<compile_context>
chip_gen: v7x
topology: tpu7x:2x2x1
jax: 0.10.0
libtpu: 0.0.40
codegen_flags: <defaults>
</compile_context>

<pallas_src>
import numpy as np
import jax
import jax.numpy as jnp
from jax.experimental import pallas as pl
from jax.experimental.pallas import tpu as pltpu

EPS = 1e-5                 # nn.BatchNorm1d default eps
ACT_DT = jnp.bfloat16      # storage dtype of the streamed pre-BN activations / weights


# ----------------------------- kernel helpers -----------------------------

def _accum_stats(y, st_ref):
    """Accumulate per-batch [sum ; sumsq] of y (rows, C) into st_ref (2, C) via the MXU."""
    rows = y.shape[0]
    ones = jnp.ones((1, rows), jnp.float32)
    s = jnp.dot(ones, y, preferred_element_type=jnp.float32)          # (1, C) sum
    ss = jnp.dot(ones, y * y, preferred_element_type=jnp.float32)     # (1, C) sum of squares

    @pl.when(pl.program_id(1) == 0)
    def _():
        st_ref[...] = jnp.zeros(st_ref.shape, st_ref.dtype)

    st_ref[0:1, :] += s
    st_ref[1:2, :] += ss


# ----------------------------- kernel bodies -------------------------------

def _mm_stats_kernel(x_ref, w_ref, b_ref, y_ref, st_ref):
    # conv1 (STN branch): y = x @ W + b ; stream pre-BN y, accumulate batch stats.
    y = jnp.dot(x_ref[...], w_ref[...], preferred_element_type=jnp.float32) + b_ref[...]
    y_ref[...] = y.astype(y_ref.dtype)
    _accum_stats(y, st_ref)


def _transform_mm_stats_kernel(x_ref, t_ref, w_ref, b_ref, y_ref, st_ref):
    # conv1 (encoder branch): apply this batch's 3x3 STN transform (bmm), then as above.
    xt = jnp.dot(x_ref[...], t_ref[...], preferred_element_type=jnp.float32)
    y = jnp.dot(xt, w_ref[...], preferred_element_type=jnp.float32) + b_ref[...]
    y_ref[...] = y.astype(y_ref.dtype)
    _accum_stats(y, st_ref)


def _bn_relu_mm_stats_kernel(hp_ref, sc_ref, sh_ref, w_ref, b_ref, y_ref, st_ref):
    # BN(prev layer, folded scale/shift) + ReLU -> matmul -> stream y, accumulate stats.
    h = jnp.maximum(hp_ref[...].astype(jnp.float32) * sc_ref[...] + sh_ref[...], 0.0)
    y = jnp.dot(h.astype(w_ref.dtype), w_ref[...],
                preferred_element_type=jnp.float32) + b_ref[...]
    y_ref[...] = y.astype(y_ref.dtype)
    _accum_stats(y, st_ref)


def _bn_relu_mm_pool_kernel(hp_ref, sc_ref, sh_ref, w_ref, b_ref, st_ref, mx_ref, mn_ref):
    # Final conv (128->1024) with the max-pool fused: BN(prev)+ReLU -> matmul ->
    # accumulate per-batch [sum;sumsq] plus running MAX and MIN of the pre-BN y.
    # The (rows, 1024) activation never leaves VMEM.
    h = jnp.maximum(hp_ref[...].astype(jnp.float32) * sc_ref[...] + sh_ref[...], 0.0)
    y = jnp.dot(h.astype(w_ref.dtype), w_ref[...],
                preferred_element_type=jnp.float32) + b_ref[...]

    @pl.when(pl.program_id(1) == 0)
    def _():
        st_ref[...] = jnp.zeros(st_ref.shape, st_ref.dtype)
        mx_ref[...] = jnp.full(mx_ref.shape, -jnp.inf, mx_ref.dtype)
        mn_ref[...] = jnp.full(mn_ref.shape, jnp.inf, mn_ref.dtype)

    rows = y.shape[0]
    ones = jnp.ones((1, rows), jnp.float32)
    st_ref[0:1, :] += jnp.dot(ones, y, preferred_element_type=jnp.float32)
    st_ref[1:2, :] += jnp.dot(ones, y * y, preferred_element_type=jnp.float32)
    mx_ref[...] = jnp.maximum(mx_ref[...], jnp.max(y, axis=0, keepdims=True))
    mn_ref[...] = jnp.minimum(mn_ref[...], jnp.min(y, axis=0, keepdims=True))


def _stn_head_kernel(g_ref, w1_ref, b1_ref, g4_ref, be4_ref,
                     w2_ref, b2_ref, g5_ref, be5_ref, w3_ref, b3_ref, out_ref):
    # (B,1024) -> fc1+bn4+relu -> fc2+bn5+relu -> fc3 (iden folded into its bias),
    # written lane-dense into (B,128); the first 9 lanes hold the 3x3 transform.
    def fc_bn_relu(h, w, b, gamma, beta):
        y = jnp.dot(h.astype(w.dtype), w, preferred_element_type=jnp.float32) + b
        mu = jnp.mean(y, axis=0, keepdims=True)
        ex2 = jnp.mean(y * y, axis=0, keepdims=True)
        scale = gamma * jax.lax.rsqrt(ex2 - mu * mu + EPS)
        return jnp.maximum(y * scale + (beta - mu * scale), 0.0)

    h = fc_bn_relu(g_ref[...], w1_ref[...], b1_ref[...], g4_ref[...], be4_ref[...])
    h = fc_bn_relu(h, w2_ref[...], b2_ref[...], g5_ref[...], be5_ref[...])
    out_ref[...] = (jnp.dot(h.astype(w3_ref.dtype), w3_ref[...],
                            preferred_element_type=jnp.float32) + b3_ref[...])


# ------------------------------- wrapper ------------------------------------

def _pick_row_tile(n, cap):
    """Largest row tile (multiple of 8, <= cap) dividing N."""
    for cand in (1024, 512, 256, 128, 64, 32, 16, 8):
        if cand <= cap and n % cand == 0:
            return cand
    # TODO(synk): pad N up to a multiple of 8 (excluding pad rows from the stats count
    # and from the running max/min) for point counts like N=2500 with no such divisor.
    return n


def pointnet_encoder(x_bcn, params):
    """x_bcn: (B, 3, N) f32 -> (global_feat (B,1024), trans (B,3,3), trans_feat=None)."""
    B, C, N = x_bcn.shape
    assert C == 3, "script instantiates PointNetEncoder(channel=3)"
    (sw1, sb1, sg1, sp1, sw2, sb2, sg2, sp2, sw3, sb3, sg3, sp3,
     fw1, fb1, fg4, fp4, fw2, fb2, fg5, fp5, fw3, fb3,
     ew1, eb1, eg1, ep1, ew2, eb2, eg2, ep2, ew3, eb3, eg3, ep3) = params

    # TODO(synk): stream x in its native (B,3,N) layout and transpose in-kernel to drop
    # this XLA pass over the input (tiny: C == 3).
    x = jnp.transpose(x_bcn, (0, 2, 1))                       # glue: NCW -> (B, N, 3)
    inv_cnt = 1.0 / float(B * N)

    tile_narrow = _pick_row_tile(N, 1024)   # conv1 / conv2 passes (128-wide stream)
    tile_wide = _pick_row_tile(N, 512)      # fused conv3+pool pass (1024-wide f32 temps)

    # ---- parameter prep (runs once under jit, outside the kernels) ----
    # conv1 padded 64 -> 128 output channels for a lane-dense bf16 activation stream;
    # padded channels have gamma = 0 so BN+ReLU maps them to exact zeros, and conv2's
    # extra zero input rows keep the math identical to the 64-channel module.
    def pad64(a):
        return jnp.pad(a, ((0, 0), (0, 64)))
    sw1p, sb1p, sg1p, sp1p = pad64(sw1), pad64(sb1), pad64(sg1), pad64(sp1)
    ew1p, eb1p, eg1p, ep1p = pad64(ew1), pad64(eb1), pad64(eg1), pad64(ep1)
    sw2p = jnp.pad(sw2, ((0, 64), (0, 0))).astype(ACT_DT)
    ew2p = jnp.pad(ew2, ((0, 64), (0, 0))).astype(ACT_DT)
    sw3b, ew3b = sw3.astype(ACT_DT), ew3.astype(ACT_DT)
    # STN fc head: bf16 weights, eye(3) folded into fc3's bias, fc3 padded to 128 lanes.
    fw1b, fw2b = fw1.astype(ACT_DT), fw2.astype(ACT_DT)
    iden9 = jnp.eye(3, dtype=jnp.float32).reshape(1, 9)
    fw3p = jnp.pad(fw3, ((0, 0), (0, 128 - fw3.shape[1]))).astype(ACT_DT)
    fb3p = jnp.pad(fb3 + iden9, ((0, 0), (0, 128 - fb3.shape[1])))

    cparams = pltpu.CompilerParams(dimension_semantics=("parallel", "arbitrary"))
    # TODO(synk): for B == 1 on v7x, split the row-tile axis across the two TensorCores
    # (extra leading dim on the accumulator outputs, reduced in the epilogue).

    def act_spec(tile, c):      # per-(batch, row-tile) activation block
        return pl.BlockSpec((None, tile, c), lambda bi, ti: (bi, ti, 0))

    def rep_spec(shape):        # grid-resident block (weights, folded BN scale/shift)
        zero = (0,) * len(shape)
        return pl.BlockSpec(shape, lambda bi, ti: zero)

    def acc_spec(r, c):         # per-batch accumulator (stats / running max / min)
        return pl.BlockSpec((None, r, c), lambda bi, ti: (bi, 0, 0))

    def bn_fold(stats, gamma, beta):
        # (B,2,C) per-batch [sum;sumsq] partials -> (1,C) training-mode BN scale/shift.
        tot = jnp.sum(stats, axis=0)
        mu = tot[0:1, :] * inv_cnt
        ex2 = tot[1:2, :] * inv_cnt
        scale = gamma * jax.lax.rsqrt(ex2 - mu * mu + EPS)
        return scale, beta - mu * scale

    def conv1_pass(trans, w, b):
        tile = tile_narrow
        arrays, specs = [x], [act_spec(tile, 3)]
        if trans is not None:
            arrays.append(trans)
            specs.append(pl.BlockSpec((None, 3, 3), lambda bi, ti: (bi, 0, 0)))
        arrays += [w, b]
        specs += [rep_spec(w.shape), rep_spec(b.shape)]
        body = _mm_stats_kernel if trans is None else _transform_mm_stats_kernel
        return pl.pallas_call(
            body, grid=(B, N // tile),
            in_specs=specs,
            out_specs=(act_spec(tile, 128), acc_spec(2, 128)),
            out_shape=(jax.ShapeDtypeStruct((B, N, 128), ACT_DT),
                       jax.ShapeDtypeStruct((B, 2, 128), jnp.float32)),
            compiler_params=cparams,
        )(*arrays)

    def conv2_pass(h, scale, shift, w, b):
        tile = tile_narrow
        return pl.pallas_call(
            _bn_relu_mm_stats_kernel, grid=(B, N // tile),
            in_specs=[act_spec(tile, 128), rep_spec(scale.shape), rep_spec(shift.shape),
                      rep_spec(w.shape), rep_spec(b.shape)],
            out_specs=(act_spec(tile, 128), acc_spec(2, 128)),
            out_shape=(jax.ShapeDtypeStruct((B, N, 128), ACT_DT),
                       jax.ShapeDtypeStruct((B, 2, 128), jnp.float32)),
            compiler_params=cparams,
        )(h, scale, shift, w, b)

    def conv3_pool_pass(h, scale, shift, w, b):
        tile = tile_wide
        return pl.pallas_call(
            _bn_relu_mm_pool_kernel, grid=(B, N // tile),
            in_specs=[act_spec(tile, 128), rep_spec(scale.shape), rep_spec(shift.shape),
                      rep_spec(w.shape), rep_spec(b.shape)],
            out_specs=(acc_spec(2, 1024), acc_spec(1, 1024), acc_spec(1, 1024)),
            out_shape=(jax.ShapeDtypeStruct((B, 2, 1024), jnp.float32),
                       jax.ShapeDtypeStruct((B, 1, 1024), jnp.float32),
                       jax.ShapeDtypeStruct((B, 1, 1024), jnp.float32)),
            compiler_params=cparams,
        )(h, scale, shift, w, b)

    def pool_epilogue(stats, mx, mn, gamma, beta, relu):
        # BN is a per-channel affine, so the max over points commutes with it:
        #   max(BN(y)) = scale > 0 ? scale*max(y)+shift : scale*min(y)+shift.
        scale, shift = bn_fold(stats, gamma, beta)
        mx2 = mx.reshape(B, -1)
        mn2 = mn.reshape(B, -1)
        pooled = jnp.where(scale > 0, scale * mx2 + shift, scale * mn2 + shift)
        return jnp.maximum(pooled, 0.0) if relu else pooled

    # ---------------- STN3d: conv chain (pool fused into conv3) -> fc head ----------------
    y1, st1 = conv1_pass(None, sw1p, sb1p)                    # (B, N, 128) bf16, stats
    sc1, sh1 = bn_fold(st1, sg1p, sp1p)
    y2, st2 = conv2_pass(y1, sc1, sh1, sw2p, sb2)             # (B, N, 128) bf16, stats
    sc2, sh2 = bn_fold(st2, sg2, sp2)
    st3, smx, smn = conv3_pool_pass(y2, sc2, sh2, sw3b, sb3)  # no (B,N,1024) stream
    g = pool_epilogue(st3, smx, smn, sg3, sp3, relu=True)     # (B, 1024)

    vm = pl.BlockSpec(memory_space=pltpu.MemorySpace.VMEM)
    t_pad = pl.pallas_call(
        _stn_head_kernel,
        in_specs=[vm] * 11,
        out_specs=vm,
        out_shape=jax.ShapeDtypeStruct((B, 128), jnp.float32),
    )(g, fw1b, fb1, fg4, fp4, fw2b, fb2, fg5, fp5, fw3p, fb3p)
    trans = t_pad[:, :9].reshape(B, 3, 3)                     # glue slice/reshape

    # ---------- encoder: bmm(x, trans) fused into conv1, then conv chain ----------
    z1, et1 = conv1_pass(trans, ew1p, eb1p)
    ec1, eh1 = bn_fold(et1, eg1p, ep1p)
    z2, et2 = conv2_pass(z1, ec1, eh1, ew2p, eb2)
    ec2, eh2 = bn_fold(et2, eg2, ep2)
    et3, emx, emn = conv3_pool_pass(z2, ec2, eh2, ew3b, eb3)
    gfeat = pool_epilogue(et3, emx, emn, eg3, ep3, relu=False)   # bn3 without ReLU

    return gfeat, trans, None   # feature_transform=False -> trans_feat is None


# --------------------------- parameters & reference ---------------------------

def init_params(key, channel=3):
    """Deterministic synthetic parameters (shapes follow the PyTorch module)."""
    keys = iter(jax.random.split(key, 64))

    def w(cin, cout):
        return jax.random.normal(next(keys), (cin, cout), jnp.float32) / np.float32(np.sqrt(cin))

    def b(c):
        return 0.01 * jax.random.normal(next(keys), (1, c), jnp.float32)

    def bn(c):
        gamma = 1.0 + 0.05 * jax.random.normal(next(keys), (1, c), jnp.float32)
        beta = 0.02 * jax.random.normal(next(keys), (1, c), jnp.float32)
        return gamma, beta

    p = []
    for cin, cout in ((channel, 64), (64, 128), (128, 1024)):   # STN conv1..3 + bn1..3
        g_, be_ = bn(cout)
        p += [w(cin, cout), b(cout), g_, be_]
    for cin, cout in ((1024, 512), (512, 256)):                 # STN fc1/fc2 + bn4/5
        g_, be_ = bn(cout)
        p += [w(cin, cout), b(cout), g_, be_]
    p += [w(256, 9), b(9)]                                      # STN fc3
    for cin, cout in ((channel, 64), (64, 128), (128, 1024)):   # encoder conv1..3 + bn1..3
        g_, be_ = bn(cout)
        p += [w(cin, cout), b(cout), g_, be_]
    return p


def _reference_forward(x_bcn, params):
    """Plain-XLA mirror of the kernel math (same bf16 casts / BN formulation)."""
    (sw1, sb1, sg1, sp1, sw2, sb2, sg2, sp2, sw3, sb3, sg3, sp3,
     fw1, fb1, fg4, fp4, fw2, fb2, fg5, fp5, fw3, fb3,
     ew1, eb1, eg1, ep1, ew2, eb2, eg2, ep2, ew3, eb3, eg3, ep3) = params
    B, C, N = x_bcn.shape
    x = jnp.transpose(x_bcn, (0, 2, 1)).reshape(B * N, C)

    def bn_apply(y_app, y_f32, gamma, beta):
        mu = jnp.mean(y_f32, axis=0, keepdims=True)
        ex2 = jnp.mean(y_f32 * y_f32, axis=0, keepdims=True)
        scale = gamma * jax.lax.rsqrt(ex2 - mu * mu + EPS)
        return y_app.astype(jnp.float32) * scale + (beta - mu * scale)

    def conv_chain(h0, w1, b1, g1, p1, w2, b2, g2, p2, w3, b3, g3, p3, last_relu):
        y = jnp.dot(h0, w1, preferred_element_type=jnp.float32) + b1
        h = jnp.maximum(bn_apply(y.astype(ACT_DT), y, g1, p1), 0.0)
        y = jnp.dot(h.astype(ACT_DT), w2.astype(ACT_DT),
                    preferred_element_type=jnp.float32) + b2
        h = jnp.maximum(bn_apply(y.astype(ACT_DT), y, g2, p2), 0.0)
        y = jnp.dot(h.astype(ACT_DT), w3.astype(ACT_DT),
                    preferred_element_type=jnp.float32) + b3
        h = bn_apply(y, y, g3, p3)          # conv3 stays f32 (pool fused in the kernel)
        return jnp.maximum(h, 0.0) if last_relu else h

    # STN3d
    h3 = conv_chain(x, sw1, sb1, sg1, sp1, sw2, sb2, sg2, sp2, sw3, sb3, sg3, sp3, True)
    g = jnp.max(h3.reshape(B, N, 1024), axis=1)

    def fc(h, w, b, gamma, beta):
        y = jnp.dot(h.astype(ACT_DT), w.astype(ACT_DT),
                    preferred_element_type=jnp.float32) + b
        mu = jnp.mean(y, axis=0, keepdims=True)
        ex2 = jnp.mean(y * y, axis=0, keepdims=True)
        scale = gamma * jax.lax.rsqrt(ex2 - mu * mu + EPS)
        return jnp.maximum(y * scale + (beta - mu * scale), 0.0)

    hh = fc(g, fw1, fb1, fg4, fp4)
    hh = fc(hh, fw2, fb2, fg5, fp5)
    t9 = (jnp.dot(hh.astype(ACT_DT), fw3.astype(ACT_DT),
                  preferred_element_type=jnp.float32) + fb3
          + jnp.eye(3, dtype=jnp.float32).reshape(1, 9))
    trans = t9.reshape(B, 3, 3)

    # input transform + encoder chain
    xt = jnp.einsum('bnd,bde->bne', x.reshape(B, N, 3), trans,
                    preferred_element_type=jnp.float32).reshape(B * N, 3)
    h3e = conv_chain(xt, ew1, eb1, eg1, ep1, ew2, eb2, eg2, ep2, ew3, eb3, eg3, ep3, False)
    gfeat = jnp.max(h3e.reshape(B, N, 1024), axis=1)
    return gfeat, trans


# ----------------------------------- main ------------------------------------

if __name__ == "__main__":
    B, C, N = 2, 3, 64
    key = jax.random.PRNGKey(0)
    kx, kp = jax.random.split(key)
    x = jax.random.normal(kx, (B, C, N), jnp.float32)
    params = init_params(kp, channel=C)

    fwd = jax.jit(pointnet_encoder)
    gfeat, trans, trans_feat = jax.block_until_ready(fwd(x, params))

    assert gfeat.shape == (B, 1024) and trans.shape == (B, 3, 3) and trans_feat is None

    with jax.default_matmul_precision("highest"):
        ref_g, ref_t = jax.jit(_reference_forward)(x, params)
    ref_g, ref_t = jax.block_until_ready((ref_g, ref_t))

    np.testing.assert_allclose(np.asarray(gfeat), np.asarray(ref_g), rtol=5e-2, atol=5e-2)
    np.testing.assert_allclose(np.asarray(trans), np.asarray(ref_t), rtol=5e-2, atol=5e-2)
    print("KERNEL_OK")
</pallas_src>

<mosaic_0001>
module attributes {stable_mosaic.version = 11 : i64} {
  func.func @_mm_stats_kernel(%arg0: i32, %arg1: i32, %arg2: memref<1x64x3xf32, #tpu.memory_space<vmem>>, %arg3: memref<3x128xf32, #tpu.memory_space<vmem>>, %arg4: memref<1x128xf32, #tpu.memory_space<vmem>>, %arg5: memref<1x64x128xbf16, #tpu.memory_space<vmem>>, %arg6: memref<1x2x128xf32, #tpu.memory_space<vmem>>) attributes {dimension_semantics = [#tpu.dimension_semantics<parallel>, #tpu.dimension_semantics<arbitrary>], iteration_bounds = array<i64: 2, 1>, scalar_prefetch = 0 : i64, scratch_operands = 0 : i64, tpu.core_type = #tpu.core_type<tc>, window_params = [{transform_indices = @transform_0, window_bounds = array<i64: 1, 64, 3>}, {pipeline_mode = #tpu.pipeline_mode<synchronous>, transform_indices = @transform_1, window_bounds = array<i64: 3, 128>}, {pipeline_mode = #tpu.pipeline_mode<synchronous>, transform_indices = @transform_2, window_bounds = array<i64: 1, 128>}, {transform_indices = @transform_3, window_bounds = array<i64: 1, 64, 128>}, {transform_indices = @transform_4, window_bounds = array<i64: 1, 2, 128>}]} {
    %c0 = arith.constant 0 : index
    %c0_0 = arith.constant 0 : index
    %c0_1 = arith.constant 0 : index
    %0 = vector.load %arg2[%c0, %c0_0, %c0_1] : memref<1x64x3xf32, #tpu.memory_space<vmem>>, vector<1x64x3xf32>
    %1 = vector.shape_cast %0 : vector<1x64x3xf32> to vector<64x3xf32>
    %c0_2 = arith.constant 0 : index
    %c0_3 = arith.constant 0 : index
    %2 = vector.load %arg3[%c0_2, %c0_3] : memref<3x128xf32, #tpu.memory_space<vmem>>, vector<3x128xf32>
    %cst = arith.constant dense<0.000000e+00> : vector<64x128xf32>
    %3 = tpu.matmul %1, %2, %cst {dimension_numbers = #tpu.dot_dimension_numbers<[1], [0], [0], [1], [0, 0, 1, 1], [], []>} : vector<64x3xf32>, vector<3x128xf32>, vector<64x128xf32> -> vector<64x128xf32>
    %c0_4 = arith.constant 0 : index
    %c0_5 = arith.constant 0 : index
    %4 = vector.load %arg4[%c0_4, %c0_5] : memref<1x128xf32, #tpu.memory_space<vmem>>, vector<1x128xf32>
    %5 = vector.broadcast %4 : vector<1x128xf32> to vector<64x128xf32>
    %6 = arith.addf %3, %5 : vector<64x128xf32>
    %7 = arith.truncf %6 : vector<64x128xf32> to vector<64x128xbf16>
    %c0_6 = arith.constant 0 : index
    %c0_7 = arith.constant 0 : index
    %c0_8 = arith.constant 0 : index
    %8 = vector.load %arg5[%c0_6, %c0_7, %c0_8] : memref<1x64x128xbf16, #tpu.memory_space<vmem>>, vector<1x64x128xbf16>
    %9 = vector.shape_cast %8 : vector<1x64x128xbf16> to vector<64x128xbf16>
    %10 = vector.shape_cast %7 : vector<64x128xbf16> to vector<1x64x128xbf16>
    tpu.vector_store %arg5[%c0_6, %c0_7, %c0_8], %10 {strides = array<i32>} : memref<1x64x128xbf16, #tpu.memory_space<vmem>>, vector<1x64x128xbf16>,
    %cst_9 = arith.constant 1.000000e+00 : f32
    %11 = vector.broadcast %cst_9 : f32 to vector<1x64xf32>
    %cst_10 = arith.constant dense<0.000000e+00> : vector<1x128xf32>
    %12 = tpu.matmul %11, %6, %cst_10 {dimension_numbers = #tpu.dot_dimension_numbers<[1], [0], [0], [1], [0, 0, 1, 1], [], []>} : vector<1x64xf32>, vector<64x128xf32>, vector<1x128xf32> -> vector<1x128xf32>
    %13 = arith.mulf %6, %6 : vector<64x128xf32>
    %cst_11 = arith.constant dense<0.000000e+00> : vector<1x128xf32>
    %14 = tpu.matmul %11, %13, %cst_11 {dimension_numbers = #tpu.dot_dimension_numbers<[1], [0], [0], [1], [0, 0, 1, 1], [], []>} : vector<1x64xf32>, vector<64x128xf32>, vector<1x128xf32> -> vector<1x128xf32>
    %c0_i32 = arith.constant 0 : i32
    %15 = arith.cmpi eq, %arg1, %c0_i32 : i32
    %16 = arith.extui %15 : i1 to i32
    %c0_i32_12 = arith.constant 0 : i32
    %17 = arith.cmpi ne, %16, %c0_i32_12 : i32
    scf.if %17 {
      %cst_24 = arith.constant 0.000000e+00 : f32
      %30 = vector.broadcast %cst_24 : f32 to vector<2x128xf32>
      %c0_25 = arith.constant 0 : index
      %c0_26 = arith.constant 0 : index
      %c0_27 = arith.constant 0 : index
      %31 = vector.load %arg6[%c0_25, %c0_26, %c0_27] : memref<1x2x128xf32, #tpu.memory_space<vmem>>, vector<1x2x128xf32>
      %32 = vector.shape_cast %31 : vector<1x2x128xf32> to vector<2x128xf32>
      %33 = vector.shape_cast %30 : vector<2x128xf32> to vector<1x2x128xf32>
      tpu.vector_store %arg6[%c0_25, %c0_26, %c0_27], %33 {strides = array<i32>} : memref<1x2x128xf32, #tpu.memory_space<vmem>>, vector<1x2x128xf32>,
    } else {
    }
    %c0_13 = arith.constant 0 : index
    %c0_14 = arith.constant 0 : index
    %c0_15 = arith.constant 0 : index
    %18 = vector.load %arg6[%c0_13, %c0_14, %c0_15] : memref<1x2x128xf32, #tpu.memory_space<vmem>>, vector<1x1x128xf32>
    %19 = vector.shape_cast %18 : vector<1x1x128xf32> to vector<1x128xf32>
    %20 = arith.addf %19, %12 : vector<1x128xf32>
    %c0_16 = arith.constant 0 : index
    %c0_17 = arith.constant 0 : index
    %c0_18 = arith.constant 0 : index
    %21 = vector.load %arg6[%c0_16, %c0_17, %c0_18] : memref<1x2x128xf32, #tpu.memory_space<vmem>>, vector<1x1x128xf32>
    %22 = vector.shape_cast %21 : vector<1x1x128xf32> to vector<1x128xf32>
    %23 = vector.shape_cast %20 : vector<1x128xf32> to vector<1x1x128xf32>
    tpu.vector_store %arg6[%c0_16, %c0_17, %c0_18], %23 {strides = array<i32>} : memref<1x2x128xf32, #tpu.memory_space<vmem>>, vector<1x1x128xf32>,
    %c0_19 = arith.constant 0 : index
    %c1 = arith.constant 1 : index
    %c0_20 = arith.constant 0 : index
    %24 = vector.load %arg6[%c0_19, %c1, %c0_20] : memref<1x2x128xf32, #tpu.memory_space<vmem>>, vector<1x1x128xf32>
    %25 = vector.shape_cast %24 : vector<1x1x128xf32> to vector<1x128xf32>
    %26 = arith.addf %25, %14 : vector<1x128xf32>
    %c0_21 = arith.constant 0 : index
    %c1_22 = arith.constant 1 : index
    %c0_23 = arith.constant 0 : index
    %27 = vector.load %arg6[%c0_21, %c1_22, %c0_23] : memref<1x2x128xf32, #tpu.memory_space<vmem>>, vector<1x1x128xf32>
    %28 = vector.shape_cast %27 : vector<1x1x128xf32> to vector<1x128xf32>
    %29 = vector.shape_cast %26 : vector<1x128xf32> to vector<1x1x128xf32>
    tpu.vector_store %arg6[%c0_21, %c1_22, %c0_23], %29 {strides = array<i32>} : memref<1x2x128xf32, #tpu.memory_space<vmem>>, vector<1x1x128xf32>,
    return
  }
  func.func @transform_0(%arg0: i32, %arg1: i32) -> (i32, i32, i32) {
    %c0_i32 = arith.constant 0 : i32
    %c0_i32_0 = arith.constant 0 : i32
    return %arg0, %arg1, %c0_i32 : i32, i32, i32
  }
  func.func @transform_1(%arg0: i32, %arg1: i32) -> (i32, i32) {
    %c0_i32 = arith.constant 0 : i32
    %c0_i32_0 = arith.constant 0 : i32
    %c0_i32_1 = arith.constant 0 : i32
    return %c0_i32, %c0_i32_0 : i32, i32
  }
  func.func @transform_2(%arg0: i32, %arg1: i32) -> (i32, i32) {
    %c0_i32 = arith.constant 0 : i32
    %c0_i32_0 = arith.constant 0 : i32
    %c0_i32_1 = arith.constant 0 : i32
    return %c0_i32, %c0_i32_0 : i32, i32
  }
  func.func @transform_3(%arg0: i32, %arg1: i32) -> (i32, i32, i32) {
    %c0_i32 = arith.constant 0 : i32
    %c0_i32_0 = arith.constant 0 : i32
    return %arg0, %arg1, %c0_i32 : i32, i32, i32
  }
  func.func @transform_4(%arg0: i32, %arg1: i32) -> (i32, i32, i32) {
    %c0_i32 = arith.constant 0 : i32
    %c0_i32_0 = arith.constant 0 : i32
    %c0_i32_1 = arith.constant 0 : i32
    return %arg0, %c0_i32, %c0_i32_0 : i32, i32, i32
  }
}

module attributes {stable_mosaic.version = 11 : i64} {
  func.func @_bn_relu_mm_stats_kernel(%arg0: i32, %arg1: i32, %arg2: memref<1x64x128xbf16, #tpu.memory_space<vmem>>, %arg3: memref<1x128xf32, #tpu.memory_space<vmem>>, %arg4: memref<1x128xf32, #tpu.memory_space<vmem>>, %arg5: memref<128x128xbf16, #tpu.memory_space<vmem>>, %arg6: memref<1x128xf32, #tpu.memory_space<vmem>>, %arg7: memref<1x64x128xbf16, #tpu.memory_space<vmem>>, %arg8: memref<1x2x128xf32, #tpu.memory_space<vmem>>) attributes {dimension_semantics = [#tpu.dimension_semantics<parallel>, #tpu.dimension_semantics<arbitrary>], iteration_bounds = array<i64: 2, 1>, scalar_prefetch = 0 : i64, scratch_operands = 0 : i64, tpu.core_type = #tpu.core_type<tc>, window_params = [{transform_indices = @transform_0, window_bounds = array<i64: 1, 64, 128>}, {pipeline_mode = #tpu.pipeline_mode<synchronous>, transform_indices = @transform_1, window_bounds = array<i64: 1, 128>}, {pipeline_mode = #tpu.pipeline_mode<synchronous>, transform_indices = @transform_2, window_bounds = array<i64: 1, 128>}, {pipeline_mode = #tpu.pipeline_mode<synchronous>, transform_indices = @transform_3, window_bounds = array<i64: 128, 128>}, {pipeline_mode = #tpu.pipeline_mode<synchronous>, transform_indices = @transform_4, window_bounds = array<i64: 1, 128>}, {transform_indices = @transform_5, window_bounds = array<i64: 1, 64, 128>}, {transform_indices = @transform_6, window_bounds = array<i64: 1, 2, 128>}]} {
    %c0 = arith.constant 0 : index
    %c0_0 = arith.constant 0 : index
    %c0_1 = arith.constant 0 : index
    %0 = vector.load %arg2[%c0, %c0_0, %c0_1] : memref<1x64x128xbf16, #tpu.memory_space<vmem>>, vector<1x64x128xbf16>
    %1 = vector.shape_cast %0 : vector<1x64x128xbf16> to vector<64x128xbf16>
    %2 = arith.extf %1 : vector<64x128xbf16> to vector<64x128xf32>
    %c0_2 = arith.constant 0 : index
    %c0_3 = arith.constant 0 : index
    %3 = vector.load %arg3[%c0_2, %c0_3] : memref<1x128xf32, #tpu.memory_space<vmem>>, vector<1x128xf32>
    %4 = vector.broadcast %3 : vector<1x128xf32> to vector<64x128xf32>
    %5 = arith.mulf %2, %4 : vector<64x128xf32>
    %c0_4 = arith.constant 0 : index
    %c0_5 = arith.constant 0 : index
    %6 = vector.load %arg4[%c0_4, %c0_5] : memref<1x128xf32, #tpu.memory_space<vmem>>, vector<1x128xf32>
    %7 = vector.broadcast %6 : vector<1x128xf32> to vector<64x128xf32>
    %8 = arith.addf %5, %7 : vector<64x128xf32>
    %cst = arith.constant 0.000000e+00 : f32
    %9 = vector.broadcast %cst : f32 to vector<64x128xf32>
    %10 = arith.maximumf %8, %9 : vector<64x128xf32>
    %11 = arith.truncf %10 : vector<64x128xf32> to vector<64x128xbf16>
    %c0_6 = arith.constant 0 : index
    %c0_7 = arith.constant 0 : index
    %12 = vector.load %arg5[%c0_6, %c0_7] : memref<128x128xbf16, #tpu.memory_space<vmem>>, vector<128x128xbf16>
    %cst_8 = arith.constant dense<0.000000e+00> : vector<64x128xf32>
    %13 = tpu.matmul %11, %12, %cst_8 {dimension_numbers = #tpu.dot_dimension_numbers<[1], [0], [0], [1], [0, 0, 1, 1], [], []>} : vector<64x128xbf16>, vector<128x128xbf16>, vector<64x128xf32> -> vector<64x128xf32>
    %c0_9 = arith.constant 0 : index
    %c0_10 = arith.constant 0 : index
    %14 = vector.load %arg6[%c0_9, %c0_10] : memref<1x128xf32, #tpu.memory_space<vmem>>, vector<1x128xf32>
    %15 = vector.broadcast %14 : vector<1x128xf32> to vector<64x128xf32>
    %16 = arith.addf %13, %15 : vector<64x128xf32>
    %17 = arith.truncf %16 : vector<64x128xf32> to vector<64x128xbf16>
    %c0_11 = arith.constant 0 : index
    %c0_12 = arith.constant 0 : index
    %c0_13 = arith.constant 0 : index
    %18 = vector.load %arg7[%c0_11, %c0_12, %c0_13] : memref<1x64x128xbf16, #tpu.memory_space<vmem>>, vector<1x64x128xbf16>
    %19 = vector.shape_cast %18 : vector<1x64x128xbf16> to vector<64x128xbf16>
    %20 = vector.shape_cast %17 : vector<64x128xbf16> to vector<1x64x128xbf16>
    tpu.vector_store %arg7[%c0_11, %c0_12, %c0_13], %20 {strides = array<i32>} : memref<1x64x128xbf16, #tpu.memory_space<vmem>>, vector<1x64x128xbf16>,
    %cst_14 = arith.constant 1.000000e+00 : f32
    %21 = vector.broadcast %cst_14 : f32 to vector<1x64xf32>
    %cst_15 = arith.constant dense<0.000000e+00> : vector<1x128xf32>
    %22 = tpu.matmul %21, %16, %cst_15 {dimension_numbers = #tpu.dot_dimension_numbers<[1], [0], [0], [1], [0, 0, 1, 1], [], []>} : vector<1x64xf32>, vector<64x128xf32>, vector<1x128xf32> -> vector<1x128xf32>
    %23 = arith.mulf %16, %16 : vector<64x128xf32>
    %cst_16 = arith.constant dense<0.000000e+00> : vector<1x128xf32>
    %24 = tpu.matmul %21, %23, %cst_16 {dimension_numbers = #tpu.dot_dimension_numbers<[1], [0], [0], [1], [0, 0, 1, 1], [], []>} : vector<1x64xf32>, vector<64x128xf32>, vector<1x128xf32> -> vector<1x128xf32>
    %c0_i32 = arith.constant 0 : i32
    %25 = arith.cmpi eq, %arg1, %c0_i32 : i32
    %26 = arith.extui %25 : i1 to i32
    %c0_i32_17 = arith.constant 0 : i32
    %27 = arith.cmpi ne, %26, %c0_i32_17 : i32
    scf.if %27 {
      %cst_29 = arith.constant 0.000000e+00 : f32
      %40 = vector.broadcast %cst_29 : f32 to vector<2x128xf32>
      %c0_30 = arith.constant 0 : index
      %c0_31 = arith.constant 0 : index
      %c0_32 = arith.constant 0 : index
      %41 = vector.load %arg8[%c0_30, %c0_31, %c0_32] : memref<1x2x128xf32, #tpu.memory_space<vmem>>, vector<1x2x128xf32>
      %42 = vector.shape_cast %41 : vector<1x2x128xf32> to vector<2x128xf32>
      %43 = vector.shape_cast %40 : vector<2x128xf32> to vector<1x2x128xf32>
      tpu.vector_store %arg8[%c0_30, %c0_31, %c0_32], %43 {strides = array<i32>} : memref<1x2x128xf32, #tpu.memory_space<vmem>>, vector<1x2x128xf32>,
    } else {
    }
    %c0_18 = arith.constant 0 : index
    %c0_19 = arith.constant 0 : index
    %c0_20 = arith.constant 0 : index
    %28 = vector.load %arg8[%c0_18, %c0_19, %c0_20] : memref<1x2x128xf32, #tpu.memory_space<vmem>>, vector<1x1x128xf32>
    %29 = vector.shape_cast %28 : vector<1x1x128xf32> to vector<1x128xf32>
    %30 = arith.addf %29, %22 : vector<1x128xf32>
    %c0_21 = arith.constant 0 : index
    %c0_22 = arith.constant 0 : index
    %c0_23 = arith.constant 0 : index
    %31 = vector.load %arg8[%c0_21, %c0_22, %c0_23] : memref<1x2x128xf32, #tpu.memory_space<vmem>>, vector<1x1x128xf32>
    %32 = vector.shape_cast %31 : vector<1x1x128xf32> to vector<1x128xf32>
    %33 = vector.shape_cast %30 : vector<1x128xf32> to vector<1x1x128xf32>
    tpu.vector_store %arg8[%c0_21, %c0_22, %c0_23], %33 {strides = array<i32>} : memref<1x2x128xf32, #tpu.memory_space<vmem>>, vector<1x1x128xf32>,
    %c0_24 = arith.constant 0 : index
    %c1 = arith.constant 1 : index
    %c0_25 = arith.constant 0 : index
    %34 = vector.load %arg8[%c0_24, %c1, %c0_25] : memref<1x2x128xf32, #tpu.memory_space<vmem>>, vector<1x1x128xf32>
    %35 = vector.shape_cast %34 : vector<1x1x128xf32> to vector<1x128xf32>
    %36 = arith.addf %35, %24 : vector<1x128xf32>
    %c0_26 = arith.constant 0 : index
    %c1_27 = arith.constant 1 : index
    %c0_28 = arith.constant 0 : index
    %37 = vector.load %arg8[%c0_26, %c1_27, %c0_28] : memref<1x2x128xf32, #tpu.memory_space<vmem>>, vector<1x1x128xf32>
    %38 = vector.shape_cast %37 : vector<1x1x128xf32> to vector<1x128xf32>
    %39 = vector.shape_cast %36 : vector<1x128xf32> to vector<1x1x128xf32>
    tpu.vector_store %arg8[%c0_26, %c1_27, %c0_28], %39 {strides = array<i32>} : memref<1x2x128xf32, #tpu.memory_space<vmem>>, vector<1x1x128xf32>,
    return
  }
  func.func @transform_0(%arg0: i32, %arg1: i32) -> (i32, i32, i32) {
    %c0_i32 = arith.constant 0 : i32
    %c0_i32_0 = arith.constant 0 : i32
    return %arg0, %arg1, %c0_i32 : i32, i32, i32
  }
  func.func @transform_1(%arg0: i32, %arg1: i32) -> (i32, i32) {
    %c0_i32 = arith.constant 0 : i32
    %c0_i32_0 = arith.constant 0 : i32
    %c0_i32_1 = arith.constant 0 : i32
    return %c0_i32, %c0_i32_0 : i32, i32
  }
  func.func @transform_2(%arg0: i32, %arg1: i32) -> (i32, i32) {
    %c0_i32 = arith.constant 0 : i32
    %c0_i32_0 = arith.constant 0 : i32
    %c0_i32_1 = arith.constant 0 : i32
    return %c0_i32, %c0_i32_0 : i32, i32
  }
  func.func @transform_3(%arg0: i32, %arg1: i32) -> (i32, i32) {
    %c0_i32 = arith.constant 0 : i32
    %c0_i32_0 = arith.constant 0 : i32
    %c0_i32_1 = arith.constant 0 : i32
    return %c0_i32, %c0_i32_0 : i32, i32
  }
  func.func @transform_4(%arg0: i32, %arg1: i32) -> (i32, i32) {
    %c0_i32 = arith.constant 0 : i32
    %c0_i32_0 = arith.constant 0 : i32
    %c0_i32_1 = arith.constant 0 : i32
    return %c0_i32, %c0_i32_0 : i32, i32
  }
  func.func @transform_5(%arg0: i32, %arg1: i32) -> (i32, i32, i32) {
    %c0_i32 = arith.constant 0 : i32
    %c0_i32_0 = arith.constant 0 : i32
    return %arg0, %arg1, %c0_i32 : i32, i32, i32
  }
  func.func @transform_6(%arg0: i32, %arg1: i32) -> (i32, i32, i32) {
    %c0_i32 = arith.constant 0 : i32
    %c0_i32_0 = arith.constant 0 : i32
    %c0_i32_1 = arith.constant 0 : i32
    return %arg0, %c0_i32, %c0_i32_0 : i32, i32, i32
  }
}

module attributes {stable_mosaic.version = 11 : i64} {
  func.func @_bn_relu_mm_pool_kernel(%arg0: i32, %arg1: i32, %arg2: memref<1x64x128xbf16, #tpu.memory_space<vmem>>, %arg3: memref<1x128xf32, #tpu.memory_space<vmem>>, %arg4: memref<1x128xf32, #tpu.memory_space<vmem>>, %arg5: memref<128x1024xbf16, #tpu.memory_space<vmem>>, %arg6: memref<1x1024xf32, #tpu.memory_space<vmem>>, %arg7: memref<1x2x1024xf32, #tpu.memory_space<vmem>>, %arg8: memref<1x1x1024xf32, #tpu.memory_space<vmem>>, %arg9: memref<1x1x1024xf32, #tpu.memory_space<vmem>>) attributes {dimension_semantics = [#tpu.dimension_semantics<parallel>, #tpu.dimension_semantics<arbitrary>], iteration_bounds = array<i64: 2, 1>, scalar_prefetch = 0 : i64, scratch_operands = 0 : i64, tpu.core_type = #tpu.core_type<tc>, window_params = [{transform_indices = @transform_0, window_bounds = array<i64: 1, 64, 128>}, {pipeline_mode = #tpu.pipeline_mode<synchronous>, transform_indices = @transform_1, window_bounds = array<i64: 1, 128>}, {pipeline_mode = #tpu.pipeline_mode<synchronous>, transform_indices = @transform_2, window_bounds = array<i64: 1, 128>}, {pipeline_mode = #tpu.pipeline_mode<synchronous>, transform_indices = @transform_3, window_bounds = array<i64: 128, 1024>}, {pipeline_mode = #tpu.pipeline_mode<synchronous>, transform_indices = @transform_4, window_bounds = array<i64: 1, 1024>}, {transform_indices = @transform_5, window_bounds = array<i64: 1, 2, 1024>}, {transform_indices = @transform_6, window_bounds = array<i64: 1, 1, 1024>}, {transform_indices = @transform_7, window_bounds = array<i64: 1, 1, 1024>}]} {
    %c0 = arith.constant 0 : index
    %c0_0 = arith.constant 0 : index
    %c0_1 = arith.constant 0 : index
    %0 = vector.load %arg2[%c0, %c0_0, %c0_1] : memref<1x64x128xbf16, #tpu.memory_space<vmem>>, vector<1x64x128xbf16>
    %1 = vector.shape_cast %0 : vector<1x64x128xbf16> to vector<64x128xbf16>
    %2 = arith.extf %1 : vector<64x128xbf16> to vector<64x128xf32>
    %c0_2 = arith.constant 0 : index
    %c0_3 = arith.constant 0 : index
    %3 = vector.load %arg3[%c0_2, %c0_3] : memref<1x128xf32, #tpu.memory_space<vmem>>, vector<1x128xf32>
    %4 = vector.broadcast %3 : vector<1x128xf32> to vector<64x128xf32>
    %5 = arith.mulf %2, %4 : vector<64x128xf32>
    %c0_4 = arith.constant 0 : index
    %c0_5 = arith.constant 0 : index
    %6 = vector.load %arg4[%c0_4, %c0_5] : memref<1x128xf32, #tpu.memory_space<vmem>>, vector<1x128xf32>
    %7 = vector.broadcast %6 : vector<1x128xf32> to vector<64x128xf32>
    %8 = arith.addf %5, %7 : vector<64x128xf32>
    %cst = arith.constant 0.000000e+00 : f32
    %9 = vector.broadcast %cst : f32 to vector<64x128xf32>
    %10 = arith.maximumf %8, %9 : vector<64x128xf32>
    %11 = arith.truncf %10 : vector<64x128xf32> to vector<64x128xbf16>
    %c0_6 = arith.constant 0 : index
    %c0_7 = arith.constant 0 : index
    %12 = vector.load %arg5[%c0_6, %c0_7] : memref<128x1024xbf16, #tpu.memory_space<vmem>>, vector<128x1024xbf16>
    %cst_8 = arith.constant dense<0.000000e+00> : vector<64x1024xf32>
    %13 = tpu.matmul %11, %12, %cst_8 {dimension_numbers = #tpu.dot_dimension_numbers<[1], [0], [0], [1], [0, 0, 1, 1], [], []>} : vector<64x128xbf16>, vector<128x1024xbf16>, vector<64x1024xf32> -> vector<64x1024xf32>
    %c0_9 = arith.constant 0 : index
    %c0_10 = arith.constant 0 : index
    %14 = vector.load %arg6[%c0_9, %c0_10] : memref<1x1024xf32, #tpu.memory_space<vmem>>, vector<1x1024xf32>
    %15 = vector.broadcast %14 : vector<1x1024xf32> to vector<64x1024xf32>
    %16 = arith.addf %13, %15 : vector<64x1024xf32>
    %c0_i32 = arith.constant 0 : i32
    %17 = arith.cmpi eq, %arg1, %c0_i32 : i32
    %18 = arith.extui %17 : i1 to i32
    %c0_i32_11 = arith.constant 0 : i32
    %19 = arith.cmpi ne, %18, %c0_i32_11 : i32
    scf.if %19 {
      %cst_40 = arith.constant 0.000000e+00 : f32
      %52 = vector.broadcast %cst_40 : f32 to vector<2x1024xf32>
      %c0_41 = arith.constant 0 : index
      %c0_42 = arith.constant 0 : index
      %c0_43 = arith.constant 0 : index
      %53 = vector.load %arg7[%c0_41, %c0_42, %c0_43] : memref<1x2x1024xf32, #tpu.memory_space<vmem>>, vector<1x2x1024xf32>
      %54 = vector.shape_cast %53 : vector<1x2x1024xf32> to vector<2x1024xf32>
      %55 = vector.shape_cast %52 : vector<2x1024xf32> to vector<1x2x1024xf32>
      tpu.vector_store %arg7[%c0_41, %c0_42, %c0_43], %55 {strides = array<i32>} : memref<1x2x1024xf32, #tpu.memory_space<vmem>>, vector<1x2x1024xf32>,
      %cst_44 = arith.constant 0xFF800000 : f32
      %56 = vector.broadcast %cst_44 : f32 to vector<1x1024xf32>
      %c0_45 = arith.constant 0 : index
      %c0_46 = arith.constant 0 : index
      %c0_47 = arith.constant 0 : index
      %57 = vector.load %arg8[%c0_45, %c0_46, %c0_47] : memref<1x1x1024xf32, #tpu.memory_space<vmem>>, vector<1x1x1024xf32>
      %58 = vector.shape_cast %57 : vector<1x1x1024xf32> to vector<1x1024xf32>
      %59 = vector.shape_cast %56 : vector<1x1024xf32> to vector<1x1x1024xf32>
      tpu.vector_store %arg8[%c0_45, %c0_46, %c0_47], %59 {strides = array<i32>} : memref<1x1x1024xf32, #tpu.memory_space<vmem>>, vector<1x1x1024xf32>,
      %cst_48 = arith.constant 0x7F800000 : f32
      %60 = vector.broadcast %cst_48 : f32 to vector<1x1024xf32>
      %c0_49 = arith.constant 0 : index
      %c0_50 = arith.constant 0 : index
      %c0_51 = arith.constant 0 : index
      %61 = vector.load %arg9[%c0_49, %c0_50, %c0_51] : memref<1x1x1024xf32, #tpu.memory_space<vmem>>, vector<1x1x1024xf32>
      %62 = vector.shape_cast %61 : vector<1x1x1024xf32> to vector<1x1024xf32>
      %63 = vector.shape_cast %60 : vector<1x1024xf32> to vector<1x1x1024xf32>
      tpu.vector_store %arg9[%c0_49, %c0_50, %c0_51], %63 {strides = array<i32>} : memref<1x1x1024xf32, #tpu.memory_space<vmem>>, vector<1x1x1024xf32>,
    } else {
    }
    %cst_12 = arith.constant 1.000000e+00 : f32
    %20 = vector.broadcast %cst_12 : f32 to vector<1x64xf32>
    %c0_13 = arith.constant 0 : index
    %c0_14 = arith.constant 0 : index
    %c0_15 = arith.constant 0 : index
    %21 = vector.load %arg7[%c0_13, %c0_14, %c0_15] : memref<1x2x1024xf32, #tpu.memory_space<vmem>>, vector<1x1x1024xf32>
    %22 = vector.shape_cast %21 : vector<1x1x1024xf32> to vector<1x1024xf32>
    %cst_16 = arith.constant dense<0.000000e+00> : vector<1x1024xf32>
    %23 = tpu.matmul %20, %16, %cst_16 {dimension_numbers = #tpu.dot_dimension_numbers<[1], [0], [0], [1], [0, 0, 1, 1], [], []>} : vector<1x64xf32>, vector<64x1024xf32>, vector<1x1024xf32> -> vector<1x1024xf32>
    %24 = arith.addf %22, %23 : vector<1x1024xf32>
    %c0_17 = arith.constant 0 : index
    %c0_18 = arith.constant 0 : index
    %c0_19 = arith.constant 0 : index
    %25 = vector.load %arg7[%c0_17, %c0_18, %c0_19] : memref<1x2x1024xf32, #tpu.memory_space<vmem>>, vector<1x1x1024xf32>
    %26 = vector.shape_cast %25 : vector<1x1x1024xf32> to vector<1x1024xf32>
    %27 = vector.shape_cast %24 : vector<1x1024xf32> to vector<1x1x1024xf32>
    tpu.vector_store %arg7[%c0_17, %c0_18, %c0_19], %27 {strides = array<i32>} : memref<1x2x1024xf32, #tpu.memory_space<vmem>>, vector<1x1x1024xf32>,
    %c0_20 = arith.constant 0 : index
    %c1 = arith.constant 1 : index
    %c0_21 = arith.constant 0 : index
    %28 = vector.load %arg7[%c0_20, %c1, %c0_21] : memref<1x2x1024xf32, #tpu.memory_space<vmem>>, vector<1x1x1024xf32>
    %29 = vector.shape_cast %28 : vector<1x1x1024xf32> to vector<1x1024xf32>
    %30 = arith.mulf %16, %16 : vector<64x1024xf32>
    %cst_22 = arith.constant dense<0.000000e+00> : vector<1x1024xf32>
    %31 = tpu.matmul %20, %30, %cst_22 {dimension_numbers = #tpu.dot_dimension_numbers<[1], [0], [0], [1], [0, 0, 1, 1], [], []>} : vector<1x64xf32>, vector<64x1024xf32>, vector<1x1024xf32> -> vector<1x1024xf32>
    %32 = arith.addf %29, %31 : vector<1x1024xf32>
    %c0_23 = arith.constant 0 : index
    %c1_24 = arith.constant 1 : index
    %c0_25 = arith.constant 0 : index
    %33 = vector.load %arg7[%c0_23, %c1_24, %c0_25] : memref<1x2x1024xf32, #tpu.memory_space<vmem>>, vector<1x1x1024xf32>
    %34 = vector.shape_cast %33 : vector<1x1x1024xf32> to vector<1x1024xf32>
    %35 = vector.shape_cast %32 : vector<1x1024xf32> to vector<1x1x1024xf32>
    tpu.vector_store %arg7[%c0_23, %c1_24, %c0_25], %35 {strides = array<i32>} : memref<1x2x1024xf32, #tpu.memory_space<vmem>>, vector<1x1x1024xf32>,
    %c0_26 = arith.constant 0 : index
    %c0_27 = arith.constant 0 : index
    %c0_28 = arith.constant 0 : index
    %36 = vector.load %arg8[%c0_26, %c0_27, %c0_28] : memref<1x1x1024xf32, #tpu.memory_space<vmem>>, vector<1x1x1024xf32>
    %37 = vector.shape_cast %36 : vector<1x1x1024xf32> to vector<1x1024xf32>
    %cst_29 = arith.constant dense<0xFF800000> : vector<1024xf32>
    %38 = vector.multi_reduction <maximumf>, %16, %cst_29 [0] : vector<64x1024xf32> to vector<1024xf32>
    %39 = vector.shape_cast %38 : vector<1024xf32> to vector<1x1024xf32>
    %40 = arith.maximumf %37, %39 : vector<1x1024xf32>
    %c0_30 = arith.constant 0 : index
    %c0_31 = arith.constant 0 : index
    %c0_32 = arith.constant 0 : index
    %41 = vector.load %arg8[%c0_30, %c0_31, %c0_32] : memref<1x1x1024xf32, #tpu.memory_space<vmem>>, vector<1x1x1024xf32>
    %42 = vector.shape_cast %41 : vector<1x1x1024xf32> to vector<1x1024xf32>
    %43 = vector.shape_cast %40 : vector<1x1024xf32> to vector<1x1x1024xf32>
    tpu.vector_store %arg8[%c0_30, %c0_31, %c0_32], %43 {strides = array<i32>} : memref<1x1x1024xf32, #tpu.memory_space<vmem>>, vector<1x1x1024xf32>,
    %c0_33 = arith.constant 0 : index
    %c0_34 = arith.constant 0 : index
    %c0_35 = arith.constant 0 : index
    %44 = vector.load %arg9[%c0_33, %c0_34, %c0_35] : memref<1x1x1024xf32, #tpu.memory_space<vmem>>, vector<1x1x1024xf32>
    %45 = vector.shape_cast %44 : vector<1x1x1024xf32> to vector<1x1024xf32>
    %cst_36 = arith.constant dense<0x7F800000> : vector<1024xf32>
    %46 = vector.multi_reduction <minimumf>, %16, %cst_36 [0] : vector<64x1024xf32> to vector<1024xf32>
    %47 = vector.shape_cast %46 : vector<1024xf32> to vector<1x1024xf32>
    %48 = arith.minimumf %45, %47 : vector<1x1024xf32>
    %c0_37 = arith.constant 0 : index
    %c0_38 = arith.constant 0 : index
    %c0_39 = arith.constant 0 : index
    %49 = vector.load %arg9[%c0_37, %c0_38, %c0_39] : memref<1x1x1024xf32, #tpu.memory_space<vmem>>, vector<1x1x1024xf32>
    %50 = vector.shape_cast %49 : vector<1x1x1024xf32> to vector<1x1024xf32>
    %51 = vector.shape_cast %48 : vector<1x1024xf32> to vector<1x1x1024xf32>
    tpu.vector_store %arg9[%c0_37, %c0_38, %c0_39], %51 {strides = array<i32>} : memref<1x1x1024xf32, #tpu.memory_space<vmem>>, vector<1x1x1024xf32>,
    return
  }
  func.func @transform_0(%arg0: i32, %arg1: i32) -> (i32, i32, i32) {
    %c0_i32 = arith.constant 0 : i32
    %c0_i32_0 = arith.constant 0 : i32
    return %arg0, %arg1, %c0_i32 : i32, i32, i32
  }
  func.func @transform_1(%arg0: i32, %arg1: i32) -> (i32, i32) {
    %c0_i32 = arith.constant 0 : i32
    %c0_i32_0 = arith.constant 0 : i32
    %c0_i32_1 = arith.constant 0 : i32
    return %c0_i32, %c0_i32_0 : i32, i32
  }
  func.func @transform_2(%arg0: i32, %arg1: i32) -> (i32, i32) {
    %c0_i32 = arith.constant 0 : i32
    %c0_i32_0 = arith.constant 0 : i32
    %c0_i32_1 = arith.constant 0 : i32
    return %c0_i32, %c0_i32_0 : i32, i32
  }
  func.func @transform_3(%arg0: i32, %arg1: i32) -> (i32, i32) {
    %c0_i32 = arith.constant 0 : i32
    %c0_i32_0 = arith.constant 0 : i32
    %c0_i32_1 = arith.constant 0 : i32
    return %c0_i32, %c0_i32_0 : i32, i32
  }
  func.func @transform_4(%arg0: i32, %arg1: i32) -> (i32, i32) {
    %c0_i32 = arith.constant 0 : i32
    %c0_i32_0 = arith.constant 0 : i32
    %c0_i32_1 = arith.constant 0 : i32
    return %c0_i32, %c0_i32_0 : i32, i32
  }
  func.func @transform_5(%arg0: i32, %arg1: i32) -> (i32, i32, i32) {
    %c0_i32 = arith.constant 0 : i32
    %c0_i32_0 = arith.constant 0 : i32
    %c0_i32_1 = arith.constant 0 : i32
    return %arg0, %c0_i32, %c0_i32_0 : i32, i32, i32
  }
  func.func @transform_6(%arg0: i32, %arg1: i32) -> (i32, i32, i32) {
    %c0_i32 = arith.constant 0 : i32
    %c0_i32_0 = arith.constant 0 : i32
    %c0_i32_1 = arith.constant 0 : i32
    return %arg0, %c0_i32, %c0_i32_0 : i32, i32, i32
  }
  func.func @transform_7(%arg0: i32, %arg1: i32) -> (i32, i32, i32) {
    %c0_i32 = arith.constant 0 : i32
    %c0_i32_0 = arith.constant 0 : i32
    %c0_i32_1 = arith.constant 0 : i32
    return %arg0, %c0_i32, %c0_i32_0 : i32, i32, i32
  }
}

module attributes {stable_mosaic.version = 11 : i64} {
  func.func @_stn_head_kernel(%arg0: memref<2x1024xf32, #tpu.memory_space<vmem>>, %arg1: memref<1024x512xbf16, #tpu.memory_space<vmem>>, %arg2: memref<1x512xf32, #tpu.memory_space<vmem>>, %arg3: memref<1x512xf32, #tpu.memory_space<vmem>>, %arg4: memref<1x512xf32, #tpu.memory_space<vmem>>, %arg5: memref<512x256xbf16, #tpu.memory_space<vmem>>, %arg6: memref<1x256xf32, #tpu.memory_space<vmem>>, %arg7: memref<1x256xf32, #tpu.memory_space<vmem>>, %arg8: memref<1x256xf32, #tpu.memory_space<vmem>>, %arg9: memref<256x128xbf16, #tpu.memory_space<vmem>>, %arg10: memref<1x128xf32, #tpu.memory_space<vmem>>, %arg11: memref<2x128xf32, #tpu.memory_space<vmem>>) attributes {dimension_semantics = [], scalar_prefetch = 0 : i64, scratch_operands = 0 : i64, tpu.core_type = #tpu.core_type<tc>} {
    %c0 = arith.constant 0 : index
    %c0_0 = arith.constant 0 : index
    %0 = vector.load %arg0[%c0, %c0_0] : memref<2x1024xf32, #tpu.memory_space<vmem>>, vector<2x1024xf32>
    %c0_1 = arith.constant 0 : index
    %c0_2 = arith.constant 0 : index
    %1 = vector.load %arg1[%c0_1, %c0_2] : memref<1024x512xbf16, #tpu.memory_space<vmem>>, vector<1024x512xbf16>
    %c0_3 = arith.constant 0 : index
    %c0_4 = arith.constant 0 : index
    %2 = vector.load %arg2[%c0_3, %c0_4] : memref<1x512xf32, #tpu.memory_space<vmem>>, vector<1x512xf32>
    %c0_5 = arith.constant 0 : index
    %c0_6 = arith.constant 0 : index
    %3 = vector.load %arg3[%c0_5, %c0_6] : memref<1x512xf32, #tpu.memory_space<vmem>>, vector<1x512xf32>
    %c0_7 = arith.constant 0 : index
    %c0_8 = arith.constant 0 : index
    %4 = vector.load %arg4[%c0_7, %c0_8] : memref<1x512xf32, #tpu.memory_space<vmem>>, vector<1x512xf32>
    %5 = arith.truncf %0 : vector<2x1024xf32> to vector<2x1024xbf16>
    %cst = arith.constant dense<0.000000e+00> : vector<2x512xf32>
    %6 = tpu.matmul %5, %1, %cst {dimension_numbers = #tpu.dot_dimension_numbers<[1], [0], [0], [1], [0, 0, 1, 1], [], []>} : vector<2x1024xbf16>, vector<1024x512xbf16>, vector<2x512xf32> -> vector<2x512xf32>
    %7 = vector.broadcast %2 : vector<1x512xf32> to vector<2x512xf32>
    %8 = arith.addf %6, %7 : vector<2x512xf32>
    %cst_9 = arith.constant dense<0.000000e+00> : vector<512xf32>
    %9 = vector.multi_reduction <add>, %8, %cst_9 [0] : vector<2x512xf32> to vector<512xf32>
    %10 = vector.shape_cast %9 : vector<512xf32> to vector<1x512xf32>
    %cst_10 = arith.constant 2.000000e+00 : f32
    %11 = vector.broadcast %cst_10 : f32 to vector<1x512xf32>
    %12 = arith.divf %10, %11 : vector<1x512xf32>
    %13 = arith.mulf %8, %8 : vector<2x512xf32>
    %cst_11 = arith.constant dense<0.000000e+00> : vector<512xf32>
    %14 = vector.multi_reduction <add>, %13, %cst_11 [0] : vector<2x512xf32> to vector<512xf32>
    %15 = vector.shape_cast %14 : vector<512xf32> to vector<1x512xf32>
    %cst_12 = arith.constant 2.000000e+00 : f32
    %16 = vector.broadcast %cst_12 : f32 to vector<1x512xf32>
    %17 = arith.divf %15, %16 : vector<1x512xf32>
    %18 = arith.mulf %12, %12 : vector<1x512xf32>
    %19 = arith.subf %17, %18 : vector<1x512xf32>
    %cst_13 = arith.constant 9.99999974E-6 : f32
    %20 = vector.broadcast %cst_13 : f32 to vector<1x512xf32>
    %21 = arith.addf %19, %20 : vector<1x512xf32>
    %22 = math.rsqrt %21 : vector<1x512xf32>
    %23 = arith.mulf %3, %22 : vector<1x512xf32>
    %24 = vector.broadcast %23 : vector<1x512xf32> to vector<2x512xf32>
    %25 = arith.mulf %8, %24 : vector<2x512xf32>
    %26 = arith.mulf %12, %23 : vector<1x512xf32>
    %27 = arith.subf %4, %26 : vector<1x512xf32>
    %28 = vector.broadcast %27 : vector<1x512xf32> to vector<2x512xf32>
    %29 = arith.addf %25, %28 : vector<2x512xf32>
    %cst_14 = arith.constant 0.000000e+00 : f32
    %30 = vector.broadcast %cst_14 : f32 to vector<2x512xf32>
    %31 = arith.maximumf %29, %30 : vector<2x512xf32>
    %c0_15 = arith.constant 0 : index
    %c0_16 = arith.constant 0 : index
    %32 = vector.load %arg5[%c0_15, %c0_16] : memref<512x256xbf16, #tpu.memory_space<vmem>>, vector<512x256xbf16>
    %c0_17 = arith.constant 0 : index
    %c0_18 = arith.constant 0 : index
    %33 = vector.load %arg6[%c0_17, %c0_18] : memref<1x256xf32, #tpu.memory_space<vmem>>, vector<1x256xf32>
    %c0_19 = arith.constant 0 : index
    %c0_20 = arith.constant 0 : index
    %34 = vector.load %arg7[%c0_19, %c0_20] : memref<1x256xf32, #tpu.memory_space<vmem>>, vector<1x256xf32>
    %c0_21 = arith.constant 0 : index
    %c0_22 = arith.constant 0 : index
    %35 = vector.load %arg8[%c0_21, %c0_22] : memref<1x256xf32, #tpu.memory_space<vmem>>, vector<1x256xf32>
    %36 = arith.truncf %31 : vector<2x512xf32> to vector<2x512xbf16>
    %cst_23 = arith.constant dense<0.000000e+00> : vector<2x256xf32>
    %37 = tpu.matmul %36, %32, %cst_23 {dimension_numbers = #tpu.dot_dimension_numbers<[1], [0], [0], [1], [0, 0, 1, 1], [], []>} : vector<2x512xbf16>, vector<512x256xbf16>, vector<2x256xf32> -> vector<2x256xf32>
    %38 = vector.broadcast %33 : vector<1x256xf32> to vector<2x256xf32>
    %39 = arith.addf %37, %38 : vector<2x256xf32>
    %cst_24 = arith.constant dense<0.000000e+00> : vector<256xf32>
    %40 = vector.multi_reduction <add>, %39, %cst_24 [0] : vector<2x256xf32> to vector<256xf32>
    %41 = vector.shape_cast %40 : vector<256xf32> to vector<1x256xf32>
    %cst_25 = arith.constant 2.000000e+00 : f32
    %42 = vector.broadcast %cst_25 : f32 to vector<1x256xf32>
    %43 = arith.divf %41, %42 : vector<1x256xf32>
    %44 = arith.mulf %39, %39 : vector<2x256xf32>
    %cst_26 = arith.constant dense<0.000000e+00> : vector<256xf32>
    %45 = vector.multi_reduction <add>, %44, %cst_26 [0] : vector<2x256xf32> to vector<256xf32>
    %46 = vector.shape_cast %45 : vector<256xf32> to vector<1x256xf32>
    %cst_27 = arith.constant 2.000000e+00 : f32
    %47 = vector.broadcast %cst_27 : f32 to vector<1x256xf32>
    %48 = arith.divf %46, %47 : vector<1x256xf32>
    %49 = arith.mulf %43, %43 : vector<1x256xf32>
    %50 = arith.subf %48, %49 : vector<1x256xf32>
    %cst_28 = arith.constant 9.99999974E-6 : f32
    %51 = vector.broadcast %cst_28 : f32 to vector<1x256xf32>
    %52 = arith.addf %50, %51 : vector<1x256xf32>
    %53 = math.rsqrt %52 : vector<1x256xf32>
    %54 = arith.mulf %34, %53 : vector<1x256xf32>
    %55 = vector.broadcast %54 : vector<1x256xf32> to vector<2x256xf32>
    %56 = arith.mulf %39, %55 : vector<2x256xf32>
    %57 = arith.mulf %43, %54 : vector<1x256xf32>
    %58 = arith.subf %35, %57 : vector<1x256xf32>
    %59 = vector.broadcast %58 : vector<1x256xf32> to vector<2x256xf32>
    %60 = arith.addf %56, %59 : vector<2x256xf32>
    %cst_29 = arith.constant 0.000000e+00 : f32
    %61 = vector.broadcast %cst_29 : f32 to vector<2x256xf32>
    %62 = arith.maximumf %60, %61 : vector<2x256xf32>
    %63 = arith.truncf %62 : vector<2x256xf32> to vector<2x256xbf16>
    %c0_30 = arith.constant 0 : index
    %c0_31 = arith.constant 0 : index
    %64 = vector.load %arg9[%c0_30, %c0_31] : memref<256x128xbf16, #tpu.memory_space<vmem>>, vector<256x128xbf16>
    %cst_32 = arith.constant dense<0.000000e+00> : vector<2x128xf32>
    %65 = tpu.matmul %63, %64, %cst_32 {dimension_numbers = #tpu.dot_dimension_numbers<[1], [0], [0], [1], [0, 0, 1, 1], [], []>} : vector<2x256xbf16>, vector<256x128xbf16>, vector<2x128xf32> -> vector<2x128xf32>
    %c0_33 = arith.constant 0 : index
    %c0_34 = arith.constant 0 : index
    %66 = vector.load %arg10[%c0_33, %c0_34] : memref<1x128xf32, #tpu.memory_space<vmem>>, vector<1x128xf32>
    %67 = vector.broadcast %66 : vector<1x128xf32> to vector<2x128xf32>
    %68 = arith.addf %65, %67 : vector<2x128xf32>
    %c0_35 = arith.constant 0 : index
    %c0_36 = arith.constant 0 : index
    %69 = vector.load %arg11[%c0_35, %c0_36] : memref<2x128xf32, #tpu.memory_space<vmem>>, vector<2x128xf32>
    tpu.vector_store %arg11[%c0_35, %c0_36], %68 {strides = array<i32>} : memref<2x128xf32, #tpu.memory_space<vmem>>, vector<2x128xf32>,
    return
  }
}

module attributes {stable_mosaic.version = 11 : i64} {
  func.func @_transform_mm_stats_kernel(%arg0: i32, %arg1: i32, %arg2: memref<1x64x3xf32, #tpu.memory_space<vmem>>, %arg3: memref<1x3x3xf32, #tpu.memory_space<vmem>>, %arg4: memref<3x128xf32, #tpu.memory_space<vmem>>, %arg5: memref<1x128xf32, #tpu.memory_space<vmem>>, %arg6: memref<1x64x128xbf16, #tpu.memory_space<vmem>>, %arg7: memref<1x2x128xf32, #tpu.memory_space<vmem>>) attributes {dimension_semantics = [#tpu.dimension_semantics<parallel>, #tpu.dimension_semantics<arbitrary>], iteration_bounds = array<i64: 2, 1>, scalar_prefetch = 0 : i64, scratch_operands = 0 : i64, tpu.core_type = #tpu.core_type<tc>, window_params = [{transform_indices = @transform_0, window_bounds = array<i64: 1, 64, 3>}, {transform_indices = @transform_1, window_bounds = array<i64: 1, 3, 3>}, {pipeline_mode = #tpu.pipeline_mode<synchronous>, transform_indices = @transform_2, window_bounds = array<i64: 3, 128>}, {pipeline_mode = #tpu.pipeline_mode<synchronous>, transform_indices = @transform_3, window_bounds = array<i64: 1, 128>}, {transform_indices = @transform_4, window_bounds = array<i64: 1, 64, 128>}, {transform_indices = @transform_5, window_bounds = array<i64: 1, 2, 128>}]} {
    %c0 = arith.constant 0 : index
    %c0_0 = arith.constant 0 : index
    %c0_1 = arith.constant 0 : index
    %0 = vector.load %arg2[%c0, %c0_0, %c0_1] : memref<1x64x3xf32, #tpu.memory_space<vmem>>, vector<1x64x3xf32>
    %1 = vector.shape_cast %0 : vector<1x64x3xf32> to vector<64x3xf32>
    %c0_2 = arith.constant 0 : index
    %c0_3 = arith.constant 0 : index
    %c0_4 = arith.constant 0 : index
    %2 = vector.load %arg3[%c0_2, %c0_3, %c0_4] : memref<1x3x3xf32, #tpu.memory_space<vmem>>, vector<1x3x3xf32>
    %3 = vector.shape_cast %2 : vector<1x3x3xf32> to vector<3x3xf32>
    %cst = arith.constant dense<0.000000e+00> : vector<64x3xf32>
    %4 = tpu.matmul %1, %3, %cst {dimension_numbers = #tpu.dot_dimension_numbers<[1], [0], [0], [1], [0, 0, 1, 1], [], []>} : vector<64x3xf32>, vector<3x3xf32>, vector<64x3xf32> -> vector<64x3xf32>
    %c0_5 = arith.constant 0 : index
    %c0_6 = arith.constant 0 : index
    %5 = vector.load %arg4[%c0_5, %c0_6] : memref<3x128xf32, #tpu.memory_space<vmem>>, vector<3x128xf32>
    %cst_7 = arith.constant dense<0.000000e+00> : vector<64x128xf32>
    %6 = tpu.matmul %4, %5, %cst_7 {dimension_numbers = #tpu.dot_dimension_numbers<[1], [0], [0], [1], [0, 0, 1, 1], [], []>} : vector<64x3xf32>, vector<3x128xf32>, vector<64x128xf32> -> vector<64x128xf32>
    %c0_8 = arith.constant 0 : index
    %c0_9 = arith.constant 0 : index
    %7 = vector.load %arg5[%c0_8, %c0_9] : memref<1x128xf32, #tpu.memory_space<vmem>>, vector<1x128xf32>
    %8 = vector.broadcast %7 : vector<1x128xf32> to vector<64x128xf32>
    %9 = arith.addf %6, %8 : vector<64x128xf32>
    %10 = arith.truncf %9 : vector<64x128xf32> to vector<64x128xbf16>
    %c0_10 = arith.constant 0 : index
    %c0_11 = arith.constant 0 : index
    %c0_12 = arith.constant 0 : index
    %11 = vector.load %arg6[%c0_10, %c0_11, %c0_12] : memref<1x64x128xbf16, #tpu.memory_space<vmem>>, vector<1x64x128xbf16>
    %12 = vector.shape_cast %11 : vector<1x64x128xbf16> to vector<64x128xbf16>
    %13 = vector.shape_cast %10 : vector<64x128xbf16> to vector<1x64x128xbf16>
    tpu.vector_store %arg6[%c0_10, %c0_11, %c0_12], %13 {strides = array<i32>} : memref<1x64x128xbf16, #tpu.memory_space<vmem>>, vector<1x64x128xbf16>,
    %cst_13 = arith.constant 1.000000e+00 : f32
    %14 = vector.broadcast %cst_13 : f32 to vector<1x64xf32>
    %cst_14 = arith.constant dense<0.000000e+00> : vector<1x128xf32>
    %15 = tpu.matmul %14, %9, %cst_14 {dimension_numbers = #tpu.dot_dimension_numbers<[1], [0], [0], [1], [0, 0, 1, 1], [], []>} : vector<1x64xf32>, vector<64x128xf32>, vector<1x128xf32> -> vector<1x128xf32>
    %16 = arith.mulf %9, %9 : vector<64x128xf32>
    %cst_15 = arith.constant dense<0.000000e+00> : vector<1x128xf32>
    %17 = tpu.matmul %14, %16, %cst_15 {dimension_numbers = #tpu.dot_dimension_numbers<[1], [0], [0], [1], [0, 0, 1, 1], [], []>} : vector<1x64xf32>, vector<64x128xf32>, vector<1x128xf32> -> vector<1x128xf32>
    %c0_i32 = arith.constant 0 : i32
    %18 = arith.cmpi eq, %arg1, %c0_i32 : i32
    %19 = arith.extui %18 : i1 to i32
    %c0_i32_16 = arith.constant 0 : i32
    %20 = arith.cmpi ne, %19, %c0_i32_16 : i32
    scf.if %20 {
      %cst_28 = arith.constant 0.000000e+00 : f32
      %33 = vector.broadcast %cst_28 : f32 to vector<2x128xf32>
      %c0_29 = arith.constant 0 : index
      %c0_30 = arith.constant 0 : index
      %c0_31 = arith.constant 0 : index
      %34 = vector.load %arg7[%c0_29, %c0_30, %c0_31] : memref<1x2x128xf32, #tpu.memory_space<vmem>>, vector<1x2x128xf32>
      %35 = vector.shape_cast %34 : vector<1x2x128xf32> to vector<2x128xf32>
      %36 = vector.shape_cast %33 : vector<2x128xf32> to vector<1x2x128xf32>
      tpu.vector_store %arg7[%c0_29, %c0_30, %c0_31], %36 {strides = array<i32>} : memref<1x2x128xf32, #tpu.memory_space<vmem>>, vector<1x2x128xf32>,
    } else {
    }
    %c0_17 = arith.constant 0 : index
    %c0_18 = arith.constant 0 : index
    %c0_19 = arith.constant 0 : index
    %21 = vector.load %arg7[%c0_17, %c0_18, %c0_19] : memref<1x2x128xf32, #tpu.memory_space<vmem>>, vector<1x1x128xf32>
    %22 = vector.shape_cast %21 : vector<1x1x128xf32> to vector<1x128xf32>
    %23 = arith.addf %22, %15 : vector<1x128xf32>
    %c0_20 = arith.constant 0 : index
    %c0_21 = arith.constant 0 : index
    %c0_22 = arith.constant 0 : index
    %24 = vector.load %arg7[%c0_20, %c0_21, %c0_22] : memref<1x2x128xf32, #tpu.memory_space<vmem>>, vector<1x1x128xf32>
    %25 = vector.shape_cast %24 : vector<1x1x128xf32> to vector<1x128xf32>
    %26 = vector.shape_cast %23 : vector<1x128xf32> to vector<1x1x128xf32>
    tpu.vector_store %arg7[%c0_20, %c0_21, %c0_22], %26 {strides = array<i32>} : memref<1x2x128xf32, #tpu.memory_space<vmem>>, vector<1x1x128xf32>,
    %c0_23 = arith.constant 0 : index
    %c1 = arith.constant 1 : index
    %c0_24 = arith.constant 0 : index
    %27 = vector.load %arg7[%c0_23, %c1, %c0_24] : memref<1x2x128xf32, #tpu.memory_space<vmem>>, vector<1x1x128xf32>
    %28 = vector.shape_cast %27 : vector<1x1x128xf32> to vector<1x128xf32>
    %29 = arith.addf %28, %17 : vector<1x128xf32>
    %c0_25 = arith.constant 0 : index
    %c1_26 = arith.constant 1 : index
    %c0_27 = arith.constant 0 : index
    %30 = vector.load %arg7[%c0_25, %c1_26, %c0_27] : memref<1x2x128xf32, #tpu.memory_space<vmem>>, vector<1x1x128xf32>
    %31 = vector.shape_cast %30 : vector<1x1x128xf32> to vector<1x128xf32>
    %32 = vector.shape_cast %29 : vector<1x128xf32> to vector<1x1x128xf32>
    tpu.vector_store %arg7[%c0_25, %c1_26, %c0_27], %32 {strides = array<i32>} : memref<1x2x128xf32, #tpu.memory_space<vmem>>, vector<1x1x128xf32>,
    return
  }
  func.func @transform_0(%arg0: i32, %arg1: i32) -> (i32, i32, i32) {
    %c0_i32 = arith.constant 0 : i32
    %c0_i32_0 = arith.constant 0 : i32
    return %arg0, %arg1, %c0_i32 : i32, i32, i32
  }
  func.func @transform_1(%arg0: i32, %arg1: i32) -> (i32, i32, i32) {
    %c0_i32 = arith.constant 0 : i32
    %c0_i32_0 = arith.constant 0 : i32
    %c0_i32_1 = arith.constant 0 : i32
    return %arg0, %c0_i32, %c0_i32_0 : i32, i32, i32
  }
  func.func @transform_2(%arg0: i32, %arg1: i32) -> (i32, i32) {
    %c0_i32 = arith.constant 0 : i32
    %c0_i32_0 = arith.constant 0 : i32
    %c0_i32_1 = arith.constant 0 : i32
    return %c0_i32, %c0_i32_0 : i32, i32
  }
  func.func @transform_3(%arg0: i32, %arg1: i32) -> (i32, i32) {
    %c0_i32 = arith.constant 0 : i32
    %c0_i32_0 = arith.constant 0 : i32
    %c0_i32_1 = arith.constant 0 : i32
    return %c0_i32, %c0_i32_0 : i32, i32
  }
  func.func @transform_4(%arg0: i32, %arg1: i32) -> (i32, i32, i32) {
    %c0_i32 = arith.constant 0 : i32
    %c0_i32_0 = arith.constant 0 : i32
    return %arg0, %arg1, %c0_i32 : i32, i32, i32
  }
  func.func @transform_5(%arg0: i32, %arg1: i32) -> (i32, i32, i32) {
    %c0_i32 = arith.constant 0 : i32
    %c0_i32_0 = arith.constant 0 : i32
    %c0_i32_1 = arith.constant 0 : i32
    return %arg0, %c0_i32, %c0_i32_0 : i32, i32, i32
  }
}

module attributes {stable_mosaic.version = 11 : i64} {
  func.func @_bn_relu_mm_stats_kernel(%arg0: i32, %arg1: i32, %arg2: memref<1x64x128xbf16, #tpu.memory_space<vmem>>, %arg3: memref<1x128xf32, #tpu.memory_space<vmem>>, %arg4: memref<1x128xf32, #tpu.memory_space<vmem>>, %arg5: memref<128x128xbf16, #tpu.memory_space<vmem>>, %arg6: memref<1x128xf32, #tpu.memory_space<vmem>>, %arg7: memref<1x64x128xbf16, #tpu.memory_space<vmem>>, %arg8: memref<1x2x128xf32, #tpu.memory_space<vmem>>) attributes {dimension_semantics = [#tpu.dimension_semantics<parallel>, #tpu.dimension_semantics<arbitrary>], iteration_bounds = array<i64: 2, 1>, scalar_prefetch = 0 : i64, scratch_operands = 0 : i64, tpu.core_type = #tpu.core_type<tc>, window_params = [{transform_indices = @transform_0, window_bounds = array<i64: 1, 64, 128>}, {pipeline_mode = #tpu.pipeline_mode<synchronous>, transform_indices = @transform_1, window_bounds = array<i64: 1, 128>}, {pipeline_mode = #tpu.pipeline_mode<synchronous>, transform_indices = @transform_2, window_bounds = array<i64: 1, 128>}, {pipeline_mode = #tpu.pipeline_mode<synchronous>, transform_indices = @transform_3, window_bounds = array<i64: 128, 128>}, {pipeline_mode = #tpu.pipeline_mode<synchronous>, transform_indices = @transform_4, window_bounds = array<i64: 1, 128>}, {transform_indices = @transform_5, window_bounds = array<i64: 1, 64, 128>}, {transform_indices = @transform_6, window_bounds = array<i64: 1, 2, 128>}]} {
    %c0 = arith.constant 0 : index
    %c0_0 = arith.constant 0 : index
    %c0_1 = arith.constant 0 : index
    %0 = vector.load %arg2[%c0, %c0_0, %c0_1] : memref<1x64x128xbf16, #tpu.memory_space<vmem>>, vector<1x64x128xbf16>
    %1 = vector.shape_cast %0 : vector<1x64x128xbf16> to vector<64x128xbf16>
    %2 = arith.extf %1 : vector<64x128xbf16> to vector<64x128xf32>
    %c0_2 = arith.constant 0 : index
    %c0_3 = arith.constant 0 : index
    %3 = vector.load %arg3[%c0_2, %c0_3] : memref<1x128xf32, #tpu.memory_space<vmem>>, vector<1x128xf32>
    %4 = vector.broadcast %3 : vector<1x128xf32> to vector<64x128xf32>
    %5 = arith.mulf %2, %4 : vector<64x128xf32>
    %c0_4 = arith.constant 0 : index
    %c0_5 = arith.constant 0 : index
    %6 = vector.load %arg4[%c0_4, %c0_5] : memref<1x128xf32, #tpu.memory_space<vmem>>, vector<1x128xf32>
    %7 = vector.broadcast %6 : vector<1x128xf32> to vector<64x128xf32>
    %8 = arith.addf %5, %7 : vector<64x128xf32>
    %cst = arith.constant 0.000000e+00 : f32
    %9 = vector.broadcast %cst : f32 to vector<64x128xf32>
    %10 = arith.maximumf %8, %9 : vector<64x128xf32>
    %11 = arith.truncf %10 : vector<64x128xf32> to vector<64x128xbf16>
    %c0_6 = arith.constant 0 : index
    %c0_7 = arith.constant 0 : index
    %12 = vector.load %arg5[%c0_6, %c0_7] : memref<128x128xbf16, #tpu.memory_space<vmem>>, vector<128x128xbf16>
    %cst_8 = arith.constant dense<0.000000e+00> : vector<64x128xf32>
    %13 = tpu.matmul %11, %12, %cst_8 {dimension_numbers = #tpu.dot_dimension_numbers<[1], [0], [0], [1], [0, 0, 1, 1], [], []>} : vector<64x128xbf16>, vector<128x128xbf16>, vector<64x128xf32> -> vector<64x128xf32>
    %c0_9 = arith.constant 0 : index
    %c0_10 = arith.constant 0 : index
    %14 = vector.load %arg6[%c0_9, %c0_10] : memref<1x128xf32, #tpu.memory_space<vmem>>, vector<1x128xf32>
    %15 = vector.broadcast %14 : vector<1x128xf32> to vector<64x128xf32>
    %16 = arith.addf %13, %15 : vector<64x128xf32>
    %17 = arith.truncf %16 : vector<64x128xf32> to vector<64x128xbf16>
    %c0_11 = arith.constant 0 : index
    %c0_12 = arith.constant 0 : index
    %c0_13 = arith.constant 0 : index
    %18 = vector.load %arg7[%c0_11, %c0_12, %c0_13] : memref<1x64x128xbf16, #tpu.memory_space<vmem>>, vector<1x64x128xbf16>
    %19 = vector.shape_cast %18 : vector<1x64x128xbf16> to vector<64x128xbf16>
    %20 = vector.shape_cast %17 : vector<64x128xbf16> to vector<1x64x128xbf16>
    tpu.vector_store %arg7[%c0_11, %c0_12, %c0_13], %20 {strides = array<i32>} : memref<1x64x128xbf16, #tpu.memory_space<vmem>>, vector<1x64x128xbf16>,
    %cst_14 = arith.constant 1.000000e+00 : f32
    %21 = vector.broadcast %cst_14 : f32 to vector<1x64xf32>
    %cst_15 = arith.constant dense<0.000000e+00> : vector<1x128xf32>
    %22 = tpu.matmul %21, %16, %cst_15 {dimension_numbers = #tpu.dot_dimension_numbers<[1], [0], [0], [1], [0, 0, 1, 1], [], []>} : vector<1x64xf32>, vector<64x128xf32>, vector<1x128xf32> -> vector<1x128xf32>
    %23 = arith.mulf %16, %16 : vector<64x128xf32>
    %cst_16 = arith.constant dense<0.000000e+00> : vector<1x128xf32>
    %24 = tpu.matmul %21, %23, %cst_16 {dimension_numbers = #tpu.dot_dimension_numbers<[1], [0], [0], [1], [0, 0, 1, 1], [], []>} : vector<1x64xf32>, vector<64x128xf32>, vector<1x128xf32> -> vector<1x128xf32>
    %c0_i32 = arith.constant 0 : i32
    %25 = arith.cmpi eq, %arg1, %c0_i32 : i32
    %26 = arith.extui %25 : i1 to i32
    %c0_i32_17 = arith.constant 0 : i32
    %27 = arith.cmpi ne, %26, %c0_i32_17 : i32
    scf.if %27 {
      %cst_29 = arith.constant 0.000000e+00 : f32
      %40 = vector.broadcast %cst_29 : f32 to vector<2x128xf32>
      %c0_30 = arith.constant 0 : index
      %c0_31 = arith.constant 0 : index
      %c0_32 = arith.constant 0 : index
      %41 = vector.load %arg8[%c0_30, %c0_31, %c0_32] : memref<1x2x128xf32, #tpu.memory_space<vmem>>, vector<1x2x128xf32>
      %42 = vector.shape_cast %41 : vector<1x2x128xf32> to vector<2x128xf32>
      %43 = vector.shape_cast %40 : vector<2x128xf32> to vector<1x2x128xf32>
      tpu.vector_store %arg8[%c0_30, %c0_31, %c0_32], %43 {strides = array<i32>} : memref<1x2x128xf32, #tpu.memory_space<vmem>>, vector<1x2x128xf32>,
    } else {
    }
    %c0_18 = arith.constant 0 : index
    %c0_19 = arith.constant 0 : index
    %c0_20 = arith.constant 0 : index
    %28 = vector.load %arg8[%c0_18, %c0_19, %c0_20] : memref<1x2x128xf32, #tpu.memory_space<vmem>>, vector<1x1x128xf32>
    %29 = vector.shape_cast %28 : vector<1x1x128xf32> to vector<1x128xf32>
    %30 = arith.addf %29, %22 : vector<1x128xf32>
    %c0_21 = arith.constant 0 : index
    %c0_22 = arith.constant 0 : index
    %c0_23 = arith.constant 0 : index
    %31 = vector.load %arg8[%c0_21, %c0_22, %c0_23] : memref<1x2x128xf32, #tpu.memory_space<vmem>>, vector<1x1x128xf32>
    %32 = vector.shape_cast %31 : vector<1x1x128xf32> to vector<1x128xf32>
    %33 = vector.shape_cast %30 : vector<1x128xf32> to vector<1x1x128xf32>
    tpu.vector_store %arg8[%c0_21, %c0_22, %c0_23], %33 {strides = array<i32>} : memref<1x2x128xf32, #tpu.memory_space<vmem>>, vector<1x1x128xf32>,
    %c0_24 = arith.constant 0 : index
    %c1 = arith.constant 1 : index
    %c0_25 = arith.constant 0 : index
    %34 = vector.load %arg8[%c0_24, %c1, %c0_25] : memref<1x2x128xf32, #tpu.memory_space<vmem>>, vector<1x1x128xf32>
    %35 = vector.shape_cast %34 : vector<1x1x128xf32> to vector<1x128xf32>
    %36 = arith.addf %35, %24 : vector<1x128xf32>
    %c0_26 = arith.constant 0 : index
    %c1_27 = arith.constant 1 : index
    %c0_28 = arith.constant 0 : index
    %37 = vector.load %arg8[%c0_26, %c1_27, %c0_28] : memref<1x2x128xf32, #tpu.memory_space<vmem>>, vector<1x1x128xf32>
    %38 = vector.shape_cast %37 : vector<1x1x128xf32> to vector<1x128xf32>
    %39 = vector.shape_cast %36 : vector<1x128xf32> to vector<1x1x128xf32>
    tpu.vector_store %arg8[%c0_26, %c1_27, %c0_28], %39 {strides = array<i32>} : memref<1x2x128xf32, #tpu.memory_space<vmem>>, vector<1x1x128xf32>,
    return
  }
  func.func @transform_0(%arg0: i32, %arg1: i32) -> (i32, i32, i32) {
    %c0_i32 = arith.constant 0 : i32
    %c0_i32_0 = arith.constant 0 : i32
    return %arg0, %arg1, %c0_i32 : i32, i32, i32
  }
  func.func @transform_1(%arg0: i32, %arg1: i32) -> (i32, i32) {
    %c0_i32 = arith.constant 0 : i32
    %c0_i32_0 = arith.constant 0 : i32
    %c0_i32_1 = arith.constant 0 : i32
    return %c0_i32, %c0_i32_0 : i32, i32
  }
  func.func @transform_2(%arg0: i32, %arg1: i32) -> (i32, i32) {
    %c0_i32 = arith.constant 0 : i32
    %c0_i32_0 = arith.constant 0 : i32
    %c0_i32_1 = arith.constant 0 : i32
    return %c0_i32, %c0_i32_0 : i32, i32
  }
  func.func @transform_3(%arg0: i32, %arg1: i32) -> (i32, i32) {
    %c0_i32 = arith.constant 0 : i32
    %c0_i32_0 = arith.constant 0 : i32
    %c0_i32_1 = arith.constant 0 : i32
    return %c0_i32, %c0_i32_0 : i32, i32
  }
  func.func @transform_4(%arg0: i32, %arg1: i32) -> (i32, i32) {
    %c0_i32 = arith.constant 0 : i32
    %c0_i32_0 = arith.constant 0 : i32
    %c0_i32_1 = arith.constant 0 : i32
    return %c0_i32, %c0_i32_0 : i32, i32
  }
  func.func @transform_5(%arg0: i32, %arg1: i32) -> (i32, i32, i32) {
    %c0_i32 = arith.constant 0 : i32
    %c0_i32_0 = arith.constant 0 : i32
    return %arg0, %arg1, %c0_i32 : i32, i32, i32
  }
  func.func @transform_6(%arg0: i32, %arg1: i32) -> (i32, i32, i32) {
    %c0_i32 = arith.constant 0 : i32
    %c0_i32_0 = arith.constant 0 : i32
    %c0_i32_1 = arith.constant 0 : i32
    return %arg0, %c0_i32, %c0_i32_0 : i32, i32, i32
  }
}

module attributes {stable_mosaic.version = 11 : i64} {
  func.func @_bn_relu_mm_pool_kernel(%arg0: i32, %arg1: i32, %arg2: memref<1x64x128xbf16, #tpu.memory_space<vmem>>, %arg3: memref<1x128xf32, #tpu.memory_space<vmem>>, %arg4: memref<1x128xf32, #tpu.memory_space<vmem>>, %arg5: memref<128x1024xbf16, #tpu.memory_space<vmem>>, %arg6: memref<1x1024xf32, #tpu.memory_space<vmem>>, %arg7: memref<1x2x1024xf32, #tpu.memory_space<vmem>>, %arg8: memref<1x1x1024xf32, #tpu.memory_space<vmem>>, %arg9: memref<1x1x1024xf32, #tpu.memory_space<vmem>>) attributes {dimension_semantics = [#tpu.dimension_semantics<parallel>, #tpu.dimension_semantics<arbitrary>], iteration_bounds = array<i64: 2, 1>, scalar_prefetch = 0 : i64, scratch_operands = 0 : i64, tpu.core_type = #tpu.core_type<tc>, window_params = [{transform_indices = @transform_0, window_bounds = array<i64: 1, 64, 128>}, {pipeline_mode = #tpu.pipeline_mode<synchronous>, transform_indices = @transform_1, window_bounds = array<i64: 1, 128>}, {pipeline_mode = #tpu.pipeline_mode<synchronous>, transform_indices = @transform_2, window_bounds = array<i64: 1, 128>}, {pipeline_mode = #tpu.pipeline_mode<synchronous>, transform_indices = @transform_3, window_bounds = array<i64: 128, 1024>}, {pipeline_mode = #tpu.pipeline_mode<synchronous>, transform_indices = @transform_4, window_bounds = array<i64: 1, 1024>}, {transform_indices = @transform_5, window_bounds = array<i64: 1, 2, 1024>}, {transform_indices = @transform_6, window_bounds = array<i64: 1, 1, 1024>}, {transform_indices = @transform_7, window_bounds = array<i64: 1, 1, 1024>}]} {
    %c0 = arith.constant 0 : index
    %c0_0 = arith.constant 0 : index
    %c0_1 = arith.constant 0 : index
    %0 = vector.load %arg2[%c0, %c0_0, %c0_1] : memref<1x64x128xbf16, #tpu.memory_space<vmem>>, vector<1x64x128xbf16>
    %1 = vector.shape_cast %0 : vector<1x64x128xbf16> to vector<64x128xbf16>
    %2 = arith.extf %1 : vector<64x128xbf16> to vector<64x128xf32>
    %c0_2 = arith.constant 0 : index
    %c0_3 = arith.constant 0 : index
    %3 = vector.load %arg3[%c0_2, %c0_3] : memref<1x128xf32, #tpu.memory_space<vmem>>, vector<1x128xf32>
    %4 = vector.broadcast %3 : vector<1x128xf32> to vector<64x128xf32>
    %5 = arith.mulf %2, %4 : vector<64x128xf32>
    %c0_4 = arith.constant 0 : index
    %c0_5 = arith.constant 0 : index
    %6 = vector.load %arg4[%c0_4, %c0_5] : memref<1x128xf32, #tpu.memory_space<vmem>>, vector<1x128xf32>
    %7 = vector.broadcast %6 : vector<1x128xf32> to vector<64x128xf32>
    %8 = arith.addf %5, %7 : vector<64x128xf32>
    %cst = arith.constant 0.000000e+00 : f32
    %9 = vector.broadcast %cst : f32 to vector<64x128xf32>
    %10 = arith.maximumf %8, %9 : vector<64x128xf32>
    %11 = arith.truncf %10 : vector<64x128xf32> to vector<64x128xbf16>
    %c0_6 = arith.constant 0 : index
    %c0_7 = arith.constant 0 : index
    %12 = vector.load %arg5[%c0_6, %c0_7] : memref<128x1024xbf16, #tpu.memory_space<vmem>>, vector<128x1024xbf16>
    %cst_8 = arith.constant dense<0.000000e+00> : vector<64x1024xf32>
    %13 = tpu.matmul %11, %12, %cst_8 {dimension_numbers = #tpu.dot_dimension_numbers<[1], [0], [0], [1], [0, 0, 1, 1], [], []>} : vector<64x128xbf16>, vector<128x1024xbf16>, vector<64x1024xf32> -> vector<64x1024xf32>
    %c0_9 = arith.constant 0 : index
    %c0_10 = arith.constant 0 : index
    %14 = vector.load %arg6[%c0_9, %c0_10] : memref<1x1024xf32, #tpu.memory_space<vmem>>, vector<1x1024xf32>
    %15 = vector.broadcast %14 : vector<1x1024xf32> to vector<64x1024xf32>
    %16 = arith.addf %13, %15 : vector<64x1024xf32>
    %c0_i32 = arith.constant 0 : i32
    %17 = arith.cmpi eq, %arg1, %c0_i32 : i32
    %18 = arith.extui %17 : i1 to i32
    %c0_i32_11 = arith.constant 0 : i32
    %19 = arith.cmpi ne, %18, %c0_i32_11 : i32
    scf.if %19 {
      %cst_40 = arith.constant 0.000000e+00 : f32
      %52 = vector.broadcast %cst_40 : f32 to vector<2x1024xf32>
      %c0_41 = arith.constant 0 : index
      %c0_42 = arith.constant 0 : index
      %c0_43 = arith.constant 0 : index
      %53 = vector.load %arg7[%c0_41, %c0_42, %c0_43] : memref<1x2x1024xf32, #tpu.memory_space<vmem>>, vector<1x2x1024xf32>
      %54 = vector.shape_cast %53 : vector<1x2x1024xf32> to vector<2x1024xf32>
      %55 = vector.shape_cast %52 : vector<2x1024xf32> to vector<1x2x1024xf32>
      tpu.vector_store %arg7[%c0_41, %c0_42, %c0_43], %55 {strides = array<i32>} : memref<1x2x1024xf32, #tpu.memory_space<vmem>>, vector<1x2x1024xf32>,
      %cst_44 = arith.constant 0xFF800000 : f32
      %56 = vector.broadcast %cst_44 : f32 to vector<1x1024xf32>
      %c0_45 = arith.constant 0 : index
      %c0_46 = arith.constant 0 : index
      %c0_47 = arith.constant 0 : index
      %57 = vector.load %arg8[%c0_45, %c0_46, %c0_47] : memref<1x1x1024xf32, #tpu.memory_space<vmem>>, vector<1x1x1024xf32>
      %58 = vector.shape_cast %57 : vector<1x1x1024xf32> to vector<1x1024xf32>
      %59 = vector.shape_cast %56 : vector<1x1024xf32> to vector<1x1x1024xf32>
      tpu.vector_store %arg8[%c0_45, %c0_46, %c0_47], %59 {strides = array<i32>} : memref<1x1x1024xf32, #tpu.memory_space<vmem>>, vector<1x1x1024xf32>,
      %cst_48 = arith.constant 0x7F800000 : f32
      %60 = vector.broadcast %cst_48 : f32 to vector<1x1024xf32>
      %c0_49 = arith.constant 0 : index
      %c0_50 = arith.constant 0 : index
      %c0_51 = arith.constant 0 : index
      %61 = vector.load %arg9[%c0_49, %c0_50, %c0_51] : memref<1x1x1024xf32, #tpu.memory_space<vmem>>, vector<1x1x1024xf32>
      %62 = vector.shape_cast %61 : vector<1x1x1024xf32> to vector<1x1024xf32>
      %63 = vector.shape_cast %60 : vector<1x1024xf32> to vector<1x1x1024xf32>
      tpu.vector_store %arg9[%c0_49, %c0_50, %c0_51], %63 {strides = array<i32>} : memref<1x1x1024xf32, #tpu.memory_space<vmem>>, vector<1x1x1024xf32>,
    } else {
    }
    %cst_12 = arith.constant 1.000000e+00 : f32
    %20 = vector.broadcast %cst_12 : f32 to vector<1x64xf32>
    %c0_13 = arith.constant 0 : index
    %c0_14 = arith.constant 0 : index
    %c0_15 = arith.constant 0 : index
    %21 = vector.load %arg7[%c0_13, %c0_14, %c0_15] : memref<1x2x1024xf32, #tpu.memory_space<vmem>>, vector<1x1x1024xf32>
    %22 = vector.shape_cast %21 : vector<1x1x1024xf32> to vector<1x1024xf32>
    %cst_16 = arith.constant dense<0.000000e+00> : vector<1x1024xf32>
    %23 = tpu.matmul %20, %16, %cst_16 {dimension_numbers = #tpu.dot_dimension_numbers<[1], [0], [0], [1], [0, 0, 1, 1], [], []>} : vector<1x64xf32>, vector<64x1024xf32>, vector<1x1024xf32> -> vector<1x1024xf32>
    %24 = arith.addf %22, %23 : vector<1x1024xf32>
    %c0_17 = arith.constant 0 : index
    %c0_18 = arith.constant 0 : index
    %c0_19 = arith.constant 0 : index
    %25 = vector.load %arg7[%c0_17, %c0_18, %c0_19] : memref<1x2x1024xf32, #tpu.memory_space<vmem>>, vector<1x1x1024xf32>
    %26 = vector.shape_cast %25 : vector<1x1x1024xf32> to vector<1x1024xf32>
    %27 = vector.shape_cast %24 : vector<1x1024xf32> to vector<1x1x1024xf32>
    tpu.vector_store %arg7[%c0_17, %c0_18, %c0_19], %27 {strides = array<i32>} : memref<1x2x1024xf32, #tpu.memory_space<vmem>>, vector<1x1x1024xf32>,
    %c0_20 = arith.constant 0 : index
    %c1 = arith.constant 1 : index
    %c0_21 = arith.constant 0 : index
    %28 = vector.load %arg7[%c0_20, %c1, %c0_21] : memref<1x2x1024xf32, #tpu.memory_space<vmem>>, vector<1x1x1024xf32>
    %29 = vector.shape_cast %28 : vector<1x1x1024xf32> to vector<1x1024xf32>
    %30 = arith.mulf %16, %16 : vector<64x1024xf32>
    %cst_22 = arith.constant dense<0.000000e+00> : vector<1x1024xf32>
    %31 = tpu.matmul %20, %30, %cst_22 {dimension_numbers = #tpu.dot_dimension_numbers<[1], [0], [0], [1], [0, 0, 1, 1], [], []>} : vector<1x64xf32>, vector<64x1024xf32>, vector<1x1024xf32> -> vector<1x1024xf32>
    %32 = arith.addf %29, %31 : vector<1x1024xf32>
    %c0_23 = arith.constant 0 : index
    %c1_24 = arith.constant 1 : index
    %c0_25 = arith.constant 0 : index
    %33 = vector.load %arg7[%c0_23, %c1_24, %c0_25] : memref<1x2x1024xf32, #tpu.memory_space<vmem>>, vector<1x1x1024xf32>
    %34 = vector.shape_cast %33 : vector<1x1x1024xf32> to vector<1x1024xf32>
    %35 = vector.shape_cast %32 : vector<1x1024xf32> to vector<1x1x1024xf32>
    tpu.vector_store %arg7[%c0_23, %c1_24, %c0_25], %35 {strides = array<i32>} : memref<1x2x1024xf32, #tpu.memory_space<vmem>>, vector<1x1x1024xf32>,
    %c0_26 = arith.constant 0 : index
    %c0_27 = arith.constant 0 : index
    %c0_28 = arith.constant 0 : index
    %36 = vector.load %arg8[%c0_26, %c0_27, %c0_28] : memref<1x1x1024xf32, #tpu.memory_space<vmem>>, vector<1x1x1024xf32>
    %37 = vector.shape_cast %36 : vector<1x1x1024xf32> to vector<1x1024xf32>
    %cst_29 = arith.constant dense<0xFF800000> : vector<1024xf32>
    %38 = vector.multi_reduction <maximumf>, %16, %cst_29 [0] : vector<64x1024xf32> to vector<1024xf32>
    %39 = vector.shape_cast %38 : vector<1024xf32> to vector<1x1024xf32>
    %40 = arith.maximumf %37, %39 : vector<1x1024xf32>
    %c0_30 = arith.constant 0 : index
    %c0_31 = arith.constant 0 : index
    %c0_32 = arith.constant 0 : index
    %41 = vector.load %arg8[%c0_30, %c0_31, %c0_32] : memref<1x1x1024xf32, #tpu.memory_space<vmem>>, vector<1x1x1024xf32>
    %42 = vector.shape_cast %41 : vector<1x1x1024xf32> to vector<1x1024xf32>
    %43 = vector.shape_cast %40 : vector<1x1024xf32> to vector<1x1x1024xf32>
    tpu.vector_store %arg8[%c0_30, %c0_31, %c0_32], %43 {strides = array<i32>} : memref<1x1x1024xf32, #tpu.memory_space<vmem>>, vector<1x1x1024xf32>,
    %c0_33 = arith.constant 0 : index
    %c0_34 = arith.constant 0 : index
    %c0_35 = arith.constant 0 : index
    %44 = vector.load %arg9[%c0_33, %c0_34, %c0_35] : memref<1x1x1024xf32, #tpu.memory_space<vmem>>, vector<1x1x1024xf32>
    %45 = vector.shape_cast %44 : vector<1x1x1024xf32> to vector<1x1024xf32>
    %cst_36 = arith.constant dense<0x7F800000> : vector<1024xf32>
    %46 = vector.multi_reduction <minimumf>, %16, %cst_36 [0] : vector<64x1024xf32> to vector<1024xf32>
    %47 = vector.shape_cast %46 : vector<1024xf32> to vector<1x1024xf32>
    %48 = arith.minimumf %45, %47 : vector<1x1024xf32>
    %c0_37 = arith.constant 0 : index
    %c0_38 = arith.constant 0 : index
    %c0_39 = arith.constant 0 : index
    %49 = vector.load %arg9[%c0_37, %c0_38, %c0_39] : memref<1x1x1024xf32, #tpu.memory_space<vmem>>, vector<1x1x1024xf32>
    %50 = vector.shape_cast %49 : vector<1x1x1024xf32> to vector<1x1024xf32>
    %51 = vector.shape_cast %48 : vector<1x1024xf32> to vector<1x1x1024xf32>
    tpu.vector_store %arg9[%c0_37, %c0_38, %c0_39], %51 {strides = array<i32>} : memref<1x1x1024xf32, #tpu.memory_space<vmem>>, vector<1x1x1024xf32>,
    return
  }
  func.func @transform_0(%arg0: i32, %arg1: i32) -> (i32, i32, i32) {
    %c0_i32 = arith.constant 0 : i32
    %c0_i32_0 = arith.constant 0 : i32
    return %arg0, %arg1, %c0_i32 : i32, i32, i32
  }
  func.func @transform_1(%arg0: i32, %arg1: i32) -> (i32, i32) {
    %c0_i32 = arith.constant 0 : i32
    %c0_i32_0 = arith.constant 0 : i32
    %c0_i32_1 = arith.constant 0 : i32
    return %c0_i32, %c0_i32_0 : i32, i32
  }
  func.func @transform_2(%arg0: i32, %arg1: i32) -> (i32, i32) {
    %c0_i32 = arith.constant 0 : i32
    %c0_i32_0 = arith.constant 0 : i32
    %c0_i32_1 = arith.constant 0 : i32
    return %c0_i32, %c0_i32_0 : i32, i32
  }
  func.func @transform_3(%arg0: i32, %arg1: i32) -> (i32, i32) {
    %c0_i32 = arith.constant 0 : i32
    %c0_i32_0 = arith.constant 0 : i32
    %c0_i32_1 = arith.constant 0 : i32
    return %c0_i32, %c0_i32_0 : i32, i32
  }
  func.func @transform_4(%arg0: i32, %arg1: i32) -> (i32, i32) {
    %c0_i32 = arith.constant 0 : i32
    %c0_i32_0 = arith.constant 0 : i32
    %c0_i32_1 = arith.constant 0 : i32
    return %c0_i32, %c0_i32_0 : i32, i32
  }
  func.func @transform_5(%arg0: i32, %arg1: i32) -> (i32, i32, i32) {
    %c0_i32 = arith.constant 0 : i32
    %c0_i32_0 = arith.constant 0 : i32
    %c0_i32_1 = arith.constant 0 : i32
    return %arg0, %c0_i32, %c0_i32_0 : i32, i32, i32
  }
  func.func @transform_6(%arg0: i32, %arg1: i32) -> (i32, i32, i32) {
    %c0_i32 = arith.constant 0 : i32
    %c0_i32_0 = arith.constant 0 : i32
    %c0_i32_1 = arith.constant 0 : i32
    return %arg0, %c0_i32, %c0_i32_0 : i32, i32, i32
  }
  func.func @transform_7(%arg0: i32, %arg1: i32) -> (i32, i32, i32) {
    %c0_i32 = arith.constant 0 : i32
    %c0_i32_0 = arith.constant 0 : i32
    %c0_i32_1 = arith.constant 0 : i32
    return %arg0, %c0_i32, %c0_i32_0 : i32, i32, i32
  }
}

</mosaic_0001>

<bundles_post_ra>
// kernel: pointnet_encoder.7
= control target key start
LH: loop header
LB: loop body
LE: loop exit
PB: predicated region body
PF: predicated region fallthrough
CT: control target
= control target key end

     0   :  { %s968_s15 = smov 0   ;;  %s970_s16 = smov 0   ;;  %s1036_s0 = inlined_call_operand.vmem [shape: f32[2,64,3], index: 0, kind: input, shape index: {}]   ;;  %s1037_s1 = inlined_call_operand.vmem [shape: f32[3,128], index: 1, kind: input, shape index: {}]   ;;  %s1038_s2 = inlined_call_operand.vmem [shape: f32[1,128], index: 2, kind: input, shape index: {}]   ;;  %s1039_s3 = inlined_call_operand.vmem [shape: bf16[2,64,128], index: 3, kind: output, shape index: {0}]   ;;  %s1040_s4 = inlined_call_operand.vmem [shape: f32[2,2,128], index: 4, kind: output, shape index: {1}]  }
   0x1   :  { %s972_s17 = smov 0  }
   0x2 LB: > { %s27_s18 = sadd.s32 1, %s933_s16  ;;  %p723_p0 = scmp.ge.s32.totalorder %s937_s17, 1  ;;  %s937_s17 = sphi %s972_s17, %s15_s17   ;;  %s933_s16 = sphi %s970_s16, %s1042_s16   ;;  %s929_s15 = sphi %s968_s15, %s1041_s15  }
   0x3   : > { %p29_p1 = scmp.ge.s32.totalorder %s27_s18, 2  ;;  %p186_p2 = scmp.lt.s32.totalorder %s937_s17, 3 }
   0x5   : > { %s1044_s18 = smov (%p29_p1, %s27_s18), 0  ;;  %p187_p3 = pnand %p723_p0, %p186_p2 }
   0x6   : > { %v256_v0 = vld [vmem:[%s1037_s1] sm:$0x7] (!%p187_p3)  ;;  %vm289_vm0 = vcmask (!%p187_p3), 1042432   ;;  %p225_p4 = scmp.lt.s32.totalorder (!%p187_p3), %s929_s15, 1  ;;  %vm264_vm1 = vcmask (!%p187_p3), 23552   ;;  %v939_v9 = vmov (!%p187_p3), 0.0|0.0  }
   0x7   : > { %190 = sbr.rel (%p187_p3) target bundleno = 468 (0x1d4), region = 32  ;;  %811 = vmatprep.subr.msk.mxu0 (!%p187_p3), %vm289_vm0, %v256_v0  ;;  %863 = vmatprep.subr.bf16.mxu1 (!%p187_p3), %v939_v9  ;;  %vm940_vm2 = vmmov (!%p187_p3), 0   ;;  %v941_v10 = vmov (!%p187_p3), 0.0   ;;  %v729_v11 = vld [vmem:[%s1038_s2] ss:$0 sm:$0xff] (!%p187_p3)  ;;  %vm438_vm3 = vcmask (!%p187_p3), 523264  }
   0x8   : > { %812 = vmatpush3.msk.msra.mxu0 (!%p187_p3), %vm289_vm0, %v256_v0  ;;  %841 = vmatprep.mubr.msk.f32.mxu1 (!%p187_p3), %vm940_vm2, %v941_v10  ;;  %v942_v44 = vmov (!%p187_p3), 1.0  }
   0x9   : > { %875 = vmatprep.subr.bf16.mxu0 (!%p187_p3), %v939_v9 }
   0xe   : > { %s1046_s15 = smov (!%p225_p4, %s929_s15), 1 }
   0xf   : > { %s751_s21 = sshll.u32 %s1046_s15, 6  ;;  %s728_s25 = sshll.u32 %s1046_s15, 1 }
  0x10   : > { %s232_s24 = scalar_lea.vmem %s1036_s0, %s751_s21  ;;  %s1007_s28 = scalar_lea.vmem %s1040_s4, %s728_s25 }
  0x11   : > { %v248_v1 = vld [vmem:[%s232_s24] sm:$0xff]  ;;  %v249_v2 = vld [vmem:[%s232_s24 + $0x8] sm:$0xff]  ;;  %v250_v3 = vld [vmem:[%s232_s24 + $0x10] sm:$0xff]  ;;  %594 = vst [vmem:[%s1007_s28] sm:$0x3] %v941_v10  ;;  %s752_s5 = sshll.u32 %s1046_s15, 5 }
  0x12   : > { %813 = vmatprep.mubr.msk.f32.mxu0 %vm264_vm1, %v248_v1  ;;  %v251_v4 = vld [vmem:[%s232_s24 + $0x18] sm:$0xff]  ;;  %v252_v5 = vld [vmem:[%s232_s24 + $0x20] sm:$0xff]  ;;  %v253_v6 = vld [vmem:[%s232_s24 + $0x28] sm:$0xff]  ;;  %s1017_s8 = scalar_lea.vmem %s1039_s3, %s752_s5 }
  0x13   : > { %814 = vmatmul.mubr.msk.f32.vlgmr.msra.gmra.mrb[0].mxu0 %vm264_vm1, %v249_v2  ;;  %v254_v7 = vld [vmem:[%s232_s24 + $0x30] sm:$0xff]  ;;  %v255_v8 = vld [vmem:[%s232_s24 + $0x38] sm:$0xff] }
  0x14   : > { %816 = vmatprep.mubr.msk.f32.mxu0 %vm264_vm1, %v250_v3 }
  0x17   : > { %817 = vmatmul.mubr.msk.f32.gmra.mrb[2].mxu0 %vm264_vm1, %v251_v4 }
  0x18   : > { %819 = vmatprep.mubr.msk.f32.mxu0 %vm264_vm1, %v252_v5  ;;  %v595_v45 = vld [vmem:[%s1007_s28] sm:$0x1]  ;;  %v598_v47 = vld [vmem:[%s1007_s28 + $0x1] sm:$0x1] }
  0x1b   : > { %820 = vmatmul.mubr.msk.f32.gmra.mrb[4].mxu0 %vm264_vm1, %v253_v6 }
  0x1c   : > { %822 = vmatprep.mubr.msk.f32.mxu0 %vm264_vm1, %v254_v7 }
  0x1f   : > { %823 = vmatmul.mubr.msk.f32.gmra.mrb[6].mxu0 %vm264_vm1, %v255_v8 }
  0x20   : > { %860 = vmatprep.mubr.msk.f32.mxu0 %vm940_vm2, %v941_v10 }
  0xe6   : > { %v815_v12 = vpop.f32.mrb[0].mxu0 }
  0xe7   : > { %v365_v13 = vadd.f32 %v815_v12, %v729_v11  ;;  %v359_v14 = vpop.f32.mrb[1].mxu0 }
  0xe8   : > { %v360_v15 = vadd.f32 %v729_v11, %v359_v14 }
  0xe9   : > { %v513_v16 = vmul.f32 %v365_v13, %v365_v13 }
  0xea   : > { %v512_v17 = vmul.f32 %v360_v15, %v360_v15  ;;  %v818_v18 = vpop.f32.mrb[2].mxu0  ;;  %v764_v19 = vpack.c.bf16 %v365_v13, %v360_v15 }
  0xeb   : > { %v375_v20 = vadd.f32 %v818_v18, %v729_v11  ;;  %v369_v21 = vpop.f32.mrb[3].mxu0 }
  0xec   : > { %v876_v22 = vpack.c.bf16 %v513_v16, %v512_v17  ;;  %v370_v23 = vadd.f32 %v729_v11, %v369_v21  ;;  %765 = vst [vmem:[%s1017_s8] sm:$0xff] %v764_v19   ;;  %865 = vmatpush3.bf16.msra.mxu1 %v764_v19 }
  0xed   : > { %v515_v24 = vmul.f32 %v375_v20, %v375_v20  ;;  %866 = vmatprep.subr.bf16.mxu1 %v939_v9 }
  0xee   : > { %v769_v25 = vpack.c.bf16 %v375_v20, %v370_v23  ;;  %v514_v26 = vmul.f32 %v370_v23, %v370_v23  ;;  %v821_v27 = vpop.f32.mrb[4].mxu0  ;;  %877 = vmatpush3.bf16.msra.mxu0 %v876_v22 }
  0xef   : > { %v385_v28 = vadd.f32 %v821_v27, %v729_v11  ;;  %v379_v29 = vpop.f32.mrb[5].mxu0  ;;  %878 = vmatprep.subr.bf16.mxu0 %v939_v9 }
  0xf0   : > { %781 = vst [vmem:[%s1017_s8 + $0x8] sm:$0xff] %v769_v25   ;;  %v879_v30 = vpack.c.bf16 %v515_v24, %v514_v26  ;;  %v380_v31 = vadd.f32 %v729_v11, %v379_v29  ;;  %868 = vmatpush3.bf16.msra.mxu1 %v769_v25 }
  0xf1   : > { %v517_v32 = vmul.f32 %v385_v28, %v385_v28  ;;  %869 = vmatprep.subr.bf16.mxu1 %v939_v9 }
  0xf2   : > { %v774_v33 = vpack.c.bf16 %v385_v28, %v380_v31  ;;  %v516_v34 = vmul.f32 %v380_v31, %v380_v31  ;;  %v824_v35 = vpop.f32.mrb[6].mxu0  ;;  %880 = vmatpush3.bf16.msra.mxu0 %v879_v30 }
  0xf3   : > { %v395_v36 = vadd.f32 %v824_v35, %v729_v11  ;;  %v389_v37 = vpop.f32.mrb[7].mxu0  ;;  %881 = vmatprep.subr.bf16.mxu0 %v939_v9 }
  0xf4   : > { %782 = vst [vmem:[%s1017_s8 + $0x10] sm:$0xff] %v774_v33   ;;  %v882_v38 = vpack.c.bf16 %v517_v32, %v516_v34  ;;  %v390_v39 = vadd.f32 %v729_v11, %v389_v37  ;;  %871 = vmatpush3.bf16.msra.mxu1 %v774_v33 }
  0xf5   : > { %v519_v40 = vmul.f32 %v395_v36, %v395_v36  ;;  %872 = vmatprep.subr.bf16.mxu1 %v939_v9 }
  0xf6   : > { %v779_v41 = vpack.c.bf16 %v395_v36, %v390_v39  ;;  %v518_v42 = vmul.f32 %v390_v39, %v390_v39  ;;  %883 = vmatpush3.bf16.msra.mxu0 %v882_v38 }
  0xf7   : > { %884 = vmatprep.subr.bf16.mxu0 %v939_v9 }
  0xf8   : > { %783 = vst [vmem:[%s1017_s8 + $0x18] sm:$0xff] %v779_v41   ;;  %v885_v43 = vpack.c.bf16 %v519_v40, %v518_v42  ;;  %874 = vmatpush3.bf16.msra.mxu1 %v779_v41 }
  0xfa   : > { %886 = vmatpush3.bf16.msra.mxu0 %v885_v43 }
  0xfb   : > { %842 = vmatmul.mubr.msk.f32.vlgmr.msra.gmra.mrb[0].mxu1 %vm438_vm3, %v942_v44 }
  0xfd   : > { %861 = vmatmul.mubr.msk.f32.vlgmr.msra.gmra.mrb[8].mxu0 %vm438_vm3, %v942_v44 }
 0x1ce   : > { %v508_v46 = vpop.f32.mrb[0].mxu1 }
 0x1cf   : > { %v596_v48 = vadd.f32 %v595_v45, %v508_v46  ;;  %v843_v49 = vpop.f32.mrb[1].mxu1 }
 0x1d0   : > { %v586_v50 = vpop.f32.mrb[8].mxu0 }
 0x1d1   : > { %597 = vst [vmem:[%s1007_s28] sm:$0x1] %v596_v48  ;;  %v599_v51 = vadd.f32 %v598_v47, %v586_v50  ;;  %v862_v52 = vpop.f32.mrb[9].mxu0 }
 0x1d3   : > { %600 = vst [vmem:[%s1007_s28 + $0x1] sm:$0x1] %v599_v51 }
 0x1d4 PF: > { %s15_s17 = sadd.s32 1, %s937_s17   ;;  %s1041_s15 = smov %s933_s16 }
 0x1d5   : > { %p12_p5 = scmp.ge.s32.totalorder %s15_s17, 4   ;;  %s1042_s16 = smov %s1044_s18 }
 0x1d7   :  { %14 = sbr.rel (!%p12_p5) target bundleno = 2 (0x2), region = 78 }

// kernel: pointnet_encoder.8
= control target key start
LH: loop header
LB: loop body
LE: loop exit
PB: predicated region body
PF: predicated region fallthrough
CT: control target
= control target key end

     0   :  { %12 = vsyncpa [#allocation3], 0  ;;  %s1189_s21 = smov 0   ;;  %s1191_s22 = smov 0   ;;  %s1327_s0 = inlined_call_operand.vmem [shape: bf16[2,64,128], index: 0, kind: input, shape index: {}]   ;;  %s1328_s1 = inlined_call_operand.vmem [shape: f32[1,128], index: 1, kind: input, shape index: {}]   ;;  %s1329_s2 = inlined_call_operand.vmem [shape: f32[1,128], index: 2, kind: input, shape index: {}]   ;;  %s1330_s3 = inlined_call_operand.vmem [shape: bf16[128,128], index: 3, kind: input, shape index: {}]   ;;  %s1331_s4 = inlined_call_operand.hbm [shape: f32[1,128], index: 4, kind: input, shape index: {}]   ;;  %s1332_s5 = inlined_call_operand.vmem [shape: bf16[2,64,128], index: 5, kind: output, shape index: {0}]   ;;  %s1333_s6 = inlined_call_operand.vmem [shape: f32[2,2,128], index: 6, kind: output, shape index: {1}]  }
   0x1   :  { %s1193_s23 = smov 0  }
   0x2 LB: > { %s843_s24 = sadd.s32 4294967295, %s1147_s23   ;;  %s30_s25 = sadd.s32 1, %s1143_s22  ;;  %s1147_s23 = sphi %s1193_s23, %s18_s23   ;;  %s1143_s22 = sphi %s1191_s22, %s1343_s22   ;;  %s1139_s21 = sphi %s1189_s21, %s1342_s21  }
   0x3   : > { %p32_p0 = scmp.ge.s32.totalorder %s30_s25, 2  ;;  %p845_p1 = scmp.ge.s32.totalorder %s1147_s23, 1 }
   0x4   : > { %p201_p2 = scmp.lt.s32.totalorder %s1147_s23, 3  ;;  %p1214_p4 = scmp.eq.s32.totalorder %s843_s24, 0 }
   0x5   : > { %s1345_s25 = smov (%p32_p0, %s30_s25), 0  ;;  %s1149_s28 = smov [#allocation2]  }
   0x6   : > { %p1210_p3 = pnand %p845_p1, %p201_p2  ;;  %s223_s29 = sshll.u32 %s1149_s28, 4  ;;  %s224_s29 = int_to_ptr.vmem [resolvable:$true] %s223_s29 }
   0x7   : > { %s1338_s27 = scalar_select %p1214_p4, 1, 0 }
   0x8   : > { %s1337_s26 = scalar_select %p1210_p3, 1, 0 }
   0x9   : > { %p1050_p5 = pneg %p1210_p3  ;;  %s1093_s9 = scalar_lea.hbm %s1331_s4, 16 }
   0xa   : > { %p1094_p7 = scmp.ne.s32.totalorder %s1331_s4, %s1093_s9  ;;  %p1100_p11 = scmp.lt.u32.totalorder %s1093_s9, %s1331_s4 }
   0xb   : > { %p1222_p6 = pnand %p1214_p4, %p1050_p5 }
   0xd   : > { %p1095_p8 = pneg %p1222_p6 }
   0xf   : > { %p1096_p9 = pnand %p1095_p8, %p1094_p7 }
  0x11   : > { %p1097_p10 = pneg %p1096_p9 }
  0x13   : > { %p1102_p12 = pnand %p1100_p11, %p1097_p10 }
  0x15   : > { %1105 = shalt.err (!%p1102_p12)
}
  0x16   : > { %s1106_s14 = scalar_lea.vmem %s224_s29, 16  ;;  %s1113_s15 = scalar_lea.vmem %s224_s29, 32 }
  0x17   : > { %p1107_p13 = scmp.ne.s32.totalorder %s224_s29, %s1106_s14  ;;  %p1114_p2 = scmp.lt.s32.totalorder %s224_s29, %s224_s29 }
  0x18   : > { %p1115_p5 = scmp.lt.s32.totalorder %s1113_s15, %s1106_s14 }
  0x19   : > { %p1109_p0 = pnand %p1107_p13, %p1095_p8 }
  0x1a   : > { %p1116_p4 = por %p1115_p5, %p1114_p2 }
  0x1b   : > { %p1110_p1 = pneg %p1109_p0 }
  0x1d   : > { %p1117_p3 = pnand %p1116_p4, %p1110_p1 }
  0x1f   : > { %1120 = shalt.err (!%p1117_p3)
}
  0x20   : > { %1053 = dma.hbm_to_vmem [thread:$0]  (!%p1222_p6), %s1331_s4, 16, %s224_s29, [#allocation3]  }
  0x21   : > { %p1340_p7 = scmp.ne.s32.totalorder %s1337_s26, 0 }
  0x22   : > { %p1341_p9 = scmp.ne.s32.totalorder (!%p1340_p7), %s1338_s27, 0 }
  0x23   : > { %249 = sbr.rel (%p1340_p7) target bundleno = 541 (0x21d), region = 40 }
  0x2a   : > { %1134 = dma.done.wait (%p1341_p9), [#allocation3], 16  }
  0x2b   : > { %1136 = vsyncadd (%p1341_p9), [#allocation3], 4294967280  ;;  %p292_p8 = scmp.lt.s32.totalorder %s1139_s21, 1  ;;  %v1085_v0 = vld [vmem:[%s1330_s3] sm:$0xff]   ;;  %v1086_v1 = vld [vmem:[%s1330_s3 + $0x8] sm:$0xff]   ;;  %v1150_v50 = vmov 0.0|0.0  }
  0x2c   : > { %960 = vmatprep.subr.bf16.mxu0 %v1085_v0  ;;  %v1087_v2 = vld [vmem:[%s1330_s3 + $0x10] sm:$0xff]   ;;  %v1088_v3 = vld [vmem:[%s1330_s3 + $0x18] sm:$0xff]   ;;  %v855_v5 = vld [vmem:[%s1328_s1] ss:$0 sm:$0xff]  ;;  %1022 = vmatprep.subr.bf16.mxu1 %v1150_v50  ;;  %vm1151_vm0 = vmmov 0   ;;  %v1152_v51 = vmov 0.0  }
  0x2d   : > { %s1347_s21 = smov (!%p292_p8, %s1139_s21), 1  ;;  %961 = vmatpush3.bf16.msra.mxu0 %v1085_v0  ;;  %v856_v8 = vld [vmem:[%s1329_s2] ss:$0 sm:$0xff]  ;;  %v1090_v22 = vld [vmem:[%s1330_s3 + $0x28] sm:$0xff]   ;;  %v1091_v29 = vld [vmem:[%s1330_s3 + $0x30] sm:$0xff]   ;;  %1000 = vmatprep.mubr.msk.f32.mxu1 %vm1151_vm0, %v1152_v51  ;;  %vm550_vm1 = vcmask 523264  }
  0x2e   : > { %s878_s26 = sshll.u32 %s1347_s21, 5  ;;  %962 = vmatprep.subr.bf16.mxu0 %v1086_v1  ;;  %v1089_v12 = vld [vmem:[%s1330_s3 + $0x20] sm:$0xff]   ;;  %v1092_v36 = vld [vmem:[%s1330_s3 + $0x38] sm:$0xff]   ;;  %s854_s27 = sshll.u32 %s1347_s21, 1 }
  0x2f   : > { %s1267_s7 = scalar_lea.vmem %s1327_s0, %s878_s26  ;;  %s1298_s30 = scalar_lea.vmem %s1333_s6, %s854_s27  ;;  %v857_v52 = vld [vmem:[#allocation2] ss:$0 sm:$0xff] }
  0x30   : > { %v889_v4 = vld [vmem:[%s1267_s7] sm:$0xff]   ;;  %v924_v11 = vld [vmem:[%s1267_s7 + $0x8] sm:$0xff]   ;;  %v925_v13 = vld [vmem:[%s1267_s7 + $0x10] sm:$0xff]   ;;  %706 = vst [vmem:[%s1298_s30] sm:$0x3] %v1152_v51  ;;  %s1307_s9 = scalar_lea.vmem %s1332_s5, %s878_s26 }
  0x31   : > { %963 = vmatpush3.bf16.msra.mxu0 %v1086_v1  ;;  %v890_v6 = vunpack.c.l.bf16 %v889_v4  ;;  %v891_v7 = vunpack.c.h.bf16 %v889_v4  ;;  %v894_v16 = vunpack.c.l.bf16 %v924_v11  ;;  %v895_v17 = vunpack.c.h.bf16 %v924_v11  ;;  %v926_v28 = vld [vmem:[%s1267_s7 + $0x18] sm:$0xff]  }
  0x32   : > { %964 = vmatprep.subr.bf16.mxu0 %v1087_v2  ;;  %v898_v20 = vunpack.c.l.bf16 %v925_v13  ;;  %v899_v21 = vunpack.c.h.bf16 %v925_v13  ;;  %v902_v32 = vunpack.c.l.bf16 %v926_v28  ;;  %v903_v33 = vunpack.c.h.bf16 %v926_v28 }
  0x33   : > { %v339_v9 = vmul.f32 %v890_v6, %v855_v5  ;;  %v340_v10 = vmul.f32 %v891_v7, %v855_v5  ;;  %v341_v24 = vmul.f32 %v894_v16, %v855_v5  ;;  %v342_v25 = vmul.f32 %v895_v17, %v855_v5 }
  0x34   : > { %v343_v26 = vmul.f32 %v898_v20, %v855_v5  ;;  %v344_v27 = vmul.f32 %v899_v21, %v855_v5  ;;  %v345_v39 = vmul.f32 %v902_v32, %v855_v5  ;;  %v346_v40 = vmul.f32 %v903_v33, %v855_v5 }
  0x35   : > { %965 = vmatpush3.bf16.msra.mxu0 %v1087_v2  ;;  %v354_v14 = vadd.f32 %v856_v8, %v339_v9  ;;  %v355_v15 = vadd.f32 %v856_v8, %v340_v10  ;;  %v356_v30 = vadd.f32 %v856_v8, %v341_v24  ;;  %v357_v31 = vadd.f32 %v856_v8, %v342_v25 }
  0x36   : > { %966 = vmatprep.subr.bf16.mxu0 %v1088_v3  ;;  %v358_v34 = vadd.f32 %v856_v8, %v343_v26  ;;  %v359_v35 = vadd.f32 %v856_v8, %v344_v27  ;;  %v360_v44 = vadd.f32 %v856_v8, %v345_v39  ;;  %v361_v45 = vadd.f32 %v856_v8, %v346_v40 }
  0x37   : > { %v362_v18 = vmax.f32 %v354_v14, 0.0  ;;  %v363_v19 = vmax.f32 %v355_v15, 0.0  ;;  %v364_v37 = vmax.f32 %v356_v30, 0.0  ;;  %v365_v38 = vmax.f32 %v357_v31, 0.0  ;;  %v710_v26 = vld [vmem:[%s1298_s30 + $0x1] sm:$0x1] }
  0x38   : > { %v366_v41 = vmax.f32 %v358_v34, 0.0  ;;  %v367_v42 = vmax.f32 %v359_v35, 0.0  ;;  %v368_v47 = vmax.f32 %v360_v44, 0.0  ;;  %v369_v48 = vmax.f32 %v361_v45, 0.0 }
  0x39   : > { %967 = vmatpush3.bf16.msra.mxu0 %v1088_v3  ;;  %v370_v23 = vpack.c.bf16 %v363_v19, %v362_v18  ;;  %v371_v43 = vpack.c.bf16 %v365_v38, %v364_v37  ;;  %v1153_v21 = vmov 1.0  }
  0x3a   : > { %968 = vmatprep.subr.bf16.mxu0 %v1089_v12  ;;  %v372_v46 = vpack.c.bf16 %v367_v42, %v366_v41  ;;  %v373_v49 = vpack.c.bf16 %v369_v48, %v368_v47 }
  0x3b   : > { %976 = vmatprep.mubr.bf16.mxu0 %v370_v23 }
  0x3d   : > { %969 = vmatpush3.bf16.msra.mxu0 %v1089_v12 }
  0x3e   : > { %970 = vmatprep.subr.bf16.mxu0 %v1090_v22 }
  0x41   : > { %971 = vmatpush3.bf16.msra.mxu0 %v1090_v22  ;;  %v707_v22 = vld [vmem:[%s1298_s30] sm:$0x1] }
  0x42   : > { %972 = vmatprep.subr.bf16.mxu0 %v1091_v29 }
  0x45   : > { %973 = vmatpush3.bf16.msra.mxu0 %v1091_v29 }
  0x46   : > { %974 = vmatprep.subr.bf16.mxu0 %v1092_v36 }
  0x49   : > { %975 = vmatpush3.bf16.msra.mxu0 %v1092_v36 }
  0x4c   : > { %977 = vmatmul.mubr.bf16.vlgmr.msra.gmra.mrb[0].mxu0 %v371_v43 }
  0x4d   : > { %980 = vmatprep.mubr.bf16.mxu0 %v372_v46 }
  0x54   : > { %981 = vmatmul.mubr.bf16.gmra.mrb[4].mxu0 %v373_v49 }
 0x11f   : > { %v978_v53 = vpop.f32.mrb[0].mxu0 }
 0x120   : > { %v488_v54 = vadd.f32 %v978_v53, %v857_v52  ;;  %v479_v55 = vpop.f32.mrb[1].mxu0 }
 0x121   : > { %v480_v56 = vadd.f32 %v857_v52, %v479_v55  ;;  %v979_v57 = vpop.f32.mrb[2].mxu0 }
 0x122   : > { %v491_v58 = vadd.f32 %v979_v57, %v857_v52  ;;  %v482_v59 = vpop.f32.mrb[3].mxu0  ;;  %v626_v61 = vmul.f32 %v488_v54, %v488_v54 }
 0x123   : > { %v483_v60 = vadd.f32 %v857_v52, %v482_v59  ;;  %v624_v0 = vmul.f32 %v480_v56, %v480_v56 }
 0x124   : > { %v912_v62 = vpack.c.bf16 %v491_v58, %v488_v54  ;;  %v627_v63 = vmul.f32 %v491_v58, %v491_v58 }
 0x125   : > { %v625_v1 = vmul.f32 %v483_v60, %v483_v60  ;;  %v907_v2 = vpack.c.bf16 %v483_v60, %v480_v56 }
 0x126   : > { %927 = vst [vmem:[%s1307_s9 + $0x8] sm:$0xff] %v912_v62   ;;  %v1038_v3 = vpack.c.bf16 %v627_v63, %v626_v61 }
 0x127   : > { %v1035_v4 = vpack.c.bf16 %v625_v1, %v624_v0  ;;  %v982_v5 = vpop.f32.mrb[4].mxu0  ;;  %908 = vst [vmem:[%s1307_s9] sm:$0xff] %v907_v2   ;;  %1024 = vmatpush3.bf16.msra.mxu1 %v907_v2 }
 0x128   : > { %v504_v6 = vadd.f32 %v982_v5, %v857_v52  ;;  %v495_v7 = vpop.f32.mrb[5].mxu0  ;;  %1025 = vmatprep.subr.bf16.mxu1 %v1150_v50 }
 0x129   : > { %v496_v8 = vadd.f32 %v857_v52, %v495_v7  ;;  %v983_v9 = vpop.f32.mrb[6].mxu0 }
 0x12a   : > { %v507_v10 = vadd.f32 %v983_v9, %v857_v52  ;;  %v498_v11 = vpop.f32.mrb[7].mxu0  ;;  %v630_v13 = vmul.f32 %v504_v6, %v504_v6 }
 0x12b   : > { %v499_v12 = vadd.f32 %v857_v52, %v498_v11  ;;  %1027 = vmatpush3.bf16.msra.mxu1 %v912_v62  ;;  %v628_v16 = vmul.f32 %v496_v8, %v496_v8 }
 0x12c   : > { %v922_v14 = vpack.c.bf16 %v507_v10, %v504_v6  ;;  %v631_v15 = vmul.f32 %v507_v10, %v507_v10  ;;  %1028 = vmatprep.subr.bf16.mxu1 %v1150_v50 }
 0x12d   : > { %v917_v17 = vpack.c.bf16 %v499_v12, %v496_v8  ;;  %v629_v18 = vmul.f32 %v499_v12, %v499_v12 }
 0x12e   : > { %929 = vst [vmem:[%s1307_s9 + $0x18] sm:$0xff] %v922_v14   ;;  %v1044_v19 = vpack.c.bf16 %v631_v15, %v630_v13 }
 0x12f   : > { %928 = vst [vmem:[%s1307_s9 + $0x10] sm:$0xff] %v917_v17   ;;  %v1041_v20 = vpack.c.bf16 %v629_v18, %v628_v16  ;;  %1030 = vmatpush3.bf16.msra.mxu1 %v917_v17 }
 0x130   : > { %1031 = vmatprep.subr.bf16.mxu1 %v1150_v50 }
 0x133   : > { %1033 = vmatpush3.bf16.msra.mxu1 %v922_v14 }
 0x134   : > { %1034 = vmatprep.subr.bf16.mxu1 %v1150_v50 }
 0x136   : > { %1001 = vmatmul.mubr.msk.f32.vlgmr.msra.gmra.mrb[0].mxu1 %vm550_vm1, %v1153_v21 }
 0x137   : > { %1036 = vmatpush3.bf16.msra.mxu1 %v1035_v4  ;;  %1019 = vmatprep.mubr.msk.f32.mxu1 %vm1151_vm0, %v1152_v51 }
 0x138   : > { %1037 = vmatprep.subr.bf16.mxu1 %v1150_v50 }
 0x13b   : > { %1039 = vmatpush3.bf16.msra.mxu1 %v1038_v3 }
 0x13c   : > { %1040 = vmatprep.subr.bf16.mxu1 %v1150_v50 }
 0x13f   : > { %1042 = vmatpush3.bf16.msra.mxu1 %v1041_v20 }
 0x140   : > { %1043 = vmatprep.subr.bf16.mxu1 %v1150_v50 }
 0x143   : > { %1045 = vmatpush3.bf16.msra.mxu1 %v1044_v19 }
 0x146   : > { %1020 = vmatmul.mubr.msk.f32.vlgmr.msra.gmra.mrb[2].mxu1 %vm550_vm1, %v1153_v21 }
 0x209   : > { %v620_v23 = vpop.f32.mrb[0].mxu1 }
 0x20a   : > { %v708_v24 = vadd.f32 %v707_v22, %v620_v23  ;;  %v1002_v25 = vpop.f32.mrb[1].mxu1 }
 0x20c   : > { %709 = vst [vmem:[%s1298_s30] sm:$0x1] %v708_v24 }
 0x219   : > { %v698_v27 = vpop.f32.mrb[2].mxu1 }
 0x21a   : > { %v711_v28 = vadd.f32 %v710_v26, %v698_v27  ;;  %v1021_v29 = vpop.f32.mrb[3].mxu1 }
 0x21c   : > { %712 = vst [vmem:[%s1298_s30 + $0x1] sm:$0x1] %v711_v28 }
 0x21d PF: > { %s18_s23 = sadd.s32 1, %s1147_s23   ;;  %s1342_s21 = smov %s1143_s22 }
 0x21e   : > { %p15_p3 = scmp.ge.s32.totalorder %s18_s23, 4   ;;  %s1343_s22 = smov %s1345_s25 }
 0x220   :  { %17 = sbr.rel (!%p15_p3) target bundleno = 2 (0x2), region = 91 }
 0x227   :  { %757 = vsyncpa [#allocation3], 1 }
 0x228   :  { %759 = vsyncpa [#allocation3 + $0x1], 1 }

// kernel: pointnet_encoder.9
= control target key start
LH: loop header
LB: loop body
LE: loop exit
PB: predicated region body
PF: predicated region fallthrough
CT: control target
= control target key end

     0   :  { %13 = vsyncpa [#allocation3], 0  ;;  %s2741_s24 = smov 0   ;;  %s2743_s25 = smov 0   ;;  %s3784_s0 = inlined_call_operand.vmem [shape: bf16[2,64,128], index: 0, kind: input, shape index: {}]   ;;  %s3785_s1 = inlined_call_operand.vmem [shape: f32[1,128], index: 1, kind: input, shape index: {}]   ;;  %s3786_s2 = inlined_call_operand.vmem [shape: f32[1,128], index: 2, kind: input, shape index: {}]   ;;  %s3787_s3 = inlined_call_operand.vmem [shape: bf16[128,1024], index: 3, kind: input, shape index: {}]   ;;  %s3788_s4 = inlined_call_operand.hbm [shape: f32[1,1024], index: 4, kind: input, shape index: {}]   ;;  %s3789_s5 = inlined_call_operand.vmem [shape: f32[2,2,1024], index: 5, kind: output, shape index: {0}]   ;;  %s3790_s6 = inlined_call_operand.vmem [shape: f32[2,1,1024], index: 6, kind: output, shape index: {1}]   ;;  %s3791_s7 = inlined_call_operand.vmem [shape: f32[2,1,1024], index: 7, kind: output, shape index: {2}]  }
   0x1   :  { %s2745_s26 = smov 0  }
   0x2 LB: > { %s2359_s27 = sadd.s32 4294967295, %s2694_s26   ;;  %s31_s28 = sadd.s32 1, %s2690_s25  ;;  %s2694_s26 = sphi %s2745_s26, %s19_s26   ;;  %s2690_s25 = sphi %s2743_s25, %s3918_s25   ;;  %s2686_s24 = sphi %s2741_s24, %s3917_s24  }
   0x3   : > { %p33_p0 = scmp.ge.s32.totalorder %s31_s28, 2  ;;  %p2361_p1 = scmp.ge.s32.totalorder %s2694_s26, 1 }
   0x4   : > { %p226_p2 = scmp.lt.s32.totalorder %s2694_s26, 3  ;;  %p2766_p4 = scmp.eq.s32.totalorder %s2359_s27, 0 }
   0x5   : > { %s3920_s28 = smov (%p33_p0, %s31_s28), 0  ;;  %s2696_s8 = smov [#allocation2]  }
   0x6   : > { %p2762_p3 = pnand %p2361_p1, %p226_p2  ;;  %s248_s9 = sshll.u32 %s2696_s8, 4  ;;  %s249_s9 = int_to_ptr.vmem [resolvable:$true] %s248_s9 }
   0x7   : > { %s3820_s30 = scalar_select %p2766_p4, 1, 0 }
   0x8   : > { %s3819_s29 = scalar_select %p2762_p3, 1, 0 }
   0x9   : > { %p2603_p5 = pneg %p2762_p3  ;;  %s2640_s13 = scalar_lea.hbm %s3788_s4, 128 }
   0xa   : > { %p2641_p7 = scmp.ne.s32.totalorder %s3788_s4, %s2640_s13  ;;  %p2647_p11 = scmp.lt.u32.totalorder %s2640_s13, %s3788_s4 }
   0xb   : > { %p2774_p6 = pnand %p2766_p4, %p2603_p5 }
   0xd   : > { %p2642_p8 = pneg %p2774_p6 }
   0xf   : > { %p2643_p9 = pnand %p2642_p8, %p2641_p7 }
  0x11   : > { %p2644_p10 = pneg %p2643_p9 }
  0x13   : > { %p2649_p12 = pnand %p2647_p11, %p2644_p10 }
  0x15   : > { %2652 = shalt.err (!%p2649_p12)
}
  0x16   : > { %s2653_s18 = scalar_lea.vmem %s249_s9, 128  ;;  %p2661_p2 = scmp.lt.s32.totalorder %s249_s9, %s249_s9 }
  0x17   : > { %p2654_p13 = scmp.ne.s32.totalorder %s249_s9, %s2653_s18  ;;  %p2662_p5 = scmp.lt.s32.totalorder %s2653_s18, %s2653_s18 }
  0x19   : > { %p2656_p0 = pnand %p2654_p13, %p2642_p8  ;;  %p2663_p4 = por %p2662_p5, %p2661_p2 }
  0x1b   : > { %p2657_p1 = pneg %p2656_p0 }
  0x1d   : > { %p2664_p3 = pnand %p2663_p4, %p2657_p1 }
  0x1f   : > { %2667 = shalt.err (!%p2664_p3)
}
  0x20   : > { %2606 = dma.hbm_to_vmem [thread:$0]  (!%p2774_p6), %s3788_s4, 128, %s249_s9, [#allocation3]  }
  0x21   : > { %p3822_p7 = scmp.ne.s32.totalorder %s3819_s29, 0 }
  0x23   : > { %274 = sbr.rel (%p3822_p7) target bundleno = 655 (0x28f), region = 40 }
  0x2a   : > { %p3823_p9 = scmp.ne.s32.totalorder %s3820_s30, 0 }
  0x2c   : > { %2681 = dma.done.wait (%p3823_p9), [#allocation3], 128  }
  0x2d   : > { %2683 = vsyncadd (%p3823_p9), [#allocation3], 4294967168  ;;  %v2697_v0 = vmov 0   ;;  %p319_p3 = scmp.lt.s32.totalorder %s2686_s24, 1  ;;  %v400_v1 = vld [vmem:[%s3787_s3] sm:$0xff]  ;;  %v401_v3 = vld [vmem:[%s3787_s3 + $0x8] sm:$0xff] }
  0x2e   : > { %858 = vmatprep.mubr.bf16.mxu0 %v2697_v0  ;;  %931 = vmatprep.mubr.bf16.mxu1 %v2697_v0  ;;  %v404_v2 = vld [vmem:[%s3787_s3 + $0x20] sm:$0xff]  ;;  %v405_v5 = vld [vmem:[%s3787_s3 + $0x28] sm:$0xff]  ;;  %vm1127_vm0 = vcmask 523264  }
  0x2f   : > { %v2375_v4 = vcombine.high %v400_v1, %v404_v2  ;;  %v2374_v6 = vcombine.low %v400_v1, %v404_v2  ;;  %v408_v7 = vld [vmem:[%s3787_s3 + $0x40] sm:$0xff]  ;;  %s3922_s24 = smov (!%p319_p3, %s2686_s24), 1  ;;  %v2377_v9 = vcombine.high %v401_v3, %v405_v5  ;;  %v2376_v10 = vcombine.low %v401_v3, %v405_v5  ;;  %v409_v12 = vld [vmem:[%s3787_s3 + $0x48] sm:$0xff] }
  0x30   : > { %v412_v8 = vld [vmem:[%s3787_s3 + $0x60] sm:$0xff]  ;;  %v413_v13 = vld [vmem:[%s3787_s3 + $0x68] sm:$0xff]  ;;  %s2450_s8 = sshll.u32 %s3922_s24, 5  ;;  %s2370_s30 = sshll.u32 %s3922_s24, 3 }
  0x31   : > { %v2383_v11 = vcombine.high %v408_v7, %v412_v8  ;;  %v416_v14 = vld [vmem:[%s3787_s3 + $0x80] sm:$0xff]  ;;  %826 = vmatprep.subr.bf16.mxu0 %v2375_v4  ;;  %v2385_v15 = vcombine.high %v409_v12, %v413_v13  ;;  %v417_v17 = vld [vmem:[%s3787_s3 + $0x88] sm:$0xff]  ;;  %899 = vmatprep.subr.bf16.mxu1 %v2377_v9  ;;  %v2382_v19 = vcombine.low %v408_v7, %v412_v8  ;;  %s2858_s18 = scalar_lea.vmem %s3784_s0, %s2450_s8  ;;  %s336_s10 = scalar_lea.vmem %s3790_s6, %s2370_s30 }
  0x32   : > { %v420_v16 = vld [vmem:[%s3787_s3 + $0xa0] sm:$0xff]  ;;  %v421_v18 = vld [vmem:[%s3787_s3 + $0xa8] sm:$0xff]  ;;  %827 = vmatpush1.bf16.msra.mxu0 %v2374_v6  ;;  %900 = vmatpush1.bf16.msra.mxu1 %v2376_v10  ;;  %v2384_v20 = vcombine.low %v409_v12, %v413_v13  ;;  %s340_s13 = scalar_lea.vmem %s3791_s7, %s2370_s30  ;;  %s2451_s14 = sshll.u32 %s3922_s24, 4 }
  0x33   : > { %828 = vmatprep.subr.bf16.mxu0 %v2383_v11  ;;  %v2391_v21 = vcombine.high %v416_v14, %v420_v16  ;;  %901 = vmatprep.subr.bf16.mxu1 %v2385_v15  ;;  %v2393_v22 = vcombine.high %v417_v17, %v421_v18  ;;  %v424_v23 = vld [vmem:[%s3787_s3 + $0xc0] sm:$0xff]  ;;  %v425_v25 = vld [vmem:[%s3787_s3 + $0xc8] sm:$0xff]  ;;  %v2390_v27 = vcombine.low %v416_v14, %v420_v16  ;;  %v402_v14 = vld [vmem:[%s3787_s3 + $0x10] sm:$0xff]  ;;  %s3753_s17 = scalar_lea.vmem %s3789_s5, %s2451_s14 }
  0x34   : > { %v428_v24 = vld [vmem:[%s3787_s3 + $0xe0] sm:$0xff]  ;;  %v429_v26 = vld [vmem:[%s3787_s3 + $0xe8] sm:$0xff]  ;;  %v2392_v28 = vcombine.low %v417_v17, %v421_v18  ;;  %v406_v15 = vld [vmem:[%s3787_s3 + $0x30] sm:$0xff] }
  0x35   : > { %v2399_v29 = vcombine.high %v424_v23, %v428_v24  ;;  %v2401_v30 = vcombine.high %v425_v25, %v429_v26  ;;  %v432_v31 = vld [vmem:[%s3787_s3 + $0x100] sm:$0xff]  ;;  %v433_v33 = vld [vmem:[%s3787_s3 + $0x108] sm:$0xff]  ;;  %v2398_v36 = vcombine.low %v424_v23, %v428_v24  ;;  %v2400_v37 = vcombine.low %v425_v25, %v429_v26  ;;  %v403_v16 = vld [vmem:[%s3787_s3 + $0x18] sm:$0xff] }
  0x36   : > { %829 = vmatpush1.bf16.msra.mxu0 %v2382_v19  ;;  %902 = vmatpush1.bf16.msra.mxu1 %v2384_v20  ;;  %v436_v32 = vld [vmem:[%s3787_s3 + $0x120] sm:$0xff]  ;;  %v437_v34 = vld [vmem:[%s3787_s3 + $0x128] sm:$0xff]  ;;  %v407_v17 = vld [vmem:[%s3787_s3 + $0x38] sm:$0xff]  ;;  %v2379_v23 = vcombine.high %v402_v14, %v406_v15 }
  0x37   : > { %830 = vmatprep.subr.bf16.mxu0 %v2391_v21  ;;  %903 = vmatprep.subr.bf16.mxu1 %v2393_v22  ;;  %v2453_v35 = vld [vmem:[%s2858_s18] sm:$0xff]   ;;  %v2407_v38 = vcombine.high %v432_v31, %v436_v32  ;;  %v2409_v39 = vcombine.high %v433_v33, %v437_v34  ;;  %v441_v44 = vld [vmem:[%s3787_s3 + $0x148] sm:$0xff]  ;;  %v2406_v47 = vcombine.low %v432_v31, %v436_v32  ;;  %v2469_v21 = vld [vmem:[%s2858_s18 + $0x10] sm:$0xff]  }
  0x38   : > { %v440_v40 = vld [vmem:[%s3787_s3 + $0x140] sm:$0xff]  ;;  %v2454_v42 = vunpack.c.l.bf16 %v2453_v35  ;;  %v2455_v43 = vunpack.c.h.bf16 %v2453_v35  ;;  %v445_v45 = vld [vmem:[%s3787_s3 + $0x168] sm:$0xff]  ;;  %v2408_v48 = vcombine.low %v433_v33, %v437_v34  ;;  %v2381_v25 = vcombine.high %v403_v16, %v407_v17  ;;  %v410_v26 = vld [vmem:[%s3787_s3 + $0x50] sm:$0xff] }
  0x39   : > { %v444_v41 = vld [vmem:[%s3787_s3 + $0x160] sm:$0xff]  ;;  %v2417_v50 = vcombine.high %v441_v44, %v445_v45  ;;  %v449_v55 = vld [vmem:[%s3787_s3 + $0x188] sm:$0xff]  ;;  %v2416_v60 = vcombine.low %v441_v44, %v445_v45  ;;  %v2462_v32 = vunpack.c.l.bf16 %v2469_v21  ;;  %v2463_v33 = vunpack.c.h.bf16 %v2469_v21 }
  0x3a   : > { %831 = vmatpush1.bf16.msra.mxu0 %v2390_v27  ;;  %904 = vmatpush1.bf16.msra.mxu1 %v2392_v28  ;;  %v2888_v46 = vld [vmem:[%s3785_s1] ss:$0 sm:$0xff]  ;;  %v2415_v49 = vcombine.high %v440_v40, %v444_v41  ;;  %v453_v56 = vld [vmem:[%s3787_s3 + $0x1a8] sm:$0xff]  ;;  %v2414_v58 = vcombine.low %v440_v40, %v444_v41  ;;  %v414_v27 = vld [vmem:[%s3787_s3 + $0x70] sm:$0xff]  ;;  %v2378_v34 = vcombine.low %v402_v14, %v406_v15 }
  0x3b   : > { %832 = vmatprep.subr.bf16.mxu0 %v2399_v29  ;;  %905 = vmatprep.subr.bf16.mxu1 %v2401_v30  ;;  %v448_v51 = vld [vmem:[%s3787_s3 + $0x180] sm:$0xff]  ;;  %v365_v53 = vmul.f32 %v2454_v42, %v2888_v46  ;;  %v366_v54 = vmul.f32 %v2455_v43, %v2888_v46  ;;  %v2468_v59 = vld [vmem:[%s2858_s18 + $0x8] sm:$0xff]   ;;  %v2425_v62 = vcombine.high %v449_v55, %v453_v56  ;;  %v411_v28 = vld [vmem:[%s3787_s3 + $0x58] sm:$0xff] }
  0x3c   : > { %v452_v52 = vld [vmem:[%s3787_s3 + $0x1a0] sm:$0xff]  ;;  %v457_v4 = vld [vmem:[%s3787_s3 + $0x1c8] sm:$0xff]  ;;  %v2458_v6 = vunpack.c.l.bf16 %v2468_v59  ;;  %v2459_v7 = vunpack.c.h.bf16 %v2468_v59  ;;  %v2424_v9 = vcombine.low %v449_v55, %v453_v56  ;;  %v415_v29 = vld [vmem:[%s3787_s3 + $0x78] sm:$0xff]  ;;  %v2380_v35 = vcombine.low %v403_v16, %v407_v17 }
  0x3d   : > { %v2907_v57 = vld [vmem:[%s3786_s2] ss:$0 sm:$0xff]  ;;  %v2423_v61 = vcombine.high %v448_v51, %v452_v52  ;;  %v461_v5 = vld [vmem:[%s3787_s3 + $0x1e8] sm:$0xff]  ;;  %v2422_v8 = vcombine.low %v448_v51, %v452_v52  ;;  %v419_v42 = vld [vmem:[%s3787_s3 + $0x98] sm:$0xff]  ;;  %v369_v44 = vmul.f32 %v2462_v32, %v2888_v46  ;;  %v370_v45 = vmul.f32 %v2463_v33, %v2888_v46 }
  0x3e   : > { %833 = vmatpush1.bf16.msra.mxu0 %v2398_v36  ;;  %906 = vmatpush1.bf16.msra.mxu1 %v2400_v37  ;;  %v456_v63 = vld [vmem:[%s3787_s3 + $0x1c0] sm:$0xff]  ;;  %v380_v2 = vadd.f32 %v2907_v57, %v365_v53  ;;  %v381_v3 = vadd.f32 %v2907_v57, %v366_v54  ;;  %v2433_v11 = vcombine.high %v457_v4, %v461_v5  ;;  %v423_v43 = vld [vmem:[%s3787_s3 + $0xb8] sm:$0xff]  ;;  %v426_v52 = vld [vmem:[%s3787_s3 + $0xd0] sm:$0xff] }
  0x3f   : > { %834 = vmatprep.subr.bf16.mxu0 %v2407_v38  ;;  %907 = vmatprep.subr.bf16.mxu1 %v2409_v39  ;;  %v460_v1 = vld [vmem:[%s3787_s3 + $0x1e0] sm:$0xff]  ;;  %v367_v18 = vmul.f32 %v2458_v6, %v2888_v46  ;;  %v368_v19 = vmul.f32 %v2459_v7, %v2888_v46  ;;  %v2432_v22 = vcombine.low %v457_v4, %v461_v5  ;;  %v418_v38 = vld [vmem:[%s3787_s3 + $0x90] sm:$0xff]  ;;  %v427_v56 = vld [vmem:[%s3787_s3 + $0xd8] sm:$0xff] }
  0x40   : > { %v2431_v10 = vcombine.high %v456_v63, %v460_v1  ;;  %v388_v12 = vmax.f32 %v380_v2, 0.0  ;;  %v389_v13 = vmax.f32 %v381_v3, 0.0  ;;  %v2430_v20 = vcombine.low %v456_v63, %v460_v1  ;;  %v422_v39 = vld [vmem:[%s3787_s3 + $0xb0] sm:$0xff]  ;;  %v435_v7 = vld [vmem:[%s3787_s3 + $0x118] sm:$0xff] }
  0x41   : > { %v382_v30 = vadd.f32 %v2907_v57, %v367_v18  ;;  %v383_v31 = vadd.f32 %v2907_v57, %v368_v19  ;;  %v2387_v36 = vcombine.high %v410_v26, %v414_v27  ;;  %v2389_v37 = vcombine.high %v411_v28, %v415_v29  ;;  %v430_v53 = vld [vmem:[%s3787_s3 + $0xf0] sm:$0xff]  ;;  %v443_v17 = vld [vmem:[%s3787_s3 + $0x158] sm:$0xff] }
  0x42   : > { %835 = vmatpush1.bf16.msra.mxu0 %v2406_v47  ;;  %908 = vmatpush1.bf16.msra.mxu1 %v2408_v48  ;;  %v2939_v24 = vpack.c.bf16 %v389_v13, %v388_v12  ;;  %v2470_v47 = vld [vmem:[%s2858_s18 + $0x18] sm:$0xff]   ;;  %v2386_v48 = vcombine.low %v410_v26, %v414_v27  ;;  %v2397_v51 = vcombine.high %v419_v42, %v423_v43  ;;  %v434_v3 = vld [vmem:[%s3787_s3 + $0x110] sm:$0xff] }
  0x43   : > { %836 = vmatprep.subr.bf16.mxu0 %v2415_v49  ;;  %909 = vmatprep.subr.bf16.mxu1 %v2417_v50  ;;  %v390_v40 = vmax.f32 %v382_v30, 0.0  ;;  %v391_v41 = vmax.f32 %v383_v31, 0.0  ;;  %v2388_v49 = vcombine.low %v411_v28, %v415_v29  ;;  %v2395_v50 = vcombine.high %v418_v38, %v422_v39  ;;  %v438_v4 = vld [vmem:[%s3787_s3 + $0x130] sm:$0xff]  ;;  %v447_v18 = vld [vmem:[%s3787_s3 + $0x178] sm:$0xff] }
  0x44   : > { %v2466_v54 = vunpack.c.l.bf16 %v2470_v47  ;;  %v384_v59 = vadd.f32 %v2907_v57, %v369_v44  ;;  %v2396_v63 = vcombine.low %v419_v42, %v423_v43  ;;  %v2403_v1 = vcombine.high %v426_v52, %v430_v53  ;;  %v442_v15 = vld [vmem:[%s3787_s3 + $0x150] sm:$0xff]  ;;  %v451_v29 = vld [vmem:[%s3787_s3 + $0x198] sm:$0xff] }
  0x45   : > { %v2980_v55 = vpack.c.bf16 %v391_v41, %v390_v40  ;;  %v2411_v13 = vcombine.high %v434_v3, %v438_v4  ;;  %v2410_v21 = vcombine.low %v434_v3, %v438_v4  ;;  %v450_v26 = vld [vmem:[%s3787_s3 + $0x190] sm:$0xff]  ;;  %v455_v30 = vld [vmem:[%s3787_s3 + $0x1b8] sm:$0xff]  ;;  %v2420_v32 = vcombine.low %v443_v17, %v447_v18 }
  0x46   : > { %837 = vmatpush1.bf16.msra.mxu0 %v2414_v58  ;;  %910 = vmatpush1.bf16.msra.mxu1 %v2416_v60  ;;  %v431_v58 = vld [vmem:[%s3787_s3 + $0xf8] sm:$0xff]  ;;  %v385_v60 = vadd.f32 %v2907_v57, %v370_v45  ;;  %v392_v5 = vmax.f32 %v384_v59, 0.0  ;;  %v454_v27 = vld [vmem:[%s3787_s3 + $0x1b0] sm:$0xff]  ;;  %v2428_v41 = vcombine.low %v451_v29, %v455_v30 }
  0x47   : > { %838 = vmatprep.subr.bf16.mxu0 %v2423_v61  ;;  %911 = vmatprep.subr.bf16.mxu1 %v2425_v62  ;;  %v2467_v61 = vunpack.c.h.bf16 %v2470_v47  ;;  %v2394_v62 = vcombine.low %v418_v38, %v422_v39  ;;  %v2405_v2 = vcombine.high %v427_v56, %v431_v58  ;;  %v2404_v12 = vcombine.low %v427_v56, %v431_v58  ;;  %v459_v38 = vld [vmem:[%s3787_s3 + $0x1d8] sm:$0xff] }
  0x48   : > { %v393_v6 = vmax.f32 %v385_v60, 0.0  ;;  %v2427_v33 = vcombine.high %v450_v26, %v454_v27  ;;  %v463_v39 = vld [vmem:[%s3787_s3 + $0x1f8] sm:$0xff]  ;;  %v2426_v40 = vcombine.low %v450_v26, %v454_v27  ;;  %v466_v47 = vlaneseq }
  0x49   : > { %v2437_v43 = vcombine.high %v459_v38, %v463_v39  ;;  %v2436_v45 = vcombine.low %v459_v38, %v463_v39 }
  0x4a   : > { %839 = vmatpush1.bf16.msra.mxu0 %v2422_v8  ;;  %912 = vmatpush1.bf16.msra.mxu1 %v2424_v9  ;;  %v439_v8 = vld [vmem:[%s3787_s3 + $0x138] sm:$0xff]  ;;  %v371_v9 = vmul.f32 %v2466_v54, %v2888_v46  ;;  %v3014_v16 = vpack.c.bf16 %v393_v6, %v392_v5  ;;  %v2699_v54 = vmov 1966171168  }
  0x4b   : > { %840 = vmatprep.subr.bf16.mxu0 %v2431_v10  ;;  %913 = vmatprep.subr.bf16.mxu1 %v2433_v11  ;;  %v372_v10 = vmul.f32 %v2467_v61, %v2888_v46  ;;  %v2402_v11 = vcombine.low %v426_v52, %v430_v53  ;;  %v2413_v14 = vcombine.high %v435_v7, %v439_v8  ;;  %v446_v46 = vld [vmem:[%s3787_s3 + $0x170] sm:$0xff] }
  0x4c   : > { %v386_v19 = vadd.f32 %v2907_v57, %v371_v9  ;;  %v2418_v31 = vcombine.low %v442_v15, %v446_v46 }
  0x4e   : > { %841 = vmatpush1.bf16.msra.mxu0 %v2430_v20  ;;  %914 = vmatpush1.bf16.msra.mxu1 %v2432_v22  ;;  %v387_v20 = vadd.f32 %v2907_v57, %v372_v10  ;;  %v2412_v22 = vcombine.low %v435_v7, %v439_v8  ;;  %v394_v28 = vmax.f32 %v386_v19, 0.0 }
  0x4f   : > { %972 = vmatprep.subr.bf16.mxu0 %v2379_v23  ;;  %1045 = vmatprep.subr.bf16.mxu1 %v2381_v25  ;;  %v2419_v23 = vcombine.high %v442_v15, %v446_v46  ;;  %v2421_v25 = vcombine.high %v443_v17, %v447_v18 }
  0x50   : > { %v395_v57 = vmax.f32 %v387_v20, 0.0 }
  0x51   : > { %859 = vmatmul.mubr.bf16.vlgmr.msra.gmra.mrb[0].mxu0 %v2939_v24  ;;  %932 = vmatmul.mubr.bf16.vlgmr.msra.gmra.mrb[0].mxu1 %v2939_v24 }
  0x52   : > { %973 = vmatpush1.bf16.msra.mxu0 %v2378_v34  ;;  %1046 = vmatpush1.bf16.msra.mxu1 %v2380_v35  ;;  %v2429_v34 = vcombine.high %v451_v29, %v455_v30  ;;  %v458_v35 = vld [vmem:[%s3787_s3 + $0x1d0] sm:$0xff] }
  0x53   : > { %974 = vmatprep.subr.bf16.mxu0 %v2387_v36  ;;  %1047 = vmatprep.subr.bf16.mxu1 %v2389_v37  ;;  %v462_v36 = vld [vmem:[%s3787_s3 + $0x1f0] sm:$0xff]  ;;  %v399_v37 = vpack.c.bf16 %v395_v57, %v394_v28 }
  0x54   : > { %868 = vmatprep.mubr.bf16.mxu0 %v2697_v0  ;;  %941 = vmatprep.mubr.bf16.mxu1 %v2697_v0  ;;  %v2435_v42 = vcombine.high %v458_v35, %v462_v36  ;;  %v2434_v44 = vcombine.low %v458_v35, %v462_v36 }
  0x56   : > { %975 = vmatpush1.bf16.msra.mxu0 %v2386_v48  ;;  %1048 = vmatpush1.bf16.msra.mxu1 %v2388_v49  ;;  %v467_v48 = vshrl.u32 %v466_v47, 7 }
  0x57   : > { %976 = vmatprep.subr.bf16.mxu0 %v2395_v50  ;;  %1049 = vmatprep.subr.bf16.mxu1 %v2397_v51  ;;  %v464_v50 = vld [vmem:[#allocation2] sm:$0xff] }
  0x58   : > { %v468_v49 = vsub.s32 0, %v467_v48  ;;  %v476_v51 = vsub.s32 2, %v467_v48  ;;  %v472_v52 = vsub.s32 1, %v467_v48  ;;  %v480_v53 = vsub.s32 3, %v467_v48 }
  0x59   : > { %869 = vmatmul.mubr.bf16.gmra.mrb[4].mxu0 %v2980_v55  ;;  %942 = vmatmul.mubr.bf16.gmra.mrb[4].mxu1 %v2980_v55  ;;  %v484_v58 = vsub.s32 4, %v467_v48  ;;  %v488_v61 = vsub.s32 5, %v467_v48 }
  0x5a   : > { %977 = vmatpush1.bf16.msra.mxu0 %v2394_v62  ;;  %1050 = vmatpush1.bf16.msra.mxu1 %v2396_v63  ;;  %v3068_v56 = vrot.slane %v464_v50, %v468_v49  ;;  %v3070_v59 = vrot.slane %v464_v50, %v476_v51  ;;  %v3072_v60 = vrot.slane %v464_v50, %v472_v52  ;;  %v496_v62 = vsub.s32 7, %v467_v48 }
  0x5b   : > { %978 = vmatprep.subr.bf16.mxu0 %v2403_v1  ;;  %1051 = vmatprep.subr.bf16.mxu1 %v2405_v2  ;;  %v3074_v63 = vrot.slane %v464_v50, %v480_v53  ;;  %v3077_v6 = vrot.slane %v464_v50, %v484_v58 }
  0x5c   : > { %878 = vmatprep.mubr.bf16.mxu0 %v2697_v0  ;;  %951 = vmatprep.mubr.bf16.mxu1 %v2697_v0 }
  0x5e   : > { %979 = vmatpush1.bf16.msra.mxu0 %v2402_v11  ;;  %1052 = vmatpush1.bf16.msra.mxu1 %v2404_v12  ;;  %v3083_v12 = vrot.slane %v464_v50, %v488_v61 }
  0x5f   : > { %980 = vmatprep.subr.bf16.mxu0 %v2411_v13  ;;  %1053 = vmatprep.subr.bf16.mxu1 %v2413_v14  ;;  %v3085_v13 = vrot.slane %v464_v50, %v496_v62 }
  0x61   : > { %879 = vmatmul.mubr.bf16.gmra.mrb[8].mxu0 %v3014_v16  ;;  %952 = vmatmul.mubr.bf16.gmra.mrb[8].mxu1 %v3014_v16 }
  0x62   : > { %981 = vmatpush1.bf16.msra.mxu0 %v2410_v21  ;;  %1054 = vmatpush1.bf16.msra.mxu1 %v2412_v22 }
  0x63   : > { %982 = vmatprep.subr.bf16.mxu0 %v2419_v23  ;;  %1055 = vmatprep.subr.bf16.mxu1 %v2421_v25 }
  0x64   : > { %888 = vmatprep.mubr.bf16.mxu0 %v2697_v0  ;;  %961 = vmatprep.mubr.bf16.mxu1 %v2697_v0 }
  0x66   : > { %983 = vmatpush1.bf16.msra.mxu0 %v2418_v31  ;;  %1056 = vmatpush1.bf16.msra.mxu1 %v2420_v32 }
  0x67   : > { %984 = vmatprep.subr.bf16.mxu0 %v2427_v33  ;;  %1057 = vmatprep.subr.bf16.mxu1 %v2429_v34 }
  0x69   : > { %889 = vmatmul.mubr.bf16.gmra.mrb[12].mxu0 %v399_v37  ;;  %962 = vmatmul.mubr.bf16.gmra.mrb[12].mxu1 %v399_v37 }
  0x6a   : > { %985 = vmatpush1.bf16.msra.mxu0 %v2426_v40  ;;  %1058 = vmatpush1.bf16.msra.mxu1 %v2428_v41 }
  0x6b   : > { %986 = vmatprep.subr.bf16.mxu0 %v2435_v42  ;;  %1059 = vmatprep.subr.bf16.mxu1 %v2437_v43 }
  0x6c   : > { %1004 = vmatprep.mubr.bf16.mxu0 %v2697_v0  ;;  %1077 = vmatprep.mubr.bf16.mxu1 %v2697_v0 }
  0x6e   : > { %987 = vmatpush1.bf16.msra.mxu0 %v2434_v44  ;;  %1060 = vmatpush1.bf16.msra.mxu1 %v2436_v45 }
  0x71   : > { %1005 = vmatmul.mubr.bf16.vlgmr.msra.gmra.mrb[16].mxu0 %v2939_v24  ;;  %1078 = vmatmul.mubr.bf16.vlgmr.msra.gmra.mrb[16].mxu1 %v2939_v24  ;;  %v3795_v24 = vmov 0.0  }
  0x72   : > { %1014 = vmatprep.mubr.bf16.mxu0 %v2697_v0  ;;  %1087 = vmatprep.mubr.bf16.mxu1 %v2697_v0 }
  0x79   : > { %1015 = vmatmul.mubr.bf16.gmra.mrb[20].mxu0 %v2980_v55  ;;  %1088 = vmatmul.mubr.bf16.gmra.mrb[20].mxu1 %v2980_v55  ;;  %v1428_v55 = vunpack.c.l.s4 %v2699_v54 }
  0x7a   : > { %1024 = vmatprep.mubr.bf16.mxu0 %v2697_v0  ;;  %1097 = vmatprep.mubr.bf16.mxu1 %v2697_v0 }
  0x7b   : > { %v1429_v1 = vunpack.c.0.s8 %v1428_v55 }
  0x7d   : > { %v3091_v18 = vsub.s32 %v1429_v1, %v467_v48 }
  0x81   : > { %1025 = vmatmul.mubr.bf16.gmra.mrb[24].mxu0 %v3014_v16  ;;  %1098 = vmatmul.mubr.bf16.gmra.mrb[24].mxu1 %v3014_v16 }
  0x82   : > { %1034 = vmatprep.mubr.bf16.mxu0 %v2697_v0  ;;  %1107 = vmatprep.mubr.bf16.mxu1 %v2697_v0  ;;  %v492_v0 = vsub.s32 6, %v467_v48 }
  0x84   : > { %v3079_v7 = vrot.slane %v464_v50, %v492_v0 }
  0x89   : > { %1035 = vmatmul.mubr.bf16.gmra.mrb[28].mxu0 %v399_v37  ;;  %1108 = vmatmul.mubr.bf16.gmra.mrb[28].mxu1 %v399_v37 }
  0x8a   : > { %1195 = vmatprep.mubr.f32.mxu0 %v3795_v24  ;;  %1266 = vmatprep.mubr.f32.mxu1 %v3795_v24 }
 0x124   : > { %v860_v2 = vpop.f32.mrb[0].mxu0  ;;  %v933_v4 = vpop.f32.mrb[0].mxu1 }
 0x125   : > { %v861_v3 = vadd.f32 %v860_v2, %v3068_v56  ;;  %v862_v5 = vpop.f32.mrb[1].mxu0  ;;  %v934_v8 = vadd.f32 %v933_v4, %v3070_v59  ;;  %v935_v10 = vpop.f32.mrb[1].mxu1 }
 0x126   : > { %v863_v9 = vadd.f32 %v862_v5, %v3072_v60  ;;  %v864_v11 = vpop.f32.mrb[2].mxu0  ;;  %v936_v15 = vadd.f32 %v935_v10, %v3074_v63  ;;  %v937_v16 = vpop.f32.mrb[2].mxu1 }
 0x127   : > { %v3087_v14 = vmul.f32 %v861_v3, %v861_v3  ;;  %v865_v46 = vadd.f32 %v864_v11, %v3068_v56  ;;  %v866_v17 = vpop.f32.mrb[3].mxu0  ;;  %v3093_v19 = vmul.f32 %v934_v8, %v934_v8  ;;  %v938_v20 = vadd.f32 %v937_v16, %v3070_v59  ;;  %v939_v22 = vpop.f32.mrb[3].mxu1 }
 0x128   : > { %v867_v21 = vadd.f32 %v866_v17, %v3072_v60  ;;  %v3097_v23 = vmul.f32 %v863_v9, %v863_v9  ;;  %v940_v28 = vadd.f32 %v939_v22, %v3074_v63  ;;  %v3109_v44 = vmul.f32 %v936_v15, %v936_v15 }
 0x129   : > { %3824 = vst [vmem:[#allocation5_spill] sm:$0xff] %v3087_v14  ;;  %3825 = vst [vmem:[#allocation6_spill] sm:$0xff] %v3093_v19  ;;  %v3099_v25 = vmul.f32 %v865_v46, %v865_v46  ;;  %v1886_v26 = vmax.f32 %v861_v3, %v865_v46  ;;  %v2051_v27 = vmin.f32 %v861_v3, %v865_v46 }
 0x12a   : > { %3826 = vst [vmem:[#allocation7_spill] sm:$0xff] %v3097_v23  ;;  %v3102_v57 = vmul.f32 %v938_v20, %v938_v20  ;;  %v1912_v29 = vmax.f32 %v934_v8, %v938_v20  ;;  %v2077_v30 = vmin.f32 %v934_v8, %v938_v20  ;;  %v1899_v31 = vmax.f32 %v863_v9, %v867_v21 }
 0x12b   : > { %3827 = vst [vmem:[#allocation8_spill] sm:$0xff] %v3099_v25  ;;  %v2064_v32 = vmin.f32 %v863_v9, %v867_v21  ;;  %v1925_v33 = vmax.f32 %v936_v15, %v940_v28  ;;  %v2090_v34 = vmin.f32 %v936_v15, %v940_v28  ;;  %v2471_v35 = vpack.c.bf16 %v867_v21, %v863_v9 }
 0x12c   : > { %3828 = vst [vmem:[#allocation9_spill] sm:$0xff] %v3102_v57  ;;  %v870_v36 = vpop.f32.mrb[4].mxu0  ;;  %v2487_v37 = vpack.c.bf16 %v940_v28, %v936_v15  ;;  %v2473_v38 = vpack.c.bf16 %v865_v46, %v861_v3  ;;  %v2489_v39 = vpack.c.bf16 %v938_v20, %v934_v8  ;;  %v3104_v40 = vmul.f32 %v867_v21, %v867_v21  ;;  %v943_v42 = vpop.f32.mrb[4].mxu1 }
 0x12d   : > { %v3107_v41 = vadd.f32 %v870_v36, %v3068_v56  ;;  %2472 = vmatprep.subr.bf16.mxu0 %v2471_v35  ;;  %v872_v43 = vpop.f32.mrb[5].mxu0  ;;  %3829 = vst [vmem:[#allocation10_spill] sm:$0xff] %v3109_v44  ;;  %v3111_v45 = vmul.f32 %v940_v28, %v940_v28  ;;  %v3116_v48 = vadd.f32 %v943_v42, %v3070_v59  ;;  %v945_v50 = vpop.f32.mrb[5].mxu1 }
 0x12e   : > { %2488 = vmatprep.subr.bf16.mxu1 %v2487_v37  ;;  %v3119_v49 = vadd.f32 %v872_v43, %v3072_v60  ;;  %2474 = vmatpush1.bf16.msra.mxu0 %v2473_v38  ;;  %v874_v51 = vpop.f32.mrb[6].mxu0  ;;  %v3130_v58 = vadd.f32 %v945_v50, %v3074_v63  ;;  %v947_v0 = vpop.f32.mrb[6].mxu1 }
 0x12f   : > { %3830 = vst [vmem:[#allocation11_spill] sm:$0xff] %v3111_v45  ;;  %v3125_v53 = vmul.f32 %v3107_v41, %v3107_v41  ;;  %v1887_v54 = vmax.f32 %v1886_v26, %v3107_v41  ;;  %v2052_v55 = vmin.f32 %v2051_v27, %v3107_v41  ;;  %2490 = vmatpush1.bf16.msra.mxu1 %v2489_v39  ;;  %v876_v61 = vpop.f32.mrb[7].mxu0  ;;  %v949_v4 = vpop.f32.mrb[7].mxu1 }
 0x130   : > { %v3134_v62 = vmul.f32 %v3116_v48, %v3116_v48  ;;  %v1913_v1 = vmax.f32 %v1912_v29, %v3116_v48  ;;  %v2078_v2 = vmin.f32 %v2077_v30, %v3116_v48  ;;  %v1900_v3 = vmax.f32 %v1899_v31, %v3119_v49 }
 0x131   : > { %v2065_v5 = vmin.f32 %v2064_v32, %v3119_v49  ;;  %v1926_v8 = vmax.f32 %v1925_v33, %v3130_v58  ;;  %v2091_v9 = vmin.f32 %v2090_v34, %v3130_v58  ;;  %v875_v10 = vadd.f32 %v874_v51, %v3068_v56 }
 0x132   : > { %v948_v11 = vadd.f32 %v947_v0, %v3070_v59  ;;  %v877_v15 = vadd.f32 %v876_v61, %v3072_v60  ;;  %v3146_v46 = vadd.f32 %v949_v4, %v3074_v63 }
 0x133   : > { %v3150_v17 = vmul.f32 %v875_v10, %v875_v10  ;;  %v1888_v20 = vmax.f32 %v1887_v54, %v875_v10  ;;  %v2053_v21 = vmin.f32 %v2052_v55, %v875_v10  ;;  %v2477_v22 = vpack.c.bf16 %v875_v10, %v3107_v41 }
 0x134   : > { %v3153_v26 = vmul.f32 %v948_v11, %v948_v11  ;;  %v1914_v27 = vmax.f32 %v1913_v1, %v948_v11  ;;  %v2079_v28 = vmin.f32 %v2078_v2, %v948_v11  ;;  %v1901_v29 = vmax.f32 %v1900_v3, %v877_v15  ;;  %v880_v30 = vpop.f32.mrb[8].mxu0  ;;  %v953_v35 = vpop.f32.mrb[8].mxu1 }
 0x135   : > { %v2066_v31 = vmin.f32 %v2065_v5, %v877_v15  ;;  %v1927_v32 = vmax.f32 %v1926_v8, %v3146_v46  ;;  %v2092_v33 = vmin.f32 %v2091_v9, %v3146_v46  ;;  %v3158_v34 = vadd.f32 %v880_v30, %v3068_v56  ;;  %v882_v36 = vpop.f32.mrb[9].mxu0  ;;  %v955_v42 = vpop.f32.mrb[9].mxu1 }
 0x136   : > { %v3161_v37 = vadd.f32 %v953_v35, %v3070_v59  ;;  %v2475_v38 = vpack.c.bf16 %v877_v15, %v3119_v49  ;;  %v2491_v39 = vpack.c.bf16 %v3146_v46, %v3130_v58  ;;  %v3167_v41 = vadd.f32 %v882_v36, %v3072_v60  ;;  %v884_v43 = vpop.f32.mrb[10].mxu0  ;;  %v957_v0 = vpop.f32.mrb[10].mxu1 }
 0x137   : > { %v3171_v50 = vmul.f32 %v3158_v34, %v3158_v34  ;;  %v1889_v51 = vmax.f32 %v1888_v20, %v3158_v34  ;;  %v2054_v54 = vmin.f32 %v2053_v21, %v3158_v34  ;;  %v3176_v55 = vadd.f32 %v955_v42, %v3074_v63  ;;  %v886_v61 = vpop.f32.mrb[11].mxu0  ;;  %v959_v4 = vpop.f32.mrb[11].mxu1 }
 0x138   : > { %v3180_v1 = vmul.f32 %v3161_v37, %v3161_v37  ;;  %v1915_v2 = vmax.f32 %v1914_v27, %v3161_v37  ;;  %v2080_v3 = vmin.f32 %v2079_v28, %v3161_v37  ;;  %2476 = vmatprep.subr.bf16.mxu0 %v2475_v38  ;;  %2492 = vmatprep.subr.bf16.mxu1 %v2491_v39 }
 0x139   : > { %3831 = vst [vmem:[#allocation12_spill] sm:$0xff] %v3171_v50  ;;  %3832 = vst [vmem:[#allocation13_spill] sm:$0xff] %v3176_v55  ;;  %v1902_v5 = vmax.f32 %v1901_v29, %v3167_v41  ;;  %v2067_v8 = vmin.f32 %v2066_v31, %v3167_v41  ;;  %v1928_v9 = vmax.f32 %v1927_v32, %v3176_v55  ;;  %2478 = vmatpush1.bf16.msra.mxu0 %v2477_v22 }
 0x13a   : > { %3833 = vst [vmem:[#allocation14_spill] sm:$0xff] %v3180_v1  ;;  %v2093_v10 = vmin.f32 %v2092_v33, %v3176_v55  ;;  %v2493_v20 = vpack.c.bf16 %v948_v11, %v3116_v48  ;;  %v885_v21 = vadd.f32 %v884_v43, %v3068_v56  ;;  %v958_v27 = vadd.f32 %v957_v0, %v3070_v59 }
 0x13b   : > { %v3192_v28 = vadd.f32 %v886_v61, %v3072_v60  ;;  %v3195_v30 = vadd.f32 %v959_v4, %v3074_v63  ;;  %v3201_v31 = vmul.f32 %v3119_v49, %v3119_v49  ;;  %v3203_v22 = vmul.f32 %v877_v15, %v877_v15 }
 0x13c   : > { %2494 = vmatpush1.bf16.msra.mxu1 %v2493_v20  ;;  %v3205_v48 = vmul.f32 %v885_v21, %v885_v21  ;;  %v1890_v11 = vmax.f32 %v1889_v51, %v885_v21  ;;  %v2055_v32 = vmin.f32 %v2054_v54, %v885_v21  ;;  %v3207_v33 = vmul.f32 %v958_v27, %v958_v27  ;;  %v890_v35 = vpop.f32.mrb[12].mxu0  ;;  %v963_v43 = vpop.f32.mrb[12].mxu1 }
 0x13d   : > { %3834 = vst [vmem:[#allocation15_spill] sm:$0xff] %v3192_v28  ;;  %3835 = vst [vmem:[#allocation16_spill] sm:$0xff] %v3195_v30  ;;  %v1916_v36 = vmax.f32 %v1915_v2, %v958_v27  ;;  %v2081_v38 = vmin.f32 %v2080_v3, %v958_v27  ;;  %v1903_v39 = vmax.f32 %v1902_v5, %v3192_v28  ;;  %v892_v0 = vpop.f32.mrb[13].mxu0  ;;  %v965_v54 = vpop.f32.mrb[13].mxu1 }
 0x13e   : > { %3836 = vst [vmem:[#allocation17_spill] sm:$0xff] %v3201_v31  ;;  %3837 = vst [vmem:[#allocation18_spill] sm:$0xff] %v3203_v22  ;;  %v2068_v42 = vmin.f32 %v2067_v8, %v3192_v28  ;;  %v1929_v49 = vmax.f32 %v1928_v9, %v3195_v30  ;;  %v2094_v15 = vmin.f32 %v2093_v10, %v3195_v30  ;;  %v894_v4 = vpop.f32.mrb[14].mxu0  ;;  %v967_v9 = vpop.f32.mrb[14].mxu1 }
 0x13f   : > { %3838 = vst [vmem:[#allocation19_spill] sm:$0xff] %v3205_v48  ;;  %3839 = vst [vmem:[#allocation20_spill] sm:$0xff] %v3207_v33  ;;  %v3214_v61 = vadd.f32 %v890_v35, %v3068_v56  ;;  %v3217_v51 = vadd.f32 %v963_v43, %v3070_v59  ;;  %v2479_v2 = vpack.c.bf16 %v3192_v28, %v3167_v41  ;;  %v896_v10 = vpop.f32.mrb[15].mxu0  ;;  %v969_v47 = vpop.f32.mrb[15].mxu1 }
 0x140   : > { %v2495_v3 = vpack.c.bf16 %v3195_v30, %v3176_v55  ;;  %v3224_v5 = vadd.f32 %v892_v0, %v3072_v60  ;;  %v3227_v8 = vadd.f32 %v965_v54, %v3074_v63 }
 0x141   : > { %v3231_v20 = vmul.f32 %v3214_v61, %v3214_v61  ;;  %v1891_v35 = vmax.f32 %v1890_v11, %v3214_v61  ;;  %v2056_v43 = vmin.f32 %v2055_v32, %v3214_v61  ;;  %v3237_v29 = vmul.f32 %v3217_v51, %v3217_v51  ;;  %2480 = vmatprep.subr.bf16.mxu0 %v2479_v2 }
 0x142   : > { %v1917_v0 = vmax.f32 %v1916_v36, %v3217_v51  ;;  %v2082_v54 = vmin.f32 %v2081_v38, %v3217_v51  ;;  %2496 = vmatprep.subr.bf16.mxu1 %v2495_v3  ;;  %v1904_v16 = vmax.f32 %v1903_v39, %v3224_v5  ;;  %v2069_v52 = vmin.f32 %v2068_v42, %v3224_v5 }
 0x143   : > { %3840 = vst [vmem:[#allocation21_spill] sm:$0xff] %v3231_v20  ;;  %3841 = vst [vmem:[#allocation22_spill] sm:$0xff] %v3237_v29  ;;  %v1930_v24 = vmax.f32 %v1929_v49, %v3227_v8  ;;  %v2095_v11 = vmin.f32 %v2094_v15, %v3227_v8  ;;  %v2481_v32 = vpack.c.bf16 %v885_v21, %v3158_v34 }
 0x144   : > { %v2497_v20 = vpack.c.bf16 %v958_v27, %v3161_v37  ;;  %v3248_v29 = vadd.f32 %v894_v4, %v3068_v56  ;;  %v3251_v36 = vadd.f32 %v967_v9, %v3070_v59  ;;  %v3254_v38 = vadd.f32 %v896_v10, %v3072_v60  ;;  %v3259_v42 = vpop.f32.mrb[16].mxu0  ;;  %v3281_v21 = vpop.f32.mrb[16].mxu1 }
 0x145   : > { %2482 = vmatpush1.bf16.msra.mxu0 %v2481_v32  ;;  %v3257_v39 = vadd.f32 %v969_v47, %v3074_v63  ;;  %v3265_v37 = vmul.f32 %v3130_v58, %v3130_v58  ;;  %v3269_v56 = vmul.f32 %v3146_v46, %v3146_v46  ;;  %v3283_v58 = vpop.f32.mrb[17].mxu0  ;;  %v3289_v4 = vpop.f32.mrb[17].mxu1  ;;  %v3323_v45 = vadd.f32 %v3281_v21, %v3079_v7 }
 0x146   : > { %2498 = vmatpush1.bf16.msra.mxu1 %v2497_v20  ;;  %v3273_v59 = vmul.f32 %v3248_v29, %v3248_v29  ;;  %v1892_v60 = vmax.f32 %v1891_v35, %v3248_v29  ;;  %v2057_v63 = vmin.f32 %v2056_v43, %v3248_v29  ;;  %v3279_v47 = vmul.f32 %v3251_v36, %v3251_v36  ;;  %v3291_v2 = vpop.f32.mrb[18].mxu0  ;;  %v3295_v35 = vpop.f32.mrb[18].mxu1 }
 0x147   : > { %v1918_v46 = vmax.f32 %v1917_v0, %v3251_v36  ;;  %v2083_v27 = vmin.f32 %v2082_v54, %v3251_v36  ;;  %v1905_v49 = vmax.f32 %v1904_v16, %v3254_v38  ;;  %v2070_v15 = vmin.f32 %v2069_v52, %v3254_v38  ;;  %v3297_v43 = vpop.f32.mrb[19].mxu0  ;;  %v3299_v34 = vpop.f32.mrb[19].mxu1 }
 0x148   : > { %3842 = vst [vmem:[#allocation23_spill] sm:$0xff] %v3273_v59  ;;  %3843 = vst [vmem:[#allocation24_spill] sm:$0xff] %v3279_v47  ;;  %v1893_v3 = vrot.slane %v1892_v60, 4  ;;  %v2058_v9 = vrot.slane %v2057_v63, 4  ;;  %v1931_v10 = vmax.f32 %v1930_v24, %v3257_v39  ;;  %v2096_v20 = vmin.f32 %v2095_v11, %v3257_v39 }
 0x149   : > { %v1919_v0 = vrot.slane %v1918_v46, 4  ;;  %v2084_v54 = vrot.slane %v2083_v27, 4  ;;  %v1906_v32 = vrot.slane %v1905_v49, 4  ;;  %v2071_v16 = vrot.slane %v2070_v15, 4 }
 0x14a   : > { %v1894_v52 = vmax.f32 %v1892_v60, %v1893_v3  ;;  %v2059_v47 = vmin.f32 %v2057_v63, %v2058_v9  ;;  %v1932_v59 = vrot.slane %v1931_v10, 4  ;;  %v2097_v31 = vrot.slane %v2096_v20, 4 }
 0x14b   : > { %v1920_v22 = vmax.f32 %v1918_v46, %v1919_v0  ;;  %v2085_v19 = vmin.f32 %v2083_v27, %v2084_v54  ;;  %v1907_v57 = vmax.f32 %v1905_v49, %v1906_v32  ;;  %v2072_v24 = vmin.f32 %v2070_v15, %v2071_v16 }
 0x14c   : > { %v1895_v14 = vrot.slane %v1894_v52, 2  ;;  %v2060_v11 = vrot.slane %v2059_v47, 2  ;;  %v1933_v25 = vmax.f32 %v1931_v10, %v1932_v59  ;;  %v2098_v33 = vmin.f32 %v2096_v20, %v2097_v31  ;;  %v3301_v55 = vpop.f32.mrb[20].mxu0  ;;  %v3303_v3 = vpop.f32.mrb[20].mxu1 }
 0x14d   : > { %v1921_v1 = vrot.slane %v1920_v22, 2  ;;  %v2086_v48 = vrot.slane %v2085_v19, 2  ;;  %v1908_v50 = vrot.slane %v1907_v57, 2  ;;  %v2073_v30 = vrot.slane %v2072_v24, 2  ;;  %v3305_v46 = vpop.f32.mrb[21].mxu0  ;;  %v3307_v59 = vpop.f32.mrb[21].mxu1 }
 0x14e   : > { %v1896_v28 = vmax.f32 %v1894_v52, %v1895_v14  ;;  %v2061_v44 = vmin.f32 %v2059_v47, %v2060_v11  ;;  %v1934_v60 = vrot.slane %v1933_v25, 2  ;;  %v2099_v63 = vrot.slane %v2098_v33, 2  ;;  %v3309_v31 = vpop.f32.mrb[22].mxu0  ;;  %v3311_v14 = vpop.f32.mrb[22].mxu1 }
 0x14f   : > { %v1922_v27 = vmax.f32 %v1920_v22, %v1921_v1  ;;  %v2087_v49 = vmin.f32 %v2085_v19, %v2086_v48  ;;  %v1909_v15 = vmax.f32 %v1907_v57, %v1908_v50  ;;  %v2074_v9 = vmin.f32 %v2072_v24, %v2073_v30  ;;  %v3313_v47 = vpop.f32.mrb[23].mxu0  ;;  %v3315_v1 = vpop.f32.mrb[23].mxu1 }
 0x150   : > { %v1897_v10 = vrot.slane %v1896_v28, 1  ;;  %v2062_v20 = vrot.slane %v2061_v44, 1  ;;  %v1935_v0 = vmax.f32 %v1933_v25, %v1934_v60  ;;  %v2100_v54 = vmin.f32 %v2098_v33, %v2099_v63 }
 0x151   : > { %v1923_v32 = vrot.slane %v1922_v27, 1  ;;  %v2088_v16 = vrot.slane %v2087_v49, 1  ;;  %v1910_v52 = vrot.slane %v1909_v15, 1  ;;  %v2075_v11 = vrot.slane %v2074_v9, 1 }
 0x152   : > { %v1898_v19 = vmax.f32 %v1896_v28, %v1897_v10  ;;  %v2063_v57 = vmin.f32 %v2061_v44, %v2062_v20  ;;  %v1936_v50 = vrot.slane %v1935_v0, 1  ;;  %v2101_v30 = vrot.slane %v2100_v54, 1 }
 0x153   : > { %v1924_v22 = vmax.f32 %v1922_v27, %v1923_v32  ;;  %v2089_v48 = vmin.f32 %v2087_v49, %v2088_v16  ;;  %v1911_v24 = vmax.f32 %v1909_v15, %v1910_v52  ;;  %v2076_v25 = vmin.f32 %v2074_v9, %v2075_v11 }
 0x154   : > { %v1937_v33 = vmax.f32 %v1935_v0, %v1936_v50  ;;  %v2102_v60 = vmin.f32 %v2100_v54, %v2101_v30  ;;  %v3319_v63 = vadd.f32 %v3259_v42, %v3077_v6  ;;  %v2483_v44 = vpack.c.bf16 %v3254_v38, %v3224_v5  ;;  %v3329_v49 = vpop.f32.mrb[24].mxu0  ;;  %v3339_v10 = vpop.f32.mrb[24].mxu1 }
 0x155   : > { %v1998_v23 = vcombine.low %v1898_v19, %v1911_v24  ;;  %v2163_v28 = vcombine.low %v2063_v57, %v2076_v25  ;;  %v2499_v27 = vpack.c.bf16 %v3257_v39, %v3227_v8  ;;  %v3337_v21 = vmul.f32 %v3323_v45, %v3323_v45  ;;  %v3341_v20 = vpop.f32.mrb[25].mxu0  ;;  %v3349_v16 = vpop.f32.mrb[25].mxu1 }
 0x156   : > { %v1999_v15 = vcombine.low %v1924_v22, %v1937_v33  ;;  %v2164_v9 = vcombine.low %v2089_v48, %v2102_v60  ;;  %v3333_v42 = vmul.f32 %v3319_v63, %v3319_v63  ;;  %2484 = vmatprep.subr.bf16.mxu0 %v2483_v44  ;;  %v3347_v32 = vadd.f32 %v3283_v58, %v3083_v12  ;;  %v3351_v52 = vpop.f32.mrb[26].mxu0  ;;  %v3361_v50 = vpop.f32.mrb[26].mxu1 }
 0x157   : > { %3845 = vst [vmem:[#allocation26_spill] sm:$0xff] %v3337_v21  ;;  %v2008_v0 = vrot.slane %v1998_v23, %v3091_v18  ;;  %v2173_v54 = vrot.slane %v2163_v28, %v3091_v18  ;;  %2500 = vmatprep.subr.bf16.mxu1 %v2499_v27  ;;  %v3357_v57 = vadd.f32 %v3289_v4, %v3085_v13  ;;  %v3363_v30 = vpop.f32.mrb[27].mxu0  ;;  %v3375_v24 = vpop.f32.mrb[27].mxu1 }
 0x158   : > { %3844 = vst [vmem:[#allocation25_spill] sm:$0xff] %v3333_v42  ;;  %3846 = vst [vmem:[#allocation27_spill] sm:$0xff] %v3347_v32  ;;  %v2015_v11 = vrot.slane %v1999_v15, %v3091_v18  ;;  %v2180_v19 = vrot.slane %v2164_v9, %v3091_v18  ;;  %v2485_v23 = vpack.c.bf16 %v3248_v29, %v3214_v61  ;;  %v3809_v9 = vmov 1.0  }
 0x159   : > { %3847 = vst [vmem:[#allocation28_spill] sm:$0xff] %v3357_v57  ;;  %v2501_v58 = vpack.c.bf16 %v3251_v36, %v3217_v51  ;;  %v1011_v22 = vadd.f32 %v3291_v2, %v3077_v6  ;;  %v1084_v48 = vadd.f32 %v3295_v35, %v3079_v7  ;;  %v3373_v4 = vadd.f32 %v3297_v43, %v3083_v12 }
 0x15a   : > { %v2030_v29 = vcombine.low %v2008_v0, %v2015_v11  ;;  %v2195_v61 = vcombine.low %v2173_v54, %v2180_v19  ;;  %2486 = vmatpush1.bf16.msra.mxu0 %v2485_v23  ;;  %v3379_v25 = vadd.f32 %v3299_v34, %v3085_v13  ;;  %v3383_v51 = vadd.f32 %v3301_v55, %v3077_v6 }
 0x15b   : > { %3848 = vst [vmem:[#allocation29_spill] sm:$0xff] %v3373_v4  ;;  %2502 = vmatpush1.bf16.msra.mxu1 %v2501_v58  ;;  %v3385_v36 = vmul.f32 %v1011_v22, %v1011_v22  ;;  %v1938_v2 = vmax.f32 %v3319_v63, %v1011_v22  ;;  %v2103_v35 = vmin.f32 %v3319_v63, %v1011_v22 }
 0x15c   : > { %3849 = vst [vmem:[#allocation30_spill] sm:$0xff] %v3379_v25  ;;  %v3389_v43 = vmul.f32 %v1084_v48, %v1084_v48  ;;  %v3392_v33 = vrot.slane %v2030_v29, %v3091_v18  ;;  %v3395_v60 = vrot.slane %v2195_v61, %v3091_v18  ;;  %v1964_v34 = vmax.f32 %v3323_v45, %v1084_v48  ;;  %v3409_v0 = vpop.f32.mrb[28].mxu0  ;;  %v3423_v58 = vpop.f32.mrb[28].mxu1 }
 0x15d   : > { %3850 = vst [vmem:[#allocation31_spill] sm:$0xff] %v3385_v36  ;;  %v2129_v55 = vmin.f32 %v3323_v45, %v1084_v48  ;;  %v1951_v28 = vmax.f32 %v3347_v32, %v3373_v4  ;;  %v2116_v44 = vmin.f32 %v3347_v32, %v3373_v4  ;;  %v1977_v27 = vmax.f32 %v3357_v57, %v3379_v25  ;;  %v3425_v29 = vpop.f32.mrb[29].mxu0 }
 0x15e   : > { %3851 = vst [vmem:[#allocation32_spill] sm:$0xff] %v3389_v43  ;;  %v2142_v15 = vmin.f32 %v3357_v57, %v3379_v25  ;;  %2438 = vmatmul.mubr.msk.f32.vlgmr.msra.gmra.mrb[32].mxu0 %vm1127_vm0, %v3809_v9  ;;  %v3413_v54 = vmul.f32 %v3383_v51, %v3383_v51  ;;  %v1939_v11 = vmax.f32 %v1938_v2, %v3383_v51  ;;  %v3853_v43 = vmov 0.0  }
 0x15f   : > { %v2104_v19 = vmin.f32 %v2103_v35, %v3383_v51  ;;  %v3419_v23 = vadd.f32 %v3303_v3, %v3079_v7  ;;  %2439 = vmatmul.mubr.msk.f32.vlgmr.msra.gmra.mrb[32].mxu1 %vm1127_vm0, %v3809_v9  ;;  %v2503_v61 = vpack.c.bf16 %v3373_v4, %v3347_v32  ;;  %v3433_v2 = vadd.f32 %v3305_v46, %v3083_v12  ;;  %v3439_v35 = vpop.f32.mrb[29].mxu1  ;;  %v3441_v9 = vpop.f32.mrb[30].mxu0 }
 0x160   : > { %3852 = vst [vmem:[#allocation33_spill] sm:$0xff] %v3413_v54  ;;  %v2519_v54 = vpack.c.bf16 %v3379_v25, %v3357_v57  ;;  %v3437_v3 = vadd.f32 %v3307_v59, %v3085_v13  ;;  %1337 = vmatprep.mubr.f32.mxu0 %v3853_v43  ;;  %v2505_v46 = vpack.c.bf16 %v1011_v22, %v3319_v63  ;;  %v3451_v25 = vpop.f32.mrb[30].mxu1  ;;  %v3453_v59 = vpop.f32.mrb[31].mxu0  ;;  %1122 = vst [vmem:[%s3753_s17] sm:$0xff] %v3853_v43 }
 0x161   : > { %v3446_v21 = vmul.f32 %v3419_v23, %v3419_v23  ;;  %v1965_v36 = vmax.f32 %v1964_v34, %v3419_v23  ;;  %v2130_v42 = vmin.f32 %v2129_v55, %v3419_v23  ;;  %1408 = vmatprep.mubr.f32.mxu1 %v3853_v43  ;;  %2504 = vmatprep.subr.bf16.mxu0 %v2503_v61  ;;  %v3459_v32 = vpop.f32.mrb[31].mxu1 }
 0x162   : > { %2520 = vmatprep.subr.bf16.mxu1 %v2519_v54  ;;  %v1952_v57 = vmax.f32 %v1951_v28, %v3433_v2  ;;  %v2117_v4 = vmin.f32 %v2116_v44, %v3433_v2  ;;  %v2143_v34 = vmin.f32 %v2142_v15, %v3437_v3  ;;  %2506 = vmatpush1.bf16.msra.mxu0 %v2505_v46 }
 0x163   : > { %3854 = vst [vmem:[#allocation34_spill] sm:$0xff] %v3446_v21  ;;  %v1978_v21 = vmax.f32 %v1977_v27, %v3437_v3  ;;  %v2521_v63 = vpack.c.bf16 %v1084_v48, %v3323_v45  ;;  %v1021_v22 = vadd.f32 %v3309_v31, %v3077_v6  ;;  %v1094_v55 = vadd.f32 %v3311_v14, %v3079_v7 }
 0x164   : > { %v3469_v28 = vadd.f32 %v3313_v47, %v3083_v12  ;;  %v3473_v44 = vadd.f32 %v3315_v1, %v3085_v13  ;;  %v3477_v27 = vadd.f32 %v3329_v49, %v3077_v6  ;;  %v3481_v45 = vadd.f32 %v3339_v10, %v3079_v7  ;;  %1123 = vst [vmem:[%s3753_s17 + $0x8] sm:$0xff] %v3853_v43 }
 0x165   : > { %2522 = vmatpush1.bf16.msra.mxu1 %v2521_v63  ;;  %v3483_v31 = vmul.f32 %v1021_v22, %v1021_v22  ;;  %v1940_v14 = vmax.f32 %v1939_v11, %v1021_v22  ;;  %v2105_v48 = vmin.f32 %v2104_v19, %v1021_v22  ;;  %v3485_v15 = vmul.f32 %v1094_v55, %v1094_v55 }
 0x166   : > { %v1966_v47 = vmax.f32 %v1965_v36, %v1094_v55  ;;  %v2131_v54 = vmin.f32 %v2130_v42, %v1094_v55  ;;  %v1953_v1 = vmax.f32 %v1952_v57, %v3469_v28  ;;  %v2118_v61 = vmin.f32 %v2117_v4, %v3469_v28 }
 0x167   : > { %v1979_v49 = vmax.f32 %v1978_v21, %v3473_v44  ;;  %v2144_v46 = vmin.f32 %v2143_v34, %v3473_v44  ;;  %v3493_v10 = vmul.f32 %v3477_v27, %v3477_v27  ;;  %v1941_v63 = vmax.f32 %v1940_v14, %v3477_v27 }
 0x168   : > { %v2106_v11 = vmin.f32 %v2105_v48, %v3477_v27  ;;  %v3499_v36 = vmul.f32 %v3481_v45, %v3481_v45  ;;  %v1967_v42 = vmax.f32 %v1966_v47, %v3481_v45  ;;  %v2132_v57 = vmin.f32 %v2131_v54, %v3481_v45 }
 0x169   : > { %3855 = vst [vmem:[#allocation35_spill] sm:$0xff] %v3493_v10  ;;  %v2507_v21 = vpack.c.bf16 %v3469_v28, %v3433_v2  ;;  %v2523_v4 = vpack.c.bf16 %v3473_v44, %v3437_v3  ;;  %v3509_v19 = vadd.f32 %v3341_v20, %v3083_v12  ;;  %v3513_v34 = vadd.f32 %v3349_v16, %v3085_v13 }
 0x16a   : > { %3856 = vst [vmem:[#allocation36_spill] sm:$0xff] %v3499_v36  ;;  %v2509_v14 = vpack.c.bf16 %v1021_v22, %v3383_v51  ;;  %v2525_v48 = vpack.c.bf16 %v1094_v55, %v3419_v23  ;;  %v1031_v47 = vadd.f32 %v3351_v52, %v3077_v6  ;;  %v1104_v54 = vadd.f32 %v3361_v50, %v3079_v7 }
 0x16b   : > { %3857 = vst [vmem:[#allocation37_spill] sm:$0xff] %v3509_v19  ;;  %3858 = vst [vmem:[#allocation38_spill] sm:$0xff] %v3513_v34  ;;  %2508 = vmatprep.subr.bf16.mxu0 %v2507_v21  ;;  %2524 = vmatprep.subr.bf16.mxu1 %v2523_v4  ;;  %v1954_v36 = vmax.f32 %v1953_v1, %v3509_v19  ;;  %v2119_v20 = vmin.f32 %v2118_v61, %v3509_v19 }
 0x16c   : > { %v1980_v10 = vmax.f32 %v1979_v49, %v3513_v34  ;;  %v2145_v16 = vmin.f32 %v2144_v46, %v3513_v34  ;;  %2510 = vmatpush1.bf16.msra.mxu0 %v2509_v14  ;;  %2526 = vmatpush1.bf16.msra.mxu1 %v2525_v48  ;;  %v3525_v51 = vmul.f32 %v1031_v47, %v1031_v47 }
 0x16d   : > { %v1942_v23 = vmax.f32 %v1941_v63, %v1031_v47  ;;  %v2107_v22 = vmin.f32 %v2106_v11, %v1031_v47  ;;  %v3527_v52 = vmul.f32 %v1104_v54, %v1104_v54  ;;  %v1968_v55 = vmax.f32 %v1967_v42, %v1104_v54 }
 0x16e   : > { %3859 = vst [vmem:[#allocation39_spill] sm:$0xff] %v3525_v51  ;;  %v2133_v50 = vmin.f32 %v2132_v57, %v1104_v54  ;;  %v3531_v21 = vadd.f32 %v3363_v30, %v3083_v12  ;;  %v3535_v1 = vadd.f32 %v3375_v24, %v3085_v13  ;;  %v3539_v61 = vadd.f32 %v3409_v0, %v3077_v6 }
 0x16f   : > { %3860 = vst [vmem:[#allocation40_spill] sm:$0xff] %v3527_v52  ;;  %v3543_v49 = vadd.f32 %v3423_v58, %v3079_v7  ;;  %v3547_v46 = vadd.f32 %v3425_v29, %v3083_v12  ;;  %v3551_v30 = vadd.f32 %v3439_v35, %v3085_v13  ;;  %v2513_v63 = vpack.c.bf16 %v1031_v47, %v3477_v27 }
 0x170   : > { %3861 = vst [vmem:[#allocation41_spill] sm:$0xff] %v3531_v21  ;;  %3862 = vst [vmem:[#allocation42_spill] sm:$0xff] %v3535_v1  ;;  %v2529_v24 = vpack.c.bf16 %v1104_v54, %v3481_v45  ;;  %v1955_v11 = vmax.f32 %v1954_v36, %v3531_v21  ;;  %v2120_v0 = vmin.f32 %v2119_v20, %v3531_v21 }
 0x171   : > { %v1981_v42 = vmax.f32 %v1980_v10, %v3535_v1  ;;  %v2146_v58 = vmin.f32 %v2145_v16, %v3535_v1  ;;  %v3561_v29 = vmul.f32 %v3539_v61, %v3539_v61  ;;  %v1943_v57 = vmax.f32 %v1942_v23, %v3539_v61 }
 0x172   : > { %v2108_v35 = vmin.f32 %v2107_v22, %v3539_v61  ;;  %v3567_v27 = vmul.f32 %v3543_v49, %v3543_v49  ;;  %v1969_v45 = vmax.f32 %v1968_v55, %v3543_v49  ;;  %v2134_v36 = vmin.f32 %v2133_v50, %v3543_v49 }
 0x173   : > { %3863 = vst [vmem:[#allocation43_spill] sm:$0xff] %v3561_v29  ;;  %v2511_v10 = vpack.c.bf16 %v3531_v21, %v3509_v19  ;;  %v2527_v4 = vpack.c.bf16 %v3535_v1, %v3513_v34  ;;  %v1956_v14 = vmax.f32 %v1955_v11, %v3547_v46  ;;  %v2121_v48 = vmin.f32 %v2120_v0, %v3547_v46 }
 0x174   : > { %3864 = vst [vmem:[#allocation44_spill] sm:$0xff] %v3567_v27  ;;  %v1982_v47 = vmax.f32 %v1981_v42, %v3551_v30  ;;  %v2147_v54 = vmin.f32 %v2146_v58, %v3551_v30  ;;  %v3581_v20 = vadd.f32 %v3441_v9, %v3077_v6  ;;  %v3585_v16 = vadd.f32 %v3451_v25, %v3079_v7 }
 0x175   : > { %2512 = vmatprep.subr.bf16.mxu0 %v2511_v10  ;;  %2528 = vmatprep.subr.bf16.mxu1 %v2527_v4  ;;  %v3589_v23 = vadd.f32 %v3453_v59, %v3083_v12  ;;  %v3593_v22 = vadd.f32 %v3459_v32, %v3085_v13 }
 0x176   : > { %2514 = vmatpush1.bf16.msra.mxu0 %v2513_v63  ;;  %2530 = vmatpush1.bf16.msra.mxu1 %v2529_v24  ;;  %v3601_v7 = vmul.f32 %v3581_v20, %v3581_v20  ;;  %v1944_v25 = vmax.f32 %v1943_v57, %v3581_v20  ;;  %v2109_v12 = vmin.f32 %v2108_v35, %v3581_v20 }
 0x177   : > { %v3607_v9 = vmul.f32 %v3585_v16, %v3585_v16  ;;  %v1970_v13 = vmax.f32 %v1969_v45, %v3585_v16  ;;  %v2135_v32 = vmin.f32 %v2134_v36, %v3585_v16  ;;  %v1957_v59 = vmax.f32 %v1956_v14, %v3589_v23 }
 0x178   : > { %3865 = vst [vmem:[#allocation45_spill] sm:$0xff] %v3601_v7  ;;  %v2122_v50 = vmin.f32 %v2121_v48, %v3589_v23  ;;  %v1945_v63 = vrot.slane %v1944_v25, 4  ;;  %v2110_v24 = vrot.slane %v2109_v12, 4  ;;  %v1983_v11 = vmax.f32 %v1982_v47, %v3593_v22 }
 0x179   : > { %3866 = vst [vmem:[#allocation46_spill] sm:$0xff] %v3607_v9  ;;  %v2148_v0 = vmin.f32 %v2147_v54, %v3593_v22  ;;  %v1971_v42 = vrot.slane %v1970_v13, 4  ;;  %v2136_v58 = vrot.slane %v2135_v32, 4  ;;  %v1958_v57 = vrot.slane %v1957_v59, 4 }
 0x17a   : > { %v2123_v35 = vrot.slane %v2122_v50, 4  ;;  %v1946_v10 = vmax.f32 %v1944_v25, %v1945_v63  ;;  %v2111_v4 = vmin.f32 %v2109_v12, %v2110_v24  ;;  %v1984_v6 = vrot.slane %v1983_v11, 4 }
 0x17b   : > { %v2149_v45 = vrot.slane %v2148_v0, 4  ;;  %v1972_v55 = vmax.f32 %v1970_v13, %v1971_v42  ;;  %v2137_v36 = vmin.f32 %v2135_v32, %v2136_v58  ;;  %v1959_v9 = vmax.f32 %v1957_v59, %v1958_v57 }
 0x17c   : > { %v2124_v14 = vmin.f32 %v2122_v50, %v2123_v35  ;;  %v1947_v27 = vrot.slane %v1946_v10, 2  ;;  %v2112_v48 = vrot.slane %v2111_v4, 2  ;;  %v1985_v7 = vmax.f32 %v1983_v11, %v1984_v6 }
 0x17d   : > { %v2150_v29 = vmin.f32 %v2148_v0, %v2149_v45  ;;  %v1973_v52 = vrot.slane %v1972_v55, 2  ;;  %v2138_v47 = vrot.slane %v2137_v36, 2  ;;  %v1960_v51 = vrot.slane %v1959_v9, 2 }
 0x17e   : > { %v2125_v54 = vrot.slane %v2124_v14, 2  ;;  %v1948_v1 = vmax.f32 %v1946_v10, %v1947_v27  ;;  %v2113_v34 = vmin.f32 %v2111_v4, %v2112_v48  ;;  %v1986_v21 = vrot.slane %v1985_v7, 2 }
 0x17f   : > { %v2151_v19 = vrot.slane %v2150_v29, 2  ;;  %v1974_v25 = vmax.f32 %v1972_v55, %v1973_v52  ;;  %v2139_v12 = vmin.f32 %v2137_v36, %v2138_v47  ;;  %v1961_v63 = vmax.f32 %v1959_v9, %v1960_v51 }
 0x180   : > { %v2126_v24 = vmin.f32 %v2124_v14, %v2125_v54  ;;  %v1949_v13 = vrot.slane %v1948_v1, 1  ;;  %v2114_v32 = vrot.slane %v2113_v34, 1  ;;  %v1987_v59 = vmax.f32 %v1985_v7, %v1986_v21 }
 0x181   : > { %v2152_v50 = vmin.f32 %v2150_v29, %v2151_v19  ;;  %v1975_v42 = vrot.slane %v1974_v25, 1  ;;  %v2140_v58 = vrot.slane %v2139_v12, 1  ;;  %v1962_v6 = vrot.slane %v1961_v63, 1 }
 0x182   : > { %v2127_v11 = vrot.slane %v2126_v24, 1  ;;  %v1950_v0 = vmax.f32 %v1948_v1, %v1949_v13  ;;  %v2115_v57 = vmin.f32 %v2113_v34, %v2114_v32  ;;  %v1988_v35 = vrot.slane %v1987_v59, 1 }
 0x183   : > { %v2153_v45 = vrot.slane %v2152_v50, 1  ;;  %v1976_v27 = vmax.f32 %v1974_v25, %v1975_v42  ;;  %v2141_v10 = vmin.f32 %v2139_v12, %v2140_v58  ;;  %v1963_v4 = vmax.f32 %v1961_v63, %v1962_v6  ;;  %v3869_v25 = vld [vmem:[#allocation11_spill] sm:$0xff]  ;;  %v3870_v12 = vld [vmem:[#allocation10_spill] sm:$0xff] }
 0x184   : > { %v2128_v48 = vmin.f32 %v2126_v24, %v2127_v11  ;;  %v1989_v52 = vmax.f32 %v1987_v59, %v1988_v35  ;;  %v2515_v51 = vpack.c.bf16 %v3589_v23, %v3547_v46  ;;  %v2531_v19 = vpack.c.bf16 %v3593_v22, %v3551_v30  ;;  %v3873_v24 = vld [vmem:[#allocation13_spill] sm:$0xff]  ;;  %v3875_v59 = vld [vmem:[#allocation12_spill] sm:$0xff]  ;;  %v3877_v58 = vld [vmem:[#allocation14_spill] sm:$0xff] }
 0x185   : > { %v2154_v55 = vmin.f32 %v2152_v50, %v2153_v45  ;;  %v2000_v21 = vcombine.low %v1950_v0, %v1963_v4  ;;  %v2517_v1 = vpack.c.bf16 %v3581_v20, %v3539_v61  ;;  %v2533_v34 = vpack.c.bf16 %v3585_v16, %v3543_v49  ;;  %v3867_v20 = vld [vmem:[#allocation7_spill] sm:$0xff]  ;;  %v3880_v45 = vld [vmem:[#allocation8_spill] sm:$0xff]  ;;  %v3883_v4 = vld [vmem:[#allocation9_spill] sm:$0xff] }
 0x186   : > { %v2165_v29 = vcombine.low %v2115_v57, %v2128_v48  ;;  %v2001_v7 = vcombine.low %v1976_v27, %v1989_v52  ;;  %2516 = vmatprep.subr.bf16.mxu0 %v2515_v51  ;;  %2532 = vmatprep.subr.bf16.mxu1 %v2531_v19  ;;  %v2557_v36 = vpack.c.bf16 %v3153_v26, %v3134_v62  ;;  %v3872_v26 = vld [vmem:[#allocation15_spill] sm:$0xff]  ;;  %v3879_v57 = vmov 1.0   ;;  %v3881_v27 = vld [vmem:[#allocation5_spill] sm:$0xff]  ;;  %v3884_v48 = vld [vmem:[#allocation6_spill] sm:$0xff] }
 0x187   : > { %v2166_v9 = vcombine.low %v2141_v10, %v2154_v55  ;;  %v2022_v14 = vrot.slane %v2000_v21, %v3091_v18  ;;  %2518 = vmatpush1.bf16.msra.mxu0 %v2517_v1  ;;  %2534 = vmatpush1.bf16.msra.mxu1 %v2533_v34  ;;  %v1510_v54 = vmul.f32 %v3167_v41, %v3167_v41  ;;  %v3874_v41 = vld [vmem:[#allocation16_spill] sm:$0xff]  ;;  %v3876_v50 = vld [vmem:[#allocation19_spill] sm:$0xff]  ;;  %v3886_v1 = vld [vmem:[#allocation18_spill] sm:$0xff] }
 0x188   : > { %v2187_v47 = vrot.slane %v2165_v29, %v3091_v18  ;;  %v2029_v61 = vrot.slane %v2001_v7, %v3091_v18  ;;  %v3868_v16 = vpack.c.bf16 %v3104_v40, %v3867_v20  ;;  %v3871_v62 = vpack.c.bf16 %v3869_v25, %v3870_v12  ;;  %v3878_v40 = vld [vmem:[#allocation20_spill] sm:$0xff]  ;;  %v3887_v34 = vld [vmem:[#allocation17_spill] sm:$0xff] }
 0x189   : > { %v2194_v49 = vrot.slane %v2166_v9, %v3091_v18  ;;  %v1518_v63 = vmul.f32 %v3872_v26, %v3872_v26  ;;  %v1512_v13 = vmul.f32 %v3873_v24, %v3873_v24  ;;  %v1520_v32 = vmul.f32 %v3874_v41, %v3874_v41  ;;  %v3893_v20 = vld [vmem:[#allocation24_spill] sm:$0xff] }
 0x18a   : > { %2536 = vmatprep.subr.bf16.mxu0 %v3868_v16  ;;  %2552 = vmatprep.subr.bf16.mxu1 %v3871_v62  ;;  %v2545_v42 = vpack.c.bf16 %v3876_v50, %v3875_v59  ;;  %v2561_v6 = vpack.c.bf16 %v3878_v40, %v3877_v58  ;;  %v2031_v11 = vcombine.low %v2022_v14, %v2029_v61  ;;  %v3900_v59 = vld [vmem:[#allocation31_spill] sm:$0xff]  ;;  %v3901_v58 = vld [vmem:[#allocation26_spill] sm:$0xff]  ;;  %v3902_v40 = vld [vmem:[#allocation32_spill] sm:$0xff] }
 0x18b   : > { %v2196_v0 = vcombine.low %v2187_v47, %v2194_v49  ;;  %2440 = vmatmul.mubr.msk.f32.vlgmr.msra.gmra.mrb[34].mxu0 %vm1127_vm0, %v3879_v57  ;;  %2441 = vmatmul.mubr.msk.f32.vlgmr.msra.gmra.mrb[34].mxu1 %vm1127_vm0, %v3879_v57  ;;  %v2543_v35 = vpack.c.bf16 %v1518_v63, %v1510_v54  ;;  %v3882_v10 = vpack.c.bf16 %v3880_v45, %v3881_v27  ;;  %v3890_v47 = vld [vmem:[#allocation21_spill] sm:$0xff]  ;;  %v3891_v54 = vld [vmem:[#allocation23_spill] sm:$0xff]  ;;  %v3892_v49 = vld [vmem:[#allocation22_spill] sm:$0xff] }
 0x18c   : > { %v3885_v52 = vpack.c.bf16 %v3883_v4, %v3884_v48  ;;  %v2559_v55 = vpack.c.bf16 %v1520_v32, %v1512_v13  ;;  %v1526_v51 = vmul.f32 %v3224_v5, %v3224_v5  ;;  %v1534_v19 = vmul.f32 %v3254_v38, %v3254_v38  ;;  %1605 = vmatprep.mubr.f32.mxu0 %v3853_v43  ;;  %v3898_v63 = vld [vmem:[#allocation30_spill] sm:$0xff]  ;;  %v3899_v32 = vld [vmem:[#allocation25_spill] sm:$0xff] }
 0x18d   : > { %2538 = vmatpush1.bf16.msra.mxu0 %v3882_v10  ;;  %v2045_v21 = vrot.slane %v2031_v11, %v3091_v18  ;;  %v2210_v29 = vrot.slane %v2196_v0, %v3091_v18  ;;  %v3888_v7 = vpack.c.bf16 %v3886_v1, %v3887_v34  ;;  %v3889_v9 = vpack.c.bf16 %v3269_v56, %v3265_v37  ;;  %v3894_v56 = vld [vmem:[#allocation27_spill] sm:$0xff]  ;;  %v3904_v27 = vld [vmem:[#allocation34_spill] sm:$0xff]  ;;  %v3906_v48 = vld [vmem:[#allocation41_spill] sm:$0xff] }
 0x18e   : > { %2554 = vmatpush1.bf16.msra.mxu1 %v3885_v52  ;;  %v1528_v14 = vmul.f32 %v3227_v8, %v3227_v8  ;;  %v2547_v5 = vpack.c.bf16 %v1534_v19, %v1526_v51  ;;  %v1536_v38 = vmul.f32 %v3257_v39, %v3257_v39  ;;  %v2549_v61 = vpack.c.bf16 %v3891_v54, %v3890_v47  ;;  %v3895_v8 = vld [vmem:[#allocation29_spill] sm:$0xff]  ;;  %v3910_v19 = vld [vmem:[#allocation39_spill] sm:$0xff] }
 0x18f   : > { %2540 = vmatprep.subr.bf16.mxu0 %v3888_v7  ;;  %2556 = vmatprep.subr.bf16.mxu1 %v3889_v9  ;;  %v2565_v16 = vpack.c.bf16 %v3893_v20, %v3892_v49  ;;  %v2046_v25 = vcombine.low %v3392_v33, %v2045_v21  ;;  %v2211_v37 = vcombine.low %v3395_v60, %v2210_v29  ;;  %v3897_v60 = vld [vmem:[#allocation28_spill] sm:$0xff]  ;;  %v3914_v47 = vld [vmem:[#allocation45_spill] sm:$0xff]  ;;  %v3916_v20 = vld [vmem:[#allocation46_spill] sm:$0xff] }
 0x190   : > { %v1482_v12 = vmul.f32 %v3894_v56, %v3894_v56  ;;  %v1490_v62 = vmul.f32 %v3895_v8, %v3895_v8  ;;  %1676 = vmatprep.mubr.f32.mxu1 %v3853_v43  ;;  %v3896_v39 = vpack.c.bf16 %v3150_v17, %v3125_v53  ;;  %v2563_v33 = vpack.c.bf16 %v1536_v38, %v1528_v14  ;;  %v3911_v21 = vld [vmem:[#allocation36_spill] sm:$0xff]  ;;  %v3913_v38 = vld [vmem:[#allocation43_spill] sm:$0xff] }
 0x191   : > { %v1484_v26 = vmul.f32 %v3897_v60, %v3897_v60  ;;  %v1492_v24 = vmul.f32 %v3898_v63, %v3898_v63  ;;  %v2569_v50 = vpack.c.bf16 %v3900_v59, %v3899_v32  ;;  %v2585_v11 = vpack.c.bf16 %v3902_v40, %v3901_v58  ;;  %2049 = vst [vmem:[%s336_s10] sm:$0xff] %v2046_v25  ;;  %v3912_v29 = vld [vmem:[#allocation40_spill] sm:$0xff] }
 0x192   : > { %2542 = vmatpush1.bf16.msra.mxu0 %v3896_v39  ;;  %2558 = vmatpush1.bf16.msra.mxu1 %v2557_v36  ;;  %v2567_v13 = vpack.c.bf16 %v1490_v62, %v1482_v12  ;;  %v1498_v53 = vmul.f32 %v3433_v2, %v3433_v2  ;;  %2214 = vst [vmem:[%s340_s13] sm:$0xff] %v2211_v37  ;;  %v3905_v2 = vld [vmem:[#allocation37_spill] sm:$0xff]  ;;  %v3915_v49 = vld [vmem:[#allocation44_spill] sm:$0xff] }
 0x193   : > { %2544 = vmatprep.subr.bf16.mxu0 %v2543_v35  ;;  %2560 = vmatprep.subr.bf16.mxu1 %v2559_v55  ;;  %v2583_v41 = vpack.c.bf16 %v1492_v24, %v1484_v26  ;;  %v1506_v17 = vmul.f32 %v3469_v28, %v3469_v28  ;;  %v1500_v36 = vmul.f32 %v3437_v3, %v3437_v3  ;;  %v3903_v35 = vld [vmem:[#allocation33_spill] sm:$0xff]  ;;  %v3907_v55 = vld [vmem:[#allocation38_spill] sm:$0xff] }
 0x194   : > { %v1508_v0 = vmul.f32 %v3473_v44, %v3473_v44  ;;  %v2573_v45 = vpack.c.bf16 %v3483_v31, %v3903_v35  ;;  %v2589_v10 = vpack.c.bf16 %v3485_v15, %v3904_v27  ;;  %v1514_v4 = vmul.f32 %v3905_v2, %v3905_v2  ;;  %v3908_v31 = vld [vmem:[#allocation42_spill] sm:$0xff]  ;;  %v1126_v59 = vld [vmem:[%s3753_s17] ss:$2 sm:$0xff] }
 0x195   : > { %v1522_v28 = vmul.f32 %v3906_v48, %v3906_v48  ;;  %v2571_v3 = vpack.c.bf16 %v1506_v17, %v1498_v53  ;;  %v1516_v44 = vmul.f32 %v3907_v55, %v3907_v55  ;;  %v2593_v1 = vpack.c.bf16 %v3912_v29, %v3911_v21 }
 0x196   : > { %2546 = vmatpush1.bf16.msra.mxu0 %v2545_v42  ;;  %2562 = vmatpush1.bf16.msra.mxu1 %v2561_v6  ;;  %v2587_v52 = vpack.c.bf16 %v1508_v0, %v1500_v36  ;;  %v1524_v42 = vmul.f32 %v3908_v31, %v3908_v31  ;;  %v3909_v6 = vld [vmem:[#allocation35_spill] sm:$0xff]  ;;  %v1530_v34 = vmul.f32 %v3547_v46, %v3547_v46 }
 0x197   : > { %2548 = vmatprep.subr.bf16.mxu0 %v2547_v5  ;;  %2564 = vmatprep.subr.bf16.mxu1 %v2563_v33  ;;  %v2575_v51 = vpack.c.bf16 %v1522_v28, %v1514_v4  ;;  %v2577_v15 = vpack.c.bf16 %v3910_v19, %v3909_v6  ;;  %v1538_v7 = vmul.f32 %v3589_v23, %v3589_v23 }
 0x198   : > { %v1532_v9 = vmul.f32 %v3551_v30, %v3551_v30  ;;  %v1540_v14 = vmul.f32 %v3593_v22, %v3593_v22  ;;  %v2591_v5 = vpack.c.bf16 %v1524_v42, %v1516_v44  ;;  %v2581_v54 = vpack.c.bf16 %v3914_v47, %v3913_v38  ;;  %v2442_v42 = vld [vmem:[%s3753_s17 + $0x1] ss:$2 sm:$0xff] }
 0x199   : > { %v2597_v25 = vpack.c.bf16 %v3916_v20, %v3915_v49  ;;  %v2579_v46 = vpack.c.bf16 %v1538_v7, %v1530_v34 }
 0x19a   : > { %2550 = vmatpush1.bf16.msra.mxu0 %v2549_v61  ;;  %2566 = vmatpush1.bf16.msra.mxu1 %v2565_v16  ;;  %v2595_v37 = vpack.c.bf16 %v1540_v14, %v1532_v9 }
 0x19b   : > { %2568 = vmatprep.subr.bf16.mxu0 %v2567_v13  ;;  %2584 = vmatprep.subr.bf16.mxu1 %v2583_v41 }
 0x19d   : > { %2443 = vmatmul.mubr.msk.f32.vlgmr.msra.gmra.mrb[36].mxu0 %vm1127_vm0, %v3879_v57  ;;  %2444 = vmatmul.mubr.msk.f32.vlgmr.msra.gmra.mrb[36].mxu1 %vm1127_vm0, %v3879_v57 }
 0x19e   : > { %2570 = vmatpush1.bf16.msra.mxu0 %v2569_v50  ;;  %2586 = vmatpush1.bf16.msra.mxu1 %v2585_v11 }
 0x19f   : > { %2572 = vmatprep.subr.bf16.mxu0 %v2571_v3  ;;  %2588 = vmatprep.subr.bf16.mxu1 %v2587_v52 }
 0x1a0   : > { %1747 = vmatprep.mubr.f32.mxu0 %v3853_v43  ;;  %1818 = vmatprep.mubr.f32.mxu1 %v3853_v43 }
 0x1a2   : > { %2574 = vmatpush1.bf16.msra.mxu0 %v2573_v45  ;;  %2590 = vmatpush1.bf16.msra.mxu1 %v2589_v10 }
 0x1a3   : > { %2576 = vmatprep.subr.bf16.mxu0 %v2575_v51  ;;  %2592 = vmatprep.subr.bf16.mxu1 %v2591_v5 }
 0x1a6   : > { %2578 = vmatpush1.bf16.msra.mxu0 %v2577_v15  ;;  %2594 = vmatpush1.bf16.msra.mxu1 %v2593_v1 }
 0x1a7   : > { %2580 = vmatprep.subr.bf16.mxu0 %v2579_v46  ;;  %2596 = vmatprep.subr.bf16.mxu1 %v2595_v37 }
 0x1aa   : > { %2582 = vmatpush1.bf16.msra.mxu0 %v2581_v54  ;;  %2598 = vmatpush1.bf16.msra.mxu1 %v2597_v25 }
 0x1ad   : > { %2445 = vmatmul.mubr.msk.f32.vlgmr.msra.gmra.mrb[38].mxu0 %vm1127_vm0, %v3879_v57  ;;  %2446 = vmatmul.mubr.msk.f32.vlgmr.msra.gmra.mrb[38].mxu1 %vm1127_vm0, %v3879_v57 }
 0x231   : > { %v1197_v30 = vpop.f32.mrb[32].mxu0 }
 0x232   : > { %v1268_v23 = vpop.f32.mrb[32].mxu1  ;;  %v1199_v22 = vpop.f32.mrb[33].mxu0 }
 0x233   : > { %v1423_v61 = vcombine.low %v1197_v30, %v1199_v22  ;;  %v1270_v16 = vpop.f32.mrb[33].mxu1 }
 0x234   : > { %v1424_v56 = vcombine.low %v1268_v23, %v1270_v16 }
 0x235   : > { %v1433_v57 = vrot.slane %v1423_v61, %v3091_v18 }
 0x236   : > { %v1440_v12 = vrot.slane %v1424_v56, %v3091_v18 }
 0x238   : > { %v1455_v8 = vcombine.low %v1433_v57, %v1440_v12 }
 0x23a   : > { %v1463_v41 = vrot.slane %v1455_v8, %v3091_v18 }
 0x25e   : > { %v1339_v62 = vpop.f32.mrb[34].mxu0  ;;  %v1410_v39 = vpop.f32.mrb[34].mxu1 }
 0x25f   : > { %v1341_v33 = vpop.f32.mrb[35].mxu0  ;;  %v1412_v60 = vpop.f32.mrb[35].mxu1 }
 0x260   : > { %v1425_v26 = vcombine.low %v1339_v62, %v1341_v33  ;;  %v1426_v63 = vcombine.low %v1410_v39, %v1412_v60 }
 0x262   : > { %v1447_v43 = vrot.slane %v1425_v26, %v3091_v18  ;;  %v1454_v24 = vrot.slane %v1426_v63, %v3091_v18 }
 0x264   : > { %v1456_v13 = vcombine.low %v1447_v43, %v1454_v24 }
 0x266   : > { %v1470_v32 = vrot.slane %v1456_v13, %v3091_v18 }
 0x268   : > { %v1471_v50 = vcombine.low %v1463_v41, %v1470_v32 }
 0x26a   : > { %v1473_v58 = vadd.f32 %v1471_v50, %v1126_v59 }
 0x26c   : > { %1474 = vst [vmem:[%s3753_s17] ss:$2 sm:$0xff] %v1473_v58 }
 0x270   : > { %v1607_v40 = vpop.f32.mrb[36].mxu0  ;;  %v1678_v11 = vpop.f32.mrb[36].mxu1 }
 0x271   : > { %v1609_v53 = vpop.f32.mrb[37].mxu0  ;;  %v1680_v17 = vpop.f32.mrb[37].mxu1 }
 0x272   : > { %v1833_v36 = vcombine.low %v1607_v40, %v1609_v53  ;;  %v1834_v0 = vcombine.low %v1678_v11, %v1680_v17 }
 0x274   : > { %v1843_v35 = vrot.slane %v1833_v36, %v3091_v18  ;;  %v1850_v45 = vrot.slane %v1834_v0, %v3091_v18 }
 0x276   : > { %v1865_v27 = vcombine.low %v1843_v35, %v1850_v45 }
 0x278   : > { %v1873_v51 = vrot.slane %v1865_v27, %v3091_v18 }
 0x280   : > { %v1749_v10 = vpop.f32.mrb[38].mxu0  ;;  %v1820_v2 = vpop.f32.mrb[38].mxu1 }
 0x281   : > { %v1751_v4 = vpop.f32.mrb[39].mxu0  ;;  %v1822_v48 = vpop.f32.mrb[39].mxu1 }
 0x282   : > { %v1835_v28 = vcombine.low %v1749_v10, %v1751_v4  ;;  %v1836_v3 = vcombine.low %v1820_v2, %v1822_v48 }
 0x284   : > { %v1857_v52 = vrot.slane %v1835_v28, %v3091_v18  ;;  %v1864_v55 = vrot.slane %v1836_v3, %v3091_v18 }
 0x286   : > { %v1866_v44 = vcombine.low %v1857_v52, %v1864_v55 }
 0x288   : > { %v1880_v31 = vrot.slane %v1866_v44, %v3091_v18 }
 0x28a   : > { %v1881_v6 = vcombine.low %v1873_v51, %v1880_v31 }
 0x28c   : > { %v1883_v19 = vadd.f32 %v2442_v42, %v1881_v6 }
 0x28e   : > { %2447 = vst [vmem:[%s3753_s17 + $0x1] ss:$2 sm:$0xff] %v1883_v19 }
 0x28f PF: > { %s19_s26 = sadd.s32 1, %s2694_s26   ;;  %s3917_s24 = smov %s2690_s25 }
 0x290   : > { %p16_p4 = scmp.ge.s32.totalorder %s19_s26, 4   ;;  %s3918_s25 = smov %s3920_s28 }
 0x292   :  { %18 = sbr.rel (!%p16_p4) target bundleno = 2 (0x2), region = 104 }
 0x299   :  { %2264 = vsyncpa [#allocation3], 1 }
 0x29a   :  { %2266 = vsyncpa [#allocation3 + $0x1], 1 }

// kernel: pointnet_encoder.11
= control target key start
LH: loop header
LB: loop body
LE: loop exit
PB: predicated region body
PF: predicated region fallthrough
CT: control target
= control target key end

     0   :  { %s1195_s18 = smov 0   ;;  %s1197_s19 = smov 0   ;;  %s1279_s0 = inlined_call_operand.vmem [shape: f32[2,64,3], index: 0, kind: input, shape index: {}]   ;;  %s1280_s1 = inlined_call_operand.vmem [shape: f32[2,3,3], index: 1, kind: input, shape index: {}]   ;;  %s1281_s2 = inlined_call_operand.vmem [shape: f32[3,128], index: 2, kind: input, shape index: {}]   ;;  %s1282_s3 = inlined_call_operand.vmem [shape: f32[1,128], index: 3, kind: input, shape index: {}]   ;;  %s1283_s4 = inlined_call_operand.vmem [shape: bf16[2,64,128], index: 4, kind: output, shape index: {0}]   ;;  %s1284_s5 = inlined_call_operand.vmem [shape: f32[2,2,128], index: 5, kind: output, shape index: {1}]  }
   0x1   :  { %s1199_s20 = smov 0  }
   0x2 LB: > { %s28_s21 = sadd.s32 1, %s1155_s19  ;;  %p912_p0 = scmp.ge.s32.totalorder %s1159_s20, 1  ;;  %s1159_s20 = sphi %s1199_s20, %s16_s20   ;;  %s1155_s19 = sphi %s1197_s19, %s1286_s19   ;;  %s1151_s18 = sphi %s1195_s18, %s1285_s18  }
   0x3   : > { %p30_p1 = scmp.ge.s32.totalorder %s28_s21, 2  ;;  %p220_p2 = scmp.lt.s32.totalorder %s1159_s20, 3 }
   0x5   : > { %s1288_s21 = smov (%p30_p1, %s28_s21), 0  ;;  %p221_p3 = pnand %p912_p0, %p220_p2 }
   0x6   : > { %p265_p4 = scmp.lt.s32.totalorder (!%p221_p3), %s1151_s18, 1  ;;  %vm326_vm0 = vcmask (!%p221_p3), 1042432   ;;  %vm301_vm1 = vcmask (!%p221_p3), 23552   ;;  %v435_v9 = vld [vmem:[%s1281_s2] sm:$0x7] (!%p221_p3)  ;;  %v1161_v18 = vmov (!%p221_p3), 0.0|0.0  }
   0x7   : > { %224 = sbr.rel (%p221_p3) target bundleno = 683 (0x2ab), region = 36  ;;  %1033 = vmatprep.subr.msk.mxu1 (!%p221_p3), %vm326_vm0, %v435_v9  ;;  %vm1162_vm2 = vmmov (!%p221_p3), 0   ;;  %v1163_v19 = vmov (!%p221_p3), 0.0   ;;  %v928_v20 = vld [vmem:[%s1282_s3] ss:$0 sm:$0xff] (!%p221_p3)  ;;  %vm615_vm3 = vcmask (!%p221_p3), 523264  }
   0x8   : > { %1034 = vmatpush3.msk.msra.mxu1 (!%p221_p3), %vm326_vm0, %v435_v9  ;;  %v1164_v53 = vmov (!%p221_p3), 1.0  }
   0x9   : > { %1097 = vmatprep.subr.bf16.mxu1 (!%p221_p3), %v1161_v18 }
   0xe   : > { %s1290_s18 = smov (!%p265_p4, %s1151_s18), 1 }
   0xf   : > { %s915_s22 = sshll.u32 %s1290_s18, 2  ;;  %s950_s23 = sshll.u32 %s1290_s18, 6 }
  0x10   : > { %s277_s26 = scalar_lea.vmem %s1280_s1, %s915_s22  ;;  %s272_s29 = scalar_lea.vmem %s1279_s0, %s950_s23 }
  0x11   : > { %v300_v0 = vld [vmem:[%s277_s26] sm:$0x7]  ;;  %v293_v2 = vld [vmem:[%s272_s29 + $0x8] sm:$0xff]  ;;  %v294_v3 = vld [vmem:[%s272_s29 + $0x10] sm:$0xff]  ;;  %s918_s7 = sshll.u32 %s1290_s18, 1  ;;  %s951_s13 = sshll.u32 %s1290_s18, 5 }
  0x12   : > { %v292_v1 = vld [vmem:[%s272_s29] sm:$0xff]  ;;  %1019 = vmatprep.subr.msk.mxu0 %vm326_vm0, %v300_v0  ;;  %v295_v4 = vld [vmem:[%s272_s29 + $0x18] sm:$0xff]  ;;  %v297_v6 = vld [vmem:[%s272_s29 + $0x28] sm:$0xff]  ;;  %s1250_s10 = scalar_lea.vmem %s1284_s5, %s918_s7  ;;  %s1260_s16 = scalar_lea.vmem %s1283_s4, %s951_s13 }
  0x13   : > { %1021 = vmatprep.mubr.msk.f32.mxu0 %vm301_vm1, %v292_v1  ;;  %1020 = vmatpush3.msk.msra.mxu0 %vm326_vm0, %v300_v0  ;;  %v296_v5 = vld [vmem:[%s272_s29 + $0x20] sm:$0xff]  ;;  %v298_v7 = vld [vmem:[%s272_s29 + $0x30] sm:$0xff]  ;;  %v299_v8 = vld [vmem:[%s272_s29 + $0x38] sm:$0xff]  ;;  %771 = vst [vmem:[%s1250_s10] sm:$0x3] %v1163_v19 }
  0x14   : > { %1022 = vmatmul.mubr.msk.f32.vlgmr.msra.gmra.mrb[0].mxu0 %vm301_vm1, %v293_v2  ;;  %1085 = vmatprep.subr.bf16.mxu0 %v1161_v18 }
  0x15   : > { %1024 = vmatprep.mubr.msk.f32.mxu0 %vm301_vm1, %v294_v3 }
  0x18   : > { %1025 = vmatmul.mubr.msk.f32.gmra.mrb[2].mxu0 %vm301_vm1, %v295_v4 }
  0x19   : > { %1027 = vmatprep.mubr.msk.f32.mxu0 %vm301_vm1, %v296_v5 }
  0x1a   : > { %v772_v54 = vld [vmem:[%s1250_s10] sm:$0x1]  ;;  %v775_v56 = vld [vmem:[%s1250_s10 + $0x1] sm:$0x1] }
  0x1c   : > { %1028 = vmatmul.mubr.msk.f32.gmra.mrb[4].mxu0 %vm301_vm1, %v297_v6 }
  0x1d   : > { %1030 = vmatprep.mubr.msk.f32.mxu0 %vm301_vm1, %v298_v7 }
  0x20   : > { %1031 = vmatmul.mubr.msk.f32.gmra.mrb[6].mxu0 %vm301_vm1, %v299_v8 }
  0x21   : > { %1063 = vmatprep.mubr.msk.f32.mxu0 %vm1162_vm2, %v1163_v19 }
  0xe7   : > { %v1023_v10 = vpop.f32.mrb[0].mxu0 }
  0xe8   : > { %v396_v11 = vpop.f32.mrb[1].mxu0 }
  0xe9   : > { %1035 = vmatprep.mubr.msk.f32.mxu1 %vm301_vm1, %v396_v11 }
  0xea   : > { %1036 = vmatmul.mubr.msk.f32.vlgmr.msra.gmra.mrb[0].mxu1 %vm301_vm1, %v1023_v10 }
  0xeb   : > { %v1026_v12 = vpop.f32.mrb[2].mxu0 }
  0xec   : > { %v406_v13 = vpop.f32.mrb[3].mxu0 }
  0xed   : > { %1038 = vmatprep.mubr.msk.f32.mxu1 %vm301_vm1, %v406_v13 }
  0xee   : > { %1039 = vmatmul.mubr.msk.f32.gmra.mrb[2].mxu1 %vm301_vm1, %v1026_v12 }
  0xef   : > { %v1029_v14 = vpop.f32.mrb[4].mxu0 }
  0xf0   : > { %v416_v15 = vpop.f32.mrb[5].mxu0 }
  0xf1   : > { %1041 = vmatprep.mubr.msk.f32.mxu1 %vm301_vm1, %v416_v15 }
  0xf2   : > { %1042 = vmatmul.mubr.msk.f32.gmra.mrb[4].mxu1 %vm301_vm1, %v1029_v14 }
  0xf3   : > { %v1032_v16 = vpop.f32.mrb[6].mxu0 }
  0xf4   : > { %v426_v17 = vpop.f32.mrb[7].mxu0 }
  0xf5   : > { %1044 = vmatprep.mubr.msk.f32.mxu1 %vm301_vm1, %v426_v17 }
  0xf6   : > { %1045 = vmatmul.mubr.msk.f32.gmra.mrb[6].mxu1 %vm301_vm1, %v1032_v16 }
  0xf7   : > { %1082 = vmatprep.mubr.msk.f32.mxu1 %vm1162_vm2, %v1163_v19 }
 0x1bd   : > { %v1037_v21 = vpop.f32.mrb[0].mxu1 }
 0x1be   : > { %v542_v22 = vadd.f32 %v1037_v21, %v928_v20  ;;  %v536_v23 = vpop.f32.mrb[1].mxu1 }
 0x1bf   : > { %v537_v24 = vadd.f32 %v928_v20, %v536_v23 }
 0x1c0   : > { %v690_v25 = vmul.f32 %v542_v22, %v542_v22 }
 0x1c1   : > { %v963_v26 = vpack.c.bf16 %v542_v22, %v537_v24  ;;  %v689_v27 = vmul.f32 %v537_v24, %v537_v24  ;;  %v1040_v28 = vpop.f32.mrb[2].mxu1 }
 0x1c2   : > { %v552_v29 = vadd.f32 %v1040_v28, %v928_v20  ;;  %v546_v30 = vpop.f32.mrb[3].mxu1 }
 0x1c3   : > { %964 = vst [vmem:[%s1260_s16] sm:$0xff] %v963_v26   ;;  %v1098_v31 = vpack.c.bf16 %v690_v25, %v689_v27  ;;  %v547_v32 = vadd.f32 %v928_v20, %v546_v30  ;;  %1087 = vmatpush3.bf16.msra.mxu0 %v963_v26 }
 0x1c4   : > { %v692_v33 = vmul.f32 %v552_v29, %v552_v29  ;;  %1088 = vmatprep.subr.bf16.mxu0 %v1161_v18 }
 0x1c5   : > { %v968_v34 = vpack.c.bf16 %v552_v29, %v547_v32  ;;  %v691_v35 = vmul.f32 %v547_v32, %v547_v32  ;;  %v1043_v36 = vpop.f32.mrb[4].mxu1  ;;  %1099 = vmatpush3.bf16.msra.mxu1 %v1098_v31 }
 0x1c6   : > { %v562_v37 = vadd.f32 %v1043_v36, %v928_v20  ;;  %v556_v38 = vpop.f32.mrb[5].mxu1  ;;  %1100 = vmatprep.subr.bf16.mxu1 %v1161_v18 }
 0x1c7   : > { %980 = vst [vmem:[%s1260_s16 + $0x8] sm:$0xff] %v968_v34   ;;  %v1101_v39 = vpack.c.bf16 %v692_v33, %v691_v35  ;;  %v557_v40 = vadd.f32 %v928_v20, %v556_v38  ;;  %1090 = vmatpush3.bf16.msra.mxu0 %v968_v34 }
 0x1c8   : > { %v694_v41 = vmul.f32 %v562_v37, %v562_v37  ;;  %1091 = vmatprep.subr.bf16.mxu0 %v1161_v18 }
 0x1c9   : > { %v973_v42 = vpack.c.bf16 %v562_v37, %v557_v40  ;;  %v693_v43 = vmul.f32 %v557_v40, %v557_v40  ;;  %v1046_v44 = vpop.f32.mrb[6].mxu1  ;;  %1102 = vmatpush3.bf16.msra.mxu1 %v1101_v39 }
 0x1ca   : > { %v572_v45 = vadd.f32 %v1046_v44, %v928_v20  ;;  %v566_v46 = vpop.f32.mrb[7].mxu1  ;;  %1103 = vmatprep.subr.bf16.mxu1 %v1161_v18 }
 0x1cb   : > { %981 = vst [vmem:[%s1260_s16 + $0x10] sm:$0xff] %v973_v42   ;;  %v1104_v47 = vpack.c.bf16 %v694_v41, %v693_v43  ;;  %v567_v48 = vadd.f32 %v928_v20, %v566_v46  ;;  %1093 = vmatpush3.bf16.msra.mxu0 %v973_v42 }
 0x1cc   : > { %v696_v49 = vmul.f32 %v572_v45, %v572_v45  ;;  %1094 = vmatprep.subr.bf16.mxu0 %v1161_v18 }
 0x1cd   : > { %v978_v50 = vpack.c.bf16 %v572_v45, %v567_v48  ;;  %v695_v51 = vmul.f32 %v567_v48, %v567_v48  ;;  %1105 = vmatpush3.bf16.msra.mxu1 %v1104_v47 }
 0x1ce   : > { %1106 = vmatprep.subr.bf16.mxu1 %v1161_v18 }
 0x1cf   : > { %982 = vst [vmem:[%s1260_s16 + $0x18] sm:$0xff] %v978_v50   ;;  %v1107_v52 = vpack.c.bf16 %v696_v49, %v695_v51  ;;  %1096 = vmatpush3.bf16.msra.mxu0 %v978_v50 }
 0x1d1   : > { %1108 = vmatpush3.bf16.msra.mxu1 %v1107_v52 }
 0x1d2   : > { %1064 = vmatmul.mubr.msk.f32.vlgmr.msra.gmra.mrb[8].mxu0 %vm615_vm3, %v1164_v53 }
 0x1d4   : > { %1083 = vmatmul.mubr.msk.f32.vlgmr.msra.gmra.mrb[8].mxu1 %vm615_vm3, %v1164_v53 }
 0x2a5   : > { %v685_v55 = vpop.f32.mrb[8].mxu0 }
 0x2a6   : > { %v773_v57 = vadd.f32 %v772_v54, %v685_v55  ;;  %v1065_v58 = vpop.f32.mrb[9].mxu0 }
 0x2a7   : > { %v763_v59 = vpop.f32.mrb[8].mxu1 }
 0x2a8   : > { %774 = vst [vmem:[%s1250_s10] sm:$0x1] %v773_v57  ;;  %v776_v60 = vadd.f32 %v775_v56, %v763_v59  ;;  %v1084_v61 = vpop.f32.mrb[9].mxu1 }
 0x2aa   : > { %777 = vst [vmem:[%s1250_s10 + $0x1] sm:$0x1] %v776_v60 }
 0x2ab PF: > { %s16_s20 = sadd.s32 1, %s1159_s20   ;;  %s1285_s18 = smov %s1155_s19 }
 0x2ac   : > { %p13_p5 = scmp.ge.s32.totalorder %s16_s20, 4   ;;  %s1286_s19 = smov %s1288_s21 }
 0x2ae   :  { %15 = sbr.rel (!%p13_p5) target bundleno = 2 (0x2), region = 85 }

// kernel: pointnet_encoder.12
= control target key start
LH: loop header
LB: loop body
LE: loop exit
PB: predicated region body
PF: predicated region fallthrough
CT: control target
= control target key end

     0   :  { %s1118_s21 = smov 0   ;;  %s1120_s22 = smov 0   ;;  %s1216_s0 = inlined_call_operand.vmem [shape: bf16[2,64,128], index: 0, kind: input, shape index: {}]   ;;  %s1217_s1 = inlined_call_operand.vmem [shape: f32[1,128], index: 1, kind: input, shape index: {}]   ;;  %s1218_s2 = inlined_call_operand.vmem [shape: f32[1,128], index: 2, kind: input, shape index: {}]   ;;  %s1219_s3 = inlined_call_operand.vmem [shape: bf16[128,128], index: 3, kind: input, shape index: {}]   ;;  %s1220_s4 = inlined_call_operand.vmem [shape: f32[1,128], index: 4, kind: input, shape index: {}]   ;;  %s1221_s5 = inlined_call_operand.vmem [shape: bf16[2,64,128], index: 5, kind: output, shape index: {0}]   ;;  %s1222_s6 = inlined_call_operand.vmem [shape: f32[2,2,128], index: 6, kind: output, shape index: {1}]  }
   0x1   :  { %s1122_s23 = smov 0  }
   0x2 LB: > { %s29_s24 = sadd.s32 1, %s1073_s22  ;;  %p822_p0 = scmp.ge.s32.totalorder %s1077_s23, 1  ;;  %s1077_s23 = sphi %s1122_s23, %s17_s23   ;;  %s1073_s22 = sphi %s1120_s22, %s1224_s22   ;;  %s1069_s21 = sphi %s1118_s21, %s1223_s21  }
   0x3   : > { %p31_p1 = scmp.ge.s32.totalorder %s29_s24, 2  ;;  %p236_p2 = scmp.lt.s32.totalorder %s1077_s23, 3 }
   0x5   : > { %s1226_s24 = smov (%p31_p1, %s29_s24), 0  ;;  %p237_p3 = pnand %p822_p0, %p236_p2 }
   0x6   : > { %v1047_v0 = vld [vmem:[%s1219_s3] sm:$0xff] (!%p237_p3)   ;;  %p279_p4 = scmp.lt.s32.totalorder (!%p237_p3), %s1069_s21, 1  ;;  %v1048_v1 = vld [vmem:[%s1219_s3 + $0x8] sm:$0xff] (!%p237_p3)   ;;  %v1049_v2 = vld [vmem:[%s1219_s3 + $0x10] sm:$0xff] (!%p237_p3)   ;;  %v1079_v50 = vmov (!%p237_p3), 0.0|0.0   ;;  %vm1080_vm0 = vmmov (!%p237_p3), 0  }
   0x7   : > { %240 = sbr.rel (%p237_p3) target bundleno = 504 (0x1f8), region = 40  ;;  %933 = vmatprep.subr.bf16.mxu0 (!%p237_p3), %v1047_v0  ;;  %v1050_v3 = vld [vmem:[%s1219_s3 + $0x18] sm:$0xff] (!%p237_p3)   ;;  %v828_v5 = vld [vmem:[%s1217_s1] ss:$0 sm:$0xff] (!%p237_p3)  ;;  %v1052_v22 = vld [vmem:[%s1219_s3 + $0x28] sm:$0xff] (!%p237_p3)   ;;  %995 = vmatprep.subr.bf16.mxu1 (!%p237_p3), %v1079_v50  ;;  %v1081_v51 = vmov (!%p237_p3), 0.0  }
   0x8   : > { %934 = vmatpush3.bf16.msra.mxu0 (!%p237_p3), %v1047_v0  ;;  %v829_v8 = vld [vmem:[%s1218_s2] ss:$0 sm:$0xff] (!%p237_p3)  ;;  %v1053_v29 = vld [vmem:[%s1219_s3 + $0x30] sm:$0xff] (!%p237_p3)   ;;  %v1054_v36 = vld [vmem:[%s1219_s3 + $0x38] sm:$0xff] (!%p237_p3)   ;;  %973 = vmatprep.mubr.msk.f32.mxu1 (!%p237_p3), %vm1080_vm0, %v1081_v51  ;;  %vm537_vm1 = vcmask (!%p237_p3), 523264  }
   0x9   : > { %935 = vmatprep.subr.bf16.mxu0 (!%p237_p3), %v1048_v1  ;;  %v1051_v12 = vld [vmem:[%s1219_s3 + $0x20] sm:$0xff] (!%p237_p3)  }
   0xa   : > { %v830_v52 = vld [vmem:[%s1220_s4] ss:$0 sm:$0xff] (!%p237_p3) }
   0xc   : > { %936 = vmatpush3.bf16.msra.mxu0 (!%p237_p3), %v1048_v1 }
   0xd   : > { %937 = vmatprep.subr.bf16.mxu0 (!%p237_p3), %v1049_v2 }
   0xe   : > { %s1228_s21 = smov (!%p279_p4, %s1069_s21), 1 }
   0xf   : > { %s851_s7 = sshll.u32 %s1228_s21, 5  ;;  %s827_s29 = sshll.u32 %s1228_s21, 1 }
  0x10   : > { %s1153_s10 = scalar_lea.vmem %s1216_s0, %s851_s7  ;;  %938 = vmatpush3.bf16.msra.mxu0 %v1049_v2  ;;  %s1184_s9 = scalar_lea.vmem %s1222_s6, %s827_s29 }
  0x11   : > { %v862_v4 = vld [vmem:[%s1153_s10] sm:$0xff]   ;;  %v897_v11 = vld [vmem:[%s1153_s10 + $0x8] sm:$0xff]   ;;  %939 = vmatprep.subr.bf16.mxu0 %v1050_v3  ;;  %v898_v13 = vld [vmem:[%s1153_s10 + $0x10] sm:$0xff]   ;;  %693 = vst [vmem:[%s1184_s9] sm:$0x3] %v1081_v51  ;;  %s1196_s14 = scalar_lea.vmem %s1221_s5, %s851_s7 }
  0x12   : > { %v863_v6 = vunpack.c.l.bf16 %v862_v4  ;;  %v864_v7 = vunpack.c.h.bf16 %v862_v4  ;;  %v867_v16 = vunpack.c.l.bf16 %v897_v11  ;;  %v868_v17 = vunpack.c.h.bf16 %v897_v11  ;;  %v899_v28 = vld [vmem:[%s1153_s10 + $0x18] sm:$0xff]  }
  0x13   : > { %v871_v20 = vunpack.c.l.bf16 %v898_v13  ;;  %v872_v21 = vunpack.c.h.bf16 %v898_v13  ;;  %v875_v32 = vunpack.c.l.bf16 %v899_v28  ;;  %v876_v33 = vunpack.c.h.bf16 %v899_v28 }
  0x14   : > { %v326_v9 = vmul.f32 %v863_v6, %v828_v5  ;;  %v327_v10 = vmul.f32 %v864_v7, %v828_v5  ;;  %940 = vmatpush3.bf16.msra.mxu0 %v1050_v3  ;;  %v328_v24 = vmul.f32 %v867_v16, %v828_v5  ;;  %v329_v25 = vmul.f32 %v868_v17, %v828_v5 }
  0x15   : > { %941 = vmatprep.subr.bf16.mxu0 %v1051_v12  ;;  %v330_v26 = vmul.f32 %v871_v20, %v828_v5  ;;  %v331_v27 = vmul.f32 %v872_v21, %v828_v5  ;;  %v332_v39 = vmul.f32 %v875_v32, %v828_v5  ;;  %v333_v40 = vmul.f32 %v876_v33, %v828_v5 }
  0x16   : > { %v341_v14 = vadd.f32 %v829_v8, %v326_v9  ;;  %v342_v15 = vadd.f32 %v829_v8, %v327_v10  ;;  %v343_v30 = vadd.f32 %v829_v8, %v328_v24  ;;  %v344_v31 = vadd.f32 %v829_v8, %v329_v25 }
  0x17   : > { %v345_v34 = vadd.f32 %v829_v8, %v330_v26  ;;  %v346_v35 = vadd.f32 %v829_v8, %v331_v27  ;;  %v347_v44 = vadd.f32 %v829_v8, %v332_v39  ;;  %v348_v45 = vadd.f32 %v829_v8, %v333_v40 }
  0x18   : > { %v349_v18 = vmax.f32 %v341_v14, 0.0  ;;  %v350_v19 = vmax.f32 %v342_v15, 0.0  ;;  %942 = vmatpush3.bf16.msra.mxu0 %v1051_v12  ;;  %v351_v37 = vmax.f32 %v343_v30, 0.0  ;;  %v352_v38 = vmax.f32 %v344_v31, 0.0  ;;  %v697_v26 = vld [vmem:[%s1184_s9 + $0x1] sm:$0x1] }
  0x19   : > { %943 = vmatprep.subr.bf16.mxu0 %v1052_v22  ;;  %v353_v41 = vmax.f32 %v345_v34, 0.0  ;;  %v354_v42 = vmax.f32 %v346_v35, 0.0  ;;  %v355_v47 = vmax.f32 %v347_v44, 0.0  ;;  %v356_v48 = vmax.f32 %v348_v45, 0.0 }
  0x1a   : > { %v357_v23 = vpack.c.bf16 %v350_v19, %v349_v18  ;;  %v358_v43 = vpack.c.bf16 %v352_v38, %v351_v37  ;;  %v1082_v21 = vmov 1.0  }
  0x1b   : > { %v359_v46 = vpack.c.bf16 %v354_v42, %v353_v41  ;;  %v360_v49 = vpack.c.bf16 %v356_v48, %v355_v47 }
  0x1c   : > { %949 = vmatprep.mubr.bf16.mxu0 %v357_v23  ;;  %944 = vmatpush3.bf16.msra.mxu0 %v1052_v22  ;;  %v694_v22 = vld [vmem:[%s1184_s9] sm:$0x1] }
  0x1d   : > { %945 = vmatprep.subr.bf16.mxu0 %v1053_v29 }
  0x20   : > { %946 = vmatpush3.bf16.msra.mxu0 %v1053_v29 }
  0x21   : > { %947 = vmatprep.subr.bf16.mxu0 %v1054_v36 }
  0x24   : > { %948 = vmatpush3.bf16.msra.mxu0 %v1054_v36 }
  0x27   : > { %950 = vmatmul.mubr.bf16.vlgmr.msra.gmra.mrb[0].mxu0 %v358_v43 }
  0x28   : > { %953 = vmatprep.mubr.bf16.mxu0 %v359_v46 }
  0x2f   : > { %954 = vmatmul.mubr.bf16.gmra.mrb[4].mxu0 %v360_v49 }
  0xfa   : > { %v951_v53 = vpop.f32.mrb[0].mxu0 }
  0xfb   : > { %v475_v54 = vadd.f32 %v951_v53, %v830_v52  ;;  %v466_v55 = vpop.f32.mrb[1].mxu0 }
  0xfc   : > { %v467_v56 = vadd.f32 %v830_v52, %v466_v55  ;;  %v952_v57 = vpop.f32.mrb[2].mxu0 }
  0xfd   : > { %v478_v58 = vadd.f32 %v952_v57, %v830_v52  ;;  %v469_v59 = vpop.f32.mrb[3].mxu0  ;;  %v613_v61 = vmul.f32 %v475_v54, %v475_v54 }
  0xfe   : > { %v470_v60 = vadd.f32 %v830_v52, %v469_v59  ;;  %v611_v0 = vmul.f32 %v467_v56, %v467_v56 }
  0xff   : > { %v885_v62 = vpack.c.bf16 %v478_v58, %v475_v54  ;;  %v614_v63 = vmul.f32 %v478_v58, %v478_v58 }
 0x100   : > { %v612_v1 = vmul.f32 %v470_v60, %v470_v60  ;;  %v880_v2 = vpack.c.bf16 %v470_v60, %v467_v56 }
 0x101   : > { %900 = vst [vmem:[%s1196_s14 + $0x8] sm:$0xff] %v885_v62   ;;  %v1011_v3 = vpack.c.bf16 %v614_v63, %v613_v61 }
 0x102   : > { %v1008_v4 = vpack.c.bf16 %v612_v1, %v611_v0  ;;  %v955_v5 = vpop.f32.mrb[4].mxu0  ;;  %881 = vst [vmem:[%s1196_s14] sm:$0xff] %v880_v2   ;;  %997 = vmatpush3.bf16.msra.mxu1 %v880_v2 }
 0x103   : > { %v491_v6 = vadd.f32 %v955_v5, %v830_v52  ;;  %v482_v7 = vpop.f32.mrb[5].mxu0  ;;  %998 = vmatprep.subr.bf16.mxu1 %v1079_v50 }
 0x104   : > { %v483_v8 = vadd.f32 %v830_v52, %v482_v7  ;;  %v956_v9 = vpop.f32.mrb[6].mxu0 }
 0x105   : > { %v494_v10 = vadd.f32 %v956_v9, %v830_v52  ;;  %v485_v11 = vpop.f32.mrb[7].mxu0  ;;  %v617_v13 = vmul.f32 %v491_v6, %v491_v6 }
 0x106   : > { %v486_v12 = vadd.f32 %v830_v52, %v485_v11  ;;  %1000 = vmatpush3.bf16.msra.mxu1 %v885_v62  ;;  %v615_v16 = vmul.f32 %v483_v8, %v483_v8 }
 0x107   : > { %v895_v14 = vpack.c.bf16 %v494_v10, %v491_v6  ;;  %v618_v15 = vmul.f32 %v494_v10, %v494_v10  ;;  %1001 = vmatprep.subr.bf16.mxu1 %v1079_v50 }
 0x108   : > { %v890_v17 = vpack.c.bf16 %v486_v12, %v483_v8  ;;  %v616_v18 = vmul.f32 %v486_v12, %v486_v12 }
 0x109   : > { %902 = vst [vmem:[%s1196_s14 + $0x18] sm:$0xff] %v895_v14   ;;  %v1017_v19 = vpack.c.bf16 %v618_v15, %v617_v13 }
 0x10a   : > { %901 = vst [vmem:[%s1196_s14 + $0x10] sm:$0xff] %v890_v17   ;;  %v1014_v20 = vpack.c.bf16 %v616_v18, %v615_v16  ;;  %1003 = vmatpush3.bf16.msra.mxu1 %v890_v17 }
 0x10b   : > { %1004 = vmatprep.subr.bf16.mxu1 %v1079_v50 }
 0x10e   : > { %1006 = vmatpush3.bf16.msra.mxu1 %v895_v14 }
 0x10f   : > { %1007 = vmatprep.subr.bf16.mxu1 %v1079_v50 }
 0x111   : > { %974 = vmatmul.mubr.msk.f32.vlgmr.msra.gmra.mrb[0].mxu1 %vm537_vm1, %v1082_v21 }
 0x112   : > { %1009 = vmatpush3.bf16.msra.mxu1 %v1008_v4  ;;  %992 = vmatprep.mubr.msk.f32.mxu1 %vm1080_vm0, %v1081_v51 }
 0x113   : > { %1010 = vmatprep.subr.bf16.mxu1 %v1079_v50 }
 0x116   : > { %1012 = vmatpush3.bf16.msra.mxu1 %v1011_v3 }
 0x117   : > { %1013 = vmatprep.subr.bf16.mxu1 %v1079_v50 }
 0x11a   : > { %1015 = vmatpush3.bf16.msra.mxu1 %v1014_v20 }
 0x11b   : > { %1016 = vmatprep.subr.bf16.mxu1 %v1079_v50 }
 0x11e   : > { %1018 = vmatpush3.bf16.msra.mxu1 %v1017_v19 }
 0x121   : > { %993 = vmatmul.mubr.msk.f32.vlgmr.msra.gmra.mrb[2].mxu1 %vm537_vm1, %v1082_v21 }
 0x1e4   : > { %v607_v23 = vpop.f32.mrb[0].mxu1 }
 0x1e5   : > { %v695_v24 = vadd.f32 %v694_v22, %v607_v23  ;;  %v975_v25 = vpop.f32.mrb[1].mxu1 }
 0x1e7   : > { %696 = vst [vmem:[%s1184_s9] sm:$0x1] %v695_v24 }
 0x1f4   : > { %v685_v27 = vpop.f32.mrb[2].mxu1 }
 0x1f5   : > { %v698_v28 = vadd.f32 %v697_v26, %v685_v27  ;;  %v994_v29 = vpop.f32.mrb[3].mxu1 }
 0x1f7   : > { %699 = vst [vmem:[%s1184_s9 + $0x1] sm:$0x1] %v698_v28 }
 0x1f8 PF: > { %s17_s23 = sadd.s32 1, %s1077_s23   ;;  %s1223_s21 = smov %s1073_s22 }
 0x1f9   : > { %p14_p5 = scmp.ge.s32.totalorder %s17_s23, 4   ;;  %s1224_s22 = smov %s1226_s24 }
 0x1fb   :  { %16 = sbr.rel (!%p14_p5) target bundleno = 2 (0x2), region = 86 }

// kernel: pointnet_encoder.10
= control target key start
LH: loop header
LB: loop body
LE: loop exit
PB: predicated region body
PF: predicated region fallthrough
CT: control target
= control target key end

     0   :  { %v3864_v36 = vmov 1983009808   ;;  %v306_v38 = vlaneseq  ;;  %vm1981_vm0 = vcmask 1041408   ;;  %s5125_s1 = inlined_call_operand.vmem [shape: bf16[1024,512], index: 1, kind: input, shape index: {}]   ;;  %s5126_s0 = inlined_call_operand.vmem [shape: f32[2,1024], index: 0, kind: input, shape index: {}]   ;;  %s5127_s2 = inlined_call_operand.vmem [shape: f32[1,512], index: 2, kind: input, shape index: {}]   ;;  %s5128_s5 = inlined_call_operand.vmem [shape: bf16[512,256], index: 5, kind: input, shape index: {}]   ;;  %s5129_s3 = inlined_call_operand.vmem [shape: f32[1,512], index: 3, kind: input, shape index: {}]   ;;  %s5130_s4 = inlined_call_operand.vmem [shape: f32[1,512], index: 4, kind: input, shape index: {}]   ;;  %s5131_s9 = inlined_call_operand.vmem [shape: bf16[256,128], index: 9, kind: input, shape index: {}]   ;;  %s5132_s6 = inlined_call_operand.vmem [shape: f32[1,256], index: 6, kind: input, shape index: {}]   ;;  %s5133_s7 = inlined_call_operand.vmem [shape: f32[1,256], index: 7, kind: input, shape index: {}]   ;;  %s5134_s8 = inlined_call_operand.vmem [shape: f32[1,256], index: 8, kind: input, shape index: {}]   ;;  %s5135_s10 = inlined_call_operand.vmem [shape: f32[1,128], index: 10, kind: input, shape index: {}]   ;;  %s5136_s11 = inlined_call_operand.vmem [shape: f32[2,128], index: 11, kind: output, shape index: {}]  }
   0x1   :  { %v3354_v0 = vld [vmem:[%s5125_s1 + $0x4] ss:$16 sps:$4 sm:$0xff]   ;;  %v3358_v2 = vld [vmem:[%s5125_s1] ss:$16 sps:$4 sm:$0xff]   ;;  %v304_v37 = vunpack.c.l.s4 %v3864_v36 }
   0x2   :  { %v3356_v1 = vld [vmem:[%s5125_s1 + $0x204] ss:$16 sps:$4 sm:$0xff]   ;;  %1653 = vmatprep.subr.bf16.mxu1 %v3354_v0  ;;  %v3359_v3 = vld [vmem:[%s5125_s1 + $0x200] ss:$16 sps:$4 sm:$0xff]   ;;  %v4043_v43 = vshrl.u32 %v306_v38, 7 }
   0x3   :  { %1694 = vmatprep.subr.bf16.mxu0 %v3356_v1  ;;  %v3360_v4 = vld [vmem:[%s5125_s1 + $0x24] ss:$16 sps:$4 sm:$0xff]   ;;  %1654 = vmatpush1.bf16.msra.mxu1 %v3358_v2  ;;  %v3364_v6 = vld [vmem:[%s5125_s1 + $0x20] ss:$16 sps:$4 sm:$0xff]   ;;  %v305_v42 = vunpack.c.0.s8 %v304_v37  ;;  %v3481_v37 = vld [vmem:[%s5125_s1 + $0x8c] ss:$16 sps:$4 sm:$0xff]  }
   0x4   :  { %1695 = vmatpush1.bf16.msra.mxu0 %v3359_v3  ;;  %v3362_v5 = vld [vmem:[%s5125_s1 + $0x224] ss:$16 sps:$4 sm:$0xff]   ;;  %1655 = vmatprep.subr.bf16.mxu1 %v3360_v4  ;;  %v3365_v7 = vld [vmem:[%s5125_s1 + $0x220] ss:$16 sps:$4 sm:$0xff]  }
   0x5   :  { %1696 = vmatprep.subr.bf16.mxu0 %v3362_v5  ;;  %v3366_v8 = vld [vmem:[%s5125_s1 + $0x44] ss:$16 sps:$4 sm:$0xff]   ;;  %v3370_v10 = vld [vmem:[%s5125_s1 + $0x40] ss:$16 sps:$4 sm:$0xff]   ;;  %v4061_v49 = vsub.s32 %v305_v42, %v4043_v43 }
   0x6   :  { %v3368_v9 = vld [vmem:[%s5125_s1 + $0x244] ss:$16 sps:$4 sm:$0xff]   ;;  %v3371_v11 = vld [vmem:[%s5125_s1 + $0x240] ss:$16 sps:$4 sm:$0xff]  }
   0x7   :  { %1656 = vmatpush1.bf16.msra.mxu1 %v3364_v6  ;;  %v3372_v12 = vld [vmem:[%s5125_s1 + $0x64] ss:$16 sps:$4 sm:$0xff]   ;;  %v3376_v14 = vld [vmem:[%s5125_s1 + $0x60] ss:$16 sps:$4 sm:$0xff]  }
   0x8   :  { %1697 = vmatpush1.bf16.msra.mxu0 %v3365_v7  ;;  %1657 = vmatprep.subr.bf16.mxu1 %v3366_v8  ;;  %v3374_v13 = vld [vmem:[%s5125_s1 + $0x264] ss:$16 sps:$4 sm:$0xff]   ;;  %v3377_v15 = vld [vmem:[%s5125_s1 + $0x260] ss:$16 sps:$4 sm:$0xff]   ;;  %v4116_v8 = vld [vmem:[%s5126_s0 + $0x8] sm:$0xff] }
   0x9   :  { %1698 = vmatprep.subr.bf16.mxu0 %v3368_v9  ;;  %v3378_v16 = vld [vmem:[%s5125_s1 + $0x84] ss:$16 sps:$4 sm:$0xff]   ;;  %v3382_v18 = vld [vmem:[%s5125_s1 + $0x80] ss:$16 sps:$4 sm:$0xff]  }
   0xa   :  { %v3380_v17 = vld [vmem:[%s5125_s1 + $0x284] ss:$16 sps:$4 sm:$0xff]   ;;  %v3383_v19 = vld [vmem:[%s5125_s1 + $0x280] ss:$16 sps:$4 sm:$0xff]  }
   0xb   :  { %1658 = vmatpush1.bf16.msra.mxu1 %v3370_v10  ;;  %v3384_v20 = vld [vmem:[%s5125_s1 + $0xa4] ss:$16 sps:$4 sm:$0xff]   ;;  %v3388_v22 = vld [vmem:[%s5125_s1 + $0xa0] ss:$16 sps:$4 sm:$0xff]  }
   0xc   :  { %1699 = vmatpush1.bf16.msra.mxu0 %v3371_v11  ;;  %1659 = vmatprep.subr.bf16.mxu1 %v3372_v12  ;;  %v3386_v21 = vld [vmem:[%s5125_s1 + $0x2a4] ss:$16 sps:$4 sm:$0xff]   ;;  %v3389_v23 = vld [vmem:[%s5125_s1 + $0x2a0] ss:$16 sps:$4 sm:$0xff]  }
   0xd   :  { %1700 = vmatprep.subr.bf16.mxu0 %v3374_v13  ;;  %v3390_v24 = vld [vmem:[%s5125_s1 + $0xc4] ss:$16 sps:$4 sm:$0xff]   ;;  %v3394_v26 = vld [vmem:[%s5125_s1 + $0xc0] ss:$16 sps:$4 sm:$0xff]   ;;  %v4132_v13 = vrot.slane %v4116_v8, %v4061_v49 }
   0xe   :  { %v3392_v25 = vld [vmem:[%s5125_s1 + $0x2c4] ss:$16 sps:$4 sm:$0xff]   ;;  %v3395_v27 = vld [vmem:[%s5125_s1 + $0x2c0] ss:$16 sps:$4 sm:$0xff]  }
   0xf   :  { %1660 = vmatpush1.bf16.msra.mxu1 %v3376_v14  ;;  %v3396_v28 = vld [vmem:[%s5125_s1 + $0xe4] ss:$16 sps:$4 sm:$0xff]   ;;  %v3400_v30 = vld [vmem:[%s5125_s1 + $0xe0] ss:$16 sps:$4 sm:$0xff]  }
  0x10   :  { %1701 = vmatpush1.bf16.msra.mxu0 %v3377_v15  ;;  %1661 = vmatprep.subr.bf16.mxu1 %v3378_v16  ;;  %v3398_v29 = vld [vmem:[%s5125_s1 + $0x2e4] ss:$16 sps:$4 sm:$0xff]   ;;  %v3401_v31 = vld [vmem:[%s5125_s1 + $0x2e0] ss:$16 sps:$4 sm:$0xff]  }
  0x11   :  { %1702 = vmatprep.subr.bf16.mxu0 %v3380_v17  ;;  %v3402_v32 = vld [vmem:[%s5125_s1 + $0x104] ss:$16 sps:$4 sm:$0xff]   ;;  %v3406_v34 = vld [vmem:[%s5125_s1 + $0x100] ss:$16 sps:$4 sm:$0xff]   ;;  %v3457_v17 = vld [vmem:[%s5125_s1 + $0xc] ss:$16 sps:$4 sm:$0xff]  }
  0x12   :  { %v3404_v33 = vld [vmem:[%s5125_s1 + $0x304] ss:$16 sps:$4 sm:$0xff]   ;;  %v3407_v35 = vld [vmem:[%s5125_s1 + $0x300] ss:$16 sps:$4 sm:$0xff]  }
  0x13   :  { %1662 = vmatpush1.bf16.msra.mxu1 %v3382_v18  ;;  %v3408_v39 = vld [vmem:[%s5125_s1 + $0x124] ss:$16 sps:$4 sm:$0xff]   ;;  %v3412_v41 = vld [vmem:[%s5125_s1 + $0x120] ss:$16 sps:$4 sm:$0xff]   ;;  %v334_v18 = vcombine.high %v4132_v13, %v4132_v13 }
  0x14   :  { %1703 = vmatpush1.bf16.msra.mxu0 %v3383_v19  ;;  %1663 = vmatprep.subr.bf16.mxu1 %v3384_v20  ;;  %v3410_v40 = vld [vmem:[%s5125_s1 + $0x324] ss:$16 sps:$4 sm:$0xff]   ;;  %v3413_v44 = vld [vmem:[%s5125_s1 + $0x320] ss:$16 sps:$4 sm:$0xff]  }
  0x15   :  { %1704 = vmatprep.subr.bf16.mxu0 %v3386_v21  ;;  %v3414_v45 = vld [vmem:[%s5125_s1 + $0x144] ss:$16 sps:$4 sm:$0xff]   ;;  %v3418_v47 = vld [vmem:[%s5125_s1 + $0x140] ss:$16 sps:$4 sm:$0xff]  }
  0x16   :  { %v3416_v46 = vld [vmem:[%s5125_s1 + $0x344] ss:$16 sps:$4 sm:$0xff]   ;;  %v3419_v48 = vld [vmem:[%s5125_s1 + $0x340] ss:$16 sps:$4 sm:$0xff]  }
  0x17   :  { %1664 = vmatpush1.bf16.msra.mxu1 %v3388_v22  ;;  %v3420_v50 = vld [vmem:[%s5125_s1 + $0x164] ss:$16 sps:$4 sm:$0xff]   ;;  %v3424_v55 = vld [vmem:[%s5125_s1 + $0x160] ss:$16 sps:$4 sm:$0xff]   ;;  %v3455_v22 = vld [vmem:[%s5125_s1 + $0x8] ss:$16 sps:$4 sm:$0xff]  }
  0x18   :  { %1705 = vmatpush1.bf16.msra.mxu0 %v3389_v23  ;;  %1665 = vmatprep.subr.bf16.mxu1 %v3390_v24  ;;  %v3422_v51 = vld [vmem:[%s5125_s1 + $0x364] ss:$16 sps:$4 sm:$0xff]   ;;  %v3425_v56 = vld [vmem:[%s5125_s1 + $0x360] ss:$16 sps:$4 sm:$0xff]   ;;  %v3463_v24 = vld [vmem:[%s5125_s1 + $0x2c] ss:$16 sps:$4 sm:$0xff]  }
  0x19   :  { %1706 = vmatprep.subr.bf16.mxu0 %v3392_v25  ;;  %v39_v52 = vld [vmem:[%s5126_s0] sm:$0xff]  ;;  %v4164_v25 = vpack.c.bf16 %v334_v18, %v334_v18  ;;  %v3541_v18 = vld [vmem:[%s5125_s1 + $0x1cc] ss:$16 sps:$4 sm:$0xff]  }
  0x1a   :  { %v309_v53 = vrot.slane %v39_v52, %v4061_v49  ;;  %v302_v54 = vcombine.high %v39_v52, %v39_v52  ;;  %v3426_v57 = vld [vmem:[%s5125_s1 + $0x184] ss:$16 sps:$4 sm:$0xff]   ;;  %v3430_v63 = vld [vmem:[%s5125_s1 + $0x180] ss:$16 sps:$4 sm:$0xff]  }
  0x1b   :  { %1666 = vmatpush1.bf16.msra.mxu1 %v3394_v26  ;;  %v3428_v58 = vld [vmem:[%s5125_s1 + $0x384] ss:$16 sps:$4 sm:$0xff]   ;;  %v3431_v0 = vld [vmem:[%s5125_s1 + $0x380] ss:$16 sps:$4 sm:$0xff]  }
  0x1c   :  { %1707 = vmatpush1.bf16.msra.mxu0 %v3395_v27  ;;  %1667 = vmatprep.subr.bf16.mxu1 %v3396_v28  ;;  %v317_v59 = vcombine.high %v309_v53, %v309_v53  ;;  %v316_v60 = vrot.slane %v302_v54, %v4061_v49  ;;  %v3432_v1 = vld [vmem:[%s5125_s1 + $0x1a4] ss:$16 sps:$4 sm:$0xff]   ;;  %v3436_v4 = vld [vmem:[%s5125_s1 + $0x1a0] ss:$16 sps:$4 sm:$0xff]   ;;  %v4148_v19 = vpack.c.bf16 %v309_v53, %v309_v53  ;;  %v3461_v27 = vld [vmem:[%s5125_s1 + $0x28] ss:$16 sps:$4 sm:$0xff]  }
  0x1d   :  { %1708 = vmatprep.subr.bf16.mxu0 %v3398_v29  ;;  %v3434_v2 = vld [vmem:[%s5125_s1 + $0x3a4] ss:$16 sps:$4 sm:$0xff]   ;;  %v3437_v5 = vld [vmem:[%s5125_s1 + $0x3a0] ss:$16 sps:$4 sm:$0xff]   ;;  %v3469_v29 = vld [vmem:[%s5125_s1 + $0x4c] ss:$16 sps:$4 sm:$0xff]  }
  0x1e   :  { %v345_v61 = vpack.c.bf16 %v317_v59, %v317_v59  ;;  %v318_v62 = vcombine.high %v316_v60, %v316_v60  ;;  %v3438_v6 = vld [vmem:[%s5125_s1 + $0x1c4] ss:$16 sps:$4 sm:$0xff]   ;;  %v3442_v9 = vld [vmem:[%s5125_s1 + $0x1c0] ss:$16 sps:$4 sm:$0xff]   ;;  %v4150_v20 = vpack.c.bf16 %v316_v60, %v316_v60  ;;  %v3497_v53 = vld [vmem:[%s5125_s1 + $0xe8] ss:$16 sps:$4 sm:$0xff]  }
  0x1f   :  { %1668 = vmatpush1.bf16.msra.mxu1 %v3400_v30  ;;  %v3440_v7 = vld [vmem:[%s5125_s1 + $0x3c4] ss:$16 sps:$4 sm:$0xff]   ;;  %v3443_v10 = vld [vmem:[%s5125_s1 + $0x3c0] ss:$16 sps:$4 sm:$0xff]   ;;  %v3511_v59 = vld [vmem:[%s5125_s1 + $0x12c] ss:$16 sps:$4 sm:$0xff]  }
  0x20   :  { %1709 = vmatpush1.bf16.msra.mxu0 %v3401_v31  ;;  %1669 = vmatprep.subr.bf16.mxu1 %v3402_v32  ;;  %v4098_v3 = vpack.c.bf16 %v318_v62, %v318_v62  ;;  %v3444_v11 = vld [vmem:[%s5125_s1 + $0x1e4] ss:$16 sps:$4 sm:$0xff]   ;;  %v3448_v14 = vld [vmem:[%s5125_s1 + $0x1e0] ss:$16 sps:$4 sm:$0xff]   ;;  %v3467_v31 = vld [vmem:[%s5125_s1 + $0x48] ss:$16 sps:$4 sm:$0xff]  }
  0x21   :  { %1710 = vmatprep.subr.bf16.mxu0 %v3404_v33  ;;  %1685 = vmatprep.mubr.bf16.mxu1 %v345_v61  ;;  %v3446_v12 = vld [vmem:[%s5125_s1 + $0x3e4] ss:$16 sps:$4 sm:$0xff]   ;;  %v3449_v15 = vld [vmem:[%s5125_s1 + $0x3e0] ss:$16 sps:$4 sm:$0xff]   ;;  %v3475_v33 = vld [vmem:[%s5125_s1 + $0x6c] ss:$16 sps:$4 sm:$0xff]  }
  0x22   :  { %1726 = vmatprep.mubr.bf16.mxu0 %v4098_v3  ;;  %v3454_v16 = vld [vmem:[%s5125_s1 + $0x404] ss:$16 sps:$4 sm:$0xff]   ;;  %v3452_v21 = vld [vmem:[%s5125_s1 + $0x400] ss:$16 sps:$4 sm:$0xff]  }
  0x23   :  { %1670 = vmatpush1.bf16.msra.mxu1 %v3406_v34  ;;  %v3460_v23 = vld [vmem:[%s5125_s1 + $0x424] ss:$16 sps:$4 sm:$0xff]   ;;  %v3458_v26 = vld [vmem:[%s5125_s1 + $0x420] ss:$16 sps:$4 sm:$0xff]  }
  0x24   :  { %1711 = vmatpush1.bf16.msra.mxu0 %v3407_v35  ;;  %1671 = vmatprep.subr.bf16.mxu1 %v3408_v39  ;;  %v3466_v28 = vld [vmem:[%s5125_s1 + $0x444] ss:$16 sps:$4 sm:$0xff]   ;;  %v3464_v30 = vld [vmem:[%s5125_s1 + $0x440] ss:$16 sps:$4 sm:$0xff]   ;;  %v3473_v35 = vld [vmem:[%s5125_s1 + $0x68] ss:$16 sps:$4 sm:$0xff]  }
  0x25   :  { %1712 = vmatprep.subr.bf16.mxu0 %v3410_v40  ;;  %v3472_v32 = vld [vmem:[%s5125_s1 + $0x464] ss:$16 sps:$4 sm:$0xff]   ;;  %v3470_v34 = vld [vmem:[%s5125_s1 + $0x460] ss:$16 sps:$4 sm:$0xff]   ;;  %v3479_v39 = vld [vmem:[%s5125_s1 + $0x88] ss:$16 sps:$4 sm:$0xff]  }
  0x26   :  { %v3478_v36 = vld [vmem:[%s5125_s1 + $0x484] ss:$16 sps:$4 sm:$0xff]   ;;  %v3476_v38 = vld [vmem:[%s5125_s1 + $0x480] ss:$16 sps:$4 sm:$0xff]  }
  0x27   :  { %1672 = vmatpush1.bf16.msra.mxu1 %v3412_v41  ;;  %v3484_v40 = vld [vmem:[%s5125_s1 + $0x4a4] ss:$16 sps:$4 sm:$0xff]   ;;  %v3487_v41 = vld [vmem:[%s5125_s1 + $0xac] ss:$16 sps:$4 sm:$0xff]   ;;  %v3482_v42 = vld [vmem:[%s5125_s1 + $0x4a0] ss:$16 sps:$4 sm:$0xff]  }
  0x28   :  { %1713 = vmatpush1.bf16.msra.mxu0 %v3413_v44  ;;  %1673 = vmatprep.subr.bf16.mxu1 %v3414_v45  ;;  %v3485_v44 = vld [vmem:[%s5125_s1 + $0xa8] ss:$16 sps:$4 sm:$0xff]   ;;  %v3490_v45 = vld [vmem:[%s5125_s1 + $0x4c4] ss:$16 sps:$4 sm:$0xff]   ;;  %v3494_v52 = vld [vmem:[%s5125_s1 + $0x4e0] ss:$16 sps:$4 sm:$0xff]  }
  0x29   :  { %1714 = vmatprep.subr.bf16.mxu0 %v3416_v46  ;;  %v3493_v46 = vld [vmem:[%s5125_s1 + $0xcc] ss:$16 sps:$4 sm:$0xff]   ;;  %v3502_v54 = vld [vmem:[%s5125_s1 + $0x504] ss:$16 sps:$4 sm:$0xff]   ;;  %v3506_v60 = vld [vmem:[%s5125_s1 + $0x520] ss:$16 sps:$4 sm:$0xff]  }
  0x2a   :  { %v3514_v62 = vld [vmem:[%s5125_s1 + $0x544] ss:$16 sps:$4 sm:$0xff]  }
  0x2b   :  { %1674 = vmatpush1.bf16.msra.mxu1 %v3418_v47  ;;  %v3488_v47 = vld [vmem:[%s5125_s1 + $0x4c0] ss:$16 sps:$4 sm:$0xff]  }
  0x2c   :  { %1715 = vmatpush1.bf16.msra.mxu0 %v3419_v48  ;;  %1675 = vmatprep.subr.bf16.mxu1 %v3420_v50  ;;  %v3491_v48 = vld [vmem:[%s5125_s1 + $0xc8] ss:$16 sps:$4 sm:$0xff]   ;;  %v3496_v50 = vld [vmem:[%s5125_s1 + $0x4e4] ss:$16 sps:$4 sm:$0xff]  }
  0x2d   :  { %1716 = vmatprep.subr.bf16.mxu0 %v3422_v51  ;;  %v3499_v51 = vld [vmem:[%s5125_s1 + $0xec] ss:$16 sps:$4 sm:$0xff]  }
  0x2f   :  { %1676 = vmatpush1.bf16.msra.mxu1 %v3424_v55  ;;  %v3505_v55 = vld [vmem:[%s5125_s1 + $0x10c] ss:$16 sps:$4 sm:$0xff]  }
  0x30   :  { %1717 = vmatpush1.bf16.msra.mxu0 %v3425_v56  ;;  %1677 = vmatprep.subr.bf16.mxu1 %v3426_v57  ;;  %v3500_v56 = vld [vmem:[%s5125_s1 + $0x500] ss:$16 sps:$4 sm:$0xff]   ;;  %v3503_v57 = vld [vmem:[%s5125_s1 + $0x108] ss:$16 sps:$4 sm:$0xff]  }
  0x31   :  { %1718 = vmatprep.subr.bf16.mxu0 %v3428_v58  ;;  %v3508_v58 = vld [vmem:[%s5125_s1 + $0x524] ss:$16 sps:$4 sm:$0xff]  }
  0x33   :  { %1678 = vmatpush1.bf16.msra.mxu1 %v3430_v63  ;;  %v3517_v63 = vld [vmem:[%s5125_s1 + $0x14c] ss:$16 sps:$4 sm:$0xff]  }
  0x34   :  { %1719 = vmatpush1.bf16.msra.mxu0 %v3431_v0  ;;  %1679 = vmatprep.subr.bf16.mxu1 %v3432_v1  ;;  %v3512_v0 = vld [vmem:[%s5125_s1 + $0x540] ss:$16 sps:$4 sm:$0xff]   ;;  %v3515_v1 = vld [vmem:[%s5125_s1 + $0x148] ss:$16 sps:$4 sm:$0xff]  }
  0x35   :  { %1720 = vmatprep.subr.bf16.mxu0 %v3434_v2  ;;  %v3520_v2 = vld [vmem:[%s5125_s1 + $0x564] ss:$16 sps:$4 sm:$0xff]  }
  0x37   :  { %1680 = vmatpush1.bf16.msra.mxu1 %v3436_v4  ;;  %v3523_v4 = vld [vmem:[%s5125_s1 + $0x16c] ss:$16 sps:$4 sm:$0xff]  }
  0x38   :  { %1721 = vmatpush1.bf16.msra.mxu0 %v3437_v5  ;;  %1681 = vmatprep.subr.bf16.mxu1 %v3438_v6  ;;  %v3518_v5 = vld [vmem:[%s5125_s1 + $0x560] ss:$16 sps:$4 sm:$0xff]   ;;  %v3521_v6 = vld [vmem:[%s5125_s1 + $0x168] ss:$16 sps:$4 sm:$0xff]  }
  0x39   :  { %1722 = vmatprep.subr.bf16.mxu0 %v3440_v7  ;;  %v3526_v7 = vld [vmem:[%s5125_s1 + $0x584] ss:$16 sps:$4 sm:$0xff]  }
  0x3b   :  { %1682 = vmatpush1.bf16.msra.mxu1 %v3442_v9  ;;  %v3529_v9 = vld [vmem:[%s5125_s1 + $0x18c] ss:$16 sps:$4 sm:$0xff]  }
  0x3c   :  { %1723 = vmatpush1.bf16.msra.mxu0 %v3443_v10  ;;  %1683 = vmatprep.subr.bf16.mxu1 %v3444_v11  ;;  %v3524_v10 = vld [vmem:[%s5125_s1 + $0x580] ss:$16 sps:$4 sm:$0xff]   ;;  %v3527_v11 = vld [vmem:[%s5125_s1 + $0x188] ss:$16 sps:$4 sm:$0xff]  }
  0x3d   :  { %1724 = vmatprep.subr.bf16.mxu0 %v3446_v12  ;;  %v3532_v12 = vld [vmem:[%s5125_s1 + $0x5a4] ss:$16 sps:$4 sm:$0xff]  }
  0x3f   :  { %1684 = vmatpush1.bf16.msra.mxu1 %v3448_v14  ;;  %v3535_v14 = vld [vmem:[%s5125_s1 + $0x1ac] ss:$16 sps:$4 sm:$0xff]  }
  0x40   :  { %1725 = vmatpush1.bf16.msra.mxu0 %v3449_v15  ;;  %1817 = vmatprep.subr.bf16.mxu1 %v3457_v17  ;;  %v3530_v15 = vld [vmem:[%s5125_s1 + $0x5a0] ss:$16 sps:$4 sm:$0xff]   ;;  %v3538_v17 = vld [vmem:[%s5125_s1 + $0x5c4] ss:$16 sps:$4 sm:$0xff]  }
  0x41   :  { %1735 = vmatprep.subr.bf16.mxu0 %v3454_v16  ;;  %v3533_v16 = vld [vmem:[%s5125_s1 + $0x1a8] ss:$16 sps:$4 sm:$0xff]  }
  0x42   :  { %1686 = vmatmul.mubr.bf16.vlgmr.msra.gmra.mrb[0].mxu1 %v4148_v19 }
  0x43   :  { %1727 = vmatmul.mubr.bf16.vlgmr.msra.gmra.mrb[0].mxu0 %v4150_v20  ;;  %1818 = vmatpush1.bf16.msra.mxu1 %v3455_v22  ;;  %v3536_v22 = vld [vmem:[%s5125_s1 + $0x5c0] ss:$16 sps:$4 sm:$0xff]  }
  0x44   :  { %1736 = vmatpush1.bf16.msra.mxu0 %v3452_v21  ;;  %1819 = vmatprep.subr.bf16.mxu1 %v3463_v24  ;;  %v319_v21 = vcombine.high %v4116_v8, %v4116_v8  ;;  %v3544_v24 = vld [vmem:[%s5125_s1 + $0x5e4] ss:$16 sps:$4 sm:$0xff]   ;;  %v3547_v8 = vld [vmem:[%s5125_s1 + $0x1ec] ss:$16 sps:$4 sm:$0xff]  }
  0x45   :  { %1737 = vmatprep.subr.bf16.mxu0 %v3460_v23  ;;  %1767 = vmatprep.mubr.bf16.mxu0 %v4164_v25  ;;  %v3539_v23 = vld [vmem:[%s5125_s1 + $0x1c8] ss:$16 sps:$4 sm:$0xff]  }
  0x46   :  { %1849 = vmatprep.mubr.bf16.mxu1 %v345_v61  ;;  %v3509_v61 = vld [vmem:[%s5125_s1 + $0x128] ss:$16 sps:$4 sm:$0xff]  }
  0x47   :  { %1820 = vmatpush1.bf16.msra.mxu1 %v3461_v27  ;;  %v3542_v27 = vld [vmem:[%s5125_s1 + $0x5e0] ss:$16 sps:$4 sm:$0xff]  }
  0x48   :  { %1738 = vmatpush1.bf16.msra.mxu0 %v3458_v26  ;;  %1821 = vmatprep.subr.bf16.mxu1 %v3469_v29  ;;  %v4340_v26 = vrot.slane %v319_v21, %v4061_v49  ;;  %v3550_v29 = vld [vmem:[%s5125_s1 + $0x604] ss:$16 sps:$4 sm:$0xff]   ;;  %v3553_v49 = vld [vmem:[%s5125_s1 + $0x20c] ss:$16 sps:$4 sm:$0xff]   ;;  %v3620_v21 = vld [vmem:[%s5125_s1 + $0x780] ss:$16 sps:$4 sm:$0xff]  }
  0x49   :  { %1739 = vmatprep.subr.bf16.mxu0 %v3466_v28  ;;  %v3545_v28 = vld [vmem:[%s5125_s1 + $0x1e8] ss:$16 sps:$4 sm:$0xff]  }
  0x4b   :  { %1822 = vmatpush1.bf16.msra.mxu1 %v3467_v31  ;;  %v4358_v31 = vpack.c.bf16 %v4132_v13, %v4132_v13  ;;  %v3559_v13 = vld [vmem:[%s5125_s1 + $0x22c] ss:$16 sps:$4 sm:$0xff]  }
  0x4c   :  { %1740 = vmatpush1.bf16.msra.mxu0 %v3464_v30  ;;  %1823 = vmatprep.subr.bf16.mxu1 %v3475_v33  ;;  %v335_v30 = vcombine.high %v4340_v26, %v4340_v26  ;;  %v3551_v33 = vld [vmem:[%s5125_s1 + $0x208] ss:$16 sps:$4 sm:$0xff]  }
  0x4d   :  { %1741 = vmatprep.subr.bf16.mxu0 %v3472_v32  ;;  %v3548_v32 = vld [vmem:[%s5125_s1 + $0x600] ss:$16 sps:$4 sm:$0xff]  }
  0x4f   :  { %1824 = vmatpush1.bf16.msra.mxu1 %v3473_v35  ;;  %v4372_v35 = vpack.c.bf16 %v335_v30, %v335_v30  ;;  %v3635_v30 = vld [vmem:[%s5125_s1 + $0x3c8] ss:$16 sps:$4 sm:$0xff]  }
  0x50   :  { %1742 = vmatpush1.bf16.msra.mxu0 %v3470_v34  ;;  %1825 = vmatprep.subr.bf16.mxu1 %v3481_v37  ;;  %v3556_v34 = vld [vmem:[%s5125_s1 + $0x624] ss:$16 sps:$4 sm:$0xff]   ;;  %v3557_v37 = vld [vmem:[%s5125_s1 + $0x228] ss:$16 sps:$4 sm:$0xff]  }
  0x51   :  { %1743 = vmatprep.subr.bf16.mxu0 %v3478_v36  ;;  %v3554_v36 = vld [vmem:[%s5125_s1 + $0x620] ss:$16 sps:$4 sm:$0xff]  }
  0x53   :  { %1826 = vmatpush1.bf16.msra.mxu1 %v3479_v39  ;;  %v3560_v39 = vld [vmem:[%s5125_s1 + $0x640] ss:$16 sps:$4 sm:$0xff]  }
  0x54   :  { %1744 = vmatpush1.bf16.msra.mxu0 %v3476_v38  ;;  %1827 = vmatprep.subr.bf16.mxu1 %v3487_v41  ;;  %v3562_v38 = vld [vmem:[%s5125_s1 + $0x644] ss:$16 sps:$4 sm:$0xff]  }
  0x55   :  { %1745 = vmatprep.subr.bf16.mxu0 %v3484_v40  ;;  %v3563_v40 = vld [vmem:[%s5125_s1 + $0x248] ss:$16 sps:$4 sm:$0xff]   ;;  %v3568_v41 = vld [vmem:[%s5125_s1 + $0x664] ss:$16 sps:$4 sm:$0xff]  }
  0x57   :  { %1828 = vmatpush1.bf16.msra.mxu1 %v3485_v44  ;;  %v3569_v44 = vld [vmem:[%s5125_s1 + $0x268] ss:$16 sps:$4 sm:$0xff]  }
  0x58   :  { %1746 = vmatpush1.bf16.msra.mxu0 %v3482_v42  ;;  %1829 = vmatprep.subr.bf16.mxu1 %v3493_v46  ;;  %v3566_v42 = vld [vmem:[%s5125_s1 + $0x660] ss:$16 sps:$4 sm:$0xff]   ;;  %v3577_v46 = vld [vmem:[%s5125_s1 + $0x28c] ss:$16 sps:$4 sm:$0xff]  }
  0x59   :  { %1747 = vmatprep.subr.bf16.mxu0 %v3490_v45  ;;  %v3574_v45 = vld [vmem:[%s5125_s1 + $0x684] ss:$16 sps:$4 sm:$0xff]  }
  0x5b   :  { %1830 = vmatpush1.bf16.msra.mxu1 %v3491_v48  ;;  %v3575_v48 = vld [vmem:[%s5125_s1 + $0x288] ss:$16 sps:$4 sm:$0xff]  }
  0x5c   :  { %1748 = vmatpush1.bf16.msra.mxu0 %v3488_v47  ;;  %1831 = vmatprep.subr.bf16.mxu1 %v3499_v51  ;;  %v3572_v47 = vld [vmem:[%s5125_s1 + $0x680] ss:$16 sps:$4 sm:$0xff]   ;;  %v3583_v51 = vld [vmem:[%s5125_s1 + $0x2ac] ss:$16 sps:$4 sm:$0xff]  }
  0x5d   :  { %1749 = vmatprep.subr.bf16.mxu0 %v3496_v50  ;;  %v3580_v50 = vld [vmem:[%s5125_s1 + $0x6a4] ss:$16 sps:$4 sm:$0xff]  }
  0x5f   :  { %1832 = vmatpush1.bf16.msra.mxu1 %v3497_v53  ;;  %v3581_v53 = vld [vmem:[%s5125_s1 + $0x2a8] ss:$16 sps:$4 sm:$0xff]  }
  0x60   :  { %1750 = vmatpush1.bf16.msra.mxu0 %v3494_v52  ;;  %1833 = vmatprep.subr.bf16.mxu1 %v3505_v55  ;;  %v3578_v52 = vld [vmem:[%s5125_s1 + $0x6a0] ss:$16 sps:$4 sm:$0xff]   ;;  %v3589_v55 = vld [vmem:[%s5125_s1 + $0x2cc] ss:$16 sps:$4 sm:$0xff]  }
  0x61   :  { %1751 = vmatprep.subr.bf16.mxu0 %v3502_v54  ;;  %v3586_v54 = vld [vmem:[%s5125_s1 + $0x6c4] ss:$16 sps:$4 sm:$0xff]  }
  0x63   :  { %1834 = vmatpush1.bf16.msra.mxu1 %v3503_v57  ;;  %v3587_v57 = vld [vmem:[%s5125_s1 + $0x2c8] ss:$16 sps:$4 sm:$0xff]  }
  0x64   :  { %1752 = vmatpush1.bf16.msra.mxu0 %v3500_v56  ;;  %1835 = vmatprep.subr.bf16.mxu1 %v3511_v59  ;;  %v3584_v56 = vld [vmem:[%s5125_s1 + $0x6c0] ss:$16 sps:$4 sm:$0xff]   ;;  %v3595_v59 = vld [vmem:[%s5125_s1 + $0x2ec] ss:$16 sps:$4 sm:$0xff]  }
  0x65   :  { %1753 = vmatprep.subr.bf16.mxu0 %v3508_v58  ;;  %v3592_v58 = vld [vmem:[%s5125_s1 + $0x6e4] ss:$16 sps:$4 sm:$0xff]  }
  0x67   :  { %1836 = vmatpush1.bf16.msra.mxu1 %v3509_v61  ;;  %v3593_v61 = vld [vmem:[%s5125_s1 + $0x2e8] ss:$16 sps:$4 sm:$0xff]  }
  0x68   :  { %1754 = vmatpush1.bf16.msra.mxu0 %v3506_v60  ;;  %1837 = vmatprep.subr.bf16.mxu1 %v3517_v63  ;;  %v3590_v60 = vld [vmem:[%s5125_s1 + $0x6e0] ss:$16 sps:$4 sm:$0xff]   ;;  %v3601_v63 = vld [vmem:[%s5125_s1 + $0x30c] ss:$16 sps:$4 sm:$0xff]  }
  0x69   :  { %1755 = vmatprep.subr.bf16.mxu0 %v3514_v62  ;;  %v3598_v62 = vld [vmem:[%s5125_s1 + $0x704] ss:$16 sps:$4 sm:$0xff]  }
  0x6b   :  { %1838 = vmatpush1.bf16.msra.mxu1 %v3515_v1  ;;  %v3599_v1 = vld [vmem:[%s5125_s1 + $0x308] ss:$16 sps:$4 sm:$0xff]  }
  0x6c   :  { %1756 = vmatpush1.bf16.msra.mxu0 %v3512_v0  ;;  %1839 = vmatprep.subr.bf16.mxu1 %v3523_v4  ;;  %v3596_v0 = vld [vmem:[%s5125_s1 + $0x700] ss:$16 sps:$4 sm:$0xff]   ;;  %v3607_v4 = vld [vmem:[%s5125_s1 + $0x32c] ss:$16 sps:$4 sm:$0xff]  }
  0x6d   :  { %1757 = vmatprep.subr.bf16.mxu0 %v3520_v2  ;;  %v3604_v2 = vld [vmem:[%s5125_s1 + $0x724] ss:$16 sps:$4 sm:$0xff]  }
  0x6f   :  { %1840 = vmatpush1.bf16.msra.mxu1 %v3521_v6  ;;  %v3605_v6 = vld [vmem:[%s5125_s1 + $0x328] ss:$16 sps:$4 sm:$0xff]  }
  0x70   :  { %1758 = vmatpush1.bf16.msra.mxu0 %v3518_v5  ;;  %1841 = vmatprep.subr.bf16.mxu1 %v3529_v9  ;;  %v3602_v5 = vld [vmem:[%s5125_s1 + $0x720] ss:$16 sps:$4 sm:$0xff]   ;;  %v3613_v9 = vld [vmem:[%s5125_s1 + $0x34c] ss:$16 sps:$4 sm:$0xff]  }
  0x71   :  { %1759 = vmatprep.subr.bf16.mxu0 %v3526_v7  ;;  %v3610_v7 = vld [vmem:[%s5125_s1 + $0x744] ss:$16 sps:$4 sm:$0xff]  }
  0x73   :  { %1842 = vmatpush1.bf16.msra.mxu1 %v3527_v11  ;;  %v3611_v11 = vld [vmem:[%s5125_s1 + $0x348] ss:$16 sps:$4 sm:$0xff]  }
  0x74   :  { %1760 = vmatpush1.bf16.msra.mxu0 %v3524_v10  ;;  %1843 = vmatprep.subr.bf16.mxu1 %v3535_v14  ;;  %v3608_v10 = vld [vmem:[%s5125_s1 + $0x740] ss:$16 sps:$4 sm:$0xff]   ;;  %v3619_v14 = vld [vmem:[%s5125_s1 + $0x36c] ss:$16 sps:$4 sm:$0xff]  }
  0x75   :  { %1761 = vmatprep.subr.bf16.mxu0 %v3532_v12  ;;  %v3616_v12 = vld [vmem:[%s5125_s1 + $0x764] ss:$16 sps:$4 sm:$0xff]  }
  0x77   :  { %1844 = vmatpush1.bf16.msra.mxu1 %v3533_v16  ;;  %v3617_v16 = vld [vmem:[%s5125_s1 + $0x368] ss:$16 sps:$4 sm:$0xff]  }
  0x78   :  { %1762 = vmatpush1.bf16.msra.mxu0 %v3530_v15  ;;  %1845 = vmatprep.subr.bf16.mxu1 %v3541_v18  ;;  %v3614_v15 = vld [vmem:[%s5125_s1 + $0x760] ss:$16 sps:$4 sm:$0xff]   ;;  %v3625_v18 = vld [vmem:[%s5125_s1 + $0x38c] ss:$16 sps:$4 sm:$0xff]  }
  0x79   :  { %1763 = vmatprep.subr.bf16.mxu0 %v3538_v17  ;;  %v3622_v17 = vld [vmem:[%s5125_s1 + $0x784] ss:$16 sps:$4 sm:$0xff]  }
  0x7b   :  { %1846 = vmatpush1.bf16.msra.mxu1 %v3539_v23  ;;  %v3628_v23 = vld [vmem:[%s5125_s1 + $0x7a4] ss:$16 sps:$4 sm:$0xff]  }
  0x7c   :  { %1764 = vmatpush1.bf16.msra.mxu0 %v3536_v22  ;;  %1847 = vmatprep.subr.bf16.mxu1 %v3547_v8  ;;  %v3623_v22 = vld [vmem:[%s5125_s1 + $0x388] ss:$16 sps:$4 sm:$0xff]   ;;  %v3626_v8 = vld [vmem:[%s5125_s1 + $0x7a0] ss:$16 sps:$4 sm:$0xff]  }
  0x7d   :  { %1765 = vmatprep.subr.bf16.mxu0 %v3544_v24  ;;  %v3631_v24 = vld [vmem:[%s5125_s1 + $0x3ac] ss:$16 sps:$4 sm:$0xff]  }
  0x7f   :  { %1848 = vmatpush1.bf16.msra.mxu1 %v3545_v28  ;;  %v3634_v28 = vld [vmem:[%s5125_s1 + $0x7c4] ss:$16 sps:$4 sm:$0xff]  }
  0x80   :  { %1766 = vmatpush1.bf16.msra.mxu0 %v3542_v27  ;;  %1858 = vmatprep.subr.bf16.mxu1 %v3553_v49  ;;  %v3629_v27 = vld [vmem:[%s5125_s1 + $0x3a8] ss:$16 sps:$4 sm:$0xff]   ;;  %v3632_v49 = vld [vmem:[%s5125_s1 + $0x7c0] ss:$16 sps:$4 sm:$0xff]  }
  0x81   :  { %1776 = vmatprep.subr.bf16.mxu0 %v3550_v29  ;;  %v3637_v29 = vld [vmem:[%s5125_s1 + $0x3cc] ss:$16 sps:$4 sm:$0xff]  }
  0x82   :  { %1850 = vmatmul.mubr.bf16.vlgmr.msra.gmra.mrb[4].mxu1 %v4148_v19  ;;  %v3565_v19 = vld [vmem:[%s5125_s1 + $0x24c] ss:$16 sps:$4 sm:$0xff]  }
  0x83   :  { %1768 = vmatmul.mubr.bf16.vlgmr.msra.gmra.mrb[0].mxu0 %v4358_v31  ;;  %1859 = vmatpush1.bf16.msra.mxu1 %v3551_v33  ;;  %v3643_v33 = vld [vmem:[%s5125_s1 + $0x3ec] ss:$16 sps:$4 sm:$0xff]  }
  0x84   :  { %1777 = vmatpush1.bf16.msra.mxu0 %v3548_v32  ;;  %1860 = vmatprep.subr.bf16.mxu1 %v3559_v13  ;;  %v3640_v32 = vld [vmem:[%s5125_s1 + $0x7e4] ss:$16 sps:$4 sm:$0xff]   ;;  %v3641_v13 = vld [vmem:[%s5125_s1 + $0x3e8] ss:$16 sps:$4 sm:$0xff]  }
  0x85   :  { %1778 = vmatprep.subr.bf16.mxu0 %v3556_v34  ;;  %1808 = vmatprep.mubr.bf16.mxu0 %v4372_v35  ;;  %v3638_v34 = vld [vmem:[%s5125_s1 + $0x7e0] ss:$16 sps:$4 sm:$0xff]  }
  0x86   :  { %1890 = vmatprep.mubr.bf16.mxu1 %v4098_v3  ;;  %v3571_v3 = vld [vmem:[%s5125_s1 + $0x26c] ss:$16 sps:$4 sm:$0xff]  }
  0x87   :  { %1861 = vmatpush1.bf16.msra.mxu1 %v3557_v37  ;;  %v4557_v37 = vpack.c.bf16 %v4340_v26, %v4340_v26  ;;  %v3647_v26 = vld [vmem:[%s5125_s1 + $0x428] ss:$16 sps:$4 sm:$0xff]  }
  0x88   :  { %1779 = vmatpush1.bf16.msra.mxu0 %v3554_v36  ;;  %1862 = vmatprep.subr.bf16.mxu1 %v3565_v19  ;;  %v3646_v36 = vld [vmem:[%s5125_s1 + $0x40c] ss:$16 sps:$4 sm:$0xff]  }
  0x89   :  { %1780 = vmatprep.subr.bf16.mxu0 %v3562_v38  ;;  %v3644_v38 = vld [vmem:[%s5125_s1 + $0x408] ss:$16 sps:$4 sm:$0xff]   ;;  %v3649_v19 = vld [vmem:[%s5125_s1 + $0x42c] ss:$16 sps:$4 sm:$0xff]  }
  0x8b   :  { %1863 = vmatpush1.bf16.msra.mxu1 %v3563_v40  ;;  %v3650_v40 = vld [vmem:[%s5125_s1 + $0x448] ss:$16 sps:$4 sm:$0xff]  }
  0x8c   :  { %1781 = vmatpush1.bf16.msra.mxu0 %v3560_v39  ;;  %1864 = vmatprep.subr.bf16.mxu1 %v3571_v3  ;;  %v3652_v39 = vld [vmem:[%s5125_s1 + $0x44c] ss:$16 sps:$4 sm:$0xff]   ;;  %v3656_v3 = vld [vmem:[%s5125_s1 + $0x488] ss:$16 sps:$4 sm:$0xff]  }
  0x8d   :  { %1782 = vmatprep.subr.bf16.mxu0 %v3568_v41  ;;  %v3658_v41 = vld [vmem:[%s5125_s1 + $0x48c] ss:$16 sps:$4 sm:$0xff]  }
  0x8f   :  { %1865 = vmatpush1.bf16.msra.mxu1 %v3569_v44  ;;  %v3659_v44 = vld [vmem:[%s5125_s1 + $0x4a8] ss:$16 sps:$4 sm:$0xff]  }
  0x90   :  { %1783 = vmatpush1.bf16.msra.mxu0 %v3566_v42  ;;  %1866 = vmatprep.subr.bf16.mxu1 %v3577_v46  ;;  %v3661_v42 = vld [vmem:[%s5125_s1 + $0x4ac] ss:$16 sps:$4 sm:$0xff]   ;;  %v3662_v46 = vld [vmem:[%s5125_s1 + $0x4c8] ss:$16 sps:$4 sm:$0xff]  }
  0x91   :  { %1784 = vmatprep.subr.bf16.mxu0 %v3574_v45  ;;  %v3664_v45 = vld [vmem:[%s5125_s1 + $0x4cc] ss:$16 sps:$4 sm:$0xff]  }
  0x93   :  { %1867 = vmatpush1.bf16.msra.mxu1 %v3575_v48  ;;  %v3665_v48 = vld [vmem:[%s5125_s1 + $0x4e8] ss:$16 sps:$4 sm:$0xff]  }
  0x94   :  { %1785 = vmatpush1.bf16.msra.mxu0 %v3572_v47  ;;  %1868 = vmatprep.subr.bf16.mxu1 %v3583_v51  ;;  %v3667_v47 = vld [vmem:[%s5125_s1 + $0x4ec] ss:$16 sps:$4 sm:$0xff]   ;;  %v3668_v51 = vld [vmem:[%s5125_s1 + $0x508] ss:$16 sps:$4 sm:$0xff]  }
  0x95   :  { %1786 = vmatprep.subr.bf16.mxu0 %v3580_v50  ;;  %v3670_v50 = vld [vmem:[%s5125_s1 + $0x50c] ss:$16 sps:$4 sm:$0xff]  }
  0x97   :  { %1869 = vmatpush1.bf16.msra.mxu1 %v3581_v53  ;;  %v3671_v53 = vld [vmem:[%s5125_s1 + $0x528] ss:$16 sps:$4 sm:$0xff]  }
  0x98   :  { %1787 = vmatpush1.bf16.msra.mxu0 %v3578_v52  ;;  %1870 = vmatprep.subr.bf16.mxu1 %v3589_v55  ;;  %v3673_v52 = vld [vmem:[%s5125_s1 + $0x52c] ss:$16 sps:$4 sm:$0xff]   ;;  %v3674_v55 = vld [vmem:[%s5125_s1 + $0x548] ss:$16 sps:$4 sm:$0xff]  }
  0x99   :  { %1788 = vmatprep.subr.bf16.mxu0 %v3586_v54  ;;  %v3676_v54 = vld [vmem:[%s5125_s1 + $0x54c] ss:$16 sps:$4 sm:$0xff]  }
  0x9b   :  { %1871 = vmatpush1.bf16.msra.mxu1 %v3587_v57  ;;  %v3677_v57 = vld [vmem:[%s5125_s1 + $0x568] ss:$16 sps:$4 sm:$0xff]  }
  0x9c   :  { %1789 = vmatpush1.bf16.msra.mxu0 %v3584_v56  ;;  %1872 = vmatprep.subr.bf16.mxu1 %v3595_v59  ;;  %v3679_v56 = vld [vmem:[%s5125_s1 + $0x56c] ss:$16 sps:$4 sm:$0xff]   ;;  %v3680_v59 = vld [vmem:[%s5125_s1 + $0x588] ss:$16 sps:$4 sm:$0xff]  }
  0x9d   :  { %1790 = vmatprep.subr.bf16.mxu0 %v3592_v58  ;;  %v3682_v58 = vld [vmem:[%s5125_s1 + $0x58c] ss:$16 sps:$4 sm:$0xff]  }
  0x9f   :  { %1873 = vmatpush1.bf16.msra.mxu1 %v3593_v61  ;;  %v3683_v61 = vld [vmem:[%s5125_s1 + $0x5a8] ss:$16 sps:$4 sm:$0xff]  }
  0xa0   :  { %1791 = vmatpush1.bf16.msra.mxu0 %v3590_v60  ;;  %1874 = vmatprep.subr.bf16.mxu1 %v3601_v63  ;;  %v3685_v60 = vld [vmem:[%s5125_s1 + $0x5ac] ss:$16 sps:$4 sm:$0xff]   ;;  %v3686_v63 = vld [vmem:[%s5125_s1 + $0x5c8] ss:$16 sps:$4 sm:$0xff]  }
  0xa1   :  { %1792 = vmatprep.subr.bf16.mxu0 %v3598_v62  ;;  %v3688_v62 = vld [vmem:[%s5125_s1 + $0x5cc] ss:$16 sps:$4 sm:$0xff]  }
  0xa3   :  { %1875 = vmatpush1.bf16.msra.mxu1 %v3599_v1  ;;  %v3689_v1 = vld [vmem:[%s5125_s1 + $0x5e8] ss:$16 sps:$4 sm:$0xff]  }
  0xa4   :  { %1793 = vmatpush1.bf16.msra.mxu0 %v3596_v0  ;;  %1876 = vmatprep.subr.bf16.mxu1 %v3607_v4  ;;  %v3691_v0 = vld [vmem:[%s5125_s1 + $0x5ec] ss:$16 sps:$4 sm:$0xff]   ;;  %v3692_v4 = vld [vmem:[%s5125_s1 + $0x608] ss:$16 sps:$4 sm:$0xff]  }
  0xa5   :  { %1794 = vmatprep.subr.bf16.mxu0 %v3604_v2  ;;  %v3694_v2 = vld [vmem:[%s5125_s1 + $0x60c] ss:$16 sps:$4 sm:$0xff]  }
  0xa7   :  { %1877 = vmatpush1.bf16.msra.mxu1 %v3605_v6  ;;  %v3695_v6 = vld [vmem:[%s5125_s1 + $0x628] ss:$16 sps:$4 sm:$0xff]  }
  0xa8   :  { %1795 = vmatpush1.bf16.msra.mxu0 %v3602_v5  ;;  %1878 = vmatprep.subr.bf16.mxu1 %v3613_v9  ;;  %v3697_v5 = vld [vmem:[%s5125_s1 + $0x62c] ss:$16 sps:$4 sm:$0xff]   ;;  %v3698_v9 = vld [vmem:[%s5125_s1 + $0x648] ss:$16 sps:$4 sm:$0xff]  }
  0xa9   :  { %1796 = vmatprep.subr.bf16.mxu0 %v3610_v7  ;;  %v3700_v7 = vld [vmem:[%s5125_s1 + $0x64c] ss:$16 sps:$4 sm:$0xff]  }
  0xab   :  { %1879 = vmatpush1.bf16.msra.mxu1 %v3611_v11  ;;  %v3704_v11 = vld [vmem:[%s5125_s1 + $0x688] ss:$16 sps:$4 sm:$0xff]  }
  0xac   :  { %1797 = vmatpush1.bf16.msra.mxu0 %v3608_v10  ;;  %1880 = vmatprep.subr.bf16.mxu1 %v3619_v14  ;;  %v3706_v10 = vld [vmem:[%s5125_s1 + $0x68c] ss:$16 sps:$4 sm:$0xff]   ;;  %v3707_v14 = vld [vmem:[%s5125_s1 + $0x6a8] ss:$16 sps:$4 sm:$0xff]  }
  0xad   :  { %1798 = vmatprep.subr.bf16.mxu0 %v3616_v12  ;;  %v3709_v12 = vld [vmem:[%s5125_s1 + $0x6ac] ss:$16 sps:$4 sm:$0xff]  }
  0xaf   :  { %1881 = vmatpush1.bf16.msra.mxu1 %v3617_v16 }
  0xb0   :  { %1799 = vmatpush1.bf16.msra.mxu0 %v3614_v15  ;;  %1882 = vmatprep.subr.bf16.mxu1 %v3625_v18  ;;  %v3712_v15 = vld [vmem:[%s5125_s1 + $0x6cc] ss:$16 sps:$4 sm:$0xff]  }
  0xb1   :  { %1800 = vmatprep.subr.bf16.mxu0 %v3622_v17 }
  0xb3   :  { %1883 = vmatpush1.bf16.msra.mxu1 %v3623_v22 }
  0xb4   :  { %1801 = vmatpush1.bf16.msra.mxu0 %v3620_v21  ;;  %1884 = vmatprep.subr.bf16.mxu1 %v3631_v24  ;;  %v3710_v21 = vld [vmem:[%s5125_s1 + $0x6c8] ss:$16 sps:$4 sm:$0xff]  }
  0xb5   :  { %1802 = vmatprep.subr.bf16.mxu0 %v3628_v23  ;;  %v3715_v23 = vld [vmem:[%s5125_s1 + $0x6ec] ss:$16 sps:$4 sm:$0xff]   ;;  %v3713_v24 = vld [vmem:[%s5125_s1 + $0x6e8] ss:$16 sps:$4 sm:$0xff]  }
  0xb7   :  { %1885 = vmatpush1.bf16.msra.mxu1 %v3629_v27  ;;  %v3716_v27 = vld [vmem:[%s5125_s1 + $0x708] ss:$16 sps:$4 sm:$0xff]  }
  0xb8   :  { %1803 = vmatpush1.bf16.msra.mxu0 %v3626_v8  ;;  %1886 = vmatprep.subr.bf16.mxu1 %v3637_v29  ;;  %v3718_v8 = vld [vmem:[%s5125_s1 + $0x70c] ss:$16 sps:$4 sm:$0xff]   ;;  %v3719_v29 = vld [vmem:[%s5125_s1 + $0x728] ss:$16 sps:$4 sm:$0xff]  }
  0xb9   :  { %1804 = vmatprep.subr.bf16.mxu0 %v3634_v28  ;;  %v3721_v28 = vld [vmem:[%s5125_s1 + $0x72c] ss:$16 sps:$4 sm:$0xff]  }
  0xbb   :  { %1887 = vmatpush1.bf16.msra.mxu1 %v3635_v30  ;;  %v3722_v30 = vld [vmem:[%s5125_s1 + $0x748] ss:$16 sps:$4 sm:$0xff]  }
  0xbc   :  { %1805 = vmatpush1.bf16.msra.mxu0 %v3632_v49  ;;  %1888 = vmatprep.subr.bf16.mxu1 %v3643_v33  ;;  %v3724_v49 = vld [vmem:[%s5125_s1 + $0x74c] ss:$16 sps:$4 sm:$0xff]   ;;  %v3725_v33 = vld [vmem:[%s5125_s1 + $0x768] ss:$16 sps:$4 sm:$0xff]  }
  0xbd   :  { %1806 = vmatprep.subr.bf16.mxu0 %v3640_v32  ;;  %v3727_v32 = vld [vmem:[%s5125_s1 + $0x76c] ss:$16 sps:$4 sm:$0xff]  }
  0xbf   :  { %1889 = vmatpush1.bf16.msra.mxu1 %v3641_v13  ;;  %v3728_v13 = vld [vmem:[%s5125_s1 + $0x788] ss:$16 sps:$4 sm:$0xff]  }
  0xc0   :  { %1807 = vmatpush1.bf16.msra.mxu0 %v3638_v34  ;;  %1899 = vmatprep.subr.bf16.mxu1 %v3646_v36  ;;  %v3730_v34 = vld [vmem:[%s5125_s1 + $0x78c] ss:$16 sps:$4 sm:$0xff]  }
  0xc1   :  { %v3733_v36 = vld [vmem:[%s5125_s1 + $0x7ac] ss:$16 sps:$4 sm:$0xff]  }
  0xc2   :  { %1891 = vmatmul.mubr.bf16.vlgmr.msra.gmra.mrb[4].mxu1 %v4150_v20  ;;  %v3655_v20 = vld [vmem:[%s5125_s1 + $0x46c] ss:$16 sps:$4 sm:$0xff]  }
  0xc3   :  { %1809 = vmatmul.mubr.bf16.vlgmr.msra.gmra.mrb[0].mxu0 %v4557_v37  ;;  %1900 = vmatpush1.bf16.msra.mxu1 %v3644_v38  ;;  %v3731_v38 = vld [vmem:[%s5125_s1 + $0x7a8] ss:$16 sps:$4 sm:$0xff]  }
  0xc4   :  { %1931 = vmatprep.mubr.bf16.mxu1 %v4164_v25  ;;  %1901 = vmatprep.subr.bf16.mxu1 %v3649_v19  ;;  %v3653_v25 = vld [vmem:[%s5125_s1 + $0x468] ss:$16 sps:$4 sm:$0xff]   ;;  %v3736_v19 = vld [vmem:[%s5125_s1 + $0x7cc] ss:$16 sps:$4 sm:$0xff]  }
  0xc7   :  { %1902 = vmatpush1.bf16.msra.mxu1 %v3647_v26  ;;  %v3734_v26 = vld [vmem:[%s5125_s1 + $0x7c8] ss:$16 sps:$4 sm:$0xff]  }
  0xc8   :  { %1903 = vmatprep.subr.bf16.mxu1 %v3652_v39  ;;  %v3739_v39 = vld [vmem:[%s5125_s1 + $0x7ec] ss:$16 sps:$4 sm:$0xff]  }
  0xcb   :  { %1904 = vmatpush1.bf16.msra.mxu1 %v3650_v40  ;;  %v3737_v40 = vld [vmem:[%s5125_s1 + $0x7e8] ss:$16 sps:$4 sm:$0xff]  }
  0xcc   :  { %1905 = vmatprep.subr.bf16.mxu1 %v3655_v20  ;;  %v4755_v20 = vsub.s32 0, %v4043_v43 }
  0xcf   :  { %1906 = vmatpush1.bf16.msra.mxu1 %v3653_v25  ;;  %v4760_v25 = vld [vmem:[%s5127_s2] sm:$0xf] }
  0xd0   :  { %1907 = vmatprep.subr.bf16.mxu1 %v3658_v41  ;;  %v4763_v41 = vsub.s32 1, %v4043_v43 }
  0xd3   :  { %1908 = vmatpush1.bf16.msra.mxu1 %v3656_v3  ;;  %v356_v3 = vrot.slane %v4760_v25, %v4755_v20 }
  0xd4   :  { %1909 = vmatprep.subr.bf16.mxu1 %v3661_v42  ;;  %v360_v42 = vrot.slane %v4760_v25, %v4763_v41 }
  0xd7   :  { %1910 = vmatpush1.bf16.msra.mxu1 %v3659_v44 }
  0xd8   :  { %1911 = vmatprep.subr.bf16.mxu1 %v3664_v45 }
  0xdb   :  { %1912 = vmatpush1.bf16.msra.mxu1 %v3662_v46 }
  0xdc   :  { %1913 = vmatprep.subr.bf16.mxu1 %v3667_v47 }
  0xdf   :  { %1914 = vmatpush1.bf16.msra.mxu1 %v3665_v48 }
  0xe0   :  { %1915 = vmatprep.subr.bf16.mxu1 %v3670_v50 }
  0xe3   :  { %1916 = vmatpush1.bf16.msra.mxu1 %v3668_v51  ;;  %v3742_v51 = vld [vmem:[%s5128_s5 + $0x4] ss:$8 sps:$4 sm:$0xff]  }
  0xe4   :  { %1917 = vmatprep.subr.bf16.mxu1 %v3673_v52  ;;  %2587 = vmatprep.subr.bf16.mxu0 %v3742_v51  ;;  %v3766_v51 = vld [vmem:[%s5128_s5 + $0x84] ss:$8 sps:$4 sm:$0xff]  }
  0xe7   :  { %1918 = vmatpush1.bf16.msra.mxu1 %v3671_v53 }
  0xe8   :  { %1919 = vmatprep.subr.bf16.mxu1 %v3676_v54 }
  0xeb   :  { %1920 = vmatpush1.bf16.msra.mxu1 %v3674_v55  ;;  %v3740_v55 = vld [vmem:[%s5128_s5] ss:$8 sps:$4 sm:$0xff]  }
  0xec   :  { %1921 = vmatprep.subr.bf16.mxu1 %v3679_v56  ;;  %2588 = vmatpush1.bf16.msra.mxu0 %v3740_v55  ;;  %v3769_v55 = vld [vmem:[%s5128_s5 + $0x94] ss:$8 sps:$4 sm:$0xff]  }
  0xef   :  { %1922 = vmatpush1.bf16.msra.mxu1 %v3677_v57 }
  0xf0   :  { %1923 = vmatprep.subr.bf16.mxu1 %v3682_v58 }
  0xf3   :  { %1924 = vmatpush1.bf16.msra.mxu1 %v3680_v59 }
  0xf4   :  { %1925 = vmatprep.subr.bf16.mxu1 %v3685_v60 }
  0xf7   :  { %1926 = vmatpush1.bf16.msra.mxu1 %v3683_v61 }
  0xf8   :  { %1927 = vmatprep.subr.bf16.mxu1 %v3688_v62 }
  0xfb   :  { %1928 = vmatpush1.bf16.msra.mxu1 %v3686_v63 }
  0xfc   :  { %1929 = vmatprep.subr.bf16.mxu1 %v3691_v0  ;;  %v3745_v0 = vld [vmem:[%s5128_s5 + $0x14] ss:$8 sps:$4 sm:$0xff]  }
  0xfd   :  { %2589 = vmatprep.subr.bf16.mxu0 %v3745_v0  ;;  %v3779_v0 = vld [vmem:[%s5128_s5 + $0xd0] ss:$8 sps:$4 sm:$0xff]  }
  0xff   :  { %1930 = vmatpush1.bf16.msra.mxu1 %v3689_v1 }
 0x100   :  { %1940 = vmatprep.subr.bf16.mxu1 %v3694_v2 }
 0x102   :  { %1932 = vmatmul.mubr.bf16.vlgmr.msra.gmra.mrb[4].mxu1 %v4358_v31  ;;  %v3703_v31 = vld [vmem:[%s5125_s1 + $0x66c] ss:$16 sps:$4 sm:$0xff]  }
 0x103   :  { %1941 = vmatpush1.bf16.msra.mxu1 %v3692_v4  ;;  %1972 = vmatprep.mubr.bf16.mxu1 %v4372_v35  ;;  %v3701_v35 = vld [vmem:[%s5125_s1 + $0x668] ss:$16 sps:$4 sm:$0xff]  }
 0x104   :  { %1942 = vmatprep.subr.bf16.mxu1 %v3697_v5  ;;  %v3743_v4 = vld [vmem:[%s5128_s5 + $0x10] ss:$8 sps:$4 sm:$0xff]  }
 0x105   :  { %2590 = vmatpush1.bf16.msra.mxu0 %v3743_v4  ;;  %v3787_v4 = vld [vmem:[%s5128_s5 + $0xf4] ss:$8 sps:$4 sm:$0xff]  }
 0x107   :  { %1943 = vmatpush1.bf16.msra.mxu1 %v3695_v6 }
 0x108   :  { %1944 = vmatprep.subr.bf16.mxu1 %v3700_v7 }
 0x10b   :  { %1945 = vmatpush1.bf16.msra.mxu1 %v3698_v9 }
 0x10c   :  { %1946 = vmatprep.subr.bf16.mxu1 %v3703_v31 }
 0x10f   :  { %1947 = vmatpush1.bf16.msra.mxu1 %v3701_v35 }
 0x110   :  { %1948 = vmatprep.subr.bf16.mxu1 %v3706_v10  ;;  %v3748_v10 = vld [vmem:[%s5128_s5 + $0x24] ss:$8 sps:$4 sm:$0xff]  }
 0x111   :  { %2591 = vmatprep.subr.bf16.mxu0 %v3748_v10 }
 0x113   :  { %1949 = vmatpush1.bf16.msra.mxu1 %v3704_v11 }
 0x114   :  { %1950 = vmatprep.subr.bf16.mxu1 %v3709_v12 }
 0x115   :  { %v1687_v16 = vpop.f32.mrb[0].mxu1 }
 0x116   :  { %v1689_v17 = vpop.f32.mrb[1].mxu1  ;;  %v1688_v44 = vadd.f32 %v1687_v16, %v356_v3 }
 0x117   :  { %v1691_v18 = vpop.f32.mrb[2].mxu1  ;;  %1951 = vmatpush1.bf16.msra.mxu1 %v3707_v14  ;;  %v1690_v45 = vadd.f32 %v1689_v17, %v360_v42  ;;  %v3746_v14 = vld [vmem:[%s5128_s5 + $0x20] ss:$8 sps:$4 sm:$0xff]   ;;  %v3755_v42 = vld [vmem:[%s5128_s5 + $0x50] ss:$8 sps:$4 sm:$0xff]  }
 0x118   :  { %v1692_v22 = vpop.f32.mrb[3].mxu1  ;;  %1952 = vmatprep.subr.bf16.mxu1 %v3712_v15  ;;  %2592 = vmatpush1.bf16.msra.mxu0 %v3746_v14 }
 0x11b   :  { %1953 = vmatpush1.bf16.msra.mxu1 %v3710_v21 }
 0x11c   :  { %1954 = vmatprep.subr.bf16.mxu1 %v3715_v23  ;;  %v3751_v23 = vld [vmem:[%s5128_s5 + $0x34] ss:$8 sps:$4 sm:$0xff]  }
 0x11d   :  { %2593 = vmatprep.subr.bf16.mxu0 %v3751_v23 }
 0x11f   :  { %1955 = vmatpush1.bf16.msra.mxu1 %v3713_v24 }
 0x120   :  { %1956 = vmatprep.subr.bf16.mxu1 %v3718_v8 }
 0x123   :  { %1957 = vmatpush1.bf16.msra.mxu1 %v3716_v27  ;;  %v3749_v27 = vld [vmem:[%s5128_s5 + $0x30] ss:$8 sps:$4 sm:$0xff]  }
 0x124   :  { %1958 = vmatprep.subr.bf16.mxu1 %v3721_v28  ;;  %2594 = vmatpush1.bf16.msra.mxu0 %v3749_v27 }
 0x127   :  { %1959 = vmatpush1.bf16.msra.mxu1 %v3719_v29 }
 0x128   :  { %1960 = vmatprep.subr.bf16.mxu1 %v3724_v49 }
 0x12b   :  { %1961 = vmatpush1.bf16.msra.mxu1 %v3722_v30 }
 0x12c   :  { %1962 = vmatprep.subr.bf16.mxu1 %v3727_v32 }
 0x12f   :  { %1963 = vmatpush1.bf16.msra.mxu1 %v3725_v33 }
 0x130   :  { %1964 = vmatprep.subr.bf16.mxu1 %v3730_v34  ;;  %v3754_v34 = vld [vmem:[%s5128_s5 + $0x44] ss:$8 sps:$4 sm:$0xff]  }
 0x131   :  { %2595 = vmatprep.subr.bf16.mxu0 %v3754_v34 }
 0x133   :  { %1965 = vmatpush1.bf16.msra.mxu1 %v3728_v13 }
 0x134   :  { %1966 = vmatprep.subr.bf16.mxu1 %v3733_v36 }
 0x137   :  { %1967 = vmatpush1.bf16.msra.mxu1 %v3731_v38  ;;  %v3752_v38 = vld [vmem:[%s5128_s5 + $0x40] ss:$8 sps:$4 sm:$0xff]  }
 0x138   :  { %1968 = vmatprep.subr.bf16.mxu1 %v3736_v19  ;;  %2596 = vmatpush1.bf16.msra.mxu0 %v3752_v38 }
 0x13b   :  { %1969 = vmatpush1.bf16.msra.mxu1 %v3734_v26 }
 0x13c   :  { %1970 = vmatprep.subr.bf16.mxu1 %v3739_v39 }
 0x13f   :  { %1971 = vmatpush1.bf16.msra.mxu1 %v3737_v40  ;;  %v3757_v40 = vld [vmem:[%s5128_s5 + $0x54] ss:$8 sps:$4 sm:$0xff]  }
 0x140   :  { %2597 = vmatprep.subr.bf16.mxu0 %v3757_v40 }
 0x141   :  { %2598 = vmatpush1.bf16.msra.mxu0 %v3755_v42 }
 0x142   :  { %1973 = vmatmul.mubr.bf16.vlgmr.msra.gmra.mrb[4].mxu1 %v4557_v37 }
 0x196   :  { %v1810_v37 = vpop.f32.mrb[0].mxu0 }
 0x197   :  { %v4769_v46 = vadd.f32 %v1810_v37, %v1688_v44  ;;  %v1812_v47 = vpop.f32.mrb[1].mxu0  ;;  %v3760_v44 = vld [vmem:[%s5128_s5 + $0x64] ss:$8 sps:$4 sm:$0xff]   ;;  %v3763_v37 = vld [vmem:[%s5128_s5 + $0x74] ss:$8 sps:$4 sm:$0xff]  }
 0x198   :  { %v4771_v48 = vadd.f32 %v1812_v47, %v1690_v45  ;;  %v1814_v50 = vpop.f32.mrb[2].mxu0  ;;  %v3758_v45 = vld [vmem:[%s5128_s5 + $0x60] ss:$8 sps:$4 sm:$0xff]   ;;  %2599 = vmatprep.subr.bf16.mxu0 %v3760_v44  ;;  %v3761_v47 = vld [vmem:[%s5128_s5 + $0x70] ss:$8 sps:$4 sm:$0xff]  }
 0x199   :  { %v1982_v52 = vsel %vm1981_vm0, %v4769_v46, 0.0  ;;  %v2015_v53 = vmul.f32 %v4769_v46, %v4769_v46  ;;  %v1815_v54 = vpop.f32.mrb[3].mxu0  ;;  %2600 = vmatpush1.bf16.msra.mxu0 %v3758_v45 }
 0x19a   :  { %v1983_v56 = vrot.slane %v1982_v52, 4  ;;  %v1989_v57 = vsel %vm1981_vm0, %v4771_v48, 0.0  ;;  %v2016_v58 = vmul.f32 %v4771_v48, %v4771_v48  ;;  %2601 = vmatprep.subr.bf16.mxu0 %v3763_v37 }
 0x19b   :  { %v2019_v59 = vsel %vm1981_vm0, %v2015_v53, 0.0  ;;  %v1990_v60 = vrot.slane %v1989_v57, 4  ;;  %v3764_v53 = vld [vmem:[%s5128_s5 + $0x80] ss:$8 sps:$4 sm:$0xff]  }
 0x19c   :  { %v1984_v61 = vadd.f32 %v1983_v56, %v1982_v52  ;;  %v2020_v62 = vrot.slane %v2019_v59, 4  ;;  %v2026_v63 = vsel %vm1981_vm0, %v2016_v58, 0.0  ;;  %v3767_v56 = vld [vmem:[%s5128_s5 + $0x90] ss:$8 sps:$4 sm:$0xff]   ;;  %v3770_v58 = vld [vmem:[%s5128_s5 + $0xa0] ss:$8 sps:$4 sm:$0xff]  }
 0x19d   :  { %v1991_v1 = vadd.f32 %v1990_v60, %v1989_v57  ;;  %v2027_v2 = vrot.slane %v2026_v63, 4  ;;  %2602 = vmatpush1.bf16.msra.mxu0 %v3761_v47  ;;  %v3772_v57 = vld [vmem:[%s5128_s5 + $0xa4] ss:$8 sps:$4 sm:$0xff]   ;;  %v3773_v60 = vld [vmem:[%s5128_s5 + $0xb0] ss:$8 sps:$4 sm:$0xff]  }
 0x19e   :  { %v1985_v5 = vrot.slane %v1984_v61, 2  ;;  %v2021_v6 = vadd.f32 %v2020_v62, %v2019_v59  ;;  %2603 = vmatprep.subr.bf16.mxu0 %v3766_v51  ;;  %v3775_v59 = vld [vmem:[%s5128_s5 + $0xb4] ss:$8 sps:$4 sm:$0xff]   ;;  %v3776_v62 = vld [vmem:[%s5128_s5 + $0xc0] ss:$8 sps:$4 sm:$0xff]  }
 0x19f   :  { %v1992_v7 = vrot.slane %v1991_v1, 2  ;;  %v2028_v9 = vadd.f32 %v2027_v2, %v2026_v63  ;;  %v3781_v63 = vld [vmem:[%s5128_s5 + $0xd4] ss:$8 sps:$4 sm:$0xff]   ;;  %v3782_v2 = vld [vmem:[%s5128_s5 + $0xe0] ss:$8 sps:$4 sm:$0xff]  }
 0x1a0   :  { %v1986_v31 = vadd.f32 %v1985_v5, %v1984_v61  ;;  %v2022_v35 = vrot.slane %v2021_v6, 2  ;;  %v3778_v61 = vld [vmem:[%s5128_s5 + $0xc4] ss:$8 sps:$4 sm:$0xff]   ;;  %v3785_v5 = vld [vmem:[%s5128_s5 + $0xf0] ss:$8 sps:$4 sm:$0xff]  }
 0x1a1   :  { %v1993_v11 = vadd.f32 %v1992_v7, %v1991_v1  ;;  %v2029_v12 = vrot.slane %v2028_v9, 2  ;;  %2604 = vmatpush1.bf16.msra.mxu0 %v3764_v53  ;;  %v3784_v1 = vld [vmem:[%s5128_s5 + $0xe4] ss:$8 sps:$4 sm:$0xff]   ;;  %v4897_v7 = vsub.s32 2, %v4043_v43 }
 0x1a2   :  { %v1987_v15 = vrot.slane %v1986_v31, 1  ;;  %v2023_v16 = vadd.f32 %v2022_v35, %v2021_v6  ;;  %2605 = vmatprep.subr.bf16.mxu0 %v3769_v55  ;;  %v3790_v6 = vld [vmem:[%s5128_s5 + $0x104] ss:$8 sps:$4 sm:$0xff]  }
 0x1a3   :  { %v1994_v17 = vrot.slane %v1993_v11, 1  ;;  %v2030_v18 = vadd.f32 %v2029_v12, %v2028_v9  ;;  %v4900_v9 = vsub.s32 3, %v4043_v43 }
 0x1a4   :  { %v1988_v21 = vadd.f32 %v1987_v15, %v1986_v31  ;;  %v2024_v22 = vrot.slane %v2023_v16, 1  ;;  %v364_v31 = vrot.slane %v4760_v25, %v4897_v7 }
 0x1a5   :  { %v1995_v24 = vadd.f32 %v1994_v17, %v1993_v11  ;;  %v2031_v8 = vrot.slane %v2030_v18, 1  ;;  %2606 = vmatpush1.bf16.msra.mxu0 %v3767_v56  ;;  %v368_v35 = vrot.slane %v4760_v25, %v4900_v9 }
 0x1a6   :  { %v4807_v28 = vmul.f32 0.5, %v1988_v21  ;;  %v2025_v29 = vadd.f32 %v2024_v22, %v2023_v16  ;;  %2607 = vmatprep.subr.bf16.mxu0 %v3772_v57 }
 0x1a7   :  { %v4809_v49 = vmul.f32 0.5, %v1995_v24  ;;  %v2032_v30 = vadd.f32 %v2031_v8, %v2030_v18 }
 0x1a8   :  { %v2047_v32 = vmul.f32 0.5, %v2025_v29  ;;  %v2051_v33 = vmul.f32 %v4807_v28, %v4807_v28 }
 0x1a9   :  { %v2048_v13 = vmul.f32 0.5, %v2032_v30  ;;  %v2052_v36 = vmul.f32 %v4809_v49, %v4809_v49  ;;  %2608 = vmatpush1.bf16.msra.mxu0 %v3770_v58 }
 0x1aa   :  { %v2055_v19 = vsub.f32 %v2047_v32, %v2051_v33  ;;  %2609 = vmatprep.subr.bf16.mxu0 %v3775_v59 }
 0x1ab   :  { %v2056_v26 = vsub.f32 %v2048_v13, %v2052_v36 }
 0x1ac   :  { %v2059_v39 = vadd.f32 1e-05, %v2055_v19 }
 0x1ad   :  { %v2060_v3 = vadd.f32 1e-05, %v2056_v26  ;;  %2610 = vmatpush1.bf16.msra.mxu0 %v3773_v60 }
 0x1ae   :  { %3852 = vrsqrt.f32 %v2059_v39  ;;  %2611 = vmatprep.subr.bf16.mxu0 %v3778_v61 }
 0x1af   :  { %3854 = vrsqrt.f32 %v2060_v3 }
 0x1b1   :  { %2612 = vmatpush1.bf16.msra.mxu0 %v3776_v62 }
 0x1b2   :  { %2613 = vmatprep.subr.bf16.mxu0 %v3781_v63 }
 0x1b5   :  { %2614 = vmatpush1.bf16.msra.mxu0 %v3779_v0 }
 0x1b6   :  { %2615 = vmatprep.subr.bf16.mxu0 %v3784_v1 }
 0x1b8   :  { %v4839_v50 = vpop.eup %3852 }
 0x1b9   :  { %v4844_v52 = vpop.eup %3854  ;;  %2616 = vmatpush1.bf16.msra.mxu0 %v3782_v2  ;;  %v3865_v2 = vmov 1966171168  }
 0x1ba   :  { %v2071_v54 = vcombine.low %v4839_v50, %v4844_v52  ;;  %2617 = vmatprep.subr.bf16.mxu0 %v3787_v4  ;;  %v2074_v4 = vunpack.c.l.s4 %v3865_v2  ;;  %v3814_v2 = vld [vmem:[%s5128_s5 + $0x184] ss:$8 sps:$4 sm:$0xff]  }
 0x1bd   :  { %2618 = vmatpush1.bf16.msra.mxu0 %v3785_v5  ;;  %v2075_v5 = vunpack.c.0.s8 %v2074_v4  ;;  %v3812_v4 = vld [vmem:[%s5128_s5 + $0x180] ss:$8 sps:$4 sm:$0xff]  }
 0x1be   :  { %2628 = vmatprep.subr.bf16.mxu0 %v3790_v6 }
 0x215   :  { %v1974_v10 = vpop.f32.mrb[4].mxu1 }
 0x216   :  { %v4906_v11 = vadd.f32 %v1974_v10, %v364_v31  ;;  %v1976_v12 = vpop.f32.mrb[5].mxu1  ;;  %v4921_v31 = vsub.s32 %v2075_v5, %v4043_v43  ;;  %v3817_v5 = vld [vmem:[%s5128_s5 + $0x194] ss:$8 sps:$4 sm:$0xff]  }
 0x217   :  { %v4908_v14 = vadd.f32 %v1976_v12, %v368_v35  ;;  %v1978_v15 = vpop.f32.mrb[6].mxu1 }
 0x218   :  { %v1996_v16 = vsel %vm1981_vm0, %v4906_v11, 0.0  ;;  %v2017_v17 = vmul.f32 %v4906_v11, %v4906_v11  ;;  %v1979_v18 = vpop.f32.mrb[7].mxu1  ;;  %v2079_v12 = vrot.slane %v2071_v54, %v4921_v31 }
 0x219   :  { %v1997_v21 = vrot.slane %v1996_v16, 4  ;;  %v2003_v22 = vsel %vm1981_vm0, %v4908_v14, 0.0  ;;  %v2018_v25 = vmul.f32 %v4908_v14, %v4908_v14 }
 0x21a   :  { %v2033_v23 = vsel %vm1981_vm0, %v2017_v17, 0.0  ;;  %v2004_v24 = vrot.slane %v2003_v22, 4  ;;  %v298_v17 = vld [vmem:[%s5129_s3] sm:$0xf] }
 0x21b   :  { %v1998_v8 = vadd.f32 %v1997_v21, %v1996_v16  ;;  %v2034_v27 = vrot.slane %v2033_v23, 4  ;;  %v2040_v29 = vsel %vm1981_vm0, %v2018_v25, 0.0 }
 0x21c   :  { %v2005_v30 = vadd.f32 %v2004_v24, %v2003_v22  ;;  %v2041_v32 = vrot.slane %v2040_v29, 4 }
 0x21d   :  { %v1999_v33 = vrot.slane %v1998_v8, 2  ;;  %v2035_v34 = vadd.f32 %v2034_v27, %v2033_v23 }
 0x21e   :  { %v2006_v13 = vrot.slane %v2005_v30, 2  ;;  %v2042_v36 = vadd.f32 %v2041_v32, %v2040_v29 }
 0x21f   :  { %v2000_v38 = vadd.f32 %v1999_v33, %v1998_v8  ;;  %v2036_v19 = vrot.slane %v2035_v34, 2 }
 0x220   :  { %v2007_v26 = vadd.f32 %v2006_v13, %v2005_v30  ;;  %v2043_v39 = vrot.slane %v2042_v36, 2 }
 0x221   :  { %v2001_v40 = vrot.slane %v2000_v38, 1  ;;  %v2037_v3 = vadd.f32 %v2036_v19, %v2035_v34 }
 0x222   :  { %v2008_v42 = vrot.slane %v2007_v26, 1  ;;  %v2044_v44 = vadd.f32 %v2043_v39, %v2042_v36 }
 0x223   :  { %v2002_v45 = vadd.f32 %v2001_v40, %v2000_v38  ;;  %v2038_v37 = vrot.slane %v2037_v3, 1 }
 0x224   :  { %v2009_v47 = vadd.f32 %v2008_v42, %v2007_v26  ;;  %v2045_v51 = vrot.slane %v2044_v44, 1 }
 0x225   :  { %v2013_v53 = vmul.f32 0.5, %v2002_v45  ;;  %v2039_v55 = vadd.f32 %v2038_v37, %v2037_v3  ;;  %v3788_v37 = vld [vmem:[%s5128_s5 + $0x100] ss:$8 sps:$4 sm:$0xff]  }
 0x226   :  { %v2014_v56 = vmul.f32 0.5, %v2009_v47  ;;  %v2046_v57 = vadd.f32 %v2045_v51, %v2044_v44  ;;  %v3791_v51 = vld [vmem:[%s5128_s5 + $0x110] ss:$8 sps:$4 sm:$0xff]  }
 0x227   :  { %v2049_v58 = vmul.f32 0.5, %v2039_v55  ;;  %v2053_v59 = vmul.f32 %v2013_v53, %v2013_v53  ;;  %v3794_v55 = vld [vmem:[%s5128_s5 + $0x120] ss:$8 sps:$4 sm:$0xff]  }
 0x228   :  { %v2050_v60 = vmul.f32 0.5, %v2046_v57  ;;  %v2054_v61 = vmul.f32 %v2014_v56, %v2014_v56  ;;  %v3797_v57 = vld [vmem:[%s5128_s5 + $0x130] ss:$8 sps:$4 sm:$0xff]  }
 0x229   :  { %v2057_v62 = vsub.f32 %v2049_v58, %v2053_v59  ;;  %v3802_v58 = vld [vmem:[%s5128_s5 + $0x144] ss:$8 sps:$4 sm:$0xff]   ;;  %v3800_v59 = vld [vmem:[%s5128_s5 + $0x140] ss:$8 sps:$4 sm:$0xff]  }
 0x22a   :  { %v2058_v63 = vsub.f32 %v2050_v60, %v2054_v61  ;;  %v3805_v60 = vld [vmem:[%s5128_s5 + $0x154] ss:$8 sps:$4 sm:$0xff]   ;;  %v3803_v61 = vld [vmem:[%s5128_s5 + $0x150] ss:$8 sps:$4 sm:$0xff]  }
 0x22b   :  { %v2061_v0 = vadd.f32 1e-05, %v2057_v62  ;;  %v3808_v62 = vld [vmem:[%s5128_s5 + $0x164] ss:$8 sps:$4 sm:$0xff]  }
 0x22c   :  { %v2062_v1 = vadd.f32 1e-05, %v2058_v63  ;;  %v3806_v63 = vld [vmem:[%s5128_s5 + $0x160] ss:$8 sps:$4 sm:$0xff]  }
 0x22d   :  { %3856 = vrsqrt.f32 %v2061_v0  ;;  %v3811_v0 = vld [vmem:[%s5128_s5 + $0x174] ss:$8 sps:$4 sm:$0xff]  }
 0x22e   :  { %3858 = vrsqrt.f32 %v2062_v1  ;;  %v3809_v1 = vld [vmem:[%s5128_s5 + $0x170] ss:$8 sps:$4 sm:$0xff]  }
 0x237   :  { %v3857_v6 = vpop.eup %3856 }
 0x238   :  { %v3859_v35 = vpop.eup %3858 }
 0x239   :  { %v2072_v10 = vcombine.low %v3857_v6, %v3859_v35  ;;  %v3815_v6 = vld [vmem:[%s5128_s5 + $0x190] ss:$8 sps:$4 sm:$0xff]   ;;  %v3820_v35 = vld [vmem:[%s5128_s5 + $0x1a4] ss:$8 sps:$4 sm:$0xff]  }
 0x23b   :  { %v2086_v15 = vrot.slane %v2072_v10, %v4921_v31  ;;  %v3818_v10 = vld [vmem:[%s5128_s5 + $0x1a0] ss:$8 sps:$4 sm:$0xff]  }
 0x23d   :  { %v2087_v16 = vcombine.low %v2079_v12, %v2086_v15  ;;  %v3823_v12 = vld [vmem:[%s5128_s5 + $0x1b4] ss:$8 sps:$4 sm:$0xff]   ;;  %v3821_v15 = vld [vmem:[%s5128_s5 + $0x1b0] ss:$8 sps:$4 sm:$0xff]  }
 0x23f   :  { %v2094_v18 = vrot.slane %v2087_v16, %v4921_v31  ;;  %v3826_v16 = vld [vmem:[%s5128_s5 + $0x1c4] ss:$8 sps:$4 sm:$0xff]  }
 0x241   :  { %v2096_v21 = vmul.f32 %v2094_v18, %v298_v17  ;;  %v3824_v17 = vld [vmem:[%s5128_s5 + $0x1c0] ss:$8 sps:$4 sm:$0xff]   ;;  %v3829_v18 = vld [vmem:[%s5128_s5 + $0x1d4] ss:$8 sps:$4 sm:$0xff]  }
 0x243   :  { %v2109_v43 = vrot.slane %v2096_v21, %v4897_v7  ;;  %v2113_v22 = vrot.slane %v2096_v21, %v4900_v9  ;;  %v2101_v25 = vrot.slane %v2096_v21, %v4755_v20  ;;  %v2105_v23 = vrot.slane %v2096_v21, %v4763_v41  ;;  %v3827_v21 = vld [vmem:[%s5128_s5 + $0x1d0] ss:$8 sps:$4 sm:$0xff]  }
 0x245   :  { %v2121_v50 = vmul.f32 %v4908_v14, %v2113_v22  ;;  %v2124_v52 = vmul.f32 %v2109_v43, %v2013_v53  ;;  %v2125_v54 = vmul.f32 %v2113_v22, %v2014_v56  ;;  %v2119_v24 = vmul.f32 %v4771_v48, %v2105_v23  ;;  %v299_v14 = vld [vmem:[%s5130_s4] sm:$0xf]  ;;  %v3796_v53 = vld [vmem:[%s5128_s5 + $0x124] ss:$8 sps:$4 sm:$0xff]   ;;  %v3799_v56 = vld [vmem:[%s5128_s5 + $0x134] ss:$8 sps:$4 sm:$0xff]  }
 0x246   :  { %v2122_v8 = vmul.f32 %v2101_v25, %v4807_v28  ;;  %v2123_v27 = vmul.f32 %v2105_v23, %v4809_v49  ;;  %v2118_v29 = vmul.f32 %v4769_v46, %v2101_v25  ;;  %v2120_v30 = vmul.f32 %v4906_v11, %v2109_v43  ;;  %v3832_v43 = vld [vmem:[%s5128_s5 + $0x1e4] ss:$8 sps:$4 sm:$0xff]   ;;  %v3830_v22 = vld [vmem:[%s5128_s5 + $0x1e0] ss:$8 sps:$4 sm:$0xff]   ;;  %v3835_v25 = vld [vmem:[%s5128_s5 + $0x1f4] ss:$8 sps:$4 sm:$0xff]  }
 0x247   :  { %v2131_v32 = vcombine.low %v2124_v52, %v2125_v54  ;;  %v3833_v23 = vld [vmem:[%s5128_s5 + $0x1f0] ss:$8 sps:$4 sm:$0xff]   ;;  %v3836_v54 = vld [vmem:[%s5131_s9 + $0x40] sm:$0xff]  }
 0x248   :  { %v2130_v33 = vcombine.low %v2122_v8, %v2123_v27  ;;  %3298 = vmatprep.subr.bf16.mxu1 %v3836_v54  ;;  %v3838_v8 = vld [vmem:[%s5131_s9 + $0x48] sm:$0xff]  }
 0x249   :  { %v2145_v34 = vrot.slane %v2131_v32, %v4921_v31  ;;  %v3839_v27 = vld [vmem:[%s5131_s9 + $0x8] sm:$0xff]   ;;  %v3842_v32 = vld [vmem:[%s5131_s9 + $0x58] sm:$0xff]  }
 0x24a   :  { %v2138_v13 = vrot.slane %v2130_v33, %v4921_v31  ;;  %v3843_v33 = vld [vmem:[%s5131_s9 + $0x18] sm:$0xff]  }
 0x24c   :  { %v2146_v36 = vcombine.low %v2138_v13, %v2145_v34  ;;  %v3844_v34 = vld [vmem:[%s5131_s9 + $0x60] sm:$0xff]  }
 0x24d   :  { %v3845_v13 = vld [vmem:[%s5131_s9 + $0x20] sm:$0xff]  }
 0x24e   :  { %v2153_v48 = vrot.slane %v2146_v36, %v4921_v31  ;;  %v3846_v36 = vld [vmem:[%s5131_s9 + $0x68] sm:$0xff]  }
 0x250   :  { %v2155_v28 = vsub.f32 %v299_v14, %v2153_v48  ;;  %v3847_v14 = vld [vmem:[%s5131_s9 + $0x28] sm:$0xff]   ;;  %v3848_v48 = vld [vmem:[%s5131_s9 + $0x70] sm:$0xff]  }
 0x252   :  { %v2164_v49 = vrot.slane %v2155_v28, %v4763_v41  ;;  %v2160_v46 = vrot.slane %v2155_v28, %v4755_v20  ;;  %v2172_v11 = vrot.slane %v2155_v28, %v4900_v9  ;;  %v2168_v38 = vrot.slane %v2155_v28, %v4897_v7  ;;  %v3793_v9 = vld [vmem:[%s5128_s5 + $0x114] ss:$8 sps:$4 sm:$0xff]  }
 0x253   :  { %v3849_v28 = vld [vmem:[%s5131_s9 + $0x30] sm:$0xff]  }
 0x254   :  { %v2178_v19 = vadd.f32 %v2164_v49, %v2119_v24  ;;  %v2177_v26 = vadd.f32 %v2160_v46, %v2118_v29  ;;  %v2180_v39 = vadd.f32 %v2172_v11, %v2121_v50  ;;  %v4952_v40 = vadd.f32 %v2168_v38, %v2120_v30  ;;  %v3837_v24 = vld [vmem:[%s5131_s9] sm:$0xff]   ;;  %v3840_v29 = vld [vmem:[%s5131_s9 + $0x50] sm:$0xff]   ;;  %v3850_v49 = vld [vmem:[%s5131_s9 + $0x78] sm:$0xff]  }
 0x255   :  { %3299 = vmatpush3.bf16.msra.mxu1 %v3837_v24  ;;  %v3841_v30 = vld [vmem:[%s5131_s9 + $0x10] sm:$0xff]   ;;  %v3851_v46 = vld [vmem:[%s5131_s9 + $0x38] sm:$0xff]   ;;  %v2249_v11 = vld [vmem:[%s5132_s6] sm:$0x3] }
 0x256   :  { %v2182_v3 = vmax.f32 %v2178_v19, 0.0  ;;  %v2181_v42 = vmax.f32 %v2177_v26, 0.0  ;;  %v2184_v44 = vmax.f32 %v2180_v39, 0.0  ;;  %v2183_v50 = vmax.f32 %v4952_v40, 0.0  ;;  %3300 = vmatprep.subr.bf16.mxu1 %v3838_v8 }
 0x257   :  { %v2260_v38 = vrot.slane %v2249_v11, %v4755_v20  ;;  %v2264_v19 = vrot.slane %v2249_v11, %v4763_v41 }
 0x258   :  { %v2253_v45 = vpack.c.bf16 %v2182_v3, %v2182_v3  ;;  %v2252_v47 = vpack.c.bf16 %v2181_v42, %v2181_v42  ;;  %v2255_v7 = vpack.c.bf16 %v2184_v44, %v2184_v44  ;;  %v2254_v52 = vpack.c.bf16 %v2183_v50, %v2183_v50 }
 0x259   :  { %3301 = vmatpush3.bf16.msra.mxu1 %v3839_v27 }
 0x25a   :  { %2619 = vmatprep.mubr.bf16.mxu0 %v2253_v45  ;;  %3302 = vmatprep.subr.bf16.mxu1 %v3840_v29 }
 0x25b   :  { %2620 = vmatmul.mubr.bf16.vlgmr.msra.gmra.mrb[4].mxu0 %v2252_v47 }
 0x25c   :  { %2629 = vmatpush1.bf16.msra.mxu0 %v3788_v37  ;;  %2660 = vmatprep.mubr.bf16.mxu0 %v2255_v7 }
 0x25d   :  { %2630 = vmatprep.subr.bf16.mxu0 %v3793_v9  ;;  %3303 = vmatpush3.bf16.msra.mxu1 %v3841_v30 }
 0x25e   :  { %3304 = vmatprep.subr.bf16.mxu1 %v3842_v32 }
 0x260   :  { %2631 = vmatpush1.bf16.msra.mxu0 %v3791_v51 }
 0x261   :  { %2632 = vmatprep.subr.bf16.mxu0 %v3796_v53  ;;  %3305 = vmatpush3.bf16.msra.mxu1 %v3843_v33 }
 0x262   :  { %3306 = vmatprep.subr.bf16.mxu1 %v3844_v34  ;;  %v2250_v34 = vld [vmem:[%s5133_s7] sm:$0x3] }
 0x264   :  { %2633 = vmatpush1.bf16.msra.mxu0 %v3794_v55 }
 0x265   :  { %2634 = vmatprep.subr.bf16.mxu0 %v3799_v56  ;;  %3307 = vmatpush3.bf16.msra.mxu1 %v3845_v13 }
 0x266   :  { %3308 = vmatprep.subr.bf16.mxu1 %v3846_v36 }
 0x268   :  { %2635 = vmatpush1.bf16.msra.mxu0 %v3797_v57 }
 0x269   :  { %2636 = vmatprep.subr.bf16.mxu0 %v3802_v58  ;;  %3309 = vmatpush3.bf16.msra.mxu1 %v3847_v14 }
 0x26a   :  { %3310 = vmatprep.subr.bf16.mxu1 %v3848_v48 }
 0x26c   :  { %2637 = vmatpush1.bf16.msra.mxu0 %v3800_v59 }
 0x26d   :  { %2638 = vmatprep.subr.bf16.mxu0 %v3805_v60  ;;  %3311 = vmatpush3.bf16.msra.mxu1 %v3849_v28 }
 0x26e   :  { %3312 = vmatprep.subr.bf16.mxu1 %v3850_v49 }
 0x270   :  { %2639 = vmatpush1.bf16.msra.mxu0 %v3803_v61 }
 0x271   :  { %2640 = vmatprep.subr.bf16.mxu0 %v3808_v62  ;;  %3313 = vmatpush3.bf16.msra.mxu1 %v3851_v46 }
 0x274   :  { %2641 = vmatpush1.bf16.msra.mxu0 %v3806_v63 }
 0x275   :  { %2642 = vmatprep.subr.bf16.mxu0 %v3811_v0 }
 0x278   :  { %2643 = vmatpush1.bf16.msra.mxu0 %v3809_v1 }
 0x279   :  { %2644 = vmatprep.subr.bf16.mxu0 %v3814_v2 }
 0x27c   :  { %2645 = vmatpush1.bf16.msra.mxu0 %v3812_v4 }
 0x27d   :  { %2646 = vmatprep.subr.bf16.mxu0 %v3817_v5 }
 0x280   :  { %2647 = vmatpush1.bf16.msra.mxu0 %v3815_v6 }
 0x281   :  { %2648 = vmatprep.subr.bf16.mxu0 %v3820_v35 }
 0x284   :  { %2649 = vmatpush1.bf16.msra.mxu0 %v3818_v10 }
 0x285   :  { %2650 = vmatprep.subr.bf16.mxu0 %v3823_v12 }
 0x288   :  { %2651 = vmatpush1.bf16.msra.mxu0 %v3821_v15 }
 0x289   :  { %2652 = vmatprep.subr.bf16.mxu0 %v3826_v16 }
 0x28c   :  { %2653 = vmatpush1.bf16.msra.mxu0 %v3824_v17 }
 0x28d   :  { %2654 = vmatprep.subr.bf16.mxu0 %v3829_v18 }
 0x290   :  { %2655 = vmatpush1.bf16.msra.mxu0 %v3827_v21 }
 0x291   :  { %2656 = vmatprep.subr.bf16.mxu0 %v3832_v43 }
 0x294   :  { %2657 = vmatpush1.bf16.msra.mxu0 %v3830_v22 }
 0x295   :  { %2658 = vmatprep.subr.bf16.mxu0 %v3835_v25 }
 0x298   :  { %2659 = vmatpush1.bf16.msra.mxu0 %v3833_v23 }
 0x29b   :  { %2661 = vmatmul.mubr.bf16.vlgmr.msra.gmra.mrb[4].mxu0 %v2254_v52 }
 0x36e   :  { %v2662_v26 = vpop.f32.mrb[4].mxu0 }
 0x36f   :  { %v3326_v39 = vadd.f32 %v2662_v26, %v2260_v38  ;;  %v2664_v40 = vpop.f32.mrb[5].mxu0  ;;  %v2251_v26 = vld [vmem:[%s5134_s8] sm:$0x3] }
 0x370   :  { %v3327_v3 = vadd.f32 %v2664_v40, %v2264_v19  ;;  %v2666_v42 = vpop.f32.mrb[6].mxu0 }
 0x371   :  { %v2669_v44 = vsel %vm1981_vm0, %v3326_v39, 0.0  ;;  %v2685_v45 = vmul.f32 %v3326_v39, %v3326_v39  ;;  %v2667_v37 = vpop.f32.mrb[7].mxu0 }
 0x372   :  { %v2670_v47 = vrot.slane %v2669_v44, 4  ;;  %v2676_v9 = vsel %vm1981_vm0, %v3327_v3, 0.0  ;;  %v2686_v7 = vmul.f32 %v3327_v3, %v3327_v3 }
 0x373   :  { %v2687_v51 = vsel %vm1981_vm0, %v2685_v45, 0.0  ;;  %v2677_v53 = vrot.slane %v2676_v9, 4 }
 0x374   :  { %v2671_v55 = vadd.f32 %v2670_v47, %v2669_v44  ;;  %v2688_v56 = vrot.slane %v2687_v51, 4  ;;  %v2694_v57 = vsel %vm1981_vm0, %v2686_v7, 0.0 }
 0x375   :  { %v2678_v58 = vadd.f32 %v2677_v53, %v2676_v9  ;;  %v2695_v59 = vrot.slane %v2694_v57, 4  ;;  %v3281_v53 = vld [vmem:[%s5135_s10] ss:$0 sm:$0xff] }
 0x376   :  { %v2672_v60 = vrot.slane %v2671_v55, 2  ;;  %v2689_v61 = vadd.f32 %v2688_v56, %v2687_v51 }
 0x377   :  { %v2679_v62 = vrot.slane %v2678_v58, 2  ;;  %v2696_v63 = vadd.f32 %v2695_v59, %v2694_v57 }
 0x378   :  { %v2673_v0 = vadd.f32 %v2672_v60, %v2671_v55  ;;  %v2690_v1 = vrot.slane %v2689_v61, 2 }
 0x379   :  { %v2680_v2 = vadd.f32 %v2679_v62, %v2678_v58  ;;  %v2697_v4 = vrot.slane %v2696_v63, 2 }
 0x37a   :  { %v2674_v5 = vrot.slane %v2673_v0, 1  ;;  %v2691_v6 = vadd.f32 %v2690_v1, %v2689_v61 }
 0x37b   :  { %v2681_v35 = vrot.slane %v2680_v2, 1  ;;  %v2698_v10 = vadd.f32 %v2697_v4, %v2696_v63 }
 0x37c   :  { %v2675_v12 = vadd.f32 %v2674_v5, %v2673_v0  ;;  %v2692_v15 = vrot.slane %v2691_v6, 1 }
 0x37d   :  { %v2682_v16 = vadd.f32 %v2681_v35, %v2680_v2  ;;  %v2699_v17 = vrot.slane %v2698_v10, 1 }
 0x37e   :  { %v2683_v18 = vmul.f32 0.5, %v2675_v12  ;;  %v2693_v21 = vadd.f32 %v2692_v15, %v2691_v6 }
 0x37f   :  { %v2684_v43 = vmul.f32 0.5, %v2682_v16  ;;  %v2700_v22 = vadd.f32 %v2699_v17, %v2698_v10 }
 0x380   :  { %v2701_v25 = vmul.f32 0.5, %v2693_v21  ;;  %v2703_v23 = vmul.f32 %v2683_v18, %v2683_v18 }
 0x381   :  { %v2702_v50 = vmul.f32 0.5, %v2700_v22  ;;  %v2704_v52 = vmul.f32 %v2684_v43, %v2684_v43 }
 0x382   :  { %v2705_v54 = vsub.f32 %v2701_v25, %v2703_v23 }
 0x383   :  { %v2706_v24 = vsub.f32 %v2702_v50, %v2704_v52 }
 0x384   :  { %v2707_v8 = vadd.f32 1e-05, %v2705_v54 }
 0x385   :  { %v2708_v27 = vadd.f32 1e-05, %v2706_v24 }
 0x386   :  { %3860 = vrsqrt.f32 %v2707_v8 }
 0x387   :  { %3862 = vrsqrt.f32 %v2708_v27 }
 0x390   :  { %v3861_v29 = vpop.eup %3860 }
 0x391   :  { %v3863_v30 = vpop.eup %3862 }
 0x392   :  { %v2713_v32 = vcombine.low %v3861_v29, %v3863_v30 }
 0x394   :  { %v2720_v33 = vrot.slane %v2713_v32, %v4921_v31 }
 0x396   :  { %v2727_v13 = vrot.slane %v2720_v33, %v4921_v31 }
 0x398   :  { %v2729_v36 = vmul.f32 %v2727_v13, %v2250_v34 }
 0x39a   :  { %v2734_v14 = vrot.slane %v2729_v36, %v4755_v20  ;;  %v2738_v48 = vrot.slane %v2729_v36, %v4763_v41 }
 0x39c   :  { %v2742_v28 = vmul.f32 %v3327_v3, %v2738_v48  ;;  %v2743_v49 = vmul.f32 %v2734_v14, %v2683_v18  ;;  %v2744_v46 = vmul.f32 %v2738_v48, %v2684_v43  ;;  %v2741_v11 = vmul.f32 %v3326_v39, %v2734_v14 }
 0x39e   :  { %v2747_v38 = vcombine.low %v2743_v49, %v2744_v46 }
 0x3a0   :  { %v2754_v19 = vrot.slane %v2747_v38, %v4921_v31 }
 0x3a2   :  { %v2761_v40 = vrot.slane %v2754_v19, %v4921_v31 }
 0x3a4   :  { %v2763_v42 = vsub.f32 %v2251_v26, %v2761_v40 }
 0x3a6   :  { %v2772_v44 = vrot.slane %v2763_v42, %v4763_v41  ;;  %v2768_v45 = vrot.slane %v2763_v42, %v4755_v20 }
 0x3a8   :  { %v2776_v37 = vadd.f32 %v2772_v44, %v2742_v28  ;;  %v2775_v47 = vadd.f32 %v2768_v45, %v2741_v11 }
 0x3aa   :  { %v2778_v3 = vmax.f32 %v2776_v37, 0.0  ;;  %v2777_v9 = vmax.f32 %v2775_v47, 0.0 }
 0x3ac   :  { %v2780_v7 = vpack.c.bf16 %v2778_v3, %v2778_v3  ;;  %v2779_v39 = vpack.c.bf16 %v2777_v9, %v2777_v9 }
 0x3ae   :  { %2948 = vmatprep.mubr.bf16.mxu1 %v2780_v7 }
 0x3af   :  { %2949 = vmatmul.mubr.bf16.vlgmr.msra.gmra.mrb[8].mxu1 %v2779_v39 }
 0x482   :  { %v3314_v51 = vpop.f32.mrb[8].mxu1 }
 0x483   :  { %v3315_v55 = vpop.f32.mrb[9].mxu1 }
 0x484   :  { %v3316_v31 = vadd.f32 %v3315_v55, %v3314_v51  ;;  %v3317_v56 = vpop.f32.mrb[10].mxu1 }
 0x485   :  { %v3318_v57 = vpop.f32.mrb[11].mxu1 }
 0x486   :  { %v2951_v41 = vadd.f32 %v3316_v31, %v3281_v53 }
 0x488   :  { %2956 = vst [vmem:[%s5136_s11] sm:$0x3] %v2951_v41 }

// kernel: pointnet_encoder.13
= control target key start
LH: loop header
LB: loop body
LE: loop exit
PB: predicated region body
PF: predicated region fallthrough
CT: control target
= control target key end

     0   :  { %s2669_s24 = smov 0   ;;  %s2671_s25 = smov 0   ;;  %s3673_s0 = inlined_call_operand.vmem [shape: bf16[2,64,128], index: 0, kind: input, shape index: {}]   ;;  %s3674_s1 = inlined_call_operand.vmem [shape: f32[1,128], index: 1, kind: input, shape index: {}]   ;;  %s3675_s2 = inlined_call_operand.vmem [shape: f32[1,128], index: 2, kind: input, shape index: {}]   ;;  %s3676_s3 = inlined_call_operand.vmem [shape: bf16[128,1024], index: 3, kind: input, shape index: {}]   ;;  %s3677_s4 = inlined_call_operand.vmem [shape: f32[1,1024], index: 4, kind: input, shape index: {}]   ;;  %s3678_s5 = inlined_call_operand.vmem [shape: f32[2,2,1024], index: 5, kind: output, shape index: {0}]   ;;  %s3679_s6 = inlined_call_operand.vmem [shape: f32[2,1,1024], index: 6, kind: output, shape index: {1}]   ;;  %s3680_s7 = inlined_call_operand.vmem [shape: f32[2,1,1024], index: 7, kind: output, shape index: {2}]  }
   0x1   :  { %s2673_s26 = smov 0  }
   0x2 LB: > { %s30_s27 = sadd.s32 1, %s2619_s25  ;;  %p2337_p0 = scmp.ge.s32.totalorder %s2623_s26, 1  ;;  %s2623_s26 = sphi %s2673_s26, %s18_s26   ;;  %s2619_s25 = sphi %s2671_s25, %s3799_s25   ;;  %s2615_s24 = sphi %s2669_s24, %s3798_s24  }
   0x3   : > { %p32_p1 = scmp.ge.s32.totalorder %s30_s27, 2  ;;  %p261_p2 = scmp.lt.s32.totalorder %s2623_s26, 3 }
   0x5   : > { %s3801_s27 = smov (%p32_p1, %s30_s27), 0  ;;  %p262_p3 = pnand %p2337_p0, %p261_p2 }
   0x7   : > { %265 = sbr.rel (%p262_p3) target bundleno = 624 (0x270), region = 40 }
   0xe   : > { %v387_v0 = vld [vmem:[%s3676_s3] sm:$0xff]  ;;  %v388_v2 = vld [vmem:[%s3676_s3 + $0x8] sm:$0xff]  ;;  %p306_p4 = scmp.lt.s32.totalorder %s2615_s24, 1  ;;  %v2625_v8 = vmov 0   ;;  %vm1114_vm0 = vcmask 523264  }
   0xf   : > { %v391_v1 = vld [vmem:[%s3676_s3 + $0x20] sm:$0xff]  ;;  %v392_v4 = vld [vmem:[%s3676_s3 + $0x28] sm:$0xff]  ;;  %845 = vmatprep.mubr.bf16.mxu0 %v2625_v8  ;;  %918 = vmatprep.mubr.bf16.mxu1 %v2625_v8 }
  0x10   : > { %v2347_v3 = vcombine.high %v387_v0, %v391_v1  ;;  %v2346_v5 = vcombine.low %v387_v0, %v391_v1  ;;  %v395_v6 = vld [vmem:[%s3676_s3 + $0x40] sm:$0xff]  ;;  %v2349_v9 = vcombine.high %v388_v2, %v392_v4  ;;  %v2348_v10 = vcombine.low %v388_v2, %v392_v4  ;;  %v396_v12 = vld [vmem:[%s3676_s3 + $0x48] sm:$0xff]  ;;  %s3803_s24 = smov (!%p306_p4, %s2615_s24), 1 }
  0x11   : > { %v399_v7 = vld [vmem:[%s3676_s3 + $0x60] sm:$0xff]  ;;  %v400_v13 = vld [vmem:[%s3676_s3 + $0x68] sm:$0xff]  ;;  %s2422_s10 = sshll.u32 %s3803_s24, 5  ;;  %s2423_s19 = sshll.u32 %s3803_s24, 4 }
  0x12   : > { %v2355_v11 = vcombine.high %v395_v6, %v399_v7  ;;  %v403_v14 = vld [vmem:[%s3676_s3 + $0x80] sm:$0xff]  ;;  %813 = vmatprep.subr.bf16.mxu0 %v2347_v3  ;;  %v2357_v15 = vcombine.high %v396_v12, %v400_v13  ;;  %v404_v17 = vld [vmem:[%s3676_s3 + $0x88] sm:$0xff]  ;;  %886 = vmatprep.subr.bf16.mxu1 %v2349_v9  ;;  %v2354_v19 = vcombine.low %v395_v6, %v399_v7  ;;  %s2744_s21 = scalar_lea.vmem %s3673_s0, %s2422_s10  ;;  %s3642_s23 = scalar_lea.vmem %s3678_s5, %s2423_s19 }
  0x13   : > { %v407_v16 = vld [vmem:[%s3676_s3 + $0xa0] sm:$0xff]  ;;  %v408_v18 = vld [vmem:[%s3676_s3 + $0xa8] sm:$0xff]  ;;  %814 = vmatpush1.bf16.msra.mxu0 %v2346_v5  ;;  %887 = vmatpush1.bf16.msra.mxu1 %v2348_v10  ;;  %v2356_v20 = vcombine.low %v396_v12, %v400_v13 }
  0x14   : > { %815 = vmatprep.subr.bf16.mxu0 %v2355_v11  ;;  %v2363_v21 = vcombine.high %v403_v14, %v407_v16  ;;  %888 = vmatprep.subr.bf16.mxu1 %v2357_v15  ;;  %v2365_v22 = vcombine.high %v404_v17, %v408_v18  ;;  %v411_v23 = vld [vmem:[%s3676_s3 + $0xc0] sm:$0xff]  ;;  %v412_v25 = vld [vmem:[%s3676_s3 + $0xc8] sm:$0xff]  ;;  %v2362_v27 = vcombine.low %v403_v14, %v407_v16  ;;  %v389_v14 = vld [vmem:[%s3676_s3 + $0x10] sm:$0xff] }
  0x15   : > { %v415_v24 = vld [vmem:[%s3676_s3 + $0xe0] sm:$0xff]  ;;  %v416_v26 = vld [vmem:[%s3676_s3 + $0xe8] sm:$0xff]  ;;  %v2364_v28 = vcombine.low %v404_v17, %v408_v18  ;;  %v393_v15 = vld [vmem:[%s3676_s3 + $0x30] sm:$0xff] }
  0x16   : > { %v2371_v29 = vcombine.high %v411_v23, %v415_v24  ;;  %v2373_v30 = vcombine.high %v412_v25, %v416_v26  ;;  %v419_v31 = vld [vmem:[%s3676_s3 + $0x100] sm:$0xff]  ;;  %v420_v33 = vld [vmem:[%s3676_s3 + $0x108] sm:$0xff]  ;;  %v2370_v36 = vcombine.low %v411_v23, %v415_v24  ;;  %v2372_v37 = vcombine.low %v412_v25, %v416_v26  ;;  %v390_v16 = vld [vmem:[%s3676_s3 + $0x18] sm:$0xff] }
  0x17   : > { %816 = vmatpush1.bf16.msra.mxu0 %v2354_v19  ;;  %889 = vmatpush1.bf16.msra.mxu1 %v2356_v20  ;;  %v423_v32 = vld [vmem:[%s3676_s3 + $0x120] sm:$0xff]  ;;  %v424_v34 = vld [vmem:[%s3676_s3 + $0x128] sm:$0xff]  ;;  %v394_v17 = vld [vmem:[%s3676_s3 + $0x38] sm:$0xff]  ;;  %v2351_v23 = vcombine.high %v389_v14, %v393_v15 }
  0x18   : > { %817 = vmatprep.subr.bf16.mxu0 %v2363_v21  ;;  %890 = vmatprep.subr.bf16.mxu1 %v2365_v22  ;;  %v2425_v35 = vld [vmem:[%s2744_s21] sm:$0xff]   ;;  %v2379_v38 = vcombine.high %v419_v31, %v423_v32  ;;  %v2381_v39 = vcombine.high %v420_v33, %v424_v34  ;;  %v428_v44 = vld [vmem:[%s3676_s3 + $0x148] sm:$0xff]  ;;  %v2378_v47 = vcombine.low %v419_v31, %v423_v32  ;;  %v2441_v21 = vld [vmem:[%s2744_s21 + $0x10] sm:$0xff]  }
  0x19   : > { %v427_v40 = vld [vmem:[%s3676_s3 + $0x140] sm:$0xff]  ;;  %v2426_v42 = vunpack.c.l.bf16 %v2425_v35  ;;  %v2427_v43 = vunpack.c.h.bf16 %v2425_v35  ;;  %v432_v45 = vld [vmem:[%s3676_s3 + $0x168] sm:$0xff]  ;;  %v2380_v48 = vcombine.low %v420_v33, %v424_v34  ;;  %v2353_v25 = vcombine.high %v390_v16, %v394_v17  ;;  %v397_v26 = vld [vmem:[%s3676_s3 + $0x50] sm:$0xff] }
  0x1a   : > { %v431_v41 = vld [vmem:[%s3676_s3 + $0x160] sm:$0xff]  ;;  %v2389_v50 = vcombine.high %v428_v44, %v432_v45  ;;  %v436_v55 = vld [vmem:[%s3676_s3 + $0x188] sm:$0xff]  ;;  %v2388_v60 = vcombine.low %v428_v44, %v432_v45  ;;  %v2434_v32 = vunpack.c.l.bf16 %v2441_v21  ;;  %v2435_v33 = vunpack.c.h.bf16 %v2441_v21 }
  0x1b   : > { %818 = vmatpush1.bf16.msra.mxu0 %v2362_v27  ;;  %891 = vmatpush1.bf16.msra.mxu1 %v2364_v28  ;;  %v2774_v46 = vld [vmem:[%s3674_s1] ss:$0 sm:$0xff]  ;;  %v2387_v49 = vcombine.high %v427_v40, %v431_v41  ;;  %v440_v56 = vld [vmem:[%s3676_s3 + $0x1a8] sm:$0xff]  ;;  %v2386_v58 = vcombine.low %v427_v40, %v431_v41  ;;  %v401_v27 = vld [vmem:[%s3676_s3 + $0x70] sm:$0xff]  ;;  %v2350_v34 = vcombine.low %v389_v14, %v393_v15 }
  0x1c   : > { %819 = vmatprep.subr.bf16.mxu0 %v2371_v29  ;;  %892 = vmatprep.subr.bf16.mxu1 %v2373_v30  ;;  %v435_v51 = vld [vmem:[%s3676_s3 + $0x180] sm:$0xff]  ;;  %v352_v53 = vmul.f32 %v2426_v42, %v2774_v46  ;;  %v353_v54 = vmul.f32 %v2427_v43, %v2774_v46  ;;  %v2440_v59 = vld [vmem:[%s2744_s21 + $0x8] sm:$0xff]   ;;  %v2397_v62 = vcombine.high %v436_v55, %v440_v56  ;;  %v398_v28 = vld [vmem:[%s3676_s3 + $0x58] sm:$0xff] }
  0x1d   : > { %v439_v52 = vld [vmem:[%s3676_s3 + $0x1a0] sm:$0xff]  ;;  %v444_v3 = vld [vmem:[%s3676_s3 + $0x1c8] sm:$0xff]  ;;  %v2430_v5 = vunpack.c.l.bf16 %v2440_v59  ;;  %v2431_v6 = vunpack.c.h.bf16 %v2440_v59  ;;  %v2396_v9 = vcombine.low %v436_v55, %v440_v56  ;;  %v402_v29 = vld [vmem:[%s3676_s3 + $0x78] sm:$0xff]  ;;  %v2352_v35 = vcombine.low %v390_v16, %v394_v17 }
  0x1e   : > { %v2793_v57 = vld [vmem:[%s3675_s2] ss:$0 sm:$0xff]  ;;  %v2395_v61 = vcombine.high %v435_v51, %v439_v52  ;;  %v448_v4 = vld [vmem:[%s3676_s3 + $0x1e8] sm:$0xff]  ;;  %v2394_v7 = vcombine.low %v435_v51, %v439_v52  ;;  %v406_v42 = vld [vmem:[%s3676_s3 + $0x98] sm:$0xff]  ;;  %v356_v44 = vmul.f32 %v2434_v32, %v2774_v46  ;;  %v357_v45 = vmul.f32 %v2435_v33, %v2774_v46 }
  0x1f   : > { %820 = vmatpush1.bf16.msra.mxu0 %v2370_v36  ;;  %893 = vmatpush1.bf16.msra.mxu1 %v2372_v37  ;;  %v443_v63 = vld [vmem:[%s3676_s3 + $0x1c0] sm:$0xff]  ;;  %v367_v1 = vadd.f32 %v2793_v57, %v352_v53  ;;  %v368_v2 = vadd.f32 %v2793_v57, %v353_v54  ;;  %v2405_v11 = vcombine.high %v444_v3, %v448_v4  ;;  %v410_v43 = vld [vmem:[%s3676_s3 + $0xb8] sm:$0xff]  ;;  %v413_v52 = vld [vmem:[%s3676_s3 + $0xd0] sm:$0xff] }
  0x20   : > { %821 = vmatprep.subr.bf16.mxu0 %v2379_v38  ;;  %894 = vmatprep.subr.bf16.mxu1 %v2381_v39  ;;  %v447_v0 = vld [vmem:[%s3676_s3 + $0x1e0] sm:$0xff]  ;;  %v354_v18 = vmul.f32 %v2430_v5, %v2774_v46  ;;  %v355_v19 = vmul.f32 %v2431_v6, %v2774_v46  ;;  %v2404_v22 = vcombine.low %v444_v3, %v448_v4  ;;  %v405_v38 = vld [vmem:[%s3676_s3 + $0x90] sm:$0xff]  ;;  %v414_v56 = vld [vmem:[%s3676_s3 + $0xd8] sm:$0xff] }
  0x21   : > { %v2403_v10 = vcombine.high %v443_v63, %v447_v0  ;;  %v375_v12 = vmax.f32 %v367_v1, 0.0  ;;  %v376_v13 = vmax.f32 %v368_v2, 0.0  ;;  %v2402_v20 = vcombine.low %v443_v63, %v447_v0  ;;  %v409_v39 = vld [vmem:[%s3676_s3 + $0xb0] sm:$0xff]  ;;  %v422_v6 = vld [vmem:[%s3676_s3 + $0x118] sm:$0xff] }
  0x22   : > { %v369_v30 = vadd.f32 %v2793_v57, %v354_v18  ;;  %v370_v31 = vadd.f32 %v2793_v57, %v355_v19  ;;  %v2359_v36 = vcombine.high %v397_v26, %v401_v27  ;;  %v2361_v37 = vcombine.high %v398_v28, %v402_v29  ;;  %v417_v53 = vld [vmem:[%s3676_s3 + $0xf0] sm:$0xff]  ;;  %v430_v17 = vld [vmem:[%s3676_s3 + $0x158] sm:$0xff] }
  0x23   : > { %822 = vmatpush1.bf16.msra.mxu0 %v2378_v47  ;;  %895 = vmatpush1.bf16.msra.mxu1 %v2380_v48  ;;  %v2825_v24 = vpack.c.bf16 %v376_v13, %v375_v12  ;;  %v2442_v47 = vld [vmem:[%s2744_s21 + $0x18] sm:$0xff]   ;;  %v2358_v48 = vcombine.low %v397_v26, %v401_v27  ;;  %v2369_v51 = vcombine.high %v406_v42, %v410_v43  ;;  %v421_v2 = vld [vmem:[%s3676_s3 + $0x110] sm:$0xff]  ;;  %s2342_s21 = sshll.u32 %s3803_s24, 3 }
  0x24   : > { %823 = vmatprep.subr.bf16.mxu0 %v2387_v49  ;;  %896 = vmatprep.subr.bf16.mxu1 %v2389_v50  ;;  %v377_v40 = vmax.f32 %v369_v30, 0.0  ;;  %v378_v41 = vmax.f32 %v370_v31, 0.0  ;;  %v2360_v49 = vcombine.low %v398_v28, %v402_v29  ;;  %v2367_v50 = vcombine.high %v405_v38, %v409_v39  ;;  %v425_v3 = vld [vmem:[%s3676_s3 + $0x130] sm:$0xff]  ;;  %v434_v18 = vld [vmem:[%s3676_s3 + $0x178] sm:$0xff]  ;;  %s323_s15 = scalar_lea.vmem %s3679_s6, %s2342_s21  ;;  %s327_s18 = scalar_lea.vmem %s3680_s7, %s2342_s21 }
  0x25   : > { %v2438_v54 = vunpack.c.l.bf16 %v2442_v47  ;;  %v371_v59 = vadd.f32 %v2793_v57, %v356_v44  ;;  %v2368_v63 = vcombine.low %v406_v42, %v410_v43  ;;  %v2375_v0 = vcombine.high %v413_v52, %v417_v53  ;;  %v429_v15 = vld [vmem:[%s3676_s3 + $0x150] sm:$0xff]  ;;  %v438_v29 = vld [vmem:[%s3676_s3 + $0x198] sm:$0xff] }
  0x26   : > { %v2866_v55 = vpack.c.bf16 %v378_v41, %v377_v40  ;;  %v2383_v13 = vcombine.high %v421_v2, %v425_v3  ;;  %v2382_v21 = vcombine.low %v421_v2, %v425_v3  ;;  %v437_v26 = vld [vmem:[%s3676_s3 + $0x190] sm:$0xff]  ;;  %v442_v30 = vld [vmem:[%s3676_s3 + $0x1b8] sm:$0xff]  ;;  %v2392_v32 = vcombine.low %v430_v17, %v434_v18 }
  0x27   : > { %824 = vmatpush1.bf16.msra.mxu0 %v2386_v58  ;;  %897 = vmatpush1.bf16.msra.mxu1 %v2388_v60  ;;  %v418_v58 = vld [vmem:[%s3676_s3 + $0xf8] sm:$0xff]  ;;  %v372_v60 = vadd.f32 %v2793_v57, %v357_v45  ;;  %v379_v4 = vmax.f32 %v371_v59, 0.0  ;;  %v441_v27 = vld [vmem:[%s3676_s3 + $0x1b0] sm:$0xff]  ;;  %v2400_v41 = vcombine.low %v438_v29, %v442_v30 }
  0x28   : > { %825 = vmatprep.subr.bf16.mxu0 %v2395_v61  ;;  %898 = vmatprep.subr.bf16.mxu1 %v2397_v62  ;;  %v2439_v61 = vunpack.c.h.bf16 %v2442_v47  ;;  %v2366_v62 = vcombine.low %v405_v38, %v409_v39  ;;  %v2377_v1 = vcombine.high %v414_v56, %v418_v58  ;;  %v2376_v12 = vcombine.low %v414_v56, %v418_v58  ;;  %v446_v38 = vld [vmem:[%s3676_s3 + $0x1d8] sm:$0xff] }
  0x29   : > { %v380_v5 = vmax.f32 %v372_v60, 0.0  ;;  %v2399_v33 = vcombine.high %v437_v26, %v441_v27  ;;  %v450_v39 = vld [vmem:[%s3676_s3 + $0x1f8] sm:$0xff]  ;;  %v2398_v40 = vcombine.low %v437_v26, %v441_v27  ;;  %v453_v47 = vlaneseq }
  0x2a   : > { %v2409_v43 = vcombine.high %v446_v38, %v450_v39  ;;  %v2408_v45 = vcombine.low %v446_v38, %v450_v39 }
  0x2b   : > { %826 = vmatpush1.bf16.msra.mxu0 %v2394_v7  ;;  %899 = vmatpush1.bf16.msra.mxu1 %v2396_v9  ;;  %v426_v7 = vld [vmem:[%s3676_s3 + $0x138] sm:$0xff]  ;;  %v358_v9 = vmul.f32 %v2438_v54, %v2774_v46  ;;  %v2900_v16 = vpack.c.bf16 %v380_v5, %v379_v4  ;;  %v2627_v54 = vmov 1966171168  }
  0x2c   : > { %827 = vmatprep.subr.bf16.mxu0 %v2403_v10  ;;  %900 = vmatprep.subr.bf16.mxu1 %v2405_v11  ;;  %v359_v10 = vmul.f32 %v2439_v61, %v2774_v46  ;;  %v2374_v11 = vcombine.low %v413_v52, %v417_v53  ;;  %v2385_v14 = vcombine.high %v422_v6, %v426_v7  ;;  %v433_v46 = vld [vmem:[%s3676_s3 + $0x170] sm:$0xff] }
  0x2d   : > { %v373_v19 = vadd.f32 %v2793_v57, %v358_v9  ;;  %v2390_v31 = vcombine.low %v429_v15, %v433_v46 }
  0x2f   : > { %828 = vmatpush1.bf16.msra.mxu0 %v2402_v20  ;;  %901 = vmatpush1.bf16.msra.mxu1 %v2404_v22  ;;  %v374_v20 = vadd.f32 %v2793_v57, %v359_v10  ;;  %v2384_v22 = vcombine.low %v422_v6, %v426_v7  ;;  %v381_v28 = vmax.f32 %v373_v19, 0.0 }
  0x30   : > { %959 = vmatprep.subr.bf16.mxu0 %v2351_v23  ;;  %1032 = vmatprep.subr.bf16.mxu1 %v2353_v25  ;;  %v2391_v23 = vcombine.high %v429_v15, %v433_v46  ;;  %v2393_v25 = vcombine.high %v430_v17, %v434_v18 }
  0x31   : > { %v382_v57 = vmax.f32 %v374_v20, 0.0 }
  0x32   : > { %846 = vmatmul.mubr.bf16.vlgmr.msra.gmra.mrb[0].mxu0 %v2825_v24  ;;  %919 = vmatmul.mubr.bf16.vlgmr.msra.gmra.mrb[0].mxu1 %v2825_v24 }
  0x33   : > { %960 = vmatpush1.bf16.msra.mxu0 %v2350_v34  ;;  %1033 = vmatpush1.bf16.msra.mxu1 %v2352_v35  ;;  %v2401_v34 = vcombine.high %v438_v29, %v442_v30  ;;  %v445_v35 = vld [vmem:[%s3676_s3 + $0x1d0] sm:$0xff] }
  0x34   : > { %961 = vmatprep.subr.bf16.mxu0 %v2359_v36  ;;  %1034 = vmatprep.subr.bf16.mxu1 %v2361_v37  ;;  %v449_v36 = vld [vmem:[%s3676_s3 + $0x1f0] sm:$0xff]  ;;  %v386_v37 = vpack.c.bf16 %v382_v57, %v381_v28 }
  0x35   : > { %855 = vmatprep.mubr.bf16.mxu0 %v2625_v8  ;;  %928 = vmatprep.mubr.bf16.mxu1 %v2625_v8  ;;  %v2407_v42 = vcombine.high %v445_v35, %v449_v36  ;;  %v2406_v44 = vcombine.low %v445_v35, %v449_v36 }
  0x37   : > { %962 = vmatpush1.bf16.msra.mxu0 %v2358_v48  ;;  %1035 = vmatpush1.bf16.msra.mxu1 %v2360_v49  ;;  %v454_v48 = vshrl.u32 %v453_v47, 7 }
  0x38   : > { %963 = vmatprep.subr.bf16.mxu0 %v2367_v50  ;;  %1036 = vmatprep.subr.bf16.mxu1 %v2369_v51  ;;  %v451_v50 = vld [vmem:[%s3677_s4] sm:$0xff] }
  0x39   : > { %v455_v49 = vsub.s32 0, %v454_v48  ;;  %v463_v51 = vsub.s32 2, %v454_v48  ;;  %v459_v52 = vsub.s32 1, %v454_v48  ;;  %v467_v53 = vsub.s32 3, %v454_v48 }
  0x3a   : > { %856 = vmatmul.mubr.bf16.gmra.mrb[4].mxu0 %v2866_v55  ;;  %929 = vmatmul.mubr.bf16.gmra.mrb[4].mxu1 %v2866_v55  ;;  %v471_v56 = vsub.s32 4, %v454_v48  ;;  %v479_v58 = vsub.s32 6, %v454_v48  ;;  %v475_v61 = vsub.s32 5, %v454_v48 }
  0x3b   : > { %964 = vmatpush1.bf16.msra.mxu0 %v2366_v62  ;;  %1037 = vmatpush1.bf16.msra.mxu1 %v2368_v63  ;;  %v2959_v59 = vrot.slane %v451_v50, %v463_v51  ;;  %v2961_v60 = vrot.slane %v451_v50, %v459_v52  ;;  %v483_v62 = vsub.s32 7, %v454_v48  ;;  %v2963_v63 = vrot.slane %v451_v50, %v467_v53 }
  0x3c   : > { %965 = vmatprep.subr.bf16.mxu0 %v2375_v0  ;;  %1038 = vmatprep.subr.bf16.mxu1 %v2377_v1  ;;  %v2966_v5 = vrot.slane %v451_v50, %v471_v56  ;;  %v2968_v6 = vrot.slane %v451_v50, %v479_v58 }
  0x3d   : > { %865 = vmatprep.mubr.bf16.mxu0 %v2625_v8  ;;  %938 = vmatprep.mubr.bf16.mxu1 %v2625_v8 }
  0x3f   : > { %966 = vmatpush1.bf16.msra.mxu0 %v2374_v11  ;;  %1039 = vmatpush1.bf16.msra.mxu1 %v2376_v12  ;;  %v2972_v12 = vrot.slane %v451_v50, %v475_v61 }
  0x40   : > { %967 = vmatprep.subr.bf16.mxu0 %v2383_v13  ;;  %1040 = vmatprep.subr.bf16.mxu1 %v2385_v14  ;;  %v2974_v13 = vrot.slane %v451_v50, %v483_v62 }
  0x42   : > { %866 = vmatmul.mubr.bf16.gmra.mrb[8].mxu0 %v2900_v16  ;;  %939 = vmatmul.mubr.bf16.gmra.mrb[8].mxu1 %v2900_v16 }
  0x43   : > { %968 = vmatpush1.bf16.msra.mxu0 %v2382_v21  ;;  %1041 = vmatpush1.bf16.msra.mxu1 %v2384_v22 }
  0x44   : > { %969 = vmatprep.subr.bf16.mxu0 %v2391_v23  ;;  %1042 = vmatprep.subr.bf16.mxu1 %v2393_v25 }
  0x45   : > { %875 = vmatprep.mubr.bf16.mxu0 %v2625_v8  ;;  %948 = vmatprep.mubr.bf16.mxu1 %v2625_v8 }
  0x47   : > { %970 = vmatpush1.bf16.msra.mxu0 %v2390_v31  ;;  %1043 = vmatpush1.bf16.msra.mxu1 %v2392_v32 }
  0x48   : > { %971 = vmatprep.subr.bf16.mxu0 %v2399_v33  ;;  %1044 = vmatprep.subr.bf16.mxu1 %v2401_v34 }
  0x4a   : > { %876 = vmatmul.mubr.bf16.gmra.mrb[12].mxu0 %v386_v37  ;;  %949 = vmatmul.mubr.bf16.gmra.mrb[12].mxu1 %v386_v37 }
  0x4b   : > { %972 = vmatpush1.bf16.msra.mxu0 %v2398_v40  ;;  %1045 = vmatpush1.bf16.msra.mxu1 %v2400_v41 }
  0x4c   : > { %973 = vmatprep.subr.bf16.mxu0 %v2407_v42  ;;  %1046 = vmatprep.subr.bf16.mxu1 %v2409_v43 }
  0x4d   : > { %991 = vmatprep.mubr.bf16.mxu0 %v2625_v8  ;;  %1064 = vmatprep.mubr.bf16.mxu1 %v2625_v8 }
  0x4f   : > { %974 = vmatpush1.bf16.msra.mxu0 %v2406_v44  ;;  %1047 = vmatpush1.bf16.msra.mxu1 %v2408_v45 }
  0x52   : > { %992 = vmatmul.mubr.bf16.vlgmr.msra.gmra.mrb[16].mxu0 %v2825_v24  ;;  %1065 = vmatmul.mubr.bf16.vlgmr.msra.gmra.mrb[16].mxu1 %v2825_v24  ;;  %v3681_v24 = vmov 0.0  }
  0x53   : > { %1001 = vmatprep.mubr.bf16.mxu0 %v2625_v8  ;;  %1074 = vmatprep.mubr.bf16.mxu1 %v2625_v8 }
  0x5a   : > { %1002 = vmatmul.mubr.bf16.gmra.mrb[20].mxu0 %v2866_v55  ;;  %1075 = vmatmul.mubr.bf16.gmra.mrb[20].mxu1 %v2866_v55  ;;  %v1415_v55 = vunpack.c.l.s4 %v2627_v54 }
  0x5b   : > { %1011 = vmatprep.mubr.bf16.mxu0 %v2625_v8  ;;  %1084 = vmatprep.mubr.bf16.mxu1 %v2625_v8 }
  0x5c   : > { %v1416_v0 = vunpack.c.0.s8 %v1415_v55 }
  0x5e   : > { %v2980_v18 = vsub.s32 %v1416_v0, %v454_v48 }
  0x62   : > { %1012 = vmatmul.mubr.bf16.gmra.mrb[24].mxu0 %v2900_v16  ;;  %1085 = vmatmul.mubr.bf16.gmra.mrb[24].mxu1 %v2900_v16 }
  0x63   : > { %1021 = vmatprep.mubr.bf16.mxu0 %v2625_v8  ;;  %1094 = vmatprep.mubr.bf16.mxu1 %v2625_v8  ;;  %v2957_v8 = vrot.slane %v451_v50, %v455_v49 }
  0x6a   : > { %1022 = vmatmul.mubr.bf16.gmra.mrb[28].mxu0 %v386_v37  ;;  %1095 = vmatmul.mubr.bf16.gmra.mrb[28].mxu1 %v386_v37 }
  0x6b   : > { %1182 = vmatprep.mubr.f32.mxu0 %v3681_v24  ;;  %1253 = vmatprep.mubr.f32.mxu1 %v3681_v24 }
 0x105   : > { %v847_v1 = vpop.f32.mrb[0].mxu0  ;;  %v920_v3 = vpop.f32.mrb[0].mxu1 }
 0x106   : > { %v848_v2 = vadd.f32 %v847_v1, %v2957_v8  ;;  %v849_v4 = vpop.f32.mrb[1].mxu0  ;;  %v921_v7 = vadd.f32 %v920_v3, %v2959_v59  ;;  %v922_v10 = vpop.f32.mrb[1].mxu1 }
 0x107   : > { %v850_v9 = vadd.f32 %v849_v4, %v2961_v60  ;;  %v851_v11 = vpop.f32.mrb[2].mxu0  ;;  %v923_v15 = vadd.f32 %v922_v10, %v2963_v63  ;;  %v924_v16 = vpop.f32.mrb[2].mxu1 }
 0x108   : > { %v2976_v14 = vmul.f32 %v848_v2, %v848_v2  ;;  %v852_v46 = vadd.f32 %v851_v11, %v2957_v8  ;;  %v853_v17 = vpop.f32.mrb[3].mxu0  ;;  %v2982_v19 = vmul.f32 %v921_v7, %v921_v7  ;;  %v925_v20 = vadd.f32 %v924_v16, %v2959_v59  ;;  %v926_v22 = vpop.f32.mrb[3].mxu1 }
 0x109   : > { %v854_v21 = vadd.f32 %v853_v17, %v2961_v60  ;;  %v2986_v23 = vmul.f32 %v850_v9, %v850_v9  ;;  %v927_v28 = vadd.f32 %v926_v22, %v2963_v63  ;;  %v2998_v44 = vmul.f32 %v923_v15, %v923_v15 }
 0x10a   : > { %3705 = vst [vmem:[#allocation2_spill] sm:$0xff] %v2976_v14  ;;  %3706 = vst [vmem:[#allocation3_spill] sm:$0xff] %v2982_v19  ;;  %v2988_v25 = vmul.f32 %v852_v46, %v852_v46  ;;  %v1873_v26 = vmax.f32 %v848_v2, %v852_v46  ;;  %v2038_v27 = vmin.f32 %v848_v2, %v852_v46 }
 0x10b   : > { %3707 = vst [vmem:[#allocation4_spill] sm:$0xff] %v2986_v23  ;;  %v2991_v57 = vmul.f32 %v925_v20, %v925_v20  ;;  %v1899_v29 = vmax.f32 %v921_v7, %v925_v20  ;;  %v2064_v30 = vmin.f32 %v921_v7, %v925_v20  ;;  %v1886_v31 = vmax.f32 %v850_v9, %v854_v21 }
 0x10c   : > { %3708 = vst [vmem:[#allocation5_spill] sm:$0xff] %v2988_v25  ;;  %v2051_v32 = vmin.f32 %v850_v9, %v854_v21  ;;  %v1912_v33 = vmax.f32 %v923_v15, %v927_v28  ;;  %v2077_v34 = vmin.f32 %v923_v15, %v927_v28  ;;  %v2443_v35 = vpack.c.bf16 %v854_v21, %v850_v9 }
 0x10d   : > { %3709 = vst [vmem:[#allocation6_spill] sm:$0xff] %v2991_v57  ;;  %v857_v36 = vpop.f32.mrb[4].mxu0  ;;  %v2459_v37 = vpack.c.bf16 %v927_v28, %v923_v15  ;;  %v2445_v38 = vpack.c.bf16 %v852_v46, %v848_v2  ;;  %v2461_v39 = vpack.c.bf16 %v925_v20, %v921_v7  ;;  %v2993_v40 = vmul.f32 %v854_v21, %v854_v21  ;;  %v930_v42 = vpop.f32.mrb[4].mxu1 }
 0x10e   : > { %v2996_v41 = vadd.f32 %v857_v36, %v2957_v8  ;;  %2444 = vmatprep.subr.bf16.mxu0 %v2443_v35  ;;  %v859_v43 = vpop.f32.mrb[5].mxu0  ;;  %3710 = vst [vmem:[#allocation7_spill] sm:$0xff] %v2998_v44  ;;  %v3000_v45 = vmul.f32 %v927_v28, %v927_v28  ;;  %v3005_v48 = vadd.f32 %v930_v42, %v2959_v59  ;;  %v932_v50 = vpop.f32.mrb[5].mxu1 }
 0x10f   : > { %2460 = vmatprep.subr.bf16.mxu1 %v2459_v37  ;;  %v3008_v49 = vadd.f32 %v859_v43, %v2961_v60  ;;  %2446 = vmatpush1.bf16.msra.mxu0 %v2445_v38  ;;  %v861_v51 = vpop.f32.mrb[6].mxu0  ;;  %v3019_v56 = vadd.f32 %v932_v50, %v2963_v63  ;;  %v934_v58 = vpop.f32.mrb[6].mxu1 }
 0x110   : > { %3711 = vst [vmem:[#allocation8_spill] sm:$0xff] %v3000_v45  ;;  %v3014_v53 = vmul.f32 %v2996_v41, %v2996_v41  ;;  %v1874_v54 = vmax.f32 %v1873_v26, %v2996_v41  ;;  %v2039_v55 = vmin.f32 %v2038_v27, %v2996_v41  ;;  %2462 = vmatpush1.bf16.msra.mxu1 %v2461_v39  ;;  %v863_v61 = vpop.f32.mrb[7].mxu0  ;;  %v936_v3 = vpop.f32.mrb[7].mxu1 }
 0x111   : > { %v3023_v62 = vmul.f32 %v3005_v48, %v3005_v48  ;;  %v1900_v0 = vmax.f32 %v1899_v29, %v3005_v48  ;;  %v2065_v1 = vmin.f32 %v2064_v30, %v3005_v48  ;;  %v1887_v2 = vmax.f32 %v1886_v31, %v3008_v49 }
 0x112   : > { %v2052_v4 = vmin.f32 %v2051_v32, %v3008_v49  ;;  %v1913_v7 = vmax.f32 %v1912_v33, %v3019_v56  ;;  %v2078_v9 = vmin.f32 %v2077_v34, %v3019_v56  ;;  %v862_v10 = vadd.f32 %v861_v51, %v2957_v8 }
 0x113   : > { %v935_v11 = vadd.f32 %v934_v58, %v2959_v59  ;;  %v864_v15 = vadd.f32 %v863_v61, %v2961_v60  ;;  %v3035_v46 = vadd.f32 %v936_v3, %v2963_v63 }
 0x114   : > { %v3039_v17 = vmul.f32 %v862_v10, %v862_v10  ;;  %v1875_v20 = vmax.f32 %v1874_v54, %v862_v10  ;;  %v2040_v21 = vmin.f32 %v2039_v55, %v862_v10  ;;  %v2449_v22 = vpack.c.bf16 %v862_v10, %v2996_v41 }
 0x115   : > { %v3042_v26 = vmul.f32 %v935_v11, %v935_v11  ;;  %v1901_v27 = vmax.f32 %v1900_v0, %v935_v11  ;;  %v2066_v28 = vmin.f32 %v2065_v1, %v935_v11  ;;  %v1888_v29 = vmax.f32 %v1887_v2, %v864_v15  ;;  %v867_v30 = vpop.f32.mrb[8].mxu0  ;;  %v940_v35 = vpop.f32.mrb[8].mxu1 }
 0x116   : > { %v2053_v31 = vmin.f32 %v2052_v4, %v864_v15  ;;  %v1914_v32 = vmax.f32 %v1913_v7, %v3035_v46  ;;  %v2079_v33 = vmin.f32 %v2078_v9, %v3035_v46  ;;  %v3047_v34 = vadd.f32 %v867_v30, %v2957_v8  ;;  %v869_v36 = vpop.f32.mrb[9].mxu0  ;;  %v942_v42 = vpop.f32.mrb[9].mxu1 }
 0x117   : > { %v3050_v37 = vadd.f32 %v940_v35, %v2959_v59  ;;  %v2447_v38 = vpack.c.bf16 %v864_v15, %v3008_v49  ;;  %v2463_v39 = vpack.c.bf16 %v3035_v46, %v3019_v56  ;;  %v3056_v41 = vadd.f32 %v869_v36, %v2961_v60  ;;  %v871_v43 = vpop.f32.mrb[10].mxu0  ;;  %v944_v58 = vpop.f32.mrb[10].mxu1 }
 0x118   : > { %v3060_v50 = vmul.f32 %v3047_v34, %v3047_v34  ;;  %v1876_v51 = vmax.f32 %v1875_v20, %v3047_v34  ;;  %v2041_v54 = vmin.f32 %v2040_v21, %v3047_v34  ;;  %v3065_v55 = vadd.f32 %v942_v42, %v2963_v63  ;;  %v873_v61 = vpop.f32.mrb[11].mxu0  ;;  %v946_v3 = vpop.f32.mrb[11].mxu1 }
 0x119   : > { %v3069_v0 = vmul.f32 %v3050_v37, %v3050_v37  ;;  %v1902_v1 = vmax.f32 %v1901_v27, %v3050_v37  ;;  %v2067_v2 = vmin.f32 %v2066_v28, %v3050_v37  ;;  %2448 = vmatprep.subr.bf16.mxu0 %v2447_v38  ;;  %2464 = vmatprep.subr.bf16.mxu1 %v2463_v39 }
 0x11a   : > { %3712 = vst [vmem:[#allocation9_spill] sm:$0xff] %v3060_v50  ;;  %3713 = vst [vmem:[#allocation10_spill] sm:$0xff] %v3065_v55  ;;  %v1889_v4 = vmax.f32 %v1888_v29, %v3056_v41  ;;  %v2054_v7 = vmin.f32 %v2053_v31, %v3056_v41  ;;  %v1915_v9 = vmax.f32 %v1914_v32, %v3065_v55  ;;  %2450 = vmatpush1.bf16.msra.mxu0 %v2449_v22 }
 0x11b   : > { %3714 = vst [vmem:[#allocation11_spill] sm:$0xff] %v3069_v0  ;;  %v2080_v10 = vmin.f32 %v2079_v33, %v3065_v55  ;;  %v2465_v20 = vpack.c.bf16 %v935_v11, %v3005_v48  ;;  %v872_v21 = vadd.f32 %v871_v43, %v2957_v8  ;;  %v945_v27 = vadd.f32 %v944_v58, %v2959_v59 }
 0x11c   : > { %v3081_v28 = vadd.f32 %v873_v61, %v2961_v60  ;;  %v3084_v30 = vadd.f32 %v946_v3, %v2963_v63  ;;  %v3090_v31 = vmul.f32 %v3008_v49, %v3008_v49  ;;  %v3092_v22 = vmul.f32 %v864_v15, %v864_v15 }
 0x11d   : > { %2466 = vmatpush1.bf16.msra.mxu1 %v2465_v20  ;;  %v3094_v48 = vmul.f32 %v872_v21, %v872_v21  ;;  %v1877_v11 = vmax.f32 %v1876_v51, %v872_v21  ;;  %v2042_v32 = vmin.f32 %v2041_v54, %v872_v21  ;;  %v3096_v33 = vmul.f32 %v945_v27, %v945_v27  ;;  %v877_v35 = vpop.f32.mrb[12].mxu0  ;;  %v950_v43 = vpop.f32.mrb[12].mxu1 }
 0x11e   : > { %3715 = vst [vmem:[#allocation12_spill] sm:$0xff] %v3081_v28  ;;  %3716 = vst [vmem:[#allocation13_spill] sm:$0xff] %v3084_v30  ;;  %v1903_v36 = vmax.f32 %v1902_v1, %v945_v27  ;;  %v2068_v38 = vmin.f32 %v2067_v2, %v945_v27  ;;  %v1890_v39 = vmax.f32 %v1889_v4, %v3081_v28  ;;  %v879_v58 = vpop.f32.mrb[13].mxu0  ;;  %v952_v54 = vpop.f32.mrb[13].mxu1 }
 0x11f   : > { %3717 = vst [vmem:[#allocation14_spill] sm:$0xff] %v3090_v31  ;;  %3718 = vst [vmem:[#allocation15_spill] sm:$0xff] %v3092_v22  ;;  %v2055_v42 = vmin.f32 %v2054_v7, %v3081_v28  ;;  %v1916_v49 = vmax.f32 %v1915_v9, %v3084_v30  ;;  %v2081_v15 = vmin.f32 %v2080_v10, %v3084_v30  ;;  %v881_v3 = vpop.f32.mrb[14].mxu0  ;;  %v954_v9 = vpop.f32.mrb[14].mxu1 }
 0x120   : > { %3719 = vst [vmem:[#allocation16_spill] sm:$0xff] %v3094_v48  ;;  %3720 = vst [vmem:[#allocation17_spill] sm:$0xff] %v3096_v33  ;;  %v3103_v61 = vadd.f32 %v877_v35, %v2957_v8  ;;  %v3106_v51 = vadd.f32 %v950_v43, %v2959_v59  ;;  %v2451_v1 = vpack.c.bf16 %v3081_v28, %v3056_v41  ;;  %v883_v10 = vpop.f32.mrb[15].mxu0  ;;  %v956_v47 = vpop.f32.mrb[15].mxu1 }
 0x121   : > { %v2467_v2 = vpack.c.bf16 %v3084_v30, %v3065_v55  ;;  %v3113_v4 = vadd.f32 %v879_v58, %v2961_v60  ;;  %v3116_v7 = vadd.f32 %v952_v54, %v2963_v63 }
 0x122   : > { %v3120_v20 = vmul.f32 %v3103_v61, %v3103_v61  ;;  %v1878_v35 = vmax.f32 %v1877_v11, %v3103_v61  ;;  %v2043_v43 = vmin.f32 %v2042_v32, %v3103_v61  ;;  %v3126_v29 = vmul.f32 %v3106_v51, %v3106_v51  ;;  %2452 = vmatprep.subr.bf16.mxu0 %v2451_v1 }
 0x123   : > { %v1904_v58 = vmax.f32 %v1903_v36, %v3106_v51  ;;  %v2069_v54 = vmin.f32 %v2068_v38, %v3106_v51  ;;  %2468 = vmatprep.subr.bf16.mxu1 %v2467_v2  ;;  %v1891_v16 = vmax.f32 %v1890_v39, %v3113_v4  ;;  %v2056_v52 = vmin.f32 %v2055_v42, %v3113_v4 }
 0x124   : > { %3721 = vst [vmem:[#allocation18_spill] sm:$0xff] %v3120_v20  ;;  %3722 = vst [vmem:[#allocation19_spill] sm:$0xff] %v3126_v29  ;;  %v1917_v24 = vmax.f32 %v1916_v49, %v3116_v7  ;;  %v2082_v11 = vmin.f32 %v2081_v15, %v3116_v7  ;;  %v2453_v32 = vpack.c.bf16 %v872_v21, %v3047_v34 }
 0x125   : > { %v2469_v20 = vpack.c.bf16 %v945_v27, %v3050_v37  ;;  %v3137_v29 = vadd.f32 %v881_v3, %v2957_v8  ;;  %v3140_v36 = vadd.f32 %v954_v9, %v2959_v59  ;;  %v3143_v38 = vadd.f32 %v883_v10, %v2961_v60  ;;  %v3148_v42 = vpop.f32.mrb[16].mxu0  ;;  %v3170_v21 = vpop.f32.mrb[16].mxu1 }
 0x126   : > { %2454 = vmatpush1.bf16.msra.mxu0 %v2453_v32  ;;  %v3146_v39 = vadd.f32 %v956_v47, %v2963_v63  ;;  %v3154_v37 = vmul.f32 %v3019_v56, %v3019_v56  ;;  %v3158_v8 = vmul.f32 %v3035_v46, %v3035_v46  ;;  %v3172_v56 = vpop.f32.mrb[17].mxu0  ;;  %v3178_v3 = vpop.f32.mrb[17].mxu1  ;;  %v3212_v45 = vadd.f32 %v3170_v21, %v2968_v6 }
 0x127   : > { %2470 = vmatpush1.bf16.msra.mxu1 %v2469_v20  ;;  %v3162_v59 = vmul.f32 %v3137_v29, %v3137_v29  ;;  %v1879_v60 = vmax.f32 %v1878_v35, %v3137_v29  ;;  %v2044_v63 = vmin.f32 %v2043_v43, %v3137_v29  ;;  %v3168_v47 = vmul.f32 %v3140_v36, %v3140_v36  ;;  %v3180_v1 = vpop.f32.mrb[18].mxu0  ;;  %v3184_v35 = vpop.f32.mrb[18].mxu1 }
 0x128   : > { %v1905_v46 = vmax.f32 %v1904_v58, %v3140_v36  ;;  %v2070_v27 = vmin.f32 %v2069_v54, %v3140_v36  ;;  %v1892_v49 = vmax.f32 %v1891_v16, %v3143_v38  ;;  %v2057_v15 = vmin.f32 %v2056_v52, %v3143_v38  ;;  %v3186_v43 = vpop.f32.mrb[19].mxu0  ;;  %v3188_v34 = vpop.f32.mrb[19].mxu1 }
 0x129   : > { %3723 = vst [vmem:[#allocation20_spill] sm:$0xff] %v3162_v59  ;;  %3724 = vst [vmem:[#allocation21_spill] sm:$0xff] %v3168_v47  ;;  %v1880_v2 = vrot.slane %v1879_v60, 4  ;;  %v2045_v9 = vrot.slane %v2044_v63, 4  ;;  %v1918_v10 = vmax.f32 %v1917_v24, %v3146_v39  ;;  %v2083_v20 = vmin.f32 %v2082_v11, %v3146_v39 }
 0x12a   : > { %v1906_v58 = vrot.slane %v1905_v46, 4  ;;  %v2071_v54 = vrot.slane %v2070_v27, 4  ;;  %v1893_v32 = vrot.slane %v1892_v49, 4  ;;  %v2058_v16 = vrot.slane %v2057_v15, 4 }
 0x12b   : > { %v1881_v52 = vmax.f32 %v1879_v60, %v1880_v2  ;;  %v2046_v47 = vmin.f32 %v2044_v63, %v2045_v9  ;;  %v1919_v59 = vrot.slane %v1918_v10, 4  ;;  %v2084_v31 = vrot.slane %v2083_v20, 4 }
 0x12c   : > { %v1907_v22 = vmax.f32 %v1905_v46, %v1906_v58  ;;  %v2072_v19 = vmin.f32 %v2070_v27, %v2071_v54  ;;  %v1894_v57 = vmax.f32 %v1892_v49, %v1893_v32  ;;  %v2059_v24 = vmin.f32 %v2057_v15, %v2058_v16 }
 0x12d   : > { %v1882_v14 = vrot.slane %v1881_v52, 2  ;;  %v2047_v11 = vrot.slane %v2046_v47, 2  ;;  %v1920_v25 = vmax.f32 %v1918_v10, %v1919_v59  ;;  %v2085_v33 = vmin.f32 %v2083_v20, %v2084_v31  ;;  %v3190_v55 = vpop.f32.mrb[20].mxu0  ;;  %v3192_v2 = vpop.f32.mrb[20].mxu1 }
 0x12e   : > { %v1908_v0 = vrot.slane %v1907_v22, 2  ;;  %v2073_v48 = vrot.slane %v2072_v19, 2  ;;  %v1895_v50 = vrot.slane %v1894_v57, 2  ;;  %v2060_v30 = vrot.slane %v2059_v24, 2  ;;  %v3194_v46 = vpop.f32.mrb[21].mxu0  ;;  %v3196_v59 = vpop.f32.mrb[21].mxu1 }
 0x12f   : > { %v1883_v28 = vmax.f32 %v1881_v52, %v1882_v14  ;;  %v2048_v44 = vmin.f32 %v2046_v47, %v2047_v11  ;;  %v1921_v60 = vrot.slane %v1920_v25, 2  ;;  %v2086_v63 = vrot.slane %v2085_v33, 2  ;;  %v3198_v31 = vpop.f32.mrb[22].mxu0  ;;  %v3200_v14 = vpop.f32.mrb[22].mxu1 }
 0x130   : > { %v1909_v27 = vmax.f32 %v1907_v22, %v1908_v0  ;;  %v2074_v49 = vmin.f32 %v2072_v19, %v2073_v48  ;;  %v1896_v15 = vmax.f32 %v1894_v57, %v1895_v50  ;;  %v2061_v9 = vmin.f32 %v2059_v24, %v2060_v30  ;;  %v3202_v47 = vpop.f32.mrb[23].mxu0  ;;  %v3204_v0 = vpop.f32.mrb[23].mxu1 }
 0x131   : > { %v1884_v10 = vrot.slane %v1883_v28, 1  ;;  %v2049_v20 = vrot.slane %v2048_v44, 1  ;;  %v1922_v58 = vmax.f32 %v1920_v25, %v1921_v60  ;;  %v2087_v54 = vmin.f32 %v2085_v33, %v2086_v63 }
 0x132   : > { %v1910_v32 = vrot.slane %v1909_v27, 1  ;;  %v2075_v16 = vrot.slane %v2074_v49, 1  ;;  %v1897_v52 = vrot.slane %v1896_v15, 1  ;;  %v2062_v11 = vrot.slane %v2061_v9, 1 }
 0x133   : > { %v1885_v19 = vmax.f32 %v1883_v28, %v1884_v10  ;;  %v2050_v57 = vmin.f32 %v2048_v44, %v2049_v20  ;;  %v1923_v50 = vrot.slane %v1922_v58, 1  ;;  %v2088_v30 = vrot.slane %v2087_v54, 1 }
 0x134   : > { %v1911_v22 = vmax.f32 %v1909_v27, %v1910_v32  ;;  %v2076_v48 = vmin.f32 %v2074_v49, %v2075_v16  ;;  %v1898_v24 = vmax.f32 %v1896_v15, %v1897_v52  ;;  %v2063_v25 = vmin.f32 %v2061_v9, %v2062_v11 }
 0x135   : > { %v1924_v33 = vmax.f32 %v1922_v58, %v1923_v50  ;;  %v2089_v60 = vmin.f32 %v2087_v54, %v2088_v30  ;;  %v3208_v63 = vadd.f32 %v3148_v42, %v2966_v5  ;;  %v2455_v44 = vpack.c.bf16 %v3143_v38, %v3113_v4  ;;  %v3218_v49 = vpop.f32.mrb[24].mxu0  ;;  %v3228_v10 = vpop.f32.mrb[24].mxu1 }
 0x136   : > { %v1985_v23 = vcombine.low %v1885_v19, %v1898_v24  ;;  %v2150_v28 = vcombine.low %v2050_v57, %v2063_v25  ;;  %v2471_v27 = vpack.c.bf16 %v3146_v39, %v3116_v7  ;;  %v3226_v21 = vmul.f32 %v3212_v45, %v3212_v45  ;;  %v3230_v20 = vpop.f32.mrb[25].mxu0  ;;  %v3238_v16 = vpop.f32.mrb[25].mxu1 }
 0x137   : > { %v1986_v15 = vcombine.low %v1911_v22, %v1924_v33  ;;  %v2151_v9 = vcombine.low %v2076_v48, %v2089_v60  ;;  %v3222_v42 = vmul.f32 %v3208_v63, %v3208_v63  ;;  %2456 = vmatprep.subr.bf16.mxu0 %v2455_v44  ;;  %v3236_v32 = vadd.f32 %v3172_v56, %v2972_v12  ;;  %v3240_v52 = vpop.f32.mrb[26].mxu0  ;;  %v3250_v50 = vpop.f32.mrb[26].mxu1 }
 0x138   : > { %3726 = vst [vmem:[#allocation23_spill] sm:$0xff] %v3226_v21  ;;  %v1995_v58 = vrot.slane %v1985_v23, %v2980_v18  ;;  %v2160_v54 = vrot.slane %v2150_v28, %v2980_v18  ;;  %2472 = vmatprep.subr.bf16.mxu1 %v2471_v27  ;;  %v3246_v57 = vadd.f32 %v3178_v3, %v2974_v13  ;;  %v3252_v30 = vpop.f32.mrb[27].mxu0  ;;  %v3264_v24 = vpop.f32.mrb[27].mxu1 }
 0x139   : > { %3725 = vst [vmem:[#allocation22_spill] sm:$0xff] %v3222_v42  ;;  %3727 = vst [vmem:[#allocation24_spill] sm:$0xff] %v3236_v32  ;;  %v2002_v11 = vrot.slane %v1986_v15, %v2980_v18  ;;  %v2167_v19 = vrot.slane %v2151_v9, %v2980_v18  ;;  %v2457_v23 = vpack.c.bf16 %v3137_v29, %v3103_v61  ;;  %v3695_v9 = vmov 1.0  }
 0x13a   : > { %3728 = vst [vmem:[#allocation25_spill] sm:$0xff] %v3246_v57  ;;  %v2473_v56 = vpack.c.bf16 %v3140_v36, %v3106_v51  ;;  %v998_v22 = vadd.f32 %v3180_v1, %v2966_v5  ;;  %v1071_v48 = vadd.f32 %v3184_v35, %v2968_v6  ;;  %v3262_v3 = vadd.f32 %v3186_v43, %v2972_v12 }
 0x13b   : > { %v2017_v29 = vcombine.low %v1995_v58, %v2002_v11  ;;  %v2182_v61 = vcombine.low %v2160_v54, %v2167_v19  ;;  %2458 = vmatpush1.bf16.msra.mxu0 %v2457_v23  ;;  %v3268_v25 = vadd.f32 %v3188_v34, %v2974_v13  ;;  %v3272_v51 = vadd.f32 %v3190_v55, %v2966_v5 }
 0x13c   : > { %3729 = vst [vmem:[#allocation26_spill] sm:$0xff] %v3262_v3  ;;  %2474 = vmatpush1.bf16.msra.mxu1 %v2473_v56  ;;  %v3274_v36 = vmul.f32 %v998_v22, %v998_v22  ;;  %v1925_v1 = vmax.f32 %v3208_v63, %v998_v22  ;;  %v2090_v35 = vmin.f32 %v3208_v63, %v998_v22 }
 0x13d   : > { %3730 = vst [vmem:[#allocation27_spill] sm:$0xff] %v3268_v25  ;;  %v3278_v43 = vmul.f32 %v1071_v48, %v1071_v48  ;;  %v3281_v33 = vrot.slane %v2017_v29, %v2980_v18  ;;  %v3284_v60 = vrot.slane %v2182_v61, %v2980_v18  ;;  %v1951_v34 = vmax.f32 %v3212_v45, %v1071_v48  ;;  %v3298_v58 = vpop.f32.mrb[28].mxu0  ;;  %v3312_v56 = vpop.f32.mrb[28].mxu1 }
 0x13e   : > { %3731 = vst [vmem:[#allocation28_spill] sm:$0xff] %v3274_v36  ;;  %v2116_v55 = vmin.f32 %v3212_v45, %v1071_v48  ;;  %v1938_v28 = vmax.f32 %v3236_v32, %v3262_v3  ;;  %v2103_v44 = vmin.f32 %v3236_v32, %v3262_v3  ;;  %v1964_v27 = vmax.f32 %v3246_v57, %v3268_v25  ;;  %v3314_v29 = vpop.f32.mrb[29].mxu0 }
 0x13f   : > { %3732 = vst [vmem:[#allocation29_spill] sm:$0xff] %v3278_v43  ;;  %v2129_v15 = vmin.f32 %v3246_v57, %v3268_v25  ;;  %2410 = vmatmul.mubr.msk.f32.vlgmr.msra.gmra.mrb[32].mxu0 %vm1114_vm0, %v3695_v9  ;;  %v3302_v54 = vmul.f32 %v3272_v51, %v3272_v51  ;;  %v1926_v11 = vmax.f32 %v1925_v1, %v3272_v51  ;;  %v3734_v43 = vmov 0.0  }
 0x140   : > { %v2091_v19 = vmin.f32 %v2090_v35, %v3272_v51  ;;  %v3308_v23 = vadd.f32 %v3192_v2, %v2968_v6  ;;  %2411 = vmatmul.mubr.msk.f32.vlgmr.msra.gmra.mrb[32].mxu1 %vm1114_vm0, %v3695_v9  ;;  %v2475_v61 = vpack.c.bf16 %v3262_v3, %v3236_v32  ;;  %v3322_v1 = vadd.f32 %v3194_v46, %v2972_v12  ;;  %v3328_v35 = vpop.f32.mrb[29].mxu1  ;;  %v3330_v9 = vpop.f32.mrb[30].mxu0 }
 0x141   : > { %3733 = vst [vmem:[#allocation30_spill] sm:$0xff] %v3302_v54  ;;  %v2491_v54 = vpack.c.bf16 %v3268_v25, %v3246_v57  ;;  %v3326_v2 = vadd.f32 %v3196_v59, %v2974_v13  ;;  %1324 = vmatprep.mubr.f32.mxu0 %v3734_v43  ;;  %v2477_v46 = vpack.c.bf16 %v998_v22, %v3208_v63  ;;  %v3340_v25 = vpop.f32.mrb[30].mxu1  ;;  %v3342_v59 = vpop.f32.mrb[31].mxu0  ;;  %1109 = vst [vmem:[%s3642_s23] sm:$0xff] %v3734_v43 }
 0x142   : > { %v3335_v21 = vmul.f32 %v3308_v23, %v3308_v23  ;;  %v1952_v36 = vmax.f32 %v1951_v34, %v3308_v23  ;;  %v2117_v42 = vmin.f32 %v2116_v55, %v3308_v23  ;;  %1395 = vmatprep.mubr.f32.mxu1 %v3734_v43  ;;  %2476 = vmatprep.subr.bf16.mxu0 %v2475_v61  ;;  %v3348_v32 = vpop.f32.mrb[31].mxu1 }
 0x143   : > { %2492 = vmatprep.subr.bf16.mxu1 %v2491_v54  ;;  %v1939_v57 = vmax.f32 %v1938_v28, %v3322_v1  ;;  %v2104_v3 = vmin.f32 %v2103_v44, %v3322_v1  ;;  %v2130_v34 = vmin.f32 %v2129_v15, %v3326_v2  ;;  %2478 = vmatpush1.bf16.msra.mxu0 %v2477_v46 }
 0x144   : > { %3735 = vst [vmem:[#allocation31_spill] sm:$0xff] %v3335_v21  ;;  %v1965_v21 = vmax.f32 %v1964_v27, %v3326_v2  ;;  %v2493_v63 = vpack.c.bf16 %v1071_v48, %v3212_v45  ;;  %v1008_v22 = vadd.f32 %v3198_v31, %v2966_v5  ;;  %v1081_v55 = vadd.f32 %v3200_v14, %v2968_v6 }
 0x145   : > { %v3358_v28 = vadd.f32 %v3202_v47, %v2972_v12  ;;  %v3362_v44 = vadd.f32 %v3204_v0, %v2974_v13  ;;  %v3366_v27 = vadd.f32 %v3218_v49, %v2966_v5  ;;  %v3370_v45 = vadd.f32 %v3228_v10, %v2968_v6  ;;  %1110 = vst [vmem:[%s3642_s23 + $0x8] sm:$0xff] %v3734_v43 }
 0x146   : > { %2494 = vmatpush1.bf16.msra.mxu1 %v2493_v63  ;;  %v3372_v31 = vmul.f32 %v1008_v22, %v1008_v22  ;;  %v1927_v14 = vmax.f32 %v1926_v11, %v1008_v22  ;;  %v2092_v48 = vmin.f32 %v2091_v19, %v1008_v22  ;;  %v3374_v15 = vmul.f32 %v1081_v55, %v1081_v55 }
 0x147   : > { %v1953_v47 = vmax.f32 %v1952_v36, %v1081_v55  ;;  %v2118_v54 = vmin.f32 %v2117_v42, %v1081_v55  ;;  %v1940_v0 = vmax.f32 %v1939_v57, %v3358_v28  ;;  %v2105_v61 = vmin.f32 %v2104_v3, %v3358_v28 }
 0x148   : > { %v1966_v49 = vmax.f32 %v1965_v21, %v3362_v44  ;;  %v2131_v46 = vmin.f32 %v2130_v34, %v3362_v44  ;;  %v3382_v10 = vmul.f32 %v3366_v27, %v3366_v27  ;;  %v1928_v63 = vmax.f32 %v1927_v14, %v3366_v27 }
 0x149   : > { %v2093_v11 = vmin.f32 %v2092_v48, %v3366_v27  ;;  %v3388_v36 = vmul.f32 %v3370_v45, %v3370_v45  ;;  %v1954_v42 = vmax.f32 %v1953_v47, %v3370_v45  ;;  %v2119_v57 = vmin.f32 %v2118_v54, %v3370_v45 }
 0x14a   : > { %3736 = vst [vmem:[#allocation32_spill] sm:$0xff] %v3382_v10  ;;  %v2479_v21 = vpack.c.bf16 %v3358_v28, %v3322_v1  ;;  %v2495_v3 = vpack.c.bf16 %v3362_v44, %v3326_v2  ;;  %v3398_v19 = vadd.f32 %v3230_v20, %v2972_v12  ;;  %v3402_v34 = vadd.f32 %v3238_v16, %v2974_v13 }
 0x14b   : > { %3737 = vst [vmem:[#allocation33_spill] sm:$0xff] %v3388_v36  ;;  %v2481_v14 = vpack.c.bf16 %v1008_v22, %v3272_v51  ;;  %v2497_v48 = vpack.c.bf16 %v1081_v55, %v3308_v23  ;;  %v1018_v47 = vadd.f32 %v3240_v52, %v2966_v5  ;;  %v1091_v54 = vadd.f32 %v3250_v50, %v2968_v6 }
 0x14c   : > { %3738 = vst [vmem:[#allocation34_spill] sm:$0xff] %v3398_v19  ;;  %3739 = vst [vmem:[#allocation35_spill] sm:$0xff] %v3402_v34  ;;  %2480 = vmatprep.subr.bf16.mxu0 %v2479_v21  ;;  %2496 = vmatprep.subr.bf16.mxu1 %v2495_v3  ;;  %v1941_v36 = vmax.f32 %v1940_v0, %v3398_v19  ;;  %v2106_v20 = vmin.f32 %v2105_v61, %v3398_v19 }
 0x14d   : > { %v1967_v10 = vmax.f32 %v1966_v49, %v3402_v34  ;;  %v2132_v16 = vmin.f32 %v2131_v46, %v3402_v34  ;;  %2482 = vmatpush1.bf16.msra.mxu0 %v2481_v14  ;;  %2498 = vmatpush1.bf16.msra.mxu1 %v2497_v48  ;;  %v3414_v51 = vmul.f32 %v1018_v47, %v1018_v47 }
 0x14e   : > { %v1929_v23 = vmax.f32 %v1928_v63, %v1018_v47  ;;  %v2094_v22 = vmin.f32 %v2093_v11, %v1018_v47  ;;  %v3416_v52 = vmul.f32 %v1091_v54, %v1091_v54  ;;  %v1955_v55 = vmax.f32 %v1954_v42, %v1091_v54 }
 0x14f   : > { %3740 = vst [vmem:[#allocation36_spill] sm:$0xff] %v3414_v51  ;;  %v2120_v50 = vmin.f32 %v2119_v57, %v1091_v54  ;;  %v3420_v21 = vadd.f32 %v3252_v30, %v2972_v12  ;;  %v3424_v0 = vadd.f32 %v3264_v24, %v2974_v13  ;;  %v3428_v61 = vadd.f32 %v3298_v58, %v2966_v5 }
 0x150   : > { %3741 = vst [vmem:[#allocation37_spill] sm:$0xff] %v3416_v52  ;;  %v3432_v49 = vadd.f32 %v3312_v56, %v2968_v6  ;;  %v3436_v46 = vadd.f32 %v3314_v29, %v2972_v12  ;;  %v3440_v30 = vadd.f32 %v3328_v35, %v2974_v13  ;;  %v2485_v63 = vpack.c.bf16 %v1018_v47, %v3366_v27 }
 0x151   : > { %3742 = vst [vmem:[#allocation38_spill] sm:$0xff] %v3420_v21  ;;  %3743 = vst [vmem:[#allocation39_spill] sm:$0xff] %v3424_v0  ;;  %v2501_v24 = vpack.c.bf16 %v1091_v54, %v3370_v45  ;;  %v1942_v11 = vmax.f32 %v1941_v36, %v3420_v21  ;;  %v2107_v58 = vmin.f32 %v2106_v20, %v3420_v21 }
 0x152   : > { %v1968_v42 = vmax.f32 %v1967_v10, %v3424_v0  ;;  %v2133_v56 = vmin.f32 %v2132_v16, %v3424_v0  ;;  %v3450_v29 = vmul.f32 %v3428_v61, %v3428_v61  ;;  %v1930_v57 = vmax.f32 %v1929_v23, %v3428_v61 }
 0x153   : > { %v2095_v35 = vmin.f32 %v2094_v22, %v3428_v61  ;;  %v3456_v27 = vmul.f32 %v3432_v49, %v3432_v49  ;;  %v1956_v45 = vmax.f32 %v1955_v55, %v3432_v49  ;;  %v2121_v36 = vmin.f32 %v2120_v50, %v3432_v49 }
 0x154   : > { %3744 = vst [vmem:[#allocation40_spill] sm:$0xff] %v3450_v29  ;;  %v2483_v10 = vpack.c.bf16 %v3420_v21, %v3398_v19  ;;  %v2499_v3 = vpack.c.bf16 %v3424_v0, %v3402_v34  ;;  %v1943_v14 = vmax.f32 %v1942_v11, %v3436_v46  ;;  %v2108_v48 = vmin.f32 %v2107_v58, %v3436_v46 }
 0x155   : > { %3745 = vst [vmem:[#allocation41_spill] sm:$0xff] %v3456_v27  ;;  %v1969_v47 = vmax.f32 %v1968_v42, %v3440_v30  ;;  %v2134_v54 = vmin.f32 %v2133_v56, %v3440_v30  ;;  %v3470_v20 = vadd.f32 %v3330_v9, %v2966_v5  ;;  %v3474_v16 = vadd.f32 %v3340_v25, %v2968_v6 }
 0x156   : > { %2484 = vmatprep.subr.bf16.mxu0 %v2483_v10  ;;  %2500 = vmatprep.subr.bf16.mxu1 %v2499_v3  ;;  %v3478_v23 = vadd.f32 %v3342_v59, %v2972_v12  ;;  %v3482_v22 = vadd.f32 %v3348_v32, %v2974_v13 }
 0x157   : > { %2486 = vmatpush1.bf16.msra.mxu0 %v2485_v63  ;;  %2502 = vmatpush1.bf16.msra.mxu1 %v2501_v24  ;;  %v3490_v6 = vmul.f32 %v3470_v20, %v3470_v20  ;;  %v1931_v25 = vmax.f32 %v1930_v57, %v3470_v20  ;;  %v2096_v12 = vmin.f32 %v2095_v35, %v3470_v20 }
 0x158   : > { %v3496_v9 = vmul.f32 %v3474_v16, %v3474_v16  ;;  %v1957_v13 = vmax.f32 %v1956_v45, %v3474_v16  ;;  %v2122_v32 = vmin.f32 %v2121_v36, %v3474_v16  ;;  %v1944_v59 = vmax.f32 %v1943_v14, %v3478_v23 }
 0x159   : > { %3746 = vst [vmem:[#allocation42_spill] sm:$0xff] %v3490_v6  ;;  %v2109_v50 = vmin.f32 %v2108_v48, %v3478_v23  ;;  %v1932_v63 = vrot.slane %v1931_v25, 4  ;;  %v2097_v24 = vrot.slane %v2096_v12, 4  ;;  %v1970_v11 = vmax.f32 %v1969_v47, %v3482_v22 }
 0x15a   : > { %3747 = vst [vmem:[#allocation43_spill] sm:$0xff] %v3496_v9  ;;  %v2135_v58 = vmin.f32 %v2134_v54, %v3482_v22  ;;  %v1958_v42 = vrot.slane %v1957_v13, 4  ;;  %v2123_v56 = vrot.slane %v2122_v32, 4  ;;  %v1945_v57 = vrot.slane %v1944_v59, 4 }
 0x15b   : > { %v2110_v35 = vrot.slane %v2109_v50, 4  ;;  %v1933_v10 = vmax.f32 %v1931_v25, %v1932_v63  ;;  %v2098_v3 = vmin.f32 %v2096_v12, %v2097_v24  ;;  %v1971_v5 = vrot.slane %v1970_v11, 4 }
 0x15c   : > { %v2136_v45 = vrot.slane %v2135_v58, 4  ;;  %v1959_v55 = vmax.f32 %v1957_v13, %v1958_v42  ;;  %v2124_v36 = vmin.f32 %v2122_v32, %v2123_v56  ;;  %v1946_v9 = vmax.f32 %v1944_v59, %v1945_v57 }
 0x15d   : > { %v2111_v14 = vmin.f32 %v2109_v50, %v2110_v35  ;;  %v1934_v27 = vrot.slane %v1933_v10, 2  ;;  %v2099_v48 = vrot.slane %v2098_v3, 2  ;;  %v1972_v6 = vmax.f32 %v1970_v11, %v1971_v5 }
 0x15e   : > { %v2137_v29 = vmin.f32 %v2135_v58, %v2136_v45  ;;  %v1960_v52 = vrot.slane %v1959_v55, 2  ;;  %v2125_v47 = vrot.slane %v2124_v36, 2  ;;  %v1947_v51 = vrot.slane %v1946_v9, 2 }
 0x15f   : > { %v2112_v54 = vrot.slane %v2111_v14, 2  ;;  %v1935_v0 = vmax.f32 %v1933_v10, %v1934_v27  ;;  %v2100_v34 = vmin.f32 %v2098_v3, %v2099_v48  ;;  %v1973_v21 = vrot.slane %v1972_v6, 2 }
 0x160   : > { %v2138_v19 = vrot.slane %v2137_v29, 2  ;;  %v1961_v25 = vmax.f32 %v1959_v55, %v1960_v52  ;;  %v2126_v12 = vmin.f32 %v2124_v36, %v2125_v47  ;;  %v1948_v63 = vmax.f32 %v1946_v9, %v1947_v51 }
 0x161   : > { %v2113_v24 = vmin.f32 %v2111_v14, %v2112_v54  ;;  %v1936_v13 = vrot.slane %v1935_v0, 1  ;;  %v2101_v32 = vrot.slane %v2100_v34, 1  ;;  %v1974_v59 = vmax.f32 %v1972_v6, %v1973_v21 }
 0x162   : > { %v2139_v50 = vmin.f32 %v2137_v29, %v2138_v19  ;;  %v1962_v42 = vrot.slane %v1961_v25, 1  ;;  %v2127_v56 = vrot.slane %v2126_v12, 1  ;;  %v1949_v5 = vrot.slane %v1948_v63, 1 }
 0x163   : > { %v2114_v11 = vrot.slane %v2113_v24, 1  ;;  %v1937_v58 = vmax.f32 %v1935_v0, %v1936_v13  ;;  %v2102_v57 = vmin.f32 %v2100_v34, %v2101_v32  ;;  %v1975_v35 = vrot.slane %v1974_v59, 1 }
 0x164   : > { %v2140_v45 = vrot.slane %v2139_v50, 1  ;;  %v1963_v27 = vmax.f32 %v1961_v25, %v1962_v42  ;;  %v2128_v10 = vmin.f32 %v2126_v12, %v2127_v56  ;;  %v1950_v3 = vmax.f32 %v1948_v63, %v1949_v5  ;;  %v3750_v25 = vld [vmem:[#allocation8_spill] sm:$0xff]  ;;  %v3751_v12 = vld [vmem:[#allocation7_spill] sm:$0xff] }
 0x165   : > { %v2115_v48 = vmin.f32 %v2113_v24, %v2114_v11  ;;  %v1976_v52 = vmax.f32 %v1974_v59, %v1975_v35  ;;  %v2487_v51 = vpack.c.bf16 %v3478_v23, %v3436_v46  ;;  %v2503_v19 = vpack.c.bf16 %v3482_v22, %v3440_v30  ;;  %v3754_v24 = vld [vmem:[#allocation10_spill] sm:$0xff]  ;;  %v3756_v59 = vld [vmem:[#allocation9_spill] sm:$0xff]  ;;  %v3758_v56 = vld [vmem:[#allocation11_spill] sm:$0xff] }
 0x166   : > { %v2141_v55 = vmin.f32 %v2139_v50, %v2140_v45  ;;  %v1987_v21 = vcombine.low %v1937_v58, %v1950_v3  ;;  %v2489_v0 = vpack.c.bf16 %v3470_v20, %v3428_v61  ;;  %v2505_v34 = vpack.c.bf16 %v3474_v16, %v3432_v49  ;;  %v3748_v20 = vld [vmem:[#allocation4_spill] sm:$0xff]  ;;  %v3761_v45 = vld [vmem:[#allocation5_spill] sm:$0xff]  ;;  %v3764_v3 = vld [vmem:[#allocation6_spill] sm:$0xff] }
 0x167   : > { %v2152_v29 = vcombine.low %v2102_v57, %v2115_v48  ;;  %v1988_v6 = vcombine.low %v1963_v27, %v1976_v52  ;;  %2488 = vmatprep.subr.bf16.mxu0 %v2487_v51  ;;  %2504 = vmatprep.subr.bf16.mxu1 %v2503_v19  ;;  %v2529_v36 = vpack.c.bf16 %v3042_v26, %v3023_v62  ;;  %v3753_v26 = vld [vmem:[#allocation12_spill] sm:$0xff]  ;;  %v3760_v57 = vmov 1.0   ;;  %v3762_v27 = vld [vmem:[#allocation2_spill] sm:$0xff]  ;;  %v3765_v48 = vld [vmem:[#allocation3_spill] sm:$0xff] }
 0x168   : > { %v2153_v9 = vcombine.low %v2128_v10, %v2141_v55  ;;  %v2009_v14 = vrot.slane %v1987_v21, %v2980_v18  ;;  %2490 = vmatpush1.bf16.msra.mxu0 %v2489_v0  ;;  %2506 = vmatpush1.bf16.msra.mxu1 %v2505_v34  ;;  %v1497_v54 = vmul.f32 %v3056_v41, %v3056_v41  ;;  %v3755_v41 = vld [vmem:[#allocation13_spill] sm:$0xff]  ;;  %v3757_v50 = vld [vmem:[#allocation16_spill] sm:$0xff]  ;;  %v3767_v0 = vld [vmem:[#allocation15_spill] sm:$0xff] }
 0x169   : > { %v2174_v47 = vrot.slane %v2152_v29, %v2980_v18  ;;  %v2016_v61 = vrot.slane %v1988_v6, %v2980_v18  ;;  %v3749_v16 = vpack.c.bf16 %v2993_v40, %v3748_v20  ;;  %v3752_v62 = vpack.c.bf16 %v3750_v25, %v3751_v12  ;;  %v3759_v40 = vld [vmem:[#allocation17_spill] sm:$0xff]  ;;  %v3768_v34 = vld [vmem:[#allocation14_spill] sm:$0xff] }
 0x16a   : > { %v2181_v49 = vrot.slane %v2153_v9, %v2980_v18  ;;  %v1505_v63 = vmul.f32 %v3753_v26, %v3753_v26  ;;  %v1499_v13 = vmul.f32 %v3754_v24, %v3754_v24  ;;  %v1507_v32 = vmul.f32 %v3755_v41, %v3755_v41  ;;  %v3774_v20 = vld [vmem:[#allocation21_spill] sm:$0xff] }
 0x16b   : > { %2508 = vmatprep.subr.bf16.mxu0 %v3749_v16  ;;  %2524 = vmatprep.subr.bf16.mxu1 %v3752_v62  ;;  %v2517_v42 = vpack.c.bf16 %v3757_v50, %v3756_v59  ;;  %v2533_v5 = vpack.c.bf16 %v3759_v40, %v3758_v56  ;;  %v2018_v11 = vcombine.low %v2009_v14, %v2016_v61  ;;  %v3781_v59 = vld [vmem:[#allocation28_spill] sm:$0xff]  ;;  %v3782_v56 = vld [vmem:[#allocation23_spill] sm:$0xff]  ;;  %v3783_v40 = vld [vmem:[#allocation29_spill] sm:$0xff] }
 0x16c   : > { %v2183_v58 = vcombine.low %v2174_v47, %v2181_v49  ;;  %2412 = vmatmul.mubr.msk.f32.vlgmr.msra.gmra.mrb[34].mxu0 %vm1114_vm0, %v3760_v57  ;;  %2413 = vmatmul.mubr.msk.f32.vlgmr.msra.gmra.mrb[34].mxu1 %vm1114_vm0, %v3760_v57  ;;  %v2515_v35 = vpack.c.bf16 %v1505_v63, %v1497_v54  ;;  %v3763_v10 = vpack.c.bf16 %v3761_v45, %v3762_v27  ;;  %v3771_v47 = vld [vmem:[#allocation18_spill] sm:$0xff]  ;;  %v3772_v54 = vld [vmem:[#allocation20_spill] sm:$0xff]  ;;  %v3773_v49 = vld [vmem:[#allocation19_spill] sm:$0xff] }
 0x16d   : > { %v3766_v52 = vpack.c.bf16 %v3764_v3, %v3765_v48  ;;  %v2531_v55 = vpack.c.bf16 %v1507_v32, %v1499_v13  ;;  %v1513_v51 = vmul.f32 %v3113_v4, %v3113_v4  ;;  %v1521_v19 = vmul.f32 %v3143_v38, %v3143_v38  ;;  %1592 = vmatprep.mubr.f32.mxu0 %v3734_v43  ;;  %v3779_v63 = vld [vmem:[#allocation27_spill] sm:$0xff]  ;;  %v3780_v32 = vld [vmem:[#allocation22_spill] sm:$0xff] }
 0x16e   : > { %2510 = vmatpush1.bf16.msra.mxu0 %v3763_v10  ;;  %v2032_v21 = vrot.slane %v2018_v11, %v2980_v18  ;;  %v2197_v29 = vrot.slane %v2183_v58, %v2980_v18  ;;  %v3769_v6 = vpack.c.bf16 %v3767_v0, %v3768_v34  ;;  %v3770_v9 = vpack.c.bf16 %v3158_v8, %v3154_v37  ;;  %v3775_v8 = vld [vmem:[#allocation24_spill] sm:$0xff]  ;;  %v3785_v27 = vld [vmem:[#allocation31_spill] sm:$0xff]  ;;  %v3787_v48 = vld [vmem:[#allocation38_spill] sm:$0xff] }
 0x16f   : > { %2526 = vmatpush1.bf16.msra.mxu1 %v3766_v52  ;;  %v1515_v14 = vmul.f32 %v3116_v7, %v3116_v7  ;;  %v2519_v4 = vpack.c.bf16 %v1521_v19, %v1513_v51  ;;  %v1523_v38 = vmul.f32 %v3146_v39, %v3146_v39  ;;  %v2521_v61 = vpack.c.bf16 %v3772_v54, %v3771_v47  ;;  %v3776_v7 = vld [vmem:[#allocation26_spill] sm:$0xff]  ;;  %v3791_v19 = vld [vmem:[#allocation36_spill] sm:$0xff] }
 0x170   : > { %2512 = vmatprep.subr.bf16.mxu0 %v3769_v6  ;;  %2528 = vmatprep.subr.bf16.mxu1 %v3770_v9  ;;  %v2537_v16 = vpack.c.bf16 %v3774_v20, %v3773_v49  ;;  %v2033_v25 = vcombine.low %v3281_v33, %v2032_v21  ;;  %v2198_v37 = vcombine.low %v3284_v60, %v2197_v29  ;;  %v3778_v60 = vld [vmem:[#allocation25_spill] sm:$0xff]  ;;  %v3795_v47 = vld [vmem:[#allocation42_spill] sm:$0xff]  ;;  %v3797_v20 = vld [vmem:[#allocation43_spill] sm:$0xff] }
 0x171   : > { %v1469_v12 = vmul.f32 %v3775_v8, %v3775_v8  ;;  %v1477_v62 = vmul.f32 %v3776_v7, %v3776_v7  ;;  %1663 = vmatprep.mubr.f32.mxu1 %v3734_v43  ;;  %v3777_v39 = vpack.c.bf16 %v3039_v17, %v3014_v53  ;;  %v2535_v33 = vpack.c.bf16 %v1523_v38, %v1515_v14  ;;  %v3792_v21 = vld [vmem:[#allocation33_spill] sm:$0xff]  ;;  %v3794_v38 = vld [vmem:[#allocation40_spill] sm:$0xff] }
 0x172   : > { %v1471_v26 = vmul.f32 %v3778_v60, %v3778_v60  ;;  %v1479_v24 = vmul.f32 %v3779_v63, %v3779_v63  ;;  %v2541_v50 = vpack.c.bf16 %v3781_v59, %v3780_v32  ;;  %v2557_v11 = vpack.c.bf16 %v3783_v40, %v3782_v56  ;;  %2036 = vst [vmem:[%s323_s15] sm:$0xff] %v2033_v25  ;;  %v3793_v29 = vld [vmem:[#allocation37_spill] sm:$0xff]  ;;  %v1113_v59 = vld [vmem:[%s3642_s23] ss:$2 sm:$0xff] }
 0x173   : > { %2514 = vmatpush1.bf16.msra.mxu0 %v3777_v39  ;;  %2530 = vmatpush1.bf16.msra.mxu1 %v2529_v36  ;;  %v2539_v13 = vpack.c.bf16 %v1477_v62, %v1469_v12  ;;  %v1485_v53 = vmul.f32 %v3322_v1, %v3322_v1  ;;  %2201 = vst [vmem:[%s327_s18] sm:$0xff] %v2198_v37  ;;  %v3786_v1 = vld [vmem:[#allocation34_spill] sm:$0xff]  ;;  %v3796_v49 = vld [vmem:[#allocation41_spill] sm:$0xff] }
 0x174   : > { %2516 = vmatprep.subr.bf16.mxu0 %v2515_v35  ;;  %2532 = vmatprep.subr.bf16.mxu1 %v2531_v55  ;;  %v2555_v41 = vpack.c.bf16 %v1479_v24, %v1471_v26  ;;  %v1493_v17 = vmul.f32 %v3358_v28, %v3358_v28  ;;  %v1487_v36 = vmul.f32 %v3326_v2, %v3326_v2  ;;  %v3784_v35 = vld [vmem:[#allocation30_spill] sm:$0xff]  ;;  %v3788_v55 = vld [vmem:[#allocation35_spill] sm:$0xff] }
 0x175   : > { %v1495_v58 = vmul.f32 %v3362_v44, %v3362_v44  ;;  %v2545_v45 = vpack.c.bf16 %v3372_v31, %v3784_v35  ;;  %v2561_v10 = vpack.c.bf16 %v3374_v15, %v3785_v27  ;;  %v1501_v3 = vmul.f32 %v3786_v1, %v3786_v1  ;;  %v3789_v31 = vld [vmem:[#allocation39_spill] sm:$0xff] }
 0x176   : > { %v1509_v28 = vmul.f32 %v3787_v48, %v3787_v48  ;;  %v2543_v2 = vpack.c.bf16 %v1493_v17, %v1485_v53  ;;  %v1503_v44 = vmul.f32 %v3788_v55, %v3788_v55  ;;  %v2565_v0 = vpack.c.bf16 %v3793_v29, %v3792_v21 }
 0x177   : > { %2518 = vmatpush1.bf16.msra.mxu0 %v2517_v42  ;;  %2534 = vmatpush1.bf16.msra.mxu1 %v2533_v5  ;;  %v2559_v52 = vpack.c.bf16 %v1495_v58, %v1487_v36  ;;  %v1511_v42 = vmul.f32 %v3789_v31, %v3789_v31  ;;  %v3790_v5 = vld [vmem:[#allocation32_spill] sm:$0xff]  ;;  %v1517_v34 = vmul.f32 %v3436_v46, %v3436_v46 }
 0x178   : > { %2520 = vmatprep.subr.bf16.mxu0 %v2519_v4  ;;  %2536 = vmatprep.subr.bf16.mxu1 %v2535_v33  ;;  %v2547_v51 = vpack.c.bf16 %v1509_v28, %v1501_v3  ;;  %v2549_v15 = vpack.c.bf16 %v3791_v19, %v3790_v5  ;;  %v1525_v6 = vmul.f32 %v3478_v23, %v3478_v23 }
 0x179   : > { %v1519_v9 = vmul.f32 %v3440_v30, %v3440_v30  ;;  %v1527_v14 = vmul.f32 %v3482_v22, %v3482_v22  ;;  %v2563_v4 = vpack.c.bf16 %v1511_v42, %v1503_v44  ;;  %v2553_v54 = vpack.c.bf16 %v3795_v47, %v3794_v38  ;;  %v2414_v42 = vld [vmem:[%s3642_s23 + $0x1] ss:$2 sm:$0xff] }
 0x17a   : > { %v2569_v25 = vpack.c.bf16 %v3797_v20, %v3796_v49  ;;  %v2551_v46 = vpack.c.bf16 %v1525_v6, %v1517_v34 }
 0x17b   : > { %2522 = vmatpush1.bf16.msra.mxu0 %v2521_v61  ;;  %2538 = vmatpush1.bf16.msra.mxu1 %v2537_v16  ;;  %v2567_v37 = vpack.c.bf16 %v1527_v14, %v1519_v9 }
 0x17c   : > { %2540 = vmatprep.subr.bf16.mxu0 %v2539_v13  ;;  %2556 = vmatprep.subr.bf16.mxu1 %v2555_v41 }
 0x17e   : > { %2415 = vmatmul.mubr.msk.f32.vlgmr.msra.gmra.mrb[36].mxu0 %vm1114_vm0, %v3760_v57  ;;  %2416 = vmatmul.mubr.msk.f32.vlgmr.msra.gmra.mrb[36].mxu1 %vm1114_vm0, %v3760_v57 }
 0x17f   : > { %2542 = vmatpush1.bf16.msra.mxu0 %v2541_v50  ;;  %2558 = vmatpush1.bf16.msra.mxu1 %v2557_v11 }
 0x180   : > { %2544 = vmatprep.subr.bf16.mxu0 %v2543_v2  ;;  %2560 = vmatprep.subr.bf16.mxu1 %v2559_v52 }
 0x181   : > { %1734 = vmatprep.mubr.f32.mxu0 %v3734_v43  ;;  %1805 = vmatprep.mubr.f32.mxu1 %v3734_v43 }
 0x183   : > { %2546 = vmatpush1.bf16.msra.mxu0 %v2545_v45  ;;  %2562 = vmatpush1.bf16.msra.mxu1 %v2561_v10 }
 0x184   : > { %2548 = vmatprep.subr.bf16.mxu0 %v2547_v51  ;;  %2564 = vmatprep.subr.bf16.mxu1 %v2563_v4 }
 0x187   : > { %2550 = vmatpush1.bf16.msra.mxu0 %v2549_v15  ;;  %2566 = vmatpush1.bf16.msra.mxu1 %v2565_v0 }
 0x188   : > { %2552 = vmatprep.subr.bf16.mxu0 %v2551_v46  ;;  %2568 = vmatprep.subr.bf16.mxu1 %v2567_v37 }
 0x18b   : > { %2554 = vmatpush1.bf16.msra.mxu0 %v2553_v54  ;;  %2570 = vmatpush1.bf16.msra.mxu1 %v2569_v25 }
 0x18e   : > { %2417 = vmatmul.mubr.msk.f32.vlgmr.msra.gmra.mrb[38].mxu0 %vm1114_vm0, %v3760_v57  ;;  %2418 = vmatmul.mubr.msk.f32.vlgmr.msra.gmra.mrb[38].mxu1 %vm1114_vm0, %v3760_v57 }
 0x212   : > { %v1184_v30 = vpop.f32.mrb[32].mxu0 }
 0x213   : > { %v1255_v23 = vpop.f32.mrb[32].mxu1  ;;  %v1186_v22 = vpop.f32.mrb[33].mxu0 }
 0x214   : > { %v1410_v61 = vcombine.low %v1184_v30, %v1186_v22  ;;  %v1257_v16 = vpop.f32.mrb[33].mxu1 }
 0x215   : > { %v1411_v8 = vcombine.low %v1255_v23, %v1257_v16 }
 0x216   : > { %v1420_v57 = vrot.slane %v1410_v61, %v2980_v18 }
 0x217   : > { %v1427_v12 = vrot.slane %v1411_v8, %v2980_v18 }
 0x219   : > { %v1442_v7 = vcombine.low %v1420_v57, %v1427_v12 }
 0x21b   : > { %v1450_v41 = vrot.slane %v1442_v7, %v2980_v18 }
 0x23f   : > { %v1326_v62 = vpop.f32.mrb[34].mxu0  ;;  %v1397_v39 = vpop.f32.mrb[34].mxu1 }
 0x240   : > { %v1328_v33 = vpop.f32.mrb[35].mxu0  ;;  %v1399_v60 = vpop.f32.mrb[35].mxu1 }
 0x241   : > { %v1412_v26 = vcombine.low %v1326_v62, %v1328_v33  ;;  %v1413_v63 = vcombine.low %v1397_v39, %v1399_v60 }
 0x243   : > { %v1434_v43 = vrot.slane %v1412_v26, %v2980_v18  ;;  %v1441_v24 = vrot.slane %v1413_v63, %v2980_v18 }
 0x245   : > { %v1443_v13 = vcombine.low %v1434_v43, %v1441_v24 }
 0x247   : > { %v1457_v32 = vrot.slane %v1443_v13, %v2980_v18 }
 0x249   : > { %v1458_v50 = vcombine.low %v1450_v41, %v1457_v32 }
 0x24b   : > { %v1460_v56 = vadd.f32 %v1458_v50, %v1113_v59 }
 0x24d   : > { %1461 = vst [vmem:[%s3642_s23] ss:$2 sm:$0xff] %v1460_v56 }
 0x251   : > { %v1594_v40 = vpop.f32.mrb[36].mxu0  ;;  %v1665_v11 = vpop.f32.mrb[36].mxu1 }
 0x252   : > { %v1596_v53 = vpop.f32.mrb[37].mxu0  ;;  %v1667_v17 = vpop.f32.mrb[37].mxu1 }
 0x253   : > { %v1820_v36 = vcombine.low %v1594_v40, %v1596_v53  ;;  %v1821_v58 = vcombine.low %v1665_v11, %v1667_v17 }
 0x255   : > { %v1830_v35 = vrot.slane %v1820_v36, %v2980_v18  ;;  %v1837_v45 = vrot.slane %v1821_v58, %v2980_v18 }
 0x257   : > { %v1852_v27 = vcombine.low %v1830_v35, %v1837_v45 }
 0x259   : > { %v1860_v51 = vrot.slane %v1852_v27, %v2980_v18 }
 0x261   : > { %v1736_v10 = vpop.f32.mrb[38].mxu0  ;;  %v1807_v1 = vpop.f32.mrb[38].mxu1 }
 0x262   : > { %v1738_v3 = vpop.f32.mrb[39].mxu0  ;;  %v1809_v48 = vpop.f32.mrb[39].mxu1 }
 0x263   : > { %v1822_v28 = vcombine.low %v1736_v10, %v1738_v3  ;;  %v1823_v2 = vcombine.low %v1807_v1, %v1809_v48 }
 0x265   : > { %v1844_v52 = vrot.slane %v1822_v28, %v2980_v18  ;;  %v1851_v55 = vrot.slane %v1823_v2, %v2980_v18 }
 0x267   : > { %v1853_v44 = vcombine.low %v1844_v52, %v1851_v55 }
 0x269   : > { %v1867_v31 = vrot.slane %v1853_v44, %v2980_v18 }
 0x26b   : > { %v1868_v5 = vcombine.low %v1860_v51, %v1867_v31 }
 0x26d   : > { %v1870_v19 = vadd.f32 %v2414_v42, %v1868_v5 }
 0x26f   : > { %2419 = vst [vmem:[%s3642_s23 + $0x1] ss:$2 sm:$0xff] %v1870_v19 }
 0x270 PF: > { %s18_s26 = sadd.s32 1, %s2623_s26   ;;  %s3798_s24 = smov %s2619_s25 }
 0x271   : > { %p15_p5 = scmp.ge.s32.totalorder %s18_s26, 4   ;;  %s3799_s25 = smov %s3801_s27 }
 0x273   :  { %17 = sbr.rel (!%p15_p5) target bundleno = 2 (0x2), region = 99 }

</bundles_post_ra>
